<compile_context>
chip_gen: v7x
topology: tpu7x:2x2x1
jax: 0.10.0
libtpu: 0.0.40
codegen_flags: <defaults>
</compile_context>

<pallas_src>
import jax
import jax.numpy as jnp
from jax.experimental import pallas as pl
from jax.experimental.pallas import tpu as pltpu

TARGET_DIM = 128 * 65          # 8320, hardcoded in the PyTorch module
IN_DIM = TARGET_DIM + 1        # 8321 (condition_time=True appends one column)
H1 = 1024
H2 = 512
TILE = 1664                    # 8320 / 5; multiple of 128 (lane dim)

WEIGHT_DTYPE = jnp.bfloat16    # streamed matmul weights (f32 accumulation)


# ----------------------------- Pallas kernel -------------------------------

def _make_fused_kernel(n_k):
    """Two-phase kernel: steps [0,n_k) build h = mlp2(SiLU(x@W1+b1_eff));
    steps [n_k, n_k+n_j) emit err = x - (h @ W4_tile + b4_tile)."""

    def kernel(x_ref, ht_ref, w1_ref, w1t_ref, b1_ref,
               w2_ref, b2_ref, w3_ref, b3_ref, w4_ref, b4_ref,
               o_ref, h_ref):
        i = pl.program_id(0)

        # ---------------- Phase 1: layer 1 (K-reduction) + fused mlp2 -------
        @pl.when(i < n_k)
        def _layer1_step():
            # Fold the "+1 time column" analytically into the init value:
            #   concat([x, t]) @ W1 + b1 == x @ W1[:8320] + (t * W1[8320] + b1)
            @pl.when(i == 0)
            def _init():
                h_ref[...] = ht_ref[...] * w1t_ref[...] + b1_ref[...]

            h_ref[...] += jnp.dot(
                x_ref[...].astype(w1_ref.dtype), w1_ref[...],
                preferred_element_type=jnp.float32)

            # Finalize: SiLU, then mlp2 (1024 -> 512 -> SiLU -> 1024), all on
            # the resident (M, 1024) f32 scratch using VMEM-resident W2/W3.
            @pl.when(i == n_k - 1)
            def _finalize_mlp2():
                h = h_ref[...]
                h = h * jax.nn.sigmoid(h)
                z = jnp.dot(h.astype(w2_ref.dtype), w2_ref[...],
                            preferred_element_type=jnp.float32) + b2_ref[...]
                z = z * jax.nn.sigmoid(z)
                h_ref[...] = jnp.dot(
                    z.astype(w3_ref.dtype), w3_ref[...],
                    preferred_element_type=jnp.float32) + b3_ref[...]

        # ---------------- Phase 2: output layer + residual ------------------
        @pl.when(i >= n_k)
        def _out_step():
            y = jnp.dot(h_ref[...].astype(w4_ref.dtype), w4_ref[...],
                        preferred_element_type=jnp.float32) + b4_ref[...]
            # x_ref here is the same (M, TILE) block shape, re-indexed to the
            # output-column tile (valid because 8320 == TARGET_DIM on both
            # the input-feature and output-feature axes).
            o_ref[...] = (x_ref[...] - y).astype(o_ref.dtype)

    return kernel


# ------------------------------ JAX wrapper ---------------------------------

def dynamics_fused_call(x, h_time, params, *, tile=TILE):
    """x: (M, 8320) f32, h_time: (M, 1) f32, weights per init_params."""
    M, K = x.shape
    assert K == TARGET_DIM
    assert TARGET_DIM % tile == 0 and tile % 128 == 0
    n_k = K // tile                 # layer-1 reduction tiles (5)
    n_j = TARGET_DIM // tile        # output-column tiles (5)
    last_k = n_k - 1

    w4_tiled = params["w4"]
    assert w4_tiled.shape == (n_j, H1, tile)

    kernel = _make_fused_kernel(n_k)

    cost = pl.CostEstimate(
        flops=2 * M * (K * H1 + H1 * H2 + H2 * H1 + H1 * TARGET_DIM),
        transcendentals=M * (H1 + H2),
        bytes_accessed=((K * H1 + 2 * H1 * H2 + H1 * TARGET_DIM)
                        * jnp.dtype(WEIGHT_DTYPE).itemsize
                        + (2 * M * K + M * TARGET_DIM) * 4
                        + (3 * H1 + H2 + TARGET_DIM + M) * 4))

    # Scoped-VMEM limit from the actual footprint (+ headroom); stays well
    # inside v7x's 64 MiB per-TC VMEM and is trivial on v5e/v6e.
    wb = jnp.dtype(WEIGHT_DTYPE).itemsize
    vmem_bytes = (
        2 * tile * H1 * wb            # W1 tile, double-buffered
        + 2 * H1 * tile * wb          # W4 tile, double-buffered
        + 2 * 2 * H1 * H2 * wb        # W2 + W3 resident (double-buffer bound)
        + 4 * M * tile * 4            # x + out tiles, double-buffered
        + M * H1 * 4                  # h scratch
        + 16 * 8 * max(H1, tile) * 4) # small (1,N) biases, sublane-padded
    vmem_limit = min(int(vmem_bytes) + (12 << 20), 48 << 20)

    # NOTE: at bs=2 full-M blocks are fine; if batch grows, add an M grid axis
    # (multiples of 8/16 rows) and re-derive vmem_limit.
    return pl.pallas_call(
        kernel,
        out_shape=jax.ShapeDtypeStruct((M, TARGET_DIM), x.dtype),
        grid=(n_k + n_j,),
        in_specs=[
            # x: activation tile in phase 1, residual tile in phase 2.
            pl.BlockSpec((M, tile),
                         lambda i: (0, jnp.where(i < n_k, i, i - n_k))),
            pl.BlockSpec((M, 1), lambda i: (0, 0)),          # time column
            # W1 main (8320, 1024): contiguous (tile, 1024) slabs; clamps to
            # the last slab during phase 2 (no re-DMA since index is constant).
            pl.BlockSpec((tile, H1), lambda i: (jnp.minimum(i, last_k), 0)),
            pl.BlockSpec((1, H1), lambda i: (0, 0)),         # W1 time row
            pl.BlockSpec((1, H1), lambda i: (0, 0)),         # b1
            pl.BlockSpec((H1, H2), lambda i: (0, 0)),        # W2 (resident)
            pl.BlockSpec((1, H2), lambda i: (0, 0)),         # b2
            pl.BlockSpec((H2, H1), lambda i: (0, 0)),        # W3 (resident)
            pl.BlockSpec((1, H1), lambda i: (0, 0)),         # b3
            # W4 pre-tiled (n_j, 1024, tile): one contiguous slab per step.
            pl.BlockSpec((None, H1, tile),
                         lambda i: (jnp.maximum(i - n_k, 0), 0, 0)),
            pl.BlockSpec((1, tile),
                         lambda i: (0, jnp.maximum(i - n_k, 0))),  # b4
        ],
        out_specs=pl.BlockSpec((M, tile),
                               lambda i: (0, jnp.maximum(i - n_k, 0))),
        scratch_shapes=[pltpu.VMEM((M, H1), jnp.float32)],   # persistent h
        compiler_params=pltpu.CompilerParams(
            dimension_semantics=("arbitrary",),
            vmem_limit_bytes=vmem_limit),
        cost_estimate=cost,
    )(x, h_time,
      params["w1_main"], params["w1_time"], params["b1"],
      params["w2"], params["b2"], params["w3"], params["b3"],
      w4_tiled, params["b4"])


def _time_column(x, t, bs):
    """Mirrors the torch h_time construction."""
    t = jnp.asarray(t)
    if t.size == 1:
        # torch: torch.empty_like(x[:, 0:1]).fill_(t.item())
        return jnp.broadcast_to(jnp.reshape(t, (1, 1)).astype(x.dtype), (bs, 1))
    # torch: t.view(bs, 1)
    return jnp.reshape(t, (bs, 1)).astype(x.dtype)


def dynamics_nocond_forward(params, x, t, batch):
    """Mirrors Dynamics_nocond.forward with condition_time=True."""
    bs = batch
    h_time = _time_column(x, t, bs)              # (bs, 1)
    return dynamics_fused_call(x, h_time, params)


def init_params(key):
    """Init matching torch.nn.Linear's U(-1/sqrt(fan_in), +1/sqrt(fan_in)).

    Big matmul weights are stored in bf16 (the model is weight-bandwidth
    bound); biases and the single time-column row stay f32.  W4 is stored
    pre-tiled (n_j, 1024, TILE) so every grid step DMAs a contiguous slab.
    """
    def linear(key, fan_in, fan_out):
        kw, kb = jax.random.split(key)
        bound = 1.0 / (fan_in ** 0.5)
        w = jax.random.uniform(kw, (fan_in, fan_out), jnp.float32, -bound, bound)
        b = jax.random.uniform(kb, (fan_out,), jnp.float32, -bound, bound)
        return w, b

    k1, k2, k3, k4 = jax.random.split(key, 4)
    w1, b1 = linear(k1, IN_DIM, H1)        # self.mlp:   8321 -> 1024
    w2, b2 = linear(k2, H1, H2)            # mlp2[0]:    1024 -> 512
    w3, b3 = linear(k3, H2, H1)            # mlp2[2]:    512  -> 1024
    w4, b4 = linear(k4, H1, TARGET_DIM)    # self.out:   1024 -> 8320

    n_j = TARGET_DIM // TILE
    w4_tiled = w4.reshape(H1, n_j, TILE).transpose(1, 0, 2)   # (5, 1024, 1664)

    return dict(
        w1_main=w1[:TARGET_DIM].astype(WEIGHT_DTYPE),   # (8320, 1024) bf16
        w1_time=w1[TARGET_DIM:],                        # (1, 1024) f32
        b1=b1.reshape(1, H1),
        w2=w2.astype(WEIGHT_DTYPE), b2=b2.reshape(1, H2),
        w3=w3.astype(WEIGHT_DTYPE), b3=b3.reshape(1, H1),
        w4=w4_tiled.astype(WEIGHT_DTYPE),               # (5, 1024, 1664) bf16
        b4=b4.reshape(1, TARGET_DIM),
    )


def _reference_forward(params, x, t, batch):
    """Plain-JAX reference using the exact same (bf16-weight) math."""
    bs = batch
    h_time = _time_column(x, t, bs)
    n_j, _, tile = params["w4"].shape
    w4_full = params["w4"].transpose(1, 0, 2).reshape(H1, n_j * tile)

    b1_eff = h_time * params["w1_time"] + params["b1"]
    h = jnp.dot(x.astype(WEIGHT_DTYPE), params["w1_main"],
                preferred_element_type=jnp.float32) + b1_eff
    h = h * jax.nn.sigmoid(h)
    z = jnp.dot(h.astype(WEIGHT_DTYPE), params["w2"],
                preferred_element_type=jnp.float32) + params["b2"]
    z = z * jax.nn.sigmoid(z)
    h = jnp.dot(z.astype(WEIGHT_DTYPE), params["w3"],
                preferred_element_type=jnp.float32) + params["b3"]
    out = jnp.dot(h.astype(WEIGHT_DTYPE), w4_full,
                  preferred_element_type=jnp.float32) + params["b4"]
    return x - out


if __name__ == "__main__":
    bs = 2
    key = jax.random.PRNGKey(0)
    kp, kx = jax.random.split(key)

    params = init_params(kp)
    x = jax.random.normal(kx, (bs, TARGET_DIM), jnp.float32)   # noised target
    t = jnp.float32(0.5)                                       # scalar timestep

    fwd = jax.jit(dynamics_nocond_forward, static_argnums=(3,))
    err = fwd(params, x, t, bs)
    jax.block_until_ready(err)

    assert err.shape == (bs, TARGET_DIM) and err.dtype == jnp.float32

    # Sanity-check against a plain-JAX reference using identical precision.
    ref = jax.jit(_reference_forward, static_argnums=(3,))(params, x, t, bs)
    jax.block_until_ready(ref)
    max_diff = float(jnp.max(jnp.abs(err - ref)))
    assert max_diff < 5e-2, f"mismatch vs reference: {max_diff}"

    print("KERNEL_OK")
</pallas_src>

<mosaic_0001>
module attributes {stable_mosaic.version = 11 : i64} {
  func.func @kernel(%arg0: i32, %arg1: memref<2x1664xf32, #tpu.memory_space<vmem>>, %arg2: memref<2x1xf32, #tpu.memory_space<vmem>>, %arg3: memref<1664x1024xbf16, #tpu.memory_space<vmem>>, %arg4: memref<1x1024xf32, #tpu.memory_space<vmem>>, %arg5: memref<1x1024xf32, #tpu.memory_space<vmem>>, %arg6: memref<1024x512xbf16, #tpu.memory_space<vmem>>, %arg7: memref<1x512xf32, #tpu.memory_space<vmem>>, %arg8: memref<512x1024xbf16, #tpu.memory_space<vmem>>, %arg9: memref<1x1024xf32, #tpu.memory_space<vmem>>, %arg10: memref<1x1024x1664xbf16, #tpu.memory_space<vmem>>, %arg11: memref<1x1664xf32, #tpu.memory_space<vmem>>, %arg12: memref<2x1664xf32, #tpu.memory_space<vmem>>, %arg13: memref<2x1024xf32, #tpu.memory_space<vmem>>) attributes {dimension_semantics = [#tpu.dimension_semantics<arbitrary>], iteration_bounds = array<i64: 10>, scalar_prefetch = 0 : i64, scratch_operands = 1 : i64, tpu.core_type = #tpu.core_type<tc>, window_params = [{transform_indices = @transform_0, window_bounds = array<i64: 2, 1664>}, {pipeline_mode = #tpu.pipeline_mode<synchronous>, transform_indices = @transform_1, window_bounds = array<i64: 2, 1>}, {transform_indices = @transform_2, window_bounds = array<i64: 1664, 1024>}, {pipeline_mode = #tpu.pipeline_mode<synchronous>, transform_indices = @transform_3, window_bounds = array<i64: 1, 1024>}, {pipeline_mode = #tpu.pipeline_mode<synchronous>, transform_indices = @transform_4, window_bounds = array<i64: 1, 1024>}, {pipeline_mode = #tpu.pipeline_mode<synchronous>, transform_indices = @transform_5, window_bounds = array<i64: 1024, 512>}, {pipeline_mode = #tpu.pipeline_mode<synchronous>, transform_indices = @transform_6, window_bounds = array<i64: 1, 512>}, {pipeline_mode = #tpu.pipeline_mode<synchronous>, transform_indices = @transform_7, window_bounds = array<i64: 512, 1024>}, {pipeline_mode = #tpu.pipeline_mode<synchronous>, transform_indices = @transform_8, window_bounds = array<i64: 1, 1024>}, {transform_indices = @transform_9, window_bounds = array<i64: 1, 1024, 1664>}, {transform_indices = @transform_10, window_bounds = array<i64: 1, 1664>}, {transform_indices = @transform_11, window_bounds = array<i64: 2, 1664>}]} {
    %c5_i32 = arith.constant 5 : i32
    %0 = arith.cmpi slt, %arg0, %c5_i32 : i32
    %1 = arith.extui %0 : i1 to i32
    %c0_i32 = arith.constant 0 : i32
    %2 = arith.cmpi ne, %1, %c0_i32 : i32
    scf.if %2 {
      %c0_i32_2 = arith.constant 0 : i32
      %6 = arith.cmpi eq, %arg0, %c0_i32_2 : i32
      %7 = arith.extui %6 : i1 to i32
      %c0_i32_3 = arith.constant 0 : i32
      %8 = arith.cmpi ne, %7, %c0_i32_3 : i32
      scf.if %8 {
        %c0_12 = arith.constant 0 : index
        %c0_13 = arith.constant 0 : index
        %19 = vector.load %arg2[%c0_12, %c0_13] : memref<2x1xf32, #tpu.memory_space<vmem>>, vector<2x1xf32>
        %c0_14 = arith.constant 0 : index
        %c0_15 = arith.constant 0 : index
        %20 = vector.load %arg4[%c0_14, %c0_15] : memref<1x1024xf32, #tpu.memory_space<vmem>>, vector<1x1024xf32>
        %21 = vector.broadcast %19 : vector<2x1xf32> to vector<2x1024xf32>
        %22 = vector.broadcast %20 : vector<1x1024xf32> to vector<2x1024xf32>
        %23 = arith.mulf %21, %22 : vector<2x1024xf32>
        %c0_16 = arith.constant 0 : index
        %c0_17 = arith.constant 0 : index
        %24 = vector.load %arg5[%c0_16, %c0_17] : memref<1x1024xf32, #tpu.memory_space<vmem>>, vector<1x1024xf32>
        %25 = vector.broadcast %24 : vector<1x1024xf32> to vector<2x1024xf32>
        %26 = arith.addf %23, %25 : vector<2x1024xf32>
        %c0_18 = arith.constant 0 : index
        %c0_19 = arith.constant 0 : index
        %27 = vector.load %arg13[%c0_18, %c0_19] : memref<2x1024xf32, #tpu.memory_space<vmem>>, vector<2x1024xf32>
        tpu.vector_store %arg13[%c0_18, %c0_19], %26 {strides = array<i32>} : memref<2x1024xf32, #tpu.memory_space<vmem>>, vector<2x1024xf32>,
      } else {
      }
      %c0 = arith.constant 0 : index
      %c0_4 = arith.constant 0 : index
      %9 = vector.load %arg13[%c0, %c0_4] : memref<2x1024xf32, #tpu.memory_space<vmem>>, vector<2x1024xf32>
      %c0_5 = arith.constant 0 : index
      %c0_6 = arith.constant 0 : index
      %10 = vector.load %arg1[%c0_5, %c0_6] : memref<2x1664xf32, #tpu.memory_space<vmem>>, vector<2x1664xf32>
      %11 = arith.truncf %10 : vector<2x1664xf32> to vector<2x1664xbf16>
      %c0_7 = arith.constant 0 : index
      %c0_8 = arith.constant 0 : index
      %12 = vector.load %arg3[%c0_7, %c0_8] : memref<1664x1024xbf16, #tpu.memory_space<vmem>>, vector<1664x1024xbf16>
      %cst = arith.constant dense<0.000000e+00> : vector<2x1024xf32>
      %13 = tpu.matmul %11, %12, %cst {dimension_numbers = #tpu.dot_dimension_numbers<[1], [0], [0], [1], [0, 0, 1, 1], [], []>} : vector<2x1664xbf16>, vector<1664x1024xbf16>, vector<2x1024xf32> -> vector<2x1024xf32>
      %14 = arith.addf %9, %13 : vector<2x1024xf32>
      %c0_9 = arith.constant 0 : index
      %c0_10 = arith.constant 0 : index
      %15 = vector.load %arg13[%c0_9, %c0_10] : memref<2x1024xf32, #tpu.memory_space<vmem>>, vector<2x1024xf32>
      tpu.vector_store %arg13[%c0_9, %c0_10], %14 {strides = array<i32>} : memref<2x1024xf32, #tpu.memory_space<vmem>>, vector<2x1024xf32>,
      %c4_i32 = arith.constant 4 : i32
      %16 = arith.cmpi eq, %arg0, %c4_i32 : i32
      %17 = arith.extui %16 : i1 to i32
      %c0_i32_11 = arith.constant 0 : i32
      %18 = arith.cmpi ne, %17, %c0_i32_11 : i32
      scf.if %18 {
        %c0_12 = arith.constant 0 : index
        %c0_13 = arith.constant 0 : index
        %19 = vector.load %arg13[%c0_12, %c0_13] : memref<2x1024xf32, #tpu.memory_space<vmem>>, vector<2x1024xf32>
        %20 = arith.negf %19 : vector<2x1024xf32>
        %21 = math.exp %20 : vector<2x1024xf32>
        %cst_14 = arith.constant 1.000000e+00 : f32
        %22 = vector.broadcast %cst_14 : f32 to vector<2x1024xf32>
        %23 = arith.addf %22, %21 : vector<2x1024xf32>
        %24 = arith.divf %22, %23 : vector<2x1024xf32>
        %25 = arith.mulf %19, %24 : vector<2x1024xf32>
        %26 = arith.truncf %25 : vector<2x1024xf32> to vector<2x1024xbf16>
        %c0_15 = arith.constant 0 : index
        %c0_16 = arith.constant 0 : index
        %27 = vector.load %arg6[%c0_15, %c0_16] : memref<1024x512xbf16, #tpu.memory_space<vmem>>, vector<1024x512xbf16>
        %cst_17 = arith.constant dense<0.000000e+00> : vector<2x512xf32>
        %28 = tpu.matmul %26, %27, %cst_17 {dimension_numbers = #tpu.dot_dimension_numbers<[1], [0], [0], [1], [0, 0, 1, 1], [], []>} : vector<2x1024xbf16>, vector<1024x512xbf16>, vector<2x512xf32> -> vector<2x512xf32>
        %c0_18 = arith.constant 0 : index
        %c0_19 = arith.constant 0 : index
        %29 = vector.load %arg7[%c0_18, %c0_19] : memref<1x512xf32, #tpu.memory_space<vmem>>, vector<1x512xf32>
        %30 = vector.broadcast %29 : vector<1x512xf32> to vector<2x512xf32>
        %31 = arith.addf %28, %30 : vector<2x512xf32>
        %32 = arith.negf %31 : vector<2x512xf32>
        %33 = math.exp %32 : vector<2x512xf32>
        %cst_20 = arith.constant 1.000000e+00 : f32
        %34 = vector.broadcast %cst_20 : f32 to vector<2x512xf32>
        %35 = arith.addf %34, %33 : vector<2x512xf32>
        %36 = arith.divf %34, %35 : vector<2x512xf32>
        %37 = arith.mulf %31, %36 : vector<2x512xf32>
        %38 = arith.truncf %37 : vector<2x512xf32> to vector<2x512xbf16>
        %c0_21 = arith.constant 0 : index
        %c0_22 = arith.constant 0 : index
        %39 = vector.load %arg8[%c0_21, %c0_22] : memref<512x1024xbf16, #tpu.memory_space<vmem>>, vector<512x1024xbf16>
        %cst_23 = arith.constant dense<0.000000e+00> : vector<2x1024xf32>
        %40 = tpu.matmul %38, %39, %cst_23 {dimension_numbers = #tpu.dot_dimension_numbers<[1], [0], [0], [1], [0, 0, 1, 1], [], []>} : vector<2x512xbf16>, vector<512x1024xbf16>, vector<2x1024xf32> -> vector<2x1024xf32>
        %c0_24 = arith.constant 0 : index
        %c0_25 = arith.constant 0 : index
        %41 = vector.load %arg9[%c0_24, %c0_25] : memref<1x1024xf32, #tpu.memory_space<vmem>>, vector<1x1024xf32>
        %42 = vector.broadcast %41 : vector<1x1024xf32> to vector<2x1024xf32>
        %43 = arith.addf %40, %42 : vector<2x1024xf32>
        %c0_26 = arith.constant 0 : index
        %c0_27 = arith.constant 0 : index
        %44 = vector.load %arg13[%c0_26, %c0_27] : memref<2x1024xf32, #tpu.memory_space<vmem>>, vector<2x1024xf32>
        tpu.vector_store %arg13[%c0_26, %c0_27], %43 {strides = array<i32>} : memref<2x1024xf32, #tpu.memory_space<vmem>>, vector<2x1024xf32>,
      } else {
      }
    } else {
    }
    %c5_i32_0 = arith.constant 5 : i32
    %3 = arith.cmpi sge, %arg0, %c5_i32_0 : i32
    %4 = arith.extui %3 : i1 to i32
    %c0_i32_1 = arith.constant 0 : i32
    %5 = arith.cmpi ne, %4, %c0_i32_1 : i32
    scf.if %5 {
      %c0 = arith.constant 0 : index
      %c0_2 = arith.constant 0 : index
      %6 = vector.load %arg13[%c0, %c0_2] : memref<2x1024xf32, #tpu.memory_space<vmem>>, vector<2x1024xf32>
      %7 = arith.truncf %6 : vector<2x1024xf32> to vector<2x1024xbf16>
      %c0_3 = arith.constant 0 : index
      %c0_4 = arith.constant 0 : index
      %c0_5 = arith.constant 0 : index
      %8 = vector.load %arg10[%c0_3, %c0_4, %c0_5] : memref<1x1024x1664xbf16, #tpu.memory_space<vmem>>, vector<1x1024x1664xbf16>
      %9 = vector.shape_cast %8 : vector<1x1024x1664xbf16> to vector<1024x1664xbf16>
      %cst = arith.constant dense<0.000000e+00> : vector<2x1664xf32>
      %10 = tpu.matmul %7, %9, %cst {dimension_numbers = #tpu.dot_dimension_numbers<[1], [0], [0], [1], [0, 0, 1, 1], [], []>} : vector<2x1024xbf16>, vector<1024x1664xbf16>, vector<2x1664xf32> -> vector<2x1664xf32>
      %c0_6 = arith.constant 0 : index
      %c0_7 = arith.constant 0 : index
      %11 = vector.load %arg11[%c0_6, %c0_7] : memref<1x1664xf32, #tpu.memory_space<vmem>>, vector<1x1664xf32>
      %12 = vector.broadcast %11 : vector<1x1664xf32> to vector<2x1664xf32>
      %13 = arith.addf %10, %12 : vector<2x1664xf32>
      %c0_8 = arith.constant 0 : index
      %c0_9 = arith.constant 0 : index
      %14 = vector.load %arg1[%c0_8, %c0_9] : memref<2x1664xf32, #tpu.memory_space<vmem>>, vector<2x1664xf32>
      %15 = arith.subf %14, %13 : vector<2x1664xf32>
      %c0_10 = arith.constant 0 : index
      %c0_11 = arith.constant 0 : index
      %16 = vector.load %arg12[%c0_10, %c0_11] : memref<2x1664xf32, #tpu.memory_space<vmem>>, vector<2x1664xf32>
      tpu.vector_store %arg12[%c0_10, %c0_11], %15 {strides = array<i32>} : memref<2x1664xf32, #tpu.memory_space<vmem>>, vector<2x1664xf32>,
    } else {
    }
    return
  }
  func.func @transform_0(%arg0: i32) -> (i32, i32) {
    %c5_i32 = arith.constant 5 : i32
    %0 = arith.cmpi slt, %arg0, %c5_i32 : i32
    %c5_i32_0 = arith.constant 5 : i32
    %1 = arith.subi %arg0, %c5_i32_0 : i32
    %2 = arith.select %0, %arg0, %1 : i32
    %c0_i32 = arith.constant 0 : i32
    %c0_i32_1 = arith.constant 0 : i32
    return %c0_i32, %2 : i32, i32
  }
  func.func @transform_1(%arg0: i32) -> (i32, i32) {
    %c0_i32 = arith.constant 0 : i32
    %c0_i32_0 = arith.constant 0 : i32
    %c0_i32_1 = arith.constant 0 : i32
    return %c0_i32, %c0_i32_0 : i32, i32
  }
  func.func @transform_2(%arg0: i32) -> (i32, i32) {
    %c4_i32 = arith.constant 4 : i32
    %0 = arith.minsi %arg0, %c4_i32 : i32
    %c0_i32 = arith.constant 0 : i32
    %c0_i32_0 = arith.constant 0 : i32
    return %0, %c0_i32 : i32, i32
  }
  func.func @transform_3(%arg0: i32) -> (i32, i32) {
    %c0_i32 = arith.constant 0 : i32
    %c0_i32_0 = arith.constant 0 : i32
    %c0_i32_1 = arith.constant 0 : i32
    return %c0_i32, %c0_i32_0 : i32, i32
  }
  func.func @transform_4(%arg0: i32) -> (i32, i32) {
    %c0_i32 = arith.constant 0 : i32
    %c0_i32_0 = arith.constant 0 : i32
    %c0_i32_1 = arith.constant 0 : i32
    return %c0_i32, %c0_i32_0 : i32, i32
  }
  func.func @transform_5(%arg0: i32) -> (i32, i32) {
    %c0_i32 = arith.constant 0 : i32
    %c0_i32_0 = arith.constant 0 : i32
    %c0_i32_1 = arith.constant 0 : i32
    return %c0_i32, %c0_i32_0 : i32, i32
  }
  func.func @transform_6(%arg0: i32) -> (i32, i32) {
    %c0_i32 = arith.constant 0 : i32
    %c0_i32_0 = arith.constant 0 : i32
    %c0_i32_1 = arith.constant 0 : i32
    return %c0_i32, %c0_i32_0 : i32, i32
  }
  func.func @transform_7(%arg0: i32) -> (i32, i32) {
    %c0_i32 = arith.constant 0 : i32
    %c0_i32_0 = arith.constant 0 : i32
    %c0_i32_1 = arith.constant 0 : i32
    return %c0_i32, %c0_i32_0 : i32, i32
  }
  func.func @transform_8(%arg0: i32) -> (i32, i32) {
    %c0_i32 = arith.constant 0 : i32
    %c0_i32_0 = arith.constant 0 : i32
    %c0_i32_1 = arith.constant 0 : i32
    return %c0_i32, %c0_i32_0 : i32, i32
  }
  func.func @transform_9(%arg0: i32) -> (i32, i32, i32) {
    %c5_i32 = arith.constant 5 : i32
    %0 = arith.subi %arg0, %c5_i32 : i32
    %c0_i32 = arith.constant 0 : i32
    %1 = arith.maxsi %0, %c0_i32 : i32
    %c0_i32_0 = arith.constant 0 : i32
    %c0_i32_1 = arith.constant 0 : i32
    %c0_i32_2 = arith.constant 0 : i32
    return %1, %c0_i32_0, %c0_i32_1 : i32, i32, i32
  }
  func.func @transform_10(%arg0: i32) -> (i32, i32) {
    %c5_i32 = arith.constant 5 : i32
    %0 = arith.subi %arg0, %c5_i32 : i32
    %c0_i32 = arith.constant 0 : i32
    %1 = arith.maxsi %0, %c0_i32 : i32
    %c0_i32_0 = arith.constant 0 : i32
    %c0_i32_1 = arith.constant 0 : i32
    return %c0_i32_0, %1 : i32, i32
  }
  func.func @transform_11(%arg0: i32) -> (i32, i32) {
    %c5_i32 = arith.constant 5 : i32
    %0 = arith.subi %arg0, %c5_i32 : i32
    %c0_i32 = arith.constant 0 : i32
    %1 = arith.maxsi %0, %c0_i32 : i32
    %c0_i32_0 = arith.constant 0 : i32
    %c0_i32_1 = arith.constant 0 : i32
    return %c0_i32_0, %1 : i32, i32
  }
}

</mosaic_0001>

<bundles_post_ra>
// kernel: dynamics_nocond_forward.1
= control target key start
LH: loop header
LB: loop body
LE: loop exit
PB: predicated region body
PF: predicated region fallthrough
CT: control target
= control target key end

     0   :  { %s25280_s0 = inlined_call_operand.hbm [shape: f32[2,8320], index: 0, kind: input, shape index: {}]   ;;  %s25281_s1 = inlined_call_operand.vmem [shape: f32[2,1], index: 1, kind: input, shape index: {}]   ;;  %s25282_s2 = inlined_call_operand.hbm [shape: bf16[8320,1024], index: 2, kind: input, shape index: {}]   ;;  %s25283_s3 = inlined_call_operand.hbm [shape: f32[1,1024], index: 3, kind: input, shape index: {}]   ;;  %s25284_s4 = inlined_call_operand.hbm [shape: f32[1,1024], index: 4, kind: input, shape index: {}]   ;;  %s25285_s5 = inlined_call_operand.hbm [shape: bf16[1024,512], index: 5, kind: input, shape index: {}]   ;;  %s25286_s6 = inlined_call_operand.hbm [shape: f32[1,512], index: 6, kind: input, shape index: {}]   ;;  %s25287_s7 = inlined_call_operand.hbm [shape: bf16[512,1024], index: 7, kind: input, shape index: {}]   ;;  %s25288_s8 = inlined_call_operand.hbm [shape: f32[1,1024], index: 8, kind: input, shape index: {}]   ;;  %s25289_s9 = inlined_call_operand.hbm [shape: bf16[5,1024,1664], index: 9, kind: input, shape index: {}]   ;;  %s25290_s10 = inlined_call_operand.hbm [shape: f32[1,8320], index: 10, kind: input, shape index: {}]   ;;  %s25291_s11 = inlined_call_operand.hbm [shape: f32[2,8320], index: 11, kind: output, shape index: {}]  }
   0x1   :  { %25323 = sst [smem:[#allocation39_spill]] %s25280_s0 }
   0x2   :  { %25324 = sst [smem:[#allocation40_spill]] %s25281_s1 }
   0x3   :  { %25325 = sst [smem:[#allocation41_spill]] %s25282_s2 }
   0x4   :  { %25326 = sst [smem:[#allocation42_spill]] %s25283_s3 }
   0x5   :  { %25327 = sst [smem:[#allocation43_spill]] %s25284_s4 }
   0x6   :  { %25328 = sst [smem:[#allocation44_spill]] %s25286_s6 }
   0x7   :  { %25329 = sst [smem:[#allocation45_spill]] %s25287_s7 }
   0x8   :  { %25330 = sst [smem:[#allocation46_spill]] %s25288_s8 }
   0x9   :  { %25331 = sst [smem:[#allocation47_spill]] %s25289_s9 }
   0xa   :  { %25332 = sst [smem:[#allocation48_spill]] %s25290_s10 }
   0xb   :  { %25333 = sst [smem:[#allocation49_spill]] %s25291_s11 }
   0xc   :  { %16 = vsyncpa [#allocation4], 0 }
   0xd   :  { %18 = vsyncpa [#allocation4 + $0x1], 0 }
   0xe   :  { %19 = vsyncpa [#allocation7], 0 }
   0xf   :  { %21 = vsyncpa [#allocation7 + $0x1], 0 }
  0x10   :  { %22 = vsyncpa [#allocation10], 0 }
  0x11   :  { %23 = vsyncpa [#allocation13], 0 }
  0x12   :  { %24 = vsyncpa [#allocation16], 0 }
  0x13   :  { %25 = vsyncpa [#allocation5], 0 }
  0x14   :  { %27 = vsyncpa [#allocation5 + $0x1], 0  ;;  %s22608_s17 = smov 0   ;;  %s22610_s18 = smov 0  }
  0x15   :  { %s22612_s19 = smov 0   ;;  %s22614_s20 = smov 0  }
  0x16   :  { %s22616_s21 = smov 0   ;;  %s22618_s22 = smov 0  }
  0x17   :  { %s22620_s23 = smov 0   ;;  %s22622_s24 = smov 0  }
  0x18   :  { %s22624_s25 = smov 0   ;;  %s22626_s26 = smov 0  }
  0x19 LB: > { %25334 = sst [smem:[#allocation29_spill]] %s22488_s17  ;;  %s22526_s27 = smov [#allocation8]   ;;  %s22524_s26 = sphi %s22626_s26, %s25403_s26   ;;  %s22520_s25 = sphi %s22624_s25, %s25416_s25   ;;  %s22516_s24 = sphi %s22622_s24, %s25415_s24   ;;  %s22512_s23 = sphi %s22620_s23, %s25414_s23   ;;  %s22508_s22 = sphi %s22618_s22, %s25413_s22   ;;  %s22504_s21 = sphi %s22616_s21, %s25412_s21   ;;  %s22500_s20 = sphi %s22614_s20, %s25411_s20   ;;  %s22496_s19 = sphi %s22612_s19, %s25410_s19   ;;  %s22492_s18 = sphi %s22610_s18, %s25409_s18   ;;  %s22488_s17 = sphi %s22608_s17, %s25408_s17  }
  0x1a   : > { %25335 = sst [smem:[#allocation30_spill]] %s22520_s25  ;;  %s359_s28 = sshll.u32 %s22526_s27, 4  ;;  %s360_s28 = int_to_ptr.vmem [resolvable:$true] %s359_s28 }
  0x1b   : > { %s22659_s29 = sadd.s32 4294967295, %s22524_s26   ;;  %p17732_p0 = scmp.ge.s32.totalorder %s22524_s26, 1 }
  0x1c   : > { %p25296_p1 = scmp.eq.s32.totalorder %s22659_s29, 0  ;;  %p343_p2 = scmp.lt.s32.totalorder %s22524_s26, 11 }
  0x1d   : > { %s22527_s12 = smov [#allocation9]   ;;  %s22528_s14 = smov [#allocation12]  }
  0x1e   : > { %p22665_p4 = pnand %p17732_p0, %p343_p2  ;;  %s370_s13 = sshll.u32 %s22527_s12, 4  ;;  %s22671_s13 = int_to_ptr.vmem [resolvable:$true] %s370_s13 }
  0x1f   : > { %s394_s15 = sshll.u32 %s22528_s14, 4  ;;  %s25339_s3 = sld [smem:[#allocation42_spill]]  ;;  %s22679_s15 = int_to_ptr.vmem [resolvable:$true] %s394_s15 }
  0x20   : > { %s25336_s30 = scalar_select %p22665_p4, 1, 0 }
  0x21   : > { %p20316_p5 = pneg %p22665_p4 }
  0x22   : > { %25337 = sst [smem:[#allocation31_spill]] %s25336_s30 }
  0x23   : > { %p22675_p6 = pnand %p20316_p5, %p25296_p1 }
  0x25   : > { %s25338_s16 = scalar_select %p22675_p6, 1, 0 }
  0x26   : > { %s22094_s1 = scalar_lea.hbm %s25339_s3, 128  ;;  %p22689_p8 = pneg %p22675_p6 }
  0x27   : > { %p22095_p7 = scmp.ne.s32.totalorder %s25339_s3, %s22094_s1  ;;  %p22101_p11 = scmp.lt.u32.totalorder %s22094_s1, %s25339_s3 }
  0x28   : > { %s25340_s12 = scalar_select %p22689_p8, 1, 0 }
  0x29   : > { %p22097_p9 = pnand %p22689_p8, %p22095_p7 }
  0x2b   : > { %p22098_p10 = pneg %p22097_p9 }
  0x2d   : > { %p22103_p12 = pnand %p22101_p11, %p22098_p10 }
  0x2f   : > { %22106 = shalt.err (!%p22103_p12)
}
  0x30   : > { %s22107_s11 = scalar_lea.vmem %s360_s28, 128  ;;  %p22115_p5 = scmp.lt.s32.totalorder %s360_s28, %s360_s28 }
  0x31   : > { %p22108_p13 = scmp.ne.s32.totalorder %s360_s28, %s22107_s11  ;;  %p22116_p3 = scmp.lt.s32.totalorder %s22107_s11, %s22107_s11 }
  0x33   : > { %p22110_p0 = pnand %p22108_p13, %p22689_p8  ;;  %p22117_p1 = por %p22116_p3, %p22115_p5 }
  0x35   : > { %p22111_p2 = pneg %p22110_p0 }
  0x37   : > { %p22118_p4 = pnand %p22117_p1, %p22111_p2 }
  0x39   : > { %22121 = shalt.err (!%p22118_p4)
}
  0x3a   : > { %20319 = dma.hbm_to_vmem [thread:$0]  (!%p22675_p6), %s25339_s3, 128, %s360_s28, [#allocation7]  }
  0x3b   : > { %s25341_s4 = sld [smem:[#allocation43_spill]] }
  0x41   : > { %s22122_s27 = scalar_lea.hbm %s25341_s4, 128 }
  0x42   : > { %p22123_p7 = scmp.ne.s32.totalorder %s25341_s4, %s22122_s27  ;;  %p22129_p1 = scmp.lt.u32.totalorder %s22122_s27, %s25341_s4 }
  0x44   : > { %p22125_p9 = pnand %p22123_p7, %p22689_p8 }
  0x46   : > { %p22126_p3 = pneg %p22125_p9 }
  0x48   : > { %p22131_p4 = pnand %p22129_p1, %p22126_p3 }
  0x4a   : > { %22134 = shalt.err (!%p22131_p4)
}
  0x4b   : > { %s22135_s28 = scalar_lea.vmem %s22671_s13, 128  ;;  %p22143_p13 = scmp.lt.s32.totalorder %s22671_s13, %s22671_s13 }
  0x4c   : > { %p22136_p10 = scmp.ne.s32.totalorder %s22671_s13, %s22135_s28  ;;  %p22144_p0 = scmp.lt.s32.totalorder %s22135_s28, %s22135_s28 }
  0x4e   : > { %p22138_p11 = pnand %p22136_p10, %p22689_p8  ;;  %p22145_p2 = por %p22144_p0, %p22143_p13 }
  0x50   : > { %p22139_p12 = pneg %p22138_p11 }
  0x52   : > { %p22146_p5 = pnand %p22145_p2, %p22139_p12 }
  0x54   : > { %22149 = shalt.err (!%p22146_p5)
}
  0x55   : > { %20322 = dma.hbm_to_vmem [thread:$0]  (!%p22675_p6), %s25341_s4, 128, %s22671_s13, [#allocation10]  }
  0x56   : > { %s25342_s6 = sld [smem:[#allocation44_spill]] }
  0x5c   : > { %s22150_s1 = scalar_lea.hbm %s25342_s6, 64 }
  0x5d   : > { %p22151_p7 = scmp.ne.s32.totalorder %s25342_s6, %s22150_s1  ;;  %p22157_p1 = scmp.lt.u32.totalorder %s22150_s1, %s25342_s6 }
  0x5f   : > { %p22153_p9 = pnand %p22151_p7, %p22689_p8 }
  0x61   : > { %p22154_p3 = pneg %p22153_p9 }
  0x63   : > { %p22159_p4 = pnand %p22157_p1, %p22154_p3 }
  0x65   : > { %22162 = shalt.err (!%p22159_p4)
}
  0x66   : > { %s22163_s13 = scalar_lea.vmem %s22679_s15, 64  ;;  %p22171_p13 = scmp.lt.s32.totalorder %s22679_s15, %s22679_s15 }
  0x67   : > { %p22164_p10 = scmp.ne.s32.totalorder %s22679_s15, %s22163_s13  ;;  %p22172_p0 = scmp.lt.s32.totalorder %s22163_s13, %s22163_s13 }
  0x69   : > { %p22166_p11 = pnand %p22164_p10, %p22689_p8  ;;  %p22173_p2 = por %p22172_p0, %p22171_p13 }
  0x6b   : > { %p22167_p12 = pneg %p22166_p11 }
  0x6d   : > { %p22174_p5 = pnand %p22173_p2, %p22167_p12 }
  0x6f   : > { %22177 = shalt.err (!%p22174_p5)
}
  0x70   : > { %20328 = dma.hbm_to_vmem [thread:$0]  (!%p22675_p6), %s25342_s6, 64, %s22679_s15, [#allocation13]  }
  0x71   : > { %s22753_s10 = sadd.s32 1, %s22524_s26   ;;  %p37_p7 = scmp.lt.s32.totalorder %s22524_s26, 5 }
  0x72   : > { %25343 = sst [smem:[#allocation32_spill]] %s22753_s10  ;;  %s17724_s30 = sadd.s32 4294967291, %s22524_s26 }
  0x73   : > { %p40_p9 = scmp.lt.s32.totalorder %s22753_s10, 5  ;;  %s17725_s15 = sadd.s32 4294967291, %s22753_s10 }
  0x74   : > { %s22759_s1 = scalar_select %p37_p7, %s22524_s26, %s17724_s30 }
  0x75   : > { %s46_s9 = sadd.s32 1, %s22520_s25  ;;  %p53_p3 = scmp.ne.s32.totalorder %s22520_s25, %s22516_s24 }
  0x76   : > { %s42_s27 = scalar_select %p40_p9, %s22753_s10, %s17725_s15 }
  0x77   : > { %p25300_p1 = scmp.eq.s32.totalorder %s22524_s26, 0  ;;  %p59_p4 = scmp.ne.s32.totalorder %s22516_s24, %s22512_s23 }
  0x78   : > { %s43_s14 = ssub.s32 %s22759_s1, %s42_s27  ;;  %p25345_p12 = scmp.eq.s32.totalorder %s22659_s29, 0 }
  0x79   : > { %p44_p10 = scmp.eq.s32.totalorder %s43_s14, 0  ;;  %p22772_p11 = por %p25300_p1, %p53_p3 }
  0x7a   : > { %p22778_p13 = por %p25345_p12, %p59_p4  ;;  %p104_p0 = scmp.ne.s32.totalorder %s22508_s22, %s22504_s21 }
  0x7b   : > { %s22785_s28 = scalar_select %p44_p10, %s22520_s25, %s46_s9  }
  0x7c   : > { %s25346_s13 = scalar_select %p22778_p13, 1, 0 }
  0x7d   : > { %25347 = sst [smem:[#allocation33_spill]] %s22785_s28  ;;  %p22789_p2 = por %p104_p0, %p25300_p1 }
  0x7e   : > { %p110_p5 = scmp.ne.s32.totalorder %s22504_s21, %s22500_s20  ;;  %p247_p7 = scmp.gt.s32.totalorder %s17724_s30, 0 }
  0x7f   : > { %p250_p9 = scmp.gt.s32.totalorder %s17725_s15, 0  ;;  %p25349_p3 = pmov %p25345_p12 }
  0x80   : > { %s255_s9 = sadd.s32 1, %s22496_s19  ;;  %s25418_s30 = smov (!%p247_p7, %s17724_s30), 0 }
  0x81   : > { %p22797_p4 = por %p110_p5, %p25349_p3  ;;  %s25420_s15 = smov (!%p250_p9, %s17725_s15), 0 }
  0x82   : > { %p262_p10 = scmp.ne.s32.totalorder %s22496_s19, %s22492_s18  ;;  %p268_p12 = scmp.ne.s32.totalorder %s22492_s18, %s22488_s17 }
  0x83   : > { %s25350_s7 = scalar_select %p22797_p4, 1, 0 }
  0x84   : > { %s252_s20 = ssub.s32 %s25418_s30, %s25420_s15  ;;  %p330_p0 = scmp.eq.s32.totalorder %s22659_s29, 9 }
  0x85   : > { %p253_p1 = scmp.eq.s32.totalorder %s252_s20, 0  ;;  %p25351_p13 = scmp.eq.s32.totalorder %s22524_s26, 0 }
  0x86   : > { %p25353_p5 = pmov %p25349_p3  ;;  %p22822_p9 = por %p330_p0, %p262_p10 }
  0x87   : > { %p22812_p6 = por %p262_p10, %p25351_p13  ;;  %s25359_s20 = sadd.s32 4294967294, %s22524_s26  }
  0x88   : > { %p22818_p7 = por %p268_p12, %p25353_p5  ;;  %p336_p3 = scmp.eq.s32.totalorder %s25359_s20, 9 }
  0x89   : > { %s25356_s8 = scalar_select %p22822_p9, 1, 0 }
  0x8a   : > { %s25354_s14 = scalar_select %p22818_p7, 1, 0 }
  0x8b   : > { %25357 = sst [smem:[#allocation35_spill]] %s25356_s8  ;;  %p25309_p13 = scmp.lt.s32.totalorder %s22524_s26, 10 }
  0x8c   : > { %25355 = sst [smem:[#allocation34_spill]] %s25354_s14  ;;  %s431_s4 = sand.u32 1, %s22520_s25  }
  0x8d   : > { %s22827_s15 = scalar_select %p253_p1, %s22496_s19, %s255_s9  }
  0x8e   : > { %p22834_p4 = por %p336_p3, %p268_p12  ;;  %s20272_s28 = smul.u32 26, %s431_s4 }
  0x8f   : > { %25358 = sst [smem:[#allocation36_spill]] %s22827_s15  ;;  %p22842_p5 = pnand %p25309_p13, %p22772_p11 }
  0x90   : > { %s25360_s6 = scalar_select %p22834_p4, 1, 0 }
  0x91   : > { %s19946_s9 = smul.u32 416, %s22759_s1  ;;  %s25363_s0 = sld [smem:[#allocation39_spill]] }
  0x92   : > { %25361 = sst [smem:[#allocation37_spill]] %s25360_s6  ;;  %s433_s3 = scalar_lea.vmem [#allocation3], %s20272_s28 }
  0x93   : > { %s444_s4 = sshll.u32 %s433_s3, 4  ;;  %p22858_p1 = pnand %p25309_p13, %p22789_p2  ;;  %s22852_s4 = int_to_ptr.vmem [resolvable:$true] %s444_s4 }
  0x94   : > { %s25365_s1 = sand.u32 1, %s22524_s26   ;;  %p22180_p10 = pneg %p22842_p5 }
  0x95   : > { %s25364_s11 = scalar_select %p22858_p1, 1, 0 }
  0x96   : > { %s22864_s25 = scalar_lea.sflag [#allocation4], %s25365_s1 }
  0x97   : > { %s22850_s20 = scalar_lea.hbm %s25363_s0, %s19946_s9  ;;  %s22183_s23 = scalar_lea.hbm %s25363_s0, 2080 }
  0x98   : > { %s22178_s8 = scalar_lea.hbm %s22850_s20, 416  ;;  %p22184_p2 = scmp.lt.u32.totalorder %s22850_s20, %s25363_s0 }
  0x99   : > { %p22179_p11 = scmp.ne.s32.totalorder %s22850_s20, %s22178_s8  ;;  %p22185_p3 = scmp.lt.u32.totalorder %s22183_s23, %s22178_s8 }
  0x9a   : > { %p22187_p4 = scmp.lt.u32.totalorder %s22178_s8, %s22850_s20 }
  0x9b   : > { %p22181_p12 = pnand %p22180_p10, %p22179_p11  ;;  %p22186_p13 = por %p22185_p3, %p22184_p2 }
  0x9d   : > { %p22182_p0 = pneg %p22181_p12  ;;  %p22188_p9 = por %p22187_p4, %p22186_p13 }
  0x9f   : > { %p22189_p7 = pnand %p22188_p9, %p22182_p0 }
  0xa1   : > { %22192 = shalt.err (!%p22189_p7)
}
  0xa2   : > { %s22193_s1 = scalar_lea.vmem %s22852_s4, 416  ;;  %s22529_s3 = smov [#allocation3]  }
  0xa3   : > { %p22194_p11 = scmp.ne.s32.totalorder %s22852_s4, %s22193_s1  ;;  %s22198_s28 = sshll.u32 %s22529_s3, 4  ;;  %s22199_s28 = int_to_ptr.vmem [resolvable:$false] %s22198_s28 }
  0xa4   : > { %s22200_s15 = scalar_lea.vmem %s22199_s28, 832  ;;  %p22201_p1 = scmp.lt.s32.totalorder %s22852_s4, %s22199_s28 }
  0xa5   : > { %p22196_p12 = pnand %p22194_p11, %p22180_p10  ;;  %p22202_p2 = scmp.lt.s32.totalorder %s22200_s15, %s22193_s1 }
  0xa7   : > { %p22197_p8 = pneg %p22196_p12  ;;  %p22203_p3 = por %p22202_p2, %p22201_p1 }
  0xa9   : > { %p22204_p4 = pnand %p22203_p3, %p22197_p8 }
  0xab   : > { %22207 = shalt.err (!%p22204_p4)
}
  0xac   : > { %20338 = dma.hbm_to_vmem [thread:$0]  (!%p22842_p5), %s22850_s20, 416, %s22852_s4, %s22864_s25  }
  0xad   : > { %p25366_p7 = scmp.lt.s32.totalorder %s22524_s26, 10  ;;  %p90_p8 = scmp.lt.s32.totalorder %s22524_s26, 4 }
  0xae   : > { %p92_p13 = scmp.lt.s32.totalorder %s22753_s10, 4  ;;  %s97_s17 = sadd.s32 1, %s22508_s22 }
  0xaf   : > { %p22896_p9 = pnand %p25366_p7, %p22812_p6  ;;  %s453_s3 = sand.u32 1, %s22508_s22  }
  0xb0   : > { %s91_s23 = scalar_select %p90_p8, %s22524_s26, 4 }
  0xb1   : > { %s25367_s8 = scalar_select %p22896_p9, 1, 0 }
  0xb2   : > { %s93_s9 = scalar_select %p92_p13, %s22753_s10, 4 }
  0xb3   : > { %s20273_s28 = smul.u32 6656, %s453_s3  ;;  %s25369_s2 = sld [smem:[#allocation41_spill]] }
  0xb4   : > { %s94_s1 = ssub.s32 %s91_s23, %s93_s9  ;;  %s19951_s15 = smul.u32 106496, %s91_s23 }
  0xb5   : > { %p95_p1 = scmp.eq.s32.totalorder %s94_s1, 0  ;;  %s455_s6 = scalar_lea.vmem [#allocation6], %s20273_s28 }
  0xb6   : > { %s465_s10 = sshll.u32 %s455_s6, 4  ;;  %s22530_s9 = smov [#allocation11]   ;;  %s22914_s10 = int_to_ptr.vmem [resolvable:$true] %s465_s10 }
  0xb7   : > { %s22907_s20 = scalar_select %p95_p1, %s22508_s22, %s97_s17  }
  0xb8   : > { %s380_s14 = sshll.u32 %s22530_s9, 4  ;;  %s25370_s23 = sand.u32 1, %s22524_s26   ;;  %s22916_s14 = int_to_ptr.vmem [resolvable:$true] %s380_s14 }
  0xb9   : > { %25368 = sst [smem:[#allocation38_spill]] %s22907_s20  ;;  %s22912_s0 = scalar_lea.hbm %s25369_s2, %s19951_s15 }
  0xba   : > { %s22920_s17 = scalar_lea.sflag [#allocation7], %s25370_s23  ;;  %s22208_s1 = scalar_lea.hbm %s22912_s0, 106496 }
  0xbb   : > { %p22209_p6 = scmp.ne.s32.totalorder %s22912_s0, %s22208_s1  ;;  %p25371_p5 = scmp.ne.s32.totalorder %s25364_s11, 0 }
  0xbc   : > { %s22213_s6 = scalar_lea.hbm %s25369_s2, 532480  ;;  %p22214_p12 = scmp.lt.u32.totalorder %s22912_s0, %s25369_s2 }
  0xbd   : > { %p22210_p10 = pneg %p25371_p5  ;;  %p22215_p2 = scmp.lt.u32.totalorder %s22213_s6, %s22208_s1 }
  0xbe   : > { %p22217_p4 = scmp.lt.u32.totalorder %s22208_s1, %s22912_s0 }
  0xbf   : > { %p22211_p0 = pnand %p22210_p10, %p22209_p6  ;;  %p22216_p3 = por %p22215_p2, %p22214_p12 }
  0xc1   : > { %p22212_p11 = pneg %p22211_p0  ;;  %p22218_p7 = por %p22217_p4, %p22216_p3 }
  0xc3   : > { %p22219_p8 = pnand %p22218_p7, %p22212_p11 }
  0xc5   : > { %22222 = shalt.err (!%p22219_p8)
}
  0xc6   : > { %s22223_s4 = scalar_lea.vmem %s22914_s10, 106496  ;;  %s22531_s9 = smov [#allocation6]  }
  0xc7   : > { %p22224_p13 = scmp.ne.s32.totalorder %s22914_s10, %s22223_s4  ;;  %s22228_s23 = sshll.u32 %s22531_s9, 4  ;;  %s22229_s23 = int_to_ptr.vmem [resolvable:$false] %s22228_s23 }
  0xc8   : > { %s22230_s3 = scalar_lea.vmem %s22229_s23, 212992  ;;  %p22231_p0 = scmp.lt.s32.totalorder %s22914_s10, %s22229_s23 }
  0xc9   : > { %p22226_p1 = pnand %p22224_p13, %p22210_p10  ;;  %p22232_p12 = scmp.lt.s32.totalorder %s22230_s3, %s22223_s4 }
  0xcb   : > { %p22227_p6 = pneg %p22226_p1  ;;  %p22233_p2 = por %p22232_p12, %p22231_p0 }
  0xcd   : > { %p22234_p3 = pnand %p22233_p2, %p22227_p6 }
  0xcf   : > { %22237 = shalt.err (!%p22234_p3)
}
  0xd0   : > { %s25320_s1 = smov 512   ;;  %s25321_s28 = smov 32  }
  0xd1   : > { %20341 = dma.hbm_to_vmem [thread:$0]  (!%p25371_p5), %s22912_s0, 106496, %s22914_s10, %s22920_s17, %s25320_s1, %s25320_s1, %s25321_s28  }
  0xd2   : > { %s22238_s27 = scalar_lea.hbm %s25285_s5, 32768  ;;  %p25372_p11 = scmp.ne.s32.totalorder %s25340_s12, 0 }
  0xd3   : > { %p22239_p10 = scmp.ne.s32.totalorder %s25285_s5, %s22238_s27  ;;  %p22245_p8 = scmp.lt.u32.totalorder %s22238_s27, %s25285_s5 }
  0xd5   : > { %p22241_p4 = pnand %p22239_p10, %p25372_p11 }
  0xd7   : > { %p22242_p7 = pneg %p22241_p4 }
  0xd9   : > { %p22247_p13 = pnand %p22245_p8, %p22242_p7 }
  0xdb   : > { %22250 = shalt.err (!%p22247_p13)
}
  0xdc   : > { %s22251_s0 = scalar_lea.vmem %s22916_s14, 32768  ;;  %p22259_p0 = scmp.lt.s32.totalorder %s22916_s14, %s22916_s14 }
  0xdd   : > { %p22252_p5 = scmp.ne.s32.totalorder %s22916_s14, %s22251_s0  ;;  %p22260_p12 = scmp.lt.s32.totalorder %s22251_s0, %s22251_s0 }
  0xdf   : > { %p22254_p1 = pnand %p22252_p5, %p25372_p11  ;;  %p22261_p2 = por %p22260_p12, %p22259_p0 }
  0xe1   : > { %p22255_p6 = pneg %p22254_p1 }
  0xe3   : > { %p22262_p3 = pnand %p22261_p2, %p22255_p6 }
  0xe5   : > { %22265 = shalt.err (!%p22262_p3)
}
  0xe6   : > { %s22534_s10 = smov 256   ;;  %s22535_s11 = smov 16  }
  0xe7   : > { %p25373_p10 = scmp.ne.s32.totalorder %s25338_s16, 0  ;;  %s22536_s27 = smov [#allocation14]  }
  0xe8   : > { %s404_s4 = sshll.u32 %s22536_s27, 4  ;;  %s22537_s9 = smov [#allocation15]   ;;  %s405_s4 = int_to_ptr.vmem [resolvable:$true] %s404_s4 }
  0xe9   : > { %20325 = dma.hbm_to_vmem [thread:$0]  (!%p25373_p10), %s25285_s5, 32768, %s22916_s14, [#allocation10], %s22534_s10, %s22534_s10, %s22535_s11  }
  0xea   : > { %s418_s23 = sshll.u32 %s22537_s9, 4  ;;  %s25374_s1 = sld [smem:[#allocation45_spill]]  ;;  %s22974_s23 = int_to_ptr.vmem [resolvable:$true] %s418_s23 }
  0xf0   : > { %s22266_s28 = scalar_lea.hbm %s25374_s1, 32768 }
  0xf1   : > { %p22267_p4 = scmp.ne.s32.totalorder %s25374_s1, %s22266_s28  ;;  %p22273_p13 = scmp.lt.u32.totalorder %s22266_s28, %s25374_s1 }
  0xf3   : > { %p22269_p7 = pnand %p22267_p4, %p25372_p11 }
  0xf5   : > { %p22270_p8 = pneg %p22269_p7 }
  0xf7   : > { %p22275_p5 = pnand %p22273_p13, %p22270_p8 }
  0xf9   : > { %22278 = shalt.err (!%p22275_p5)
}
  0xfa   : > { %s22279_s10 = scalar_lea.vmem %s405_s4, 32768  ;;  %p22287_p12 = scmp.lt.s32.totalorder %s405_s4, %s405_s4 }
  0xfb   : > { %p22280_p1 = scmp.ne.s32.totalorder %s405_s4, %s22279_s10  ;;  %p22288_p2 = scmp.lt.s32.totalorder %s22279_s10, %s22279_s10 }
  0xfd   : > { %p22282_p6 = pnand %p22280_p1, %p25372_p11  ;;  %p22289_p3 = por %p22288_p2, %p22287_p12 }
  0xff   : > { %p22283_p0 = pneg %p22282_p6 }
 0x101   : > { %p22290_p9 = pnand %p22289_p3, %p22283_p0 }
 0x103   : > { %22293 = shalt.err (!%p22290_p9)
}
 0x104   : > { %s25375_s2 = smov 32   ;;  %s25376_s20 = smov 512  }
 0x105   : > { %20331 = dma.hbm_to_vmem [thread:$0]  (!%p25373_p10), %s25374_s1, 32768, %s405_s4, [#allocation13], %s25376_s20, %s25376_s20, %s25375_s2  }
 0x106   : > { %s25377_s9 = sld [smem:[#allocation46_spill]] }
 0x10c   : > { %s22294_s3 = scalar_lea.hbm %s25377_s9, 128 }
 0x10d   : > { %p22295_p4 = scmp.ne.s32.totalorder %s25377_s9, %s22294_s3  ;;  %p22301_p8 = scmp.lt.u32.totalorder %s22294_s3, %s25377_s9 }
 0x10f   : > { %p22297_p9 = pnand %p22295_p4, %p25372_p11 }
 0x111   : > { %p22298_p7 = pneg %p22297_p9 }
 0x113   : > { %p22303_p13 = pnand %p22301_p8, %p22298_p7 }
 0x115   : > { %22306 = shalt.err (!%p22303_p13)
}
 0x116   : > { %s22307_s4 = scalar_lea.vmem %s22974_s23, 128  ;;  %p22315_p0 = scmp.lt.s32.totalorder %s22974_s23, %s22974_s23 }
 0x117   : > { %p22308_p5 = scmp.ne.s32.totalorder %s22974_s23, %s22307_s4  ;;  %p22316_p12 = scmp.lt.s32.totalorder %s22307_s4, %s22307_s4 }
 0x119   : > { %p22310_p1 = pnand %p22308_p5, %p25372_p11  ;;  %p22317_p2 = por %p22316_p12, %p22315_p0 }
 0x11b   : > { %p22311_p6 = pneg %p22310_p1 }
 0x11d   : > { %p22318_p3 = pnand %p22317_p2, %p22311_p6 }
 0x11f   : > { %22321 = shalt.err (!%p22318_p3)
}
 0x120   : > { %20334 = dma.hbm_to_vmem [thread:$0]  (!%p25373_p10), %s25377_s9, 128, %s22974_s23, [#allocation16]  }
 0x121   : > { %s477_s12 = sand.u32 1, %s22496_s19   ;;  %s20275_s11 = smul.u32 106496, %s25418_s30 }
 0x122   : > { %s20274_s28 = smul.u32 6656, %s477_s12  ;;  %s25378_s3 = sld [smem:[#allocation47_spill]] }
 0x123   : > { %s23027_s16 = smul.u32 13, %s477_s12  ;;  %p25379_p10 = scmp.ne.s32.totalorder %s25367_s8, 0 }
 0x124   : > { %s479_s6 = scalar_lea.vmem [#allocation17], %s20274_s28  ;;  %s19949_s10 = smul.u32 208, %s25418_s30 }
 0x125   : > { %s489_s14 = sshll.u32 %s479_s6, 4  ;;  %p22324_p4 = pneg %p25379_p10  ;;  %s23030_s14 = int_to_ptr.vmem [resolvable:$true] %s489_s14 }
 0x128   : > { %s23025_s0 = scalar_lea.hbm %s25378_s3, %s20275_s11  ;;  %s22327_s20 = scalar_lea.hbm %s25378_s3, 532480 }
 0x129   : > { %s22322_s23 = scalar_lea.hbm %s23025_s0, 106496  ;;  %p22328_p8 = scmp.lt.u32.totalorder %s23025_s0, %s25378_s3 }
 0x12a   : > { %p22323_p11 = scmp.ne.s32.totalorder %s23025_s0, %s22322_s23  ;;  %p22329_p13 = scmp.lt.u32.totalorder %s22327_s20, %s22322_s23 }
 0x12b   : > { %p22331_p1 = scmp.lt.u32.totalorder %s22322_s23, %s23025_s0 }
 0x12c   : > { %p22325_p9 = pnand %p22324_p4, %p22323_p11  ;;  %p22330_p5 = por %p22329_p13, %p22328_p8 }
 0x12e   : > { %p22326_p7 = pneg %p22325_p9  ;;  %p22332_p6 = por %p22331_p1, %p22330_p5 }
 0x130   : > { %p22333_p0 = pnand %p22332_p6, %p22326_p7 }
 0x132   : > { %22336 = shalt.err (!%p22333_p0)
}
 0x133   : > { %s22337_s28 = scalar_lea.vmem %s23030_s14, 106496  ;;  %s22538_s15 = smov [#allocation17]  }
 0x134   : > { %p22338_p12 = scmp.ne.s32.totalorder %s23030_s14, %s22337_s28  ;;  %s22342_s27 = sshll.u32 %s22538_s15, 4  ;;  %s22343_s27 = int_to_ptr.vmem [resolvable:$false] %s22342_s27 }
 0x135   : > { %s22344_s6 = scalar_lea.vmem %s22343_s27, 212992  ;;  %p22345_p11 = scmp.lt.s32.totalorder %s23030_s14, %s22343_s27 }
 0x136   : > { %p22340_p2 = pnand %p22338_p12, %p22324_p4  ;;  %p22346_p9 = scmp.lt.s32.totalorder %s22344_s6, %s22337_s28 }
 0x138   : > { %p22341_p3 = pneg %p22340_p2  ;;  %p22347_p8 = por %p22346_p9, %p22345_p11 }
 0x13a   : > { %p22348_p13 = pnand %p22347_p8, %p22341_p3 }
 0x13c   : > { %22351 = shalt.err (!%p22348_p13)
}
 0x13d   : > { %s22539_s23 = smov 832   ;;  %s22540_s4 = smov 52  }
 0x13e   : > { %20344 = dma.hbm_to_vmem [thread:$0]  (!%p25379_p10), %s23025_s0, 106496, %s23030_s14, %s22864_s25, %s22539_s23, %s22539_s23, %s22540_s4  }
 0x13f   : > { %s25380_s11 = sld [smem:[#allocation48_spill]]  ;;  %s503_s28 = scalar_lea.vmem [#allocation18], %s23027_s16 }
 0x140   : > { %s514_s15 = sshll.u32 %s503_s28, 4  ;;  %s515_s15 = int_to_ptr.vmem [resolvable:$true] %s514_s15 }
 0x145   : > { %s23063_s12 = scalar_lea.hbm %s25380_s11, %s19949_s10  ;;  %s22357_s0 = scalar_lea.hbm %s25380_s11, 1040 }
 0x146   : > { %s22352_s27 = scalar_lea.hbm %s23063_s12, 208  ;;  %p22358_p6 = scmp.lt.u32.totalorder %s23063_s12, %s25380_s11 }
 0x147   : > { %p22353_p7 = scmp.ne.s32.totalorder %s23063_s12, %s22352_s27  ;;  %p22359_p0 = scmp.lt.u32.totalorder %s22357_s0, %s22352_s27 }
 0x148   : > { %p22361_p2 = scmp.lt.u32.totalorder %s22352_s27, %s23063_s12 }
 0x149   : > { %p22355_p5 = pnand %p22353_p7, %p22324_p4  ;;  %p22360_p12 = por %p22359_p0, %p22358_p6 }
 0x14b   : > { %p22356_p1 = pneg %p22355_p5  ;;  %p22362_p3 = por %p22361_p2, %p22360_p12 }
 0x14d   : > { %p22363_p11 = pnand %p22362_p3, %p22356_p1 }
 0x14f   : > { %22366 = shalt.err (!%p22363_p11)
}
 0x150   : > { %s22367_s16 = scalar_lea.vmem %s515_s15, 208  ;;  %s22541_s6 = smov [#allocation18]  }
 0x151   : > { %p22368_p9 = scmp.ne.s32.totalorder %s515_s15, %s22367_s16  ;;  %s22372_s23 = sshll.u32 %s22541_s6, 4  ;;  %s22373_s23 = int_to_ptr.vmem [resolvable:$false] %s22372_s23 }
 0x152   : > { %s22374_s4 = scalar_lea.vmem %s22373_s23, 416  ;;  %p22375_p7 = scmp.lt.s32.totalorder %s515_s15, %s22373_s23 }
 0x153   : > { %p22370_p8 = pnand %p22368_p9, %p22324_p4  ;;  %p22376_p5 = scmp.lt.s32.totalorder %s22374_s4, %s22367_s16 }
 0x155   : > { %p22371_p13 = pneg %p22370_p8  ;;  %p22377_p0 = por %p22376_p5, %p22375_p7 }
 0x157   : > { %p22378_p6 = pnand %p22377_p0, %p22371_p13 }
 0x159   : > { %22381 = shalt.err (!%p22378_p6)
}
 0x15a   : > { %20347 = dma.hbm_to_vmem [thread:$0]  (!%p25379_p10), %s23063_s12, 208, %s515_s15, %s22920_s17  }
 0x15b   : > { %s25381_s2 = sld [smem:[#allocation31_spill]] }
 0x161   : > { %p25382_p1 = scmp.ne.s32.totalorder %s25381_s2, 0 }
 0x162   : > { %s525_s20 = sand.u32 (!%p25382_p1), 1, %s22659_s29   ;;  %s527_s28 = sand.u32 (!%p25382_p1), 1, %s22516_s24  }
 0x163   : > { %523 = sbr.rel (%p25382_p1) target bundleno = 3573 (0xdf5), region = 64  ;;  %s526_s25 = scalar_lea.sflag (!%p25382_p1), [#allocation4], %s525_s20 }
 0x164   : > { %s20277_s27 = smul.u32 (!%p25382_p1), 26, %s527_s28  ;;  %p25383_p4 = scmp.ne.s32.totalorder (!%p25382_p1), %s25346_s13, 0 }
 0x166   : > { %s23090_s30 = scalar_lea.vmem (!%p25382_p1), [#allocation3], %s20277_s27 }
 0x16a   : > { %22451 = dma.done.wait (%p25383_p4), %s526_s25, 416  }
 0x16b   : > { %22453 = vsyncadd (%p25383_p4), %s526_s25, 4294966880  ;;  %s536_s8 = sand.u32 1, %s22504_s21   ;;  %s535_s12 = scalar_lea.sflag [#allocation7], %s525_s20 }
 0x16c   : > { %s20278_s17 = smul.u32 6656, %s536_s8  ;;  %p25384_p10 = scmp.ne.s32.totalorder %s25350_s7, 0 }
 0x16e   : > { %s23097_s15 = scalar_lea.vmem [#allocation6], %s20278_s17 }
 0x16f   : > { %22455 = dma.done.wait (%p25384_p10), %s535_s12, 106496  }
 0x170   : > { %22457 = vsyncadd (%p25384_p10), %s535_s12, 4294860800  ;;  %p25385_p12 = scmp.eq.s32.totalorder %s22659_s29, 0 }
 0x172   : > { %22459 = dma.done.wait (%p25385_p12), [#allocation7], 128   ;;  %p25386_p2 = pmov %p25385_p12 }
 0x174   : > { %22461 = vsyncadd (%p25386_p2), [#allocation7], 4294967168  ;;  %p25387_p3 = pmov %p25386_p2 }
 0x175   : > { %p25388_p11 = pmov %p25386_p2 }
 0x176   : > { %22463 = dma.done.wait (%p25387_p3), [#allocation10], 32896  }
 0x177   : > { %22465 = vsyncadd (%p25388_p11), [#allocation10], 4294934400  ;;  %p25389_p9 = pmov %p25386_p2 }
 0x178   : > { %p25390_p8 = pmov %p25386_p2 }
 0x179   : > { %22467 = dma.done.wait (%p25389_p9), [#allocation13], 32832  }
 0x17a   : > { %22469 = vsyncadd (%p25390_p8), [#allocation13], 4294934464  ;;  %p25391_p13 = pmov %p25386_p2 }
 0x17b   : > { %p25392_p7 = pmov %p25386_p2 }
 0x17c   : > { %22471 = dma.done.wait (%p25391_p13), [#allocation16], 128  }
 0x17d   : > { %22473 = vsyncadd (%p25392_p7), [#allocation16], 4294967168  ;;  %s25393_s13 = sld [smem:[#allocation34_spill]]  ;;  %s23120_s7 = sand.u32 1, %s22492_s18  }
 0x17e   : > { %s20279_s0 = smul.u32 6656, %s23120_s7 }
 0x180   : > { %s23123_s14 = scalar_lea.vmem [#allocation17], %s20279_s0 }
 0x183   : > { %p25394_p5 = scmp.ne.s32.totalorder %s25393_s13, 0 }
 0x185   : > { %22475 = dma.done.wait (%p25394_p5), %s526_s25, 106496  }
 0x186   : > { %22477 = vsyncadd (%p25394_p5), %s526_s25, 4294860800  ;;  %s20280_s10 = smul.u32 13, %s23120_s7 }
 0x188   : > { %s23130_s16 = scalar_lea.vmem [#allocation18], %s20280_s10 }
 0x189   : > { %22479 = dma.done.wait (%p25394_p5), %s535_s12, 208  }
 0x18a   : > { %22481 = vsyncadd (%p25394_p5), %s535_s12, 4294967088  ;;  %s20281_s6 = smul.u32 26, %s23120_s7  ;;  %p17755_p0 = scmp.ge.s32.totalorder %s22659_s29, 5 }
 0x18b   : > { %p25395_p6 = scmp.ne.s32.totalorder (!%p17755_p0), %s22659_s29, 0 }
 0x18c   : > { %s23137_s23 = scalar_lea.vmem [#allocation19], %s20281_s6  ;;  %656 = sbr.rel (%p17755_p0) target bundleno = 2487 (0x9b7), region = 108 }
 0x193   : > { %660 = sbr.rel (%p25395_p6) target bundleno = 550 (0x226), region = 112  ;;  %s25396_s20 = sld [smem:[#allocation40_spill]] (!%p25395_p6)  ;;  %v22542_v1 = vmov (!%p25395_p6), 0   ;;  %v669_v2 = vlaneseq (!%p25395_p6)  ;;  %v22543_v5 = vmov (!%p25395_p6), 1983009808   ;;  %v662_v7 = vld [vmem:[#allocation8] sm:$0xff] (!%p25395_p6) }
 0x194   : > { %20463 = vset.pattern.permute.xlu0 (!%p25395_p6), %v22542_v1  ;;  %v778_v6 = vunpack.c.l.s4 (!%p25395_p6), %v22543_v5  ;;  %v717_v15 = vld [vmem:[#allocation9] sm:$0xff] (!%p25395_p6) }
 0x195   : > { %v670_v3 = vshrl.u32 (!%p25395_p6), %v669_v2, 7 }
 0x196   : > { %v779_v17 = vunpack.c.0.s8 (!%p25395_p6), %v778_v6 }
 0x197   : > { %v671_v4 = vsub.s32 (!%p25395_p6), 0, %v670_v3  ;;  %v675_v8 = vsub.s32 (!%p25395_p6), 1, %v670_v3  ;;  %v679_v9 = vsub.s32 (!%p25395_p6), 2, %v670_v3  ;;  %v683_v10 = vsub.s32 (!%p25395_p6), 3, %v670_v3 }
 0x198   : > { %v687_v11 = vsub.s32 (!%p25395_p6), 4, %v670_v3  ;;  %v691_v12 = vsub.s32 (!%p25395_p6), 5, %v670_v3  ;;  %v695_v13 = vsub.s32 (!%p25395_p6), 6, %v670_v3  ;;  %v699_v14 = vsub.s32 (!%p25395_p6), 7, %v670_v3 }
 0x199   : > { %v661_v0 = vld [vmem:[%s25396_s20] sm:$0x3] (!%p25395_p6)  ;;  %v672_v16 = vrot.slane (!%p25395_p6), %v662_v7, %v671_v4  ;;  %v676_v18 = vrot.slane (!%p25395_p6), %v662_v7, %v675_v8  ;;  %v680_v19 = vrot.slane (!%p25395_p6), %v662_v7, %v679_v9  ;;  %v684_v20 = vrot.slane (!%p25395_p6), %v662_v7, %v683_v10 }
 0x19a   : > { %665 = vperm.xlu0 %20463, %v661_v0   ;;  %v688_v21 = vrot.slane %v662_v7, %v687_v11  ;;  %v692_v22 = vrot.slane %v662_v7, %v691_v12  ;;  %v696_v23 = vrot.slane %v662_v7, %v695_v13  ;;  %v700_v24 = vrot.slane %v662_v7, %v699_v14 }
 0x19b   : > { %v722_v25 = vrot.slane %v717_v15, %v671_v4  ;;  %v726_v26 = vrot.slane %v717_v15, %v675_v8  ;;  %v730_v27 = vrot.slane %v717_v15, %v679_v9  ;;  %v734_v28 = vrot.slane %v717_v15, %v683_v10 }
 0x19c   : > { %v738_v29 = vrot.slane %v717_v15, %v687_v11  ;;  %v742_v30 = vrot.slane %v717_v15, %v691_v12  ;;  %v746_v31 = vrot.slane %v717_v15, %v695_v13  ;;  %v750_v32 = vrot.slane %v717_v15, %v699_v14 }
 0x19d   : > { %v782_v33 = vsub.s32 %v779_v17, %v670_v3 }
 0x219   : > { %v666_v34 = vpop.permute.xlu0 %665 }
 0x21a   : > { %v709_v35 = vmul.f32 %v672_v16, %v666_v34  ;;  %v710_v36 = vmul.f32 %v676_v18, %v666_v34  ;;  %v711_v37 = vmul.f32 %v680_v19, %v666_v34  ;;  %v712_v38 = vmul.f32 %v684_v20, %v666_v34 }
 0x21b   : > { %v713_v39 = vmul.f32 %v688_v21, %v666_v34  ;;  %v714_v40 = vmul.f32 %v692_v22, %v666_v34  ;;  %v715_v41 = vmul.f32 %v696_v23, %v666_v34  ;;  %v716_v42 = vmul.f32 %v700_v24, %v666_v34 }
 0x21c   : > { %v759_v43 = vadd.f32 %v722_v25, %v709_v35  ;;  %v760_v44 = vadd.f32 %v726_v26, %v710_v36  ;;  %v761_v45 = vadd.f32 %v730_v27, %v711_v37  ;;  %v762_v46 = vadd.f32 %v734_v28, %v712_v38 }
 0x21d   : > { %v763_v47 = vadd.f32 %v738_v29, %v713_v39  ;;  %v764_v48 = vadd.f32 %v742_v30, %v714_v40  ;;  %v765_v49 = vadd.f32 %v746_v31, %v715_v41  ;;  %v766_v50 = vadd.f32 %v750_v32, %v716_v42 }
 0x21e   : > { %v775_v51 = vcombine.low %v759_v43, %v760_v44  ;;  %v776_v52 = vcombine.low %v761_v45, %v762_v46 }
 0x21f   : > { %v792_v53 = vcombine.low %v763_v47, %v764_v48  ;;  %v793_v54 = vcombine.low %v765_v49, %v766_v50 }
 0x220   : > { %v783_v55 = vrot.slane %v775_v51, %v782_v33  ;;  %v790_v56 = vrot.slane %v776_v52, %v782_v33 }
 0x221   : > { %v800_v57 = vrot.slane %v792_v53, %v782_v33  ;;  %v807_v58 = vrot.slane %v793_v54, %v782_v33 }
 0x222   : > { %v791_v59 = vcombine.low %v783_v55, %v790_v56 }
 0x223   : > { %v808_v60 = vcombine.low %v800_v57, %v807_v58 }
 0x224   : > { %811 = vst [vmem:[#allocation2] sm:$0xff] %v791_v59 }
 0x225   : > { %812 = vst [vmem:[#allocation2 + $0x8] sm:$0xff] %v808_v60 }
 0x226 PF: > { %v907_v61 = vld [vmem:[%s23097_s15] sm:$0xff]  ;;  %v908_v63 = vld [vmem:[%s23097_s15 + $0x8] sm:$0xff]  ;;  %v22544_v29 = vmov 1983009808   ;;  %v827_v31 = vlaneseq  ;;  %p18590_p1 = scmp.ne.s32.totalorder %s22659_s29, 4 }
 0x227   : > { %v911_v62 = vld [vmem:[%s23097_s15 + $0x20] sm:$0xff]  ;;  %v912_v1 = vld [vmem:[%s23097_s15 + $0x28] sm:$0xff]  ;;  %v825_v30 = vunpack.c.l.s4 %v22544_v29 }
 0x228   : > { %v17759_v0 = vcombine.high %v907_v61, %v911_v62  ;;  %v17758_v2 = vcombine.low %v907_v61, %v911_v62  ;;  %v915_v3 = vld [vmem:[%s23097_s15 + $0x40] sm:$0xff]  ;;  %v17761_v5 = vcombine.high %v908_v63, %v912_v1  ;;  %v17760_v6 = vcombine.low %v908_v63, %v912_v1  ;;  %v916_v8 = vld [vmem:[%s23097_s15 + $0x48] sm:$0xff] }
 0x229   : > { %v919_v4 = vld [vmem:[%s23097_s15 + $0x60] sm:$0xff]  ;;  %v920_v9 = vld [vmem:[%s23097_s15 + $0x68] sm:$0xff]  ;;  %v826_v40 = vunpack.c.0.s8 %v825_v30  ;;  %v23167_v41 = vshrl.u32 %v827_v31, 7 }
 0x22a   : > { %v17767_v7 = vcombine.high %v915_v3, %v919_v4  ;;  %v923_v10 = vld [vmem:[%s23097_s15 + $0x80] sm:$0xff]  ;;  %5899 = vmatprep.subr.bf16.mxu0 %v17759_v0  ;;  %v17769_v11 = vcombine.high %v916_v8, %v920_v9  ;;  %v924_v13 = vld [vmem:[%s23097_s15 + $0x88] sm:$0xff]  ;;  %6186 = vmatprep.subr.bf16.mxu1 %v17761_v5  ;;  %v17766_v15 = vcombine.low %v915_v3, %v919_v4 }
 0x22b   : > { %v927_v12 = vld [vmem:[%s23097_s15 + $0xa0] sm:$0xff]  ;;  %v928_v14 = vld [vmem:[%s23097_s15 + $0xa8] sm:$0xff]  ;;  %5900 = vmatpush1.bf16.msra.mxu0 %v17758_v2  ;;  %6187 = vmatpush1.bf16.msra.mxu1 %v17760_v6  ;;  %v17768_v16 = vcombine.low %v916_v8, %v920_v9  ;;  %v23174_v50 = vsub.s32 %v826_v40, %v23167_v41 }
 0x22c   : > { %5901 = vmatprep.subr.bf16.mxu0 %v17767_v7  ;;  %v17775_v17 = vcombine.high %v923_v10, %v927_v12  ;;  %6188 = vmatprep.subr.bf16.mxu1 %v17769_v11  ;;  %v17777_v18 = vcombine.high %v924_v13, %v928_v14  ;;  %v931_v19 = vld [vmem:[%s23097_s15 + $0xc0] sm:$0xff]  ;;  %v932_v21 = vld [vmem:[%s23097_s15 + $0xc8] sm:$0xff]  ;;  %v17774_v23 = vcombine.low %v923_v10, %v927_v12 }
 0x22d   : > { %v935_v20 = vld [vmem:[%s23097_s15 + $0xe0] sm:$0xff]  ;;  %v936_v22 = vld [vmem:[%s23097_s15 + $0xe8] sm:$0xff]  ;;  %v17776_v24 = vcombine.low %v924_v13, %v928_v14 }
 0x22e   : > { %v17783_v25 = vcombine.high %v931_v19, %v935_v20  ;;  %v17785_v26 = vcombine.high %v932_v21, %v936_v22  ;;  %v939_v27 = vld [vmem:[%s23097_s15 + $0x100] sm:$0xff]  ;;  %v940_v32 = vld [vmem:[%s23097_s15 + $0x108] sm:$0xff]  ;;  %v17782_v34 = vcombine.low %v931_v19, %v935_v20  ;;  %v17784_v35 = vcombine.low %v932_v21, %v936_v22 }
 0x22f   : > { %5902 = vmatpush1.bf16.msra.mxu0 %v17766_v15  ;;  %6189 = vmatpush1.bf16.msra.mxu1 %v17768_v16  ;;  %v943_v28 = vld [vmem:[%s23097_s15 + $0x120] sm:$0xff]  ;;  %v944_v33 = vld [vmem:[%s23097_s15 + $0x128] sm:$0xff] }
 0x230   : > { %5903 = vmatprep.subr.bf16.mxu0 %v17775_v17  ;;  %6190 = vmatprep.subr.bf16.mxu1 %v17777_v18  ;;  %v17791_v36 = vcombine.high %v939_v27, %v943_v28  ;;  %v17793_v37 = vcombine.high %v940_v32, %v944_v33  ;;  %v947_v38 = vld [vmem:[%s23097_s15 + $0x140] sm:$0xff]  ;;  %v948_v42 = vld [vmem:[%s23097_s15 + $0x148] sm:$0xff]  ;;  %v17790_v44 = vcombine.low %v939_v27, %v943_v28 }
 0x231   : > { %v951_v39 = vld [vmem:[%s23097_s15 + $0x160] sm:$0xff]  ;;  %v952_v43 = vld [vmem:[%s23097_s15 + $0x168] sm:$0xff]  ;;  %v17792_v45 = vcombine.low %v940_v32, %v944_v33 }
 0x232   : > { %v17799_v46 = vcombine.high %v947_v38, %v951_v39  ;;  %v17801_v47 = vcombine.high %v948_v42, %v952_v43  ;;  %v955_v48 = vld [vmem:[%s23097_s15 + $0x180] sm:$0xff]  ;;  %v956_v51 = vld [vmem:[%s23097_s15 + $0x188] sm:$0xff]  ;;  %v17798_v53 = vcombine.low %v947_v38, %v951_v39  ;;  %v17800_v54 = vcombine.low %v948_v42, %v952_v43 }
 0x233   : > { %5904 = vmatpush1.bf16.msra.mxu0 %v17774_v23  ;;  %6191 = vmatpush1.bf16.msra.mxu1 %v17776_v24  ;;  %v959_v49 = vld [vmem:[%s23097_s15 + $0x1a0] sm:$0xff]  ;;  %v960_v52 = vld [vmem:[%s23097_s15 + $0x1a8] sm:$0xff] }
 0x234   : > { %5905 = vmatprep.subr.bf16.mxu0 %v17783_v25  ;;  %6192 = vmatprep.subr.bf16.mxu1 %v17785_v26  ;;  %v17807_v55 = vcombine.high %v955_v48, %v959_v49  ;;  %v23179_v56 = vld [vmem:[%s23090_s30] sm:$0xff]  ;;  %v17809_v57 = vcombine.high %v956_v51, %v960_v52  ;;  %v17806_v63 = vcombine.low %v955_v48, %v959_v49 }
 0x235   : > { %v963_v58 = vld [vmem:[%s23097_s15 + $0x1c0] sm:$0xff]  ;;  %v23185_v60 = vrot.slane %v23179_v56, %v23174_v50  ;;  %v964_v61 = vld [vmem:[%s23097_s15 + $0x1c8] sm:$0xff]  ;;  %v17808_v1 = vcombine.low %v956_v51, %v960_v52 }
 0x236   : > { %v967_v59 = vld [vmem:[%s23097_s15 + $0x1e0] sm:$0xff]  ;;  %v968_v62 = vld [vmem:[%s23097_s15 + $0x1e8] sm:$0xff] }
 0x237   : > { %5906 = vmatpush1.bf16.msra.mxu0 %v17782_v34  ;;  %6193 = vmatpush1.bf16.msra.mxu1 %v17784_v35  ;;  %v838_v0 = vcombine.high %v23185_v60, %v23185_v60  ;;  %v17815_v2 = vcombine.high %v963_v58, %v967_v59  ;;  %v17817_v3 = vcombine.high %v964_v61, %v968_v62  ;;  %v971_v4 = vld [vmem:[%s23097_s15 + $0x200] sm:$0xff]  ;;  %v972_v7 = vld [vmem:[%s23097_s15 + $0x208] sm:$0xff] }
 0x238   : > { %5907 = vmatprep.subr.bf16.mxu0 %v17791_v36  ;;  %6194 = vmatprep.subr.bf16.mxu1 %v17793_v37  ;;  %v975_v5 = vld [vmem:[%s23097_s15 + $0x220] sm:$0xff]  ;;  %v976_v8 = vld [vmem:[%s23097_s15 + $0x228] sm:$0xff]  ;;  %v17814_v9 = vcombine.low %v963_v58, %v967_v59  ;;  %v17816_v10 = vcombine.low %v964_v61, %v968_v62 }
 0x239   : > { %v23193_v6 = vpack.c.bf16 %v838_v0, %v838_v0  ;;  %v17823_v11 = vcombine.high %v971_v4, %v975_v5  ;;  %v17825_v12 = vcombine.high %v972_v7, %v976_v8  ;;  %v979_v13 = vld [vmem:[%s23097_s15 + $0x240] sm:$0xff]  ;;  %v980_v15 = vld [vmem:[%s23097_s15 + $0x248] sm:$0xff]  ;;  %v17822_v17 = vcombine.low %v971_v4, %v975_v5 }
 0x23a   : > { %v983_v14 = vld [vmem:[%s23097_s15 + $0x260] sm:$0xff]  ;;  %v984_v16 = vld [vmem:[%s23097_s15 + $0x268] sm:$0xff]  ;;  %v17824_v18 = vcombine.low %v972_v7, %v976_v8 }
 0x23b   : > { %5908 = vmatpush1.bf16.msra.mxu0 %v17790_v44  ;;  %6195 = vmatpush1.bf16.msra.mxu1 %v17792_v45  ;;  %v17831_v19 = vcombine.high %v979_v13, %v983_v14  ;;  %v17833_v20 = vcombine.high %v980_v15, %v984_v16  ;;  %v987_v21 = vld [vmem:[%s23097_s15 + $0x280] sm:$0xff]  ;;  %v988_v23 = vld [vmem:[%s23097_s15 + $0x288] sm:$0xff]  ;;  %v17830_v25 = vcombine.low %v979_v13, %v983_v14 }
 0x23c   : > { %5909 = vmatprep.subr.bf16.mxu0 %v17799_v46  ;;  %6196 = vmatprep.subr.bf16.mxu1 %v17801_v47  ;;  %v991_v22 = vld [vmem:[%s23097_s15 + $0x2a0] sm:$0xff]  ;;  %v992_v24 = vld [vmem:[%s23097_s15 + $0x2a8] sm:$0xff]  ;;  %v17832_v26 = vcombine.low %v980_v15, %v984_v16 }
 0x23d   : > { %5931 = vmatprep.mubr.bf16.mxu0 %v23193_v6  ;;  %6218 = vmatprep.mubr.bf16.mxu1 %v23193_v6  ;;  %v17839_v27 = vcombine.high %v987_v21, %v991_v22  ;;  %v17841_v28 = vcombine.high %v988_v23, %v992_v24  ;;  %v995_v29 = vld [vmem:[%s23097_s15 + $0x2c0] sm:$0xff]  ;;  %v996_v31 = vld [vmem:[%s23097_s15 + $0x2c8] sm:$0xff]  ;;  %v17838_v33 = vcombine.low %v987_v21, %v991_v22 }
 0x23e   : > { %v999_v30 = vld [vmem:[%s23097_s15 + $0x2e0] sm:$0xff]  ;;  %v1000_v32 = vld [vmem:[%s23097_s15 + $0x2e8] sm:$0xff]  ;;  %v17840_v34 = vcombine.low %v988_v23, %v992_v24  ;;  %v23242_v22 = vpack.c.bf16 %v23185_v60, %v23185_v60 }
 0x23f   : > { %5910 = vmatpush1.bf16.msra.mxu0 %v17798_v53  ;;  %6197 = vmatpush1.bf16.msra.mxu1 %v17800_v54  ;;  %v17847_v35 = vcombine.high %v995_v29, %v999_v30  ;;  %v17849_v36 = vcombine.high %v996_v31, %v1000_v32  ;;  %v1003_v37 = vld [vmem:[%s23097_s15 + $0x300] sm:$0xff]  ;;  %v1004_v39 = vld [vmem:[%s23097_s15 + $0x308] sm:$0xff]  ;;  %v17846_v42 = vcombine.low %v995_v29, %v999_v30 }
 0x240   : > { %5911 = vmatprep.subr.bf16.mxu0 %v17807_v55  ;;  %6198 = vmatprep.subr.bf16.mxu1 %v17809_v57  ;;  %v1007_v38 = vld [vmem:[%s23097_s15 + $0x320] sm:$0xff]  ;;  %v1008_v40 = vld [vmem:[%s23097_s15 + $0x328] sm:$0xff]  ;;  %v17848_v43 = vcombine.low %v996_v31, %v1000_v32 }
 0x241   : > { %v17855_v44 = vcombine.high %v1003_v37, %v1007_v38  ;;  %v17857_v45 = vcombine.high %v1004_v39, %v1008_v40  ;;  %v1011_v46 = vld [vmem:[%s23097_s15 + $0x340] sm:$0xff]  ;;  %v1012_v48 = vld [vmem:[%s23097_s15 + $0x348] sm:$0xff]  ;;  %v17854_v51 = vcombine.low %v1003_v37, %v1007_v38  ;;  %v17856_v52 = vcombine.low %v1004_v39, %v1008_v40 }
 0x242   : > { %v1015_v47 = vld [vmem:[%s23097_s15 + $0x360] sm:$0xff]  ;;  %v1016_v49 = vld [vmem:[%s23097_s15 + $0x368] sm:$0xff] }
 0x243   : > { %5912 = vmatpush1.bf16.msra.mxu0 %v17806_v63  ;;  %6199 = vmatpush1.bf16.msra.mxu1 %v17808_v1  ;;  %v17863_v53 = vcombine.high %v1011_v46, %v1015_v47  ;;  %v17865_v54 = vcombine.high %v1012_v48, %v1016_v49  ;;  %v1019_v55 = vld [vmem:[%s23097_s15 + $0x380] sm:$0xff]  ;;  %v1020_v58 = vld [vmem:[%s23097_s15 + $0x388] sm:$0xff]  ;;  %v17862_v61 = vcombine.low %v1011_v46, %v1015_v47 }
 0x244   : > { %5913 = vmatprep.subr.bf16.mxu0 %v17815_v2  ;;  %6200 = vmatprep.subr.bf16.mxu1 %v17817_v3  ;;  %v1023_v57 = vld [vmem:[%s23097_s15 + $0x3a0] sm:$0xff]  ;;  %v1024_v59 = vld [vmem:[%s23097_s15 + $0x3a8] sm:$0xff]  ;;  %v17864_v62 = vcombine.low %v1012_v48, %v1016_v49  ;;  %v823_v3 = vcombine.high %v23179_v56, %v23179_v56 }
 0x245   : > { %v17871_v63 = vcombine.high %v1019_v55, %v1023_v57  ;;  %v17873_v0 = vcombine.high %v1020_v58, %v1024_v59  ;;  %v1027_v1 = vld [vmem:[%s23097_s15 + $0x3c0] sm:$0xff]  ;;  %v1028_v4 = vld [vmem:[%s23097_s15 + $0x3c8] sm:$0xff]  ;;  %v17870_v7 = vcombine.low %v1019_v55, %v1023_v57  ;;  %v17872_v8 = vcombine.low %v1020_v58, %v1024_v59 }
 0x246   : > { %v1031_v2 = vld [vmem:[%s23097_s15 + $0x3e0] sm:$0xff]  ;;  %v1032_v5 = vld [vmem:[%s23097_s15 + $0x3e8] sm:$0xff]  ;;  %v23232_v13 = vrot.slane %v823_v3, %v23174_v50 }
 0x247   : > { %5914 = vmatpush1.bf16.msra.mxu0 %v17814_v9  ;;  %6201 = vmatpush1.bf16.msra.mxu1 %v17816_v10  ;;  %v17879_v9 = vcombine.high %v1027_v1, %v1031_v2  ;;  %v17881_v10 = vcombine.high %v1028_v4, %v1032_v5  ;;  %v1036_v56 = vld [vmem:[%s23097_s15 + $0x408] sm:$0xff]  ;;  %v17878_v15 = vcombine.low %v1027_v1, %v1031_v2  ;;  %v1051_v29 = vld [vmem:[%s23097_s15 + $0x480] sm:$0xff] }
 0x248   : > { %5915 = vmatprep.subr.bf16.mxu0 %v17823_v11  ;;  %6202 = vmatprep.subr.bf16.mxu1 %v17825_v12  ;;  %v1035_v11 = vld [vmem:[%s23097_s15 + $0x400] sm:$0xff]  ;;  %v1040_v14 = vld [vmem:[%s23097_s15 + $0x428] sm:$0xff]  ;;  %v17880_v16 = vcombine.low %v1028_v4, %v1032_v5  ;;  %v839_v21 = vcombine.high %v23232_v13, %v23232_v13 }
 0x249   : > { %v1039_v12 = vld [vmem:[%s23097_s15 + $0x420] sm:$0xff]  ;;  %v1044_v23 = vld [vmem:[%s23097_s15 + $0x448] sm:$0xff] }
 0x24a   : > { %v1048_v24 = vld [vmem:[%s23097_s15 + $0x468] sm:$0xff]  ;;  %v1055_v30 = vld [vmem:[%s23097_s15 + $0x4a0] sm:$0xff]  ;;  %v23248_v31 = vpack.c.bf16 %v839_v21, %v839_v21 }
 0x24b   : > { %5916 = vmatpush1.bf16.msra.mxu0 %v17822_v17  ;;  %6203 = vmatpush1.bf16.msra.mxu1 %v17824_v18  ;;  %v17887_v17 = vcombine.high %v1035_v11, %v1039_v12  ;;  %v17889_v18 = vcombine.high %v1036_v56, %v1040_v14  ;;  %v1052_v60 = vld [vmem:[%s23097_s15 + $0x488] sm:$0xff]  ;;  %v1059_v37 = vld [vmem:[%s23097_s15 + $0x4c0] sm:$0xff] }
 0x24c   : > { %5917 = vmatprep.subr.bf16.mxu0 %v17831_v19  ;;  %6204 = vmatprep.subr.bf16.mxu1 %v17833_v20  ;;  %v1043_v19 = vld [vmem:[%s23097_s15 + $0x440] sm:$0xff]  ;;  %v1056_v32 = vld [vmem:[%s23097_s15 + $0x4a8] sm:$0xff] }
 0x24d   : > { %v1047_v20 = vld [vmem:[%s23097_s15 + $0x460] sm:$0xff]  ;;  %v1060_v39 = vld [vmem:[%s23097_s15 + $0x4c8] sm:$0xff] }
 0x24e   : > { %v1063_v38 = vld [vmem:[%s23097_s15 + $0x4e0] sm:$0xff]  ;;  %v1064_v40 = vld [vmem:[%s23097_s15 + $0x4e8] sm:$0xff] }
 0x24f   : > { %5918 = vmatpush1.bf16.msra.mxu0 %v17830_v25  ;;  %6205 = vmatpush1.bf16.msra.mxu1 %v17832_v26  ;;  %v17886_v25 = vcombine.low %v1035_v11, %v1039_v12  ;;  %v17888_v26 = vcombine.low %v1036_v56, %v1040_v14  ;;  %v1067_v46 = vld [vmem:[%s23097_s15 + $0x500] sm:$0xff]  ;;  %v1068_v48 = vld [vmem:[%s23097_s15 + $0x508] sm:$0xff] }
 0x250   : > { %5919 = vmatprep.subr.bf16.mxu0 %v17839_v27  ;;  %6206 = vmatprep.subr.bf16.mxu1 %v17841_v28  ;;  %v17895_v27 = vcombine.high %v1043_v19, %v1047_v20  ;;  %v17897_v28 = vcombine.high %v1044_v23, %v1048_v24  ;;  %v1071_v47 = vld [vmem:[%s23097_s15 + $0x520] sm:$0xff]  ;;  %v1072_v49 = vld [vmem:[%s23097_s15 + $0x528] sm:$0xff] }
 0x251   : > { %v1075_v55 = vld [vmem:[%s23097_s15 + $0x540] sm:$0xff]  ;;  %v1076_v58 = vld [vmem:[%s23097_s15 + $0x548] sm:$0xff] }
 0x252   : > { %v1079_v57 = vld [vmem:[%s23097_s15 + $0x560] sm:$0xff]  ;;  %v1080_v59 = vld [vmem:[%s23097_s15 + $0x568] sm:$0xff] }
 0x253   : > { %5920 = vmatpush1.bf16.msra.mxu0 %v17838_v33  ;;  %6207 = vmatpush1.bf16.msra.mxu1 %v17840_v34  ;;  %v17894_v33 = vcombine.low %v1043_v19, %v1047_v20  ;;  %v17896_v34 = vcombine.low %v1044_v23, %v1048_v24  ;;  %v1083_v1 = vld [vmem:[%s23097_s15 + $0x580] sm:$0xff]  ;;  %v1084_v3 = vld [vmem:[%s23097_s15 + $0x588] sm:$0xff]  ;;  %v17926_v5 = vcombine.low %v1075_v55, %v1079_v57 }
 0x254   : > { %5921 = vmatprep.subr.bf16.mxu0 %v17847_v35  ;;  %6208 = vmatprep.subr.bf16.mxu1 %v17849_v36  ;;  %v17903_v35 = vcombine.high %v1051_v29, %v1055_v30  ;;  %v17905_v36 = vcombine.high %v1052_v60, %v1056_v32  ;;  %v1087_v2 = vld [vmem:[%s23097_s15 + $0x5a0] sm:$0xff]  ;;  %v1088_v4 = vld [vmem:[%s23097_s15 + $0x5a8] sm:$0xff] }
 0x255   : > { %v1095_v11 = vld [vmem:[%s23097_s15 + $0x5e0] sm:$0xff]  ;;  %v1092_v12 = vld [vmem:[%s23097_s15 + $0x5c8] sm:$0xff]  ;;  %v17934_v14 = vcombine.low %v1083_v1, %v1087_v2 }
 0x256   : > { %v1096_v56 = vld [vmem:[%s23097_s15 + $0x5e8] sm:$0xff]  ;;  %v1103_v19 = vld [vmem:[%s23097_s15 + $0x620] sm:$0xff] }
 0x257   : > { %5922 = vmatpush1.bf16.msra.mxu0 %v17846_v42  ;;  %6209 = vmatpush1.bf16.msra.mxu1 %v17848_v43  ;;  %v17902_v42 = vcombine.low %v1051_v29, %v1055_v30  ;;  %v17904_v43 = vcombine.low %v1052_v60, %v1056_v32  ;;  %v1100_v20 = vld [vmem:[%s23097_s15 + $0x608] sm:$0xff]  ;;  %v17944_v24 = vcombine.low %v1092_v12, %v1096_v56 }
 0x258   : > { %5923 = vmatprep.subr.bf16.mxu0 %v17855_v44  ;;  %6210 = vmatprep.subr.bf16.mxu1 %v17857_v45  ;;  %v17911_v44 = vcombine.high %v1059_v37, %v1063_v38  ;;  %v17913_v45 = vcombine.high %v1060_v39, %v1064_v40  ;;  %v1104_v21 = vld [vmem:[%s23097_s15 + $0x628] sm:$0xff] }
 0x259   : > { %v1108_v29 = vld [vmem:[%s23097_s15 + $0x648] sm:$0xff]  ;;  %v17952_v32 = vcombine.low %v1100_v20, %v1104_v21 }
 0x25a   : > { %v1112_v30 = vld [vmem:[%s23097_s15 + $0x668] sm:$0xff] }
 0x25b   : > { %5924 = vmatpush1.bf16.msra.mxu0 %v17854_v51  ;;  %6211 = vmatpush1.bf16.msra.mxu1 %v17856_v52  ;;  %v17910_v51 = vcombine.low %v1059_v37, %v1063_v38  ;;  %v17912_v52 = vcombine.low %v1060_v39, %v1064_v40  ;;  %v1116_v37 = vld [vmem:[%s23097_s15 + $0x688] sm:$0xff]  ;;  %v17960_v40 = vcombine.low %v1108_v29, %v1112_v30 }
 0x25c   : > { %5925 = vmatprep.subr.bf16.mxu0 %v17863_v53  ;;  %6212 = vmatprep.subr.bf16.mxu1 %v17865_v54  ;;  %v17919_v53 = vcombine.high %v1067_v46, %v1071_v47  ;;  %v17921_v54 = vcombine.high %v1068_v48, %v1072_v49  ;;  %v1120_v38 = vld [vmem:[%s23097_s15 + $0x6a8] sm:$0xff] }
 0x25f   : > { %5926 = vmatpush1.bf16.msra.mxu0 %v17862_v61  ;;  %6213 = vmatpush1.bf16.msra.mxu1 %v17864_v62  ;;  %v17918_v61 = vcombine.low %v1067_v46, %v1071_v47  ;;  %v17920_v62 = vcombine.low %v1068_v48, %v1072_v49  ;;  %v1124_v46 = vld [vmem:[%s23097_s15 + $0x6c8] sm:$0xff]  ;;  %v17968_v49 = vcombine.low %v1116_v37, %v1120_v38 }
 0x260   : > { %5927 = vmatprep.subr.bf16.mxu0 %v17871_v63  ;;  %6214 = vmatprep.subr.bf16.mxu1 %v17873_v0  ;;  %v17927_v63 = vcombine.high %v1075_v55, %v1079_v57  ;;  %v17929_v0 = vcombine.high %v1076_v58, %v1080_v59  ;;  %v1128_v47 = vld [vmem:[%s23097_s15 + $0x6e8] sm:$0xff] }
 0x261   : > { %v1132_v55 = vld [vmem:[%s23097_s15 + $0x708] sm:$0xff] }
 0x262   : > { %v1136_v57 = vld [vmem:[%s23097_s15 + $0x728] sm:$0xff] }
 0x263   : > { %5928 = vmatpush1.bf16.msra.mxu0 %v17870_v7  ;;  %6215 = vmatpush1.bf16.msra.mxu1 %v17872_v8  ;;  %v17928_v7 = vcombine.low %v1076_v58, %v1080_v59  ;;  %v17935_v8 = vcombine.high %v1083_v1, %v1087_v2  ;;  %v17976_v59 = vcombine.low %v1124_v46, %v1128_v47  ;;  %v1140_v1 = vld [vmem:[%s23097_s15 + $0x748] sm:$0xff] }
 0x264   : > { %5929 = vmatprep.subr.bf16.mxu0 %v17879_v9  ;;  %6216 = vmatprep.subr.bf16.mxu1 %v17881_v10  ;;  %v17937_v9 = vcombine.high %v1084_v3, %v1088_v4  ;;  %v1091_v10 = vld [vmem:[%s23097_s15 + $0x5c0] sm:$0xff]  ;;  %v1144_v2 = vld [vmem:[%s23097_s15 + $0x768] sm:$0xff] }
 0x265   : > { %v17942_v23 = vcombine.low %v1091_v10, %v1095_v11 }
 0x267   : > { %5930 = vmatpush1.bf16.msra.mxu0 %v17878_v15  ;;  %6217 = vmatpush1.bf16.msra.mxu1 %v17880_v16  ;;  %v17936_v15 = vcombine.low %v1084_v3, %v1088_v4  ;;  %v17943_v16 = vcombine.high %v1091_v10, %v1095_v11  ;;  %v17984_v4 = vcombine.low %v1132_v55, %v1136_v57  ;;  %v1148_v10 = vld [vmem:[%s23097_s15 + $0x788] sm:$0xff] }
 0x268   : > { %5940 = vmatprep.subr.bf16.mxu0 %v17887_v17  ;;  %6227 = vmatprep.subr.bf16.mxu1 %v17889_v18  ;;  %v17945_v17 = vcombine.high %v1092_v12, %v1096_v56  ;;  %v1099_v18 = vld [vmem:[%s23097_s15 + $0x600] sm:$0xff]  ;;  %v1152_v11 = vld [vmem:[%s23097_s15 + $0x7a8] sm:$0xff]  ;;  %v17992_v56 = vcombine.low %v1140_v1, %v1144_v2 }
 0x269   : > { %v17950_v60 = vcombine.low %v1099_v18, %v1103_v19 }
 0x26a   : > { %5932 = vmatmul.mubr.bf16.vlgmr.msra.gmra.mrb[0].mxu0 %v23242_v22  ;;  %6219 = vmatmul.mubr.bf16.vlgmr.msra.gmra.mrb[0].mxu1 %v23242_v22 }
 0x26b   : > { %5941 = vmatpush1.bf16.msra.mxu0 %v17886_v25  ;;  %6228 = vmatpush1.bf16.msra.mxu1 %v17888_v26  ;;  %v17951_v25 = vcombine.high %v1099_v18, %v1103_v19  ;;  %v17953_v26 = vcombine.high %v1100_v20, %v1104_v21  ;;  %v1156_v18 = vld [vmem:[%s23097_s15 + $0x7c8] sm:$0xff] }
 0x26c   : > { %5942 = vmatprep.subr.bf16.mxu0 %v17895_v27  ;;  %6229 = vmatprep.subr.bf16.mxu1 %v17897_v28  ;;  %v1107_v27 = vld [vmem:[%s23097_s15 + $0x640] sm:$0xff]  ;;  %v1160_v19 = vld [vmem:[%s23097_s15 + $0x7e8] sm:$0xff] }
 0x26d   : > { %5972 = vmatprep.mubr.bf16.mxu0 %v23248_v31  ;;  %6259 = vmatprep.mubr.bf16.mxu1 %v23248_v31  ;;  %v1111_v28 = vld [vmem:[%s23097_s15 + $0x660] sm:$0xff]  ;;  %v23309_v20 = vld [vmem:[%s23090_s30 + $0x8] sm:$0xff] }
 0x26e   : > { %v17958_v39 = vcombine.low %v1107_v27, %v1111_v28 }
 0x26f   : > { %5943 = vmatpush1.bf16.msra.mxu0 %v17894_v33  ;;  %6230 = vmatpush1.bf16.msra.mxu1 %v17896_v34  ;;  %v17959_v33 = vcombine.high %v1107_v27, %v1111_v28  ;;  %v17961_v34 = vcombine.high %v1108_v29, %v1112_v30  ;;  %v1167_v27 = vld [vmem:[%s23097_s15 + $0x820] sm:$0xff]  ;;  %v23315_v28 = vrot.slane %v23309_v20, %v23174_v50  ;;  %v1164_v29 = vld [vmem:[%s23097_s15 + $0x808] sm:$0xff] }
 0x270   : > { %5944 = vmatprep.subr.bf16.mxu0 %v17903_v35  ;;  %6231 = vmatprep.subr.bf16.mxu1 %v17905_v36  ;;  %v1115_v35 = vld [vmem:[%s23097_s15 + $0x680] sm:$0xff]  ;;  %v1168_v30 = vld [vmem:[%s23097_s15 + $0x828] sm:$0xff] }
 0x271   : > { %v1119_v36 = vld [vmem:[%s23097_s15 + $0x6a0] sm:$0xff] }
 0x272   : > { %v17966_v48 = vcombine.low %v1115_v35, %v1119_v36 }
 0x273   : > { %5945 = vmatpush1.bf16.msra.mxu0 %v17902_v42  ;;  %6232 = vmatpush1.bf16.msra.mxu1 %v17904_v43  ;;  %v17967_v42 = vcombine.high %v1115_v35, %v1119_v36  ;;  %v17969_v43 = vcombine.high %v1116_v37, %v1120_v38  ;;  %v1171_v35 = vld [vmem:[%s23097_s15 + $0x840] sm:$0xff]  ;;  %v855_v37 = vcombine.high %v23315_v28, %v23315_v28 }
 0x274   : > { %5946 = vmatprep.subr.bf16.mxu0 %v17911_v44  ;;  %6233 = vmatprep.subr.bf16.mxu1 %v17913_v45  ;;  %v1123_v44 = vld [vmem:[%s23097_s15 + $0x6c0] sm:$0xff]  ;;  %v23325_v38 = vpack.c.bf16 %v23232_v13, %v23232_v13  ;;  %v1180_v13 = vld [vmem:[%s23097_s15 + $0x888] sm:$0xff] }
 0x275   : > { %v1127_v45 = vld [vmem:[%s23097_s15 + $0x6e0] sm:$0xff] }
 0x276   : > { %v17974_v58 = vcombine.low %v1123_v44, %v1127_v45  ;;  %v1175_v36 = vld [vmem:[%s23097_s15 + $0x860] sm:$0xff] }
 0x277   : > { %5947 = vmatpush1.bf16.msra.mxu0 %v17910_v51  ;;  %6234 = vmatpush1.bf16.msra.mxu1 %v17912_v52  ;;  %v17975_v51 = vcombine.high %v1123_v44, %v1127_v45  ;;  %v17977_v52 = vcombine.high %v1124_v46, %v1128_v47  ;;  %v18023_v44 = vcombine.high %v1171_v35, %v1175_v36  ;;  %v1179_v46 = vld [vmem:[%s23097_s15 + $0x880] sm:$0xff] }
 0x278   : > { %5948 = vmatprep.subr.bf16.mxu0 %v17919_v53  ;;  %6235 = vmatprep.subr.bf16.mxu1 %v17921_v54  ;;  %v1131_v53 = vld [vmem:[%s23097_s15 + $0x700] sm:$0xff] }
 0x279   : > { %v1135_v54 = vld [vmem:[%s23097_s15 + $0x720] sm:$0xff] }
 0x27a   : > { %v17982_v3 = vcombine.low %v1131_v53, %v1135_v54  ;;  %v1183_v47 = vld [vmem:[%s23097_s15 + $0x8a0] sm:$0xff] }
 0x27b   : > { %5949 = vmatpush1.bf16.msra.mxu0 %v17918_v61  ;;  %6236 = vmatpush1.bf16.msra.mxu1 %v17920_v62  ;;  %v17983_v61 = vcombine.high %v1131_v53, %v1135_v54  ;;  %v17985_v62 = vcombine.high %v1132_v55, %v1136_v57  ;;  %v18031_v53 = vcombine.high %v1179_v46, %v1183_v47  ;;  %v1187_v55 = vld [vmem:[%s23097_s15 + $0x8c0] sm:$0xff] }
 0x27c   : > { %5950 = vmatprep.subr.bf16.mxu0 %v17927_v63  ;;  %6237 = vmatprep.subr.bf16.mxu1 %v17929_v0  ;;  %v1139_v63 = vld [vmem:[%s23097_s15 + $0x740] sm:$0xff] }
 0x27d   : > { %v1143_v0 = vld [vmem:[%s23097_s15 + $0x760] sm:$0xff] }
 0x27e   : > { %v17990_v12 = vcombine.low %v1139_v63, %v1143_v0  ;;  %v1191_v57 = vld [vmem:[%s23097_s15 + $0x8e0] sm:$0xff] }
 0x27f   : > { %5951 = vmatpush1.bf16.msra.mxu0 %v17926_v5  ;;  %6238 = vmatpush1.bf16.msra.mxu1 %v17928_v7  ;;  %v17991_v5 = vcombine.high %v1139_v63, %v1143_v0  ;;  %v17993_v7 = vcombine.high %v1140_v1, %v1144_v2  ;;  %v18039_v63 = vcombine.high %v1187_v55, %v1191_v57  ;;  %v1195_v1 = vld [vmem:[%s23097_s15 + $0x900] sm:$0xff] }
 0x280   : > { %5952 = vmatprep.subr.bf16.mxu0 %v17935_v8  ;;  %6239 = vmatprep.subr.bf16.mxu1 %v17937_v9  ;;  %v1147_v8 = vld [vmem:[%s23097_s15 + $0x780] sm:$0xff] }
 0x281   : > { %v1151_v9 = vld [vmem:[%s23097_s15 + $0x7a0] sm:$0xff] }
 0x282   : > { %v17998_v21 = vcombine.low %v1147_v8, %v1151_v9  ;;  %v1199_v2 = vld [vmem:[%s23097_s15 + $0x920] sm:$0xff] }
 0x283   : > { %5953 = vmatpush1.bf16.msra.mxu0 %v17934_v14  ;;  %6240 = vmatpush1.bf16.msra.mxu1 %v17936_v15  ;;  %v17999_v14 = vcombine.high %v1147_v8, %v1151_v9  ;;  %v18001_v15 = vcombine.high %v1148_v10, %v1152_v11  ;;  %v18047_v8 = vcombine.high %v1195_v1, %v1199_v2 }
 0x284   : > { %5954 = vmatprep.subr.bf16.mxu0 %v17943_v16  ;;  %6241 = vmatprep.subr.bf16.mxu1 %v17945_v17  ;;  %v1155_v16 = vld [vmem:[%s23097_s15 + $0x7c0] sm:$0xff] }
 0x285   : > { %v1159_v17 = vld [vmem:[%s23097_s15 + $0x7e0] sm:$0xff] }
 0x287   : > { %5955 = vmatpush1.bf16.msra.mxu0 %v17942_v23  ;;  %6242 = vmatpush1.bf16.msra.mxu1 %v17944_v24  ;;  %v18000_v23 = vcombine.low %v1148_v10, %v1152_v11  ;;  %v18007_v24 = vcombine.high %v1155_v16, %v1159_v17  ;;  %v1203_v10 = vld [vmem:[%s23097_s15 + $0x940] sm:$0xff] }
 0x288   : > { %5956 = vmatprep.subr.bf16.mxu0 %v17951_v25  ;;  %6243 = vmatprep.subr.bf16.mxu1 %v17953_v26  ;;  %v18009_v25 = vcombine.high %v1156_v18, %v1160_v19  ;;  %v1163_v26 = vld [vmem:[%s23097_s15 + $0x800] sm:$0xff] }
 0x289   : > { %v1207_v11 = vld [vmem:[%s23097_s15 + $0x960] sm:$0xff] }
 0x28b   : > { %5957 = vmatpush1.bf16.msra.mxu0 %v17950_v60  ;;  %6244 = vmatpush1.bf16.msra.mxu1 %v17952_v32  ;;  %v18006_v60 = vcombine.low %v1155_v16, %v1159_v17  ;;  %v18008_v32 = vcombine.low %v1156_v18, %v1160_v19  ;;  %v18055_v16 = vcombine.high %v1203_v10, %v1207_v11  ;;  %v1211_v18 = vld [vmem:[%s23097_s15 + $0x980] sm:$0xff] }
 0x28c   : > { %5958 = vmatprep.subr.bf16.mxu0 %v17959_v33  ;;  %6245 = vmatprep.subr.bf16.mxu1 %v17961_v34  ;;  %v18015_v33 = vcombine.high %v1163_v26, %v1167_v27  ;;  %v18017_v34 = vcombine.high %v1164_v29, %v1168_v30  ;;  %v1215_v19 = vld [vmem:[%s23097_s15 + $0x9a0] sm:$0xff] }
 0x28f   : > { %5959 = vmatpush1.bf16.msra.mxu0 %v17958_v39  ;;  %6246 = vmatpush1.bf16.msra.mxu1 %v17960_v40  ;;  %v1172_v39 = vld [vmem:[%s23097_s15 + $0x848] sm:$0xff] }
 0x290   : > { %5960 = vmatprep.subr.bf16.mxu0 %v17967_v42  ;;  %6247 = vmatprep.subr.bf16.mxu1 %v17969_v43  ;;  %v1176_v40 = vld [vmem:[%s23097_s15 + $0x868] sm:$0xff]  ;;  %v18014_v42 = vcombine.low %v1163_v26, %v1167_v27  ;;  %v18016_v43 = vcombine.low %v1164_v29, %v1168_v30  ;;  %v18063_v26 = vcombine.high %v1211_v18, %v1215_v19  ;;  %v1219_v29 = vld [vmem:[%s23097_s15 + $0x9c0] sm:$0xff] }
 0x291   : > { %v18025_v45 = vcombine.high %v1172_v39, %v1176_v40  ;;  %v1223_v30 = vld [vmem:[%s23097_s15 + $0x9e0] sm:$0xff] }
 0x293   : > { %5961 = vmatpush1.bf16.msra.mxu0 %v17966_v48  ;;  %6248 = vmatpush1.bf16.msra.mxu1 %v17968_v49  ;;  %v23331_v48 = vpack.c.bf16 %v855_v37, %v855_v37  ;;  %v1184_v49 = vld [vmem:[%s23097_s15 + $0x8a8] sm:$0xff]  ;;  %v1227_v37 = vld [vmem:[%s23097_s15 + $0xa00] sm:$0xff] }
 0x294   : > { %5962 = vmatprep.subr.bf16.mxu0 %v17975_v51  ;;  %6249 = vmatprep.subr.bf16.mxu1 %v17977_v52  ;;  %v18022_v51 = vcombine.low %v1171_v35, %v1175_v36  ;;  %v18024_v52 = vcombine.low %v1172_v39, %v1176_v40  ;;  %v18033_v54 = vcombine.high %v1180_v13, %v1184_v49  ;;  %v1231_v39 = vld [vmem:[%s23097_s15 + $0xa20] sm:$0xff]  ;;  %v1228_v40 = vld [vmem:[%s23097_s15 + $0xa08] sm:$0xff] }
 0x295   : > { %v18071_v35 = vcombine.high %v1219_v29, %v1223_v30 }
 0x297   : > { %5963 = vmatpush1.bf16.msra.mxu0 %v17974_v58  ;;  %6250 = vmatpush1.bf16.msra.mxu1 %v17976_v59  ;;  %v1188_v58 = vld [vmem:[%s23097_s15 + $0x8c8] sm:$0xff] }
 0x298   : > { %5964 = vmatprep.subr.bf16.mxu0 %v17983_v61  ;;  %6251 = vmatprep.subr.bf16.mxu1 %v17985_v62  ;;  %v1192_v59 = vld [vmem:[%s23097_s15 + $0x8e8] sm:$0xff]  ;;  %v18030_v61 = vcombine.low %v1179_v46, %v1183_v47  ;;  %v18032_v62 = vcombine.low %v1180_v13, %v1184_v49  ;;  %v1235_v47 = vld [vmem:[%s23097_s15 + $0xa40] sm:$0xff] }
 0x299   : > { %v18041_v0 = vcombine.high %v1188_v58, %v1192_v59  ;;  %v1239_v13 = vld [vmem:[%s23097_s15 + $0xa60] sm:$0xff]  ;;  %v1236_v49 = vld [vmem:[%s23097_s15 + $0xa48] sm:$0xff] }
 0x29b   : > { %5965 = vmatpush1.bf16.msra.mxu0 %v17982_v3  ;;  %6252 = vmatpush1.bf16.msra.mxu1 %v17984_v4  ;;  %v1196_v3 = vld [vmem:[%s23097_s15 + $0x908] sm:$0xff] }
 0x29c   : > { %5966 = vmatprep.subr.bf16.mxu0 %v17991_v5  ;;  %6253 = vmatprep.subr.bf16.mxu1 %v17993_v7  ;;  %v1200_v4 = vld [vmem:[%s23097_s15 + $0x928] sm:$0xff]  ;;  %v18038_v5 = vcombine.low %v1187_v55, %v1191_v57  ;;  %v18040_v7 = vcombine.low %v1188_v58, %v1192_v59  ;;  %v1243_v57 = vld [vmem:[%s23097_s15 + $0xa80] sm:$0xff] }
 0x29d   : > { %v18049_v9 = vcombine.high %v1196_v3, %v1200_v4  ;;  %v1247_v58 = vld [vmem:[%s23097_s15 + $0xaa0] sm:$0xff]  ;;  %v1244_v59 = vld [vmem:[%s23097_s15 + $0xa88] sm:$0xff] }
 0x29f   : > { %5967 = vmatpush1.bf16.msra.mxu0 %v17990_v12  ;;  %6254 = vmatpush1.bf16.msra.mxu1 %v17992_v56  ;;  %v1204_v12 = vld [vmem:[%s23097_s15 + $0x948] sm:$0xff] }
 0x2a0   : > { %5968 = vmatprep.subr.bf16.mxu0 %v17999_v14  ;;  %6255 = vmatprep.subr.bf16.mxu1 %v18001_v15  ;;  %v1208_v56 = vld [vmem:[%s23097_s15 + $0x968] sm:$0xff]  ;;  %v18046_v14 = vcombine.low %v1195_v1, %v1199_v2  ;;  %v18048_v15 = vcombine.low %v1196_v3, %v1200_v4  ;;  %v1251_v2 = vld [vmem:[%s23097_s15 + $0xac0] sm:$0xff] }
 0x2a1   : > { %v18057_v17 = vcombine.high %v1204_v12, %v1208_v56  ;;  %v1255_v3 = vld [vmem:[%s23097_s15 + $0xae0] sm:$0xff]  ;;  %v1252_v4 = vld [vmem:[%s23097_s15 + $0xac8] sm:$0xff] }
 0x2a3   : > { %5969 = vmatpush1.bf16.msra.mxu0 %v17998_v21  ;;  %6256 = vmatpush1.bf16.msra.mxu1 %v18000_v23  ;;  %v1212_v21 = vld [vmem:[%s23097_s15 + $0x988] sm:$0xff] }
 0x2a4   : > { %5970 = vmatprep.subr.bf16.mxu0 %v18007_v24  ;;  %6257 = vmatprep.subr.bf16.mxu1 %v18009_v25  ;;  %v1216_v23 = vld [vmem:[%s23097_s15 + $0x9a8] sm:$0xff]  ;;  %v18054_v24 = vcombine.low %v1203_v10, %v1207_v11  ;;  %v18056_v25 = vcombine.low %v1204_v12, %v1208_v56  ;;  %v1259_v11 = vld [vmem:[%s23097_s15 + $0xb00] sm:$0xff] }
 0x2a5   : > { %v18065_v27 = vcombine.high %v1212_v21, %v1216_v23  ;;  %v1263_v12 = vld [vmem:[%s23097_s15 + $0xb20] sm:$0xff]  ;;  %v1260_v56 = vld [vmem:[%s23097_s15 + $0xb08] sm:$0xff] }
 0x2a7   : > { %5971 = vmatpush1.bf16.msra.mxu0 %v18006_v60  ;;  %6258 = vmatpush1.bf16.msra.mxu1 %v18008_v32  ;;  %v1220_v60 = vld [vmem:[%s23097_s15 + $0x9c8] sm:$0xff] }
 0x2a8   : > { %5981 = vmatprep.subr.bf16.mxu0 %v18015_v33  ;;  %6268 = vmatprep.subr.bf16.mxu1 %v18017_v34  ;;  %v1224_v32 = vld [vmem:[%s23097_s15 + $0x9e8] sm:$0xff]  ;;  %v18062_v33 = vcombine.low %v1211_v18, %v1215_v19  ;;  %v18064_v34 = vcombine.low %v1212_v21, %v1216_v23  ;;  %v1267_v19 = vld [vmem:[%s23097_s15 + $0xb40] sm:$0xff] }
 0x2a9   : > { %v18073_v36 = vcombine.high %v1220_v60, %v1224_v32  ;;  %v1271_v21 = vld [vmem:[%s23097_s15 + $0xb60] sm:$0xff]  ;;  %v1268_v23 = vld [vmem:[%s23097_s15 + $0xb48] sm:$0xff] }
 0x2aa   : > { %5973 = vmatmul.mubr.bf16.vlgmr.msra.gmra.mrb[0].mxu0 %v23325_v38  ;;  %6260 = vmatmul.mubr.bf16.vlgmr.msra.gmra.mrb[0].mxu1 %v23325_v38 }
 0x2ab   : > { %5982 = vmatpush1.bf16.msra.mxu0 %v18014_v42  ;;  %6269 = vmatpush1.bf16.msra.mxu1 %v18016_v43  ;;  %v1232_v42 = vld [vmem:[%s23097_s15 + $0xa28] sm:$0xff]  ;;  %v18070_v43 = vcombine.low %v1219_v29, %v1223_v30  ;;  %v1275_v30 = vld [vmem:[%s23097_s15 + $0xb80] sm:$0xff] }
 0x2ac   : > { %5983 = vmatprep.subr.bf16.mxu0 %v18023_v44  ;;  %6270 = vmatprep.subr.bf16.mxu1 %v18025_v45  ;;  %v18072_v44 = vcombine.low %v1220_v60, %v1224_v32  ;;  %v18079_v45 = vcombine.high %v1227_v37, %v1231_v39  ;;  %v18081_v46 = vcombine.high %v1228_v40, %v1232_v42  ;;  %v1279_v60 = vld [vmem:[%s23097_s15 + $0xba0] sm:$0xff]  ;;  %v1276_v32 = vld [vmem:[%s23097_s15 + $0xb88] sm:$0xff] }
 0x2ad   : > { %6013 = vmatprep.mubr.bf16.mxu0 %v23331_v48  ;;  %6300 = vmatprep.mubr.bf16.mxu1 %v23331_v48 }
 0x2af   : > { %5984 = vmatpush1.bf16.msra.mxu0 %v18022_v51  ;;  %6271 = vmatpush1.bf16.msra.mxu1 %v18024_v52  ;;  %v1240_v51 = vld [vmem:[%s23097_s15 + $0xa68] sm:$0xff]  ;;  %v18078_v52 = vcombine.low %v1227_v37, %v1231_v39  ;;  %v1283_v39 = vld [vmem:[%s23097_s15 + $0xbc0] sm:$0xff] }
 0x2b0   : > { %5985 = vmatprep.subr.bf16.mxu0 %v18031_v53  ;;  %6272 = vmatprep.subr.bf16.mxu1 %v18033_v54  ;;  %v18080_v53 = vcombine.low %v1228_v40, %v1232_v42  ;;  %v18087_v54 = vcombine.high %v1235_v47, %v1239_v13  ;;  %v18089_v55 = vcombine.high %v1236_v49, %v1240_v51  ;;  %v1287_v40 = vld [vmem:[%s23097_s15 + $0xbe0] sm:$0xff] }
 0x2b1   : > { %v840_v42 = vcombine.high %v23309_v20, %v23309_v20  ;;  %v1292_v20 = vld [vmem:[%s23097_s15 + $0xc08] sm:$0xff] }
 0x2b3   : > { %5986 = vmatpush1.bf16.msra.mxu0 %v18030_v61  ;;  %6273 = vmatpush1.bf16.msra.mxu1 %v18032_v62  ;;  %v1248_v61 = vld [vmem:[%s23097_s15 + $0xaa8] sm:$0xff]  ;;  %v18086_v62 = vcombine.low %v1235_v47, %v1239_v13  ;;  %v18135_v47 = vcombine.high %v1283_v39, %v1287_v40 }
 0x2b4   : > { %5987 = vmatprep.subr.bf16.mxu0 %v18039_v63  ;;  %6274 = vmatprep.subr.bf16.mxu1 %v18041_v0  ;;  %v18088_v63 = vcombine.low %v1236_v49, %v1240_v51  ;;  %v18095_v0 = vcombine.high %v1243_v57, %v1247_v58  ;;  %v18097_v1 = vcombine.high %v1244_v59, %v1248_v61  ;;  %v1291_v49 = vld [vmem:[%s23097_s15 + $0xc00] sm:$0xff] }
 0x2b5   : > { %v1295_v51 = vld [vmem:[%s23097_s15 + $0xc20] sm:$0xff] }
 0x2b7   : > { %5988 = vmatpush1.bf16.msra.mxu0 %v18038_v5  ;;  %6275 = vmatpush1.bf16.msra.mxu1 %v18040_v7  ;;  %v1256_v5 = vld [vmem:[%s23097_s15 + $0xae8] sm:$0xff]  ;;  %v18094_v7 = vcombine.low %v1243_v57, %v1247_v58  ;;  %v18143_v57 = vcombine.high %v1291_v49, %v1295_v51 }
 0x2b8   : > { %5989 = vmatprep.subr.bf16.mxu0 %v18047_v8  ;;  %6276 = vmatprep.subr.bf16.mxu1 %v18049_v9  ;;  %v18096_v8 = vcombine.low %v1244_v59, %v1248_v61  ;;  %v18103_v9 = vcombine.high %v1251_v2, %v1255_v3  ;;  %v18105_v10 = vcombine.high %v1252_v4, %v1256_v5  ;;  %v1299_v59 = vld [vmem:[%s23097_s15 + $0xc40] sm:$0xff] }
 0x2b9   : > { %v1303_v61 = vld [vmem:[%s23097_s15 + $0xc60] sm:$0xff] }
 0x2bb   : > { %5990 = vmatpush1.bf16.msra.mxu0 %v18046_v14  ;;  %6277 = vmatpush1.bf16.msra.mxu1 %v18048_v15  ;;  %v1264_v14 = vld [vmem:[%s23097_s15 + $0xb28] sm:$0xff]  ;;  %v18102_v15 = vcombine.low %v1251_v2, %v1255_v3  ;;  %v18142_v2 = vcombine.low %v1291_v49, %v1295_v51 }
 0x2bc   : > { %5991 = vmatprep.subr.bf16.mxu0 %v18055_v16  ;;  %6278 = vmatprep.subr.bf16.mxu1 %v18057_v17  ;;  %v18104_v16 = vcombine.low %v1252_v4, %v1256_v5  ;;  %v18111_v17 = vcombine.high %v1259_v11, %v1263_v12  ;;  %v18113_v18 = vcombine.high %v1260_v56, %v1264_v14 }
 0x2bd   : > { %v18151_v4 = vcombine.high %v1299_v59, %v1303_v61 }
 0x2bf   : > { %5992 = vmatpush1.bf16.msra.mxu0 %v18054_v24  ;;  %6279 = vmatpush1.bf16.msra.mxu1 %v18056_v25  ;;  %v1272_v24 = vld [vmem:[%s23097_s15 + $0xb68] sm:$0xff]  ;;  %v18110_v25 = vcombine.low %v1259_v11, %v1263_v12  ;;  %v18150_v11 = vcombine.low %v1299_v59, %v1303_v61 }
 0x2c0   : > { %5993 = vmatprep.subr.bf16.mxu0 %v18063_v26  ;;  %6280 = vmatprep.subr.bf16.mxu1 %v18065_v27  ;;  %v18112_v26 = vcombine.low %v1260_v56, %v1264_v14  ;;  %v18119_v27 = vcombine.high %v1267_v19, %v1271_v21  ;;  %v18121_v29 = vcombine.high %v1268_v23, %v1272_v24 }
 0x2c3   : > { %5994 = vmatpush1.bf16.msra.mxu0 %v18062_v33  ;;  %6281 = vmatpush1.bf16.msra.mxu1 %v18064_v34  ;;  %v1280_v33 = vld [vmem:[%s23097_s15 + $0xba8] sm:$0xff]  ;;  %v18118_v34 = vcombine.low %v1267_v19, %v1271_v21 }
 0x2c4   : > { %5995 = vmatprep.subr.bf16.mxu0 %v18071_v35  ;;  %6282 = vmatprep.subr.bf16.mxu1 %v18073_v36  ;;  %v18120_v35 = vcombine.low %v1268_v23, %v1272_v24  ;;  %v18127_v36 = vcombine.high %v1275_v30, %v1279_v60  ;;  %v18129_v37 = vcombine.high %v1276_v32, %v1280_v33 }
 0x2c7   : > { %5996 = vmatpush1.bf16.msra.mxu0 %v18070_v43  ;;  %6283 = vmatpush1.bf16.msra.mxu1 %v18072_v44  ;;  %v1284_v43 = vld [vmem:[%s23097_s15 + $0xbc8] sm:$0xff] }
 0x2c8   : > { %5997 = vmatprep.subr.bf16.mxu0 %v18079_v45  ;;  %6284 = vmatprep.subr.bf16.mxu1 %v18081_v46  ;;  %v1288_v44 = vld [vmem:[%s23097_s15 + $0xbe8] sm:$0xff]  ;;  %v18126_v45 = vcombine.low %v1275_v30, %v1279_v60  ;;  %v18128_v46 = vcombine.low %v1276_v32, %v1280_v33 }
 0x2c9   : > { %v18137_v13 = vcombine.high %v1284_v43, %v1288_v44 }
 0x2cb   : > { %5998 = vmatpush1.bf16.msra.mxu0 %v18078_v52  ;;  %6285 = vmatpush1.bf16.msra.mxu1 %v18080_v53  ;;  %v23396_v52 = vrot.slane %v840_v42, %v23174_v50  ;;  %v1296_v53 = vld [vmem:[%s23097_s15 + $0xc28] sm:$0xff] }
 0x2cc   : > { %5999 = vmatprep.subr.bf16.mxu0 %v18087_v54  ;;  %6286 = vmatprep.subr.bf16.mxu1 %v18089_v55  ;;  %v18134_v54 = vcombine.low %v1283_v39, %v1287_v40  ;;  %v18136_v55 = vcombine.low %v1284_v43, %v1288_v44  ;;  %v18145_v58 = vcombine.high %v1292_v20, %v1296_v53  ;;  %v1339_v44 = vld [vmem:[%s23097_s15 + $0xd80] sm:$0xff] }
 0x2cd   : > { %v18144_v3 = vcombine.low %v1292_v20, %v1296_v53  ;;  %v1347_v53 = vld [vmem:[%s23097_s15 + $0xdc0] sm:$0xff] }
 0x2cf   : > { %6000 = vmatpush1.bf16.msra.mxu0 %v18086_v62  ;;  %6287 = vmatpush1.bf16.msra.mxu1 %v18088_v63  ;;  %v856_v62 = vcombine.high %v23396_v52, %v23396_v52  ;;  %v23406_v63 = vpack.c.bf16 %v23315_v28, %v23315_v28  ;;  %v1308_v28 = vld [vmem:[%s23097_s15 + $0xc88] sm:$0xff] }
 0x2d0   : > { %6001 = vmatprep.subr.bf16.mxu0 %v18095_v0  ;;  %6288 = vmatprep.subr.bf16.mxu1 %v18097_v1  ;;  %v1300_v0 = vld [vmem:[%s23097_s15 + $0xc48] sm:$0xff] }
 0x2d1   : > { %v1304_v1 = vld [vmem:[%s23097_s15 + $0xc68] sm:$0xff] }
 0x2d2   : > { %v18153_v5 = vcombine.high %v1300_v0, %v1304_v1  ;;  %v18152_v12 = vcombine.low %v1300_v0, %v1304_v1  ;;  %v1355_v0 = vld [vmem:[%s23097_s15 + $0xe00] sm:$0xff] }
 0x2d3   : > { %6002 = vmatpush1.bf16.msra.mxu0 %v18094_v7  ;;  %6289 = vmatpush1.bf16.msra.mxu1 %v18096_v8  ;;  %v1307_v7 = vld [vmem:[%s23097_s15 + $0xc80] sm:$0xff] }
 0x2d4   : > { %6003 = vmatprep.subr.bf16.mxu0 %v18103_v9  ;;  %6290 = vmatprep.subr.bf16.mxu1 %v18105_v10  ;;  %v1311_v8 = vld [vmem:[%s23097_s15 + $0xca0] sm:$0xff]  ;;  %v23412_v9 = vpack.c.bf16 %v856_v62, %v856_v62  ;;  %v1312_v10 = vld [vmem:[%s23097_s15 + $0xca8] sm:$0xff] }
 0x2d5   : > { %v18159_v56 = vcombine.high %v1307_v7, %v1311_v8  ;;  %v18161_v14 = vcombine.high %v1308_v28, %v1312_v10  ;;  %v18158_v19 = vcombine.low %v1307_v7, %v1311_v8  ;;  %v18160_v21 = vcombine.low %v1308_v28, %v1312_v10  ;;  %v1359_v1 = vld [vmem:[%s23097_s15 + $0xe20] sm:$0xff] }
 0x2d6   : > { %v18207_v7 = vcombine.high %v1355_v0, %v1359_v1  ;;  %v1363_v28 = vld [vmem:[%s23097_s15 + $0xe40] sm:$0xff] }
 0x2d7   : > { %6004 = vmatpush1.bf16.msra.mxu0 %v18102_v15  ;;  %6291 = vmatpush1.bf16.msra.mxu1 %v18104_v16  ;;  %v1315_v15 = vld [vmem:[%s23097_s15 + $0xcc0] sm:$0xff] }
 0x2d8   : > { %6005 = vmatprep.subr.bf16.mxu0 %v18111_v17  ;;  %6292 = vmatprep.subr.bf16.mxu1 %v18113_v18  ;;  %v1319_v16 = vld [vmem:[%s23097_s15 + $0xce0] sm:$0xff]  ;;  %v1316_v17 = vld [vmem:[%s23097_s15 + $0xcc8] sm:$0xff] }
 0x2d9   : > { %v1320_v18 = vld [vmem:[%s23097_s15 + $0xce8] sm:$0xff]  ;;  %v18167_v23 = vcombine.high %v1315_v15, %v1319_v16  ;;  %v18166_v30 = vcombine.low %v1315_v15, %v1319_v16  ;;  %v1367_v10 = vld [vmem:[%s23097_s15 + $0xe60] sm:$0xff] }
 0x2da   : > { %v18169_v24 = vcombine.high %v1316_v17, %v1320_v18  ;;  %v18168_v60 = vcombine.low %v1316_v17, %v1320_v18  ;;  %v18215_v15 = vcombine.high %v1363_v28, %v1367_v10  ;;  %v1371_v17 = vld [vmem:[%s23097_s15 + $0xe80] sm:$0xff] }
 0x2db   : > { %6006 = vmatpush1.bf16.msra.mxu0 %v18110_v25  ;;  %6293 = vmatpush1.bf16.msra.mxu1 %v18112_v26  ;;  %v1323_v25 = vld [vmem:[%s23097_s15 + $0xd00] sm:$0xff] }
 0x2dc   : > { %6007 = vmatprep.subr.bf16.mxu0 %v18119_v27  ;;  %6294 = vmatprep.subr.bf16.mxu1 %v18121_v29  ;;  %v1327_v26 = vld [vmem:[%s23097_s15 + $0xd20] sm:$0xff]  ;;  %v1324_v27 = vld [vmem:[%s23097_s15 + $0xd08] sm:$0xff] }
 0x2dd   : > { %v1328_v29 = vld [vmem:[%s23097_s15 + $0xd28] sm:$0xff]  ;;  %v18175_v32 = vcombine.high %v1323_v25, %v1327_v26  ;;  %v18174_v39 = vcombine.low %v1323_v25, %v1327_v26  ;;  %v1375_v18 = vld [vmem:[%s23097_s15 + $0xea0] sm:$0xff] }
 0x2de   : > { %v18177_v33 = vcombine.high %v1324_v27, %v1328_v29  ;;  %v18176_v40 = vcombine.low %v1324_v27, %v1328_v29  ;;  %v18223_v25 = vcombine.high %v1371_v17, %v1375_v18  ;;  %v1379_v27 = vld [vmem:[%s23097_s15 + $0xec0] sm:$0xff] }
 0x2df   : > { %6008 = vmatpush1.bf16.msra.mxu0 %v18118_v34  ;;  %6295 = vmatpush1.bf16.msra.mxu1 %v18120_v35  ;;  %v1331_v34 = vld [vmem:[%s23097_s15 + $0xd40] sm:$0xff] }
 0x2e0   : > { %6009 = vmatprep.subr.bf16.mxu0 %v18127_v36  ;;  %6296 = vmatprep.subr.bf16.mxu1 %v18129_v37  ;;  %v1335_v35 = vld [vmem:[%s23097_s15 + $0xd60] sm:$0xff]  ;;  %v1332_v36 = vld [vmem:[%s23097_s15 + $0xd48] sm:$0xff] }
 0x2e1   : > { %v1336_v37 = vld [vmem:[%s23097_s15 + $0xd68] sm:$0xff]  ;;  %v18183_v42 = vcombine.high %v1331_v34, %v1335_v35  ;;  %v1383_v29 = vld [vmem:[%s23097_s15 + $0xee0] sm:$0xff] }
 0x2e2   : > { %v18185_v43 = vcombine.high %v1332_v36, %v1336_v37  ;;  %v18184_v49 = vcombine.low %v1332_v36, %v1336_v37  ;;  %v1387_v36 = vld [vmem:[%s23097_s15 + $0xf00] sm:$0xff] }
 0x2e3   : > { %6010 = vmatpush1.bf16.msra.mxu0 %v18126_v45  ;;  %6297 = vmatpush1.bf16.msra.mxu1 %v18128_v46  ;;  %v1343_v45 = vld [vmem:[%s23097_s15 + $0xda0] sm:$0xff]  ;;  %v1340_v46 = vld [vmem:[%s23097_s15 + $0xd88] sm:$0xff] }
 0x2e4   : > { %6011 = vmatprep.subr.bf16.mxu0 %v18135_v47  ;;  %6298 = vmatprep.subr.bf16.mxu1 %v18137_v13  ;;  %v1344_v47 = vld [vmem:[%s23097_s15 + $0xda8] sm:$0xff]  ;;  %v18182_v13 = vcombine.low %v1331_v34, %v1335_v35  ;;  %v18191_v51 = vcombine.high %v1339_v44, %v1343_v45  ;;  %v18231_v34 = vcombine.high %v1379_v27, %v1383_v29  ;;  %v1391_v37 = vld [vmem:[%s23097_s15 + $0xf20] sm:$0xff] }
 0x2e5   : > { %v18193_v20 = vcombine.high %v1340_v46, %v1344_v47  ;;  %v18192_v59 = vcombine.low %v1340_v46, %v1344_v47  ;;  %v1395_v46 = vld [vmem:[%s23097_s15 + $0xf40] sm:$0xff] }
 0x2e6   : > { %v1399_v47 = vld [vmem:[%s23097_s15 + $0xf60] sm:$0xff] }
 0x2e7   : > { %6012 = vmatpush1.bf16.msra.mxu0 %v18134_v54  ;;  %6299 = vmatpush1.bf16.msra.mxu1 %v18136_v55  ;;  %v1351_v54 = vld [vmem:[%s23097_s15 + $0xde0] sm:$0xff]  ;;  %v1348_v55 = vld [vmem:[%s23097_s15 + $0xdc8] sm:$0xff] }
 0x2e8   : > { %6022 = vmatprep.subr.bf16.mxu0 %v18143_v57  ;;  %6309 = vmatprep.subr.bf16.mxu1 %v18145_v58  ;;  %v1352_v57 = vld [vmem:[%s23097_s15 + $0xde8] sm:$0xff]  ;;  %v18190_v58 = vcombine.low %v1339_v44, %v1343_v45  ;;  %v18199_v61 = vcombine.high %v1347_v53, %v1351_v54  ;;  %v18239_v44 = vcombine.high %v1387_v36, %v1391_v37 }
 0x2e9   : > { %v18201_v62 = vcombine.high %v1348_v55, %v1352_v57 }
 0x2ea   : > { %6014 = vmatmul.mubr.bf16.vlgmr.msra.gmra.mrb[0].mxu0 %v23406_v63  ;;  %6301 = vmatmul.mubr.bf16.vlgmr.msra.gmra.mrb[0].mxu1 %v23406_v63 }
 0x2eb   : > { %6023 = vmatpush1.bf16.msra.mxu0 %v18142_v2  ;;  %6310 = vmatpush1.bf16.msra.mxu1 %v18144_v3  ;;  %v1356_v2 = vld [vmem:[%s23097_s15 + $0xe08] sm:$0xff] }
 0x2ec   : > { %6024 = vmatprep.subr.bf16.mxu0 %v18151_v4  ;;  %6311 = vmatprep.subr.bf16.mxu1 %v18153_v5  ;;  %v1360_v3 = vld [vmem:[%s23097_s15 + $0xe28] sm:$0xff]  ;;  %v18198_v4 = vcombine.low %v1347_v53, %v1351_v54  ;;  %v18200_v5 = vcombine.low %v1348_v55, %v1352_v57  ;;  %v18247_v53 = vcombine.high %v1395_v46, %v1399_v47  ;;  %v1403_v55 = vld [vmem:[%s23097_s15 + $0xf80] sm:$0xff] }
 0x2ed   : > { %6054 = vmatprep.mubr.bf16.mxu0 %v23412_v9  ;;  %6341 = vmatprep.mubr.bf16.mxu1 %v23412_v9  ;;  %v18209_v8 = vcombine.high %v1356_v2, %v1360_v3  ;;  %v1407_v57 = vld [vmem:[%s23097_s15 + $0xfa0] sm:$0xff] }
 0x2ef   : > { %6025 = vmatpush1.bf16.msra.mxu0 %v18150_v11  ;;  %6312 = vmatpush1.bf16.msra.mxu1 %v18152_v12  ;;  %v1364_v11 = vld [vmem:[%s23097_s15 + $0xe48] sm:$0xff] }
 0x2f0   : > { %6026 = vmatprep.subr.bf16.mxu0 %v18159_v56  ;;  %6313 = vmatprep.subr.bf16.mxu1 %v18161_v14  ;;  %v1368_v12 = vld [vmem:[%s23097_s15 + $0xe68] sm:$0xff]  ;;  %v18206_v56 = vcombine.low %v1355_v0, %v1359_v1  ;;  %v18208_v14 = vcombine.low %v1356_v2, %v1360_v3  ;;  %v18255_v0 = vcombine.high %v1403_v55, %v1407_v57  ;;  %v1411_v2 = vld [vmem:[%s23097_s15 + $0xfc0] sm:$0xff] }
 0x2f1   : > { %v18217_v16 = vcombine.high %v1364_v11, %v1368_v12  ;;  %v1415_v3 = vld [vmem:[%s23097_s15 + $0xfe0] sm:$0xff] }
 0x2f3   : > { %6027 = vmatpush1.bf16.msra.mxu0 %v18158_v19  ;;  %6314 = vmatpush1.bf16.msra.mxu1 %v18160_v21  ;;  %v1372_v19 = vld [vmem:[%s23097_s15 + $0xe88] sm:$0xff] }
 0x2f4   : > { %6028 = vmatprep.subr.bf16.mxu0 %v18167_v23  ;;  %6315 = vmatprep.subr.bf16.mxu1 %v18169_v24  ;;  %v1376_v21 = vld [vmem:[%s23097_s15 + $0xea8] sm:$0xff]  ;;  %v18214_v23 = vcombine.low %v1363_v28, %v1367_v10  ;;  %v18216_v24 = vcombine.low %v1364_v11, %v1368_v12  ;;  %v18263_v10 = vcombine.high %v1411_v2, %v1415_v3  ;;  %v1419_v12 = vld [vmem:[%s23097_s15 + $0x1000] sm:$0xff] }
 0x2f5   : > { %v18225_v26 = vcombine.high %v1372_v19, %v1376_v21 }
 0x2f7   : > { %6029 = vmatpush1.bf16.msra.mxu0 %v18166_v30  ;;  %6316 = vmatpush1.bf16.msra.mxu1 %v18168_v60  ;;  %v1380_v30 = vld [vmem:[%s23097_s15 + $0xec8] sm:$0xff] }
 0x2f8   : > { %6030 = vmatprep.subr.bf16.mxu0 %v18175_v32  ;;  %6317 = vmatprep.subr.bf16.mxu1 %v18177_v33  ;;  %v1384_v60 = vld [vmem:[%s23097_s15 + $0xee8] sm:$0xff]  ;;  %v18222_v32 = vcombine.low %v1371_v17, %v1375_v18  ;;  %v18224_v33 = vcombine.low %v1372_v19, %v1376_v21  ;;  %v18262_v17 = vcombine.low %v1411_v2, %v1415_v3 }
 0x2f9   : > { %v18233_v35 = vcombine.high %v1380_v30, %v1384_v60  ;;  %v1460_v2 = vld [vmem:[%s23097_s15 + $0x1148] sm:$0xff] }
 0x2fa   : > { %v1464_v3 = vld [vmem:[%s23097_s15 + $0x1168] sm:$0xff] }
 0x2fb   : > { %6031 = vmatpush1.bf16.msra.mxu0 %v18174_v39  ;;  %6318 = vmatpush1.bf16.msra.mxu1 %v18176_v40  ;;  %v1388_v39 = vld [vmem:[%s23097_s15 + $0xf08] sm:$0xff] }
 0x2fc   : > { %6032 = vmatprep.subr.bf16.mxu0 %v18183_v42  ;;  %6319 = vmatprep.subr.bf16.mxu1 %v18185_v43  ;;  %v1392_v40 = vld [vmem:[%s23097_s15 + $0xf28] sm:$0xff]  ;;  %v18230_v42 = vcombine.low %v1379_v27, %v1383_v29  ;;  %v18232_v43 = vcombine.low %v1380_v30, %v1384_v60 }
 0x2fd   : > { %v18241_v45 = vcombine.high %v1388_v39, %v1392_v40  ;;  %v1428_v27 = vld [vmem:[%s23097_s15 + $0x1048] sm:$0xff] }
 0x2fe   : > { %v1432_v29 = vld [vmem:[%s23097_s15 + $0x1068] sm:$0xff] }
 0x2ff   : > { %6033 = vmatpush1.bf16.msra.mxu0 %v18182_v13  ;;  %6320 = vmatpush1.bf16.msra.mxu1 %v18184_v49  ;;  %v1396_v13 = vld [vmem:[%s23097_s15 + $0xf48] sm:$0xff] }
 0x300   : > { %6034 = vmatprep.subr.bf16.mxu0 %v18191_v51  ;;  %6321 = vmatprep.subr.bf16.mxu1 %v18193_v20  ;;  %v1400_v49 = vld [vmem:[%s23097_s15 + $0xf68] sm:$0xff]  ;;  %v18238_v51 = vcombine.low %v1387_v36, %v1391_v37  ;;  %v18240_v20 = vcombine.low %v1388_v39, %v1392_v40  ;;  %v18280_v40 = vcombine.low %v1428_v27, %v1432_v29 }
 0x301   : > { %v18249_v54 = vcombine.high %v1396_v13, %v1400_v49  ;;  %v1440_v37 = vld [vmem:[%s23097_s15 + $0x10a8] sm:$0xff] }
 0x303   : > { %6035 = vmatpush1.bf16.msra.mxu0 %v18190_v58  ;;  %6322 = vmatpush1.bf16.msra.mxu1 %v18192_v59  ;;  %v1404_v58 = vld [vmem:[%s23097_s15 + $0xf88] sm:$0xff] }
 0x304   : > { %6036 = vmatprep.subr.bf16.mxu0 %v18199_v61  ;;  %6323 = vmatprep.subr.bf16.mxu1 %v18201_v62  ;;  %v1408_v59 = vld [vmem:[%s23097_s15 + $0xfa8] sm:$0xff]  ;;  %v18246_v61 = vcombine.low %v1395_v46, %v1399_v47  ;;  %v18248_v62 = vcombine.low %v1396_v13, %v1400_v49 }
 0x305   : > { %v18257_v1 = vcombine.high %v1404_v58, %v1408_v59  ;;  %v18256_v28 = vcombine.low %v1404_v58, %v1408_v59  ;;  %v1444_v46 = vld [vmem:[%s23097_s15 + $0x10c8] sm:$0xff] }
 0x306   : > { %v1448_v47 = vld [vmem:[%s23097_s15 + $0x10e8] sm:$0xff] }
 0x307   : > { %6037 = vmatpush1.bf16.msra.mxu0 %v18198_v4  ;;  %6324 = vmatpush1.bf16.msra.mxu1 %v18200_v5  ;;  %v1412_v4 = vld [vmem:[%s23097_s15 + $0xfc8] sm:$0xff]  ;;  %v18296_v59 = vcombine.low %v1444_v46, %v1448_v47 }
 0x308   : > { %6038 = vmatprep.subr.bf16.mxu0 %v18207_v7  ;;  %6325 = vmatprep.subr.bf16.mxu1 %v18209_v8  ;;  %v1416_v5 = vld [vmem:[%s23097_s15 + $0xfe8] sm:$0xff]  ;;  %v23473_v7 = vld [vmem:[%s23090_s30 + $0x10] sm:$0xff]  ;;  %v18254_v8 = vcombine.low %v1403_v55, %v1407_v57 }
 0x309   : > { %v18265_v11 = vcombine.high %v1412_v4, %v1416_v5  ;;  %v18264_v18 = vcombine.low %v1412_v4, %v1416_v5  ;;  %v1452_v55 = vld [vmem:[%s23097_s15 + $0x1108] sm:$0xff] }
 0x30a   : > { %v1456_v57 = vld [vmem:[%s23097_s15 + $0x1128] sm:$0xff] }
 0x30b   : > { %6039 = vmatpush1.bf16.msra.mxu0 %v18206_v56  ;;  %6326 = vmatpush1.bf16.msra.mxu1 %v18208_v14  ;;  %v1423_v56 = vld [vmem:[%s23097_s15 + $0x1020] sm:$0xff]  ;;  %v23479_v14 = vrot.slane %v23473_v7, %v23174_v50  ;;  %v18304_v5 = vcombine.low %v1452_v55, %v1456_v57 }
 0x30c   : > { %6040 = vmatprep.subr.bf16.mxu0 %v18215_v15  ;;  %6327 = vmatprep.subr.bf16.mxu1 %v18217_v16  ;;  %v1420_v15 = vld [vmem:[%s23097_s15 + $0x1008] sm:$0xff]  ;;  %v18271_v19 = vcombine.high %v1419_v12, %v1423_v56  ;;  %v18270_v30 = vcombine.low %v1419_v12, %v1423_v56 }
 0x30d   : > { %v1424_v16 = vld [vmem:[%s23097_s15 + $0x1028] sm:$0xff] }
 0x30e   : > { %v18273_v21 = vcombine.high %v1420_v15, %v1424_v16  ;;  %v18272_v60 = vcombine.low %v1420_v15, %v1424_v16  ;;  %v1468_v12 = vld [vmem:[%s23097_s15 + $0x1188] sm:$0xff]  ;;  %v18312_v16 = vcombine.low %v1460_v2, %v1464_v3 }
 0x30f   : > { %6041 = vmatpush1.bf16.msra.mxu0 %v18214_v23  ;;  %6328 = vmatpush1.bf16.msra.mxu1 %v18216_v24  ;;  %v1427_v23 = vld [vmem:[%s23097_s15 + $0x1040] sm:$0xff]  ;;  %v1472_v56 = vld [vmem:[%s23097_s15 + $0x11a8] sm:$0xff] }
 0x310   : > { %6042 = vmatprep.subr.bf16.mxu0 %v18223_v25  ;;  %6329 = vmatprep.subr.bf16.mxu1 %v18225_v26  ;;  %v1431_v24 = vld [vmem:[%s23097_s15 + $0x1060] sm:$0xff]  ;;  %v872_v25 = vcombine.high %v23479_v14, %v23479_v14  ;;  %v23489_v26 = vpack.c.bf16 %v23396_v52, %v23396_v52  ;;  %v1436_v52 = vld [vmem:[%s23097_s15 + $0x1088] sm:$0xff] }
 0x311   : > { %v18278_v39 = vcombine.low %v1427_v23, %v1431_v24  ;;  %v18288_v49 = vcombine.low %v1436_v52, %v1440_v37 }
 0x312   : > { %v23495_v36 = vpack.c.bf16 %v872_v25, %v872_v25 }
 0x313   : > { %6043 = vmatpush1.bf16.msra.mxu0 %v18222_v32  ;;  %6330 = vmatpush1.bf16.msra.mxu1 %v18224_v33  ;;  %v18279_v32 = vcombine.high %v1427_v23, %v1431_v24  ;;  %v18281_v33 = vcombine.high %v1428_v27, %v1432_v29  ;;  %v1476_v23 = vld [vmem:[%s23097_s15 + $0x11c8] sm:$0xff]  ;;  %v18320_v27 = vcombine.low %v1468_v12, %v1472_v56 }
 0x314   : > { %6044 = vmatprep.subr.bf16.mxu0 %v18231_v34  ;;  %6331 = vmatprep.subr.bf16.mxu1 %v18233_v35  ;;  %v1435_v34 = vld [vmem:[%s23097_s15 + $0x1080] sm:$0xff]  ;;  %v1480_v24 = vld [vmem:[%s23097_s15 + $0x11e8] sm:$0xff] }
 0x315   : > { %v1439_v35 = vld [vmem:[%s23097_s15 + $0x10a0] sm:$0xff] }
 0x316   : > { %v18286_v13 = vcombine.low %v1435_v34, %v1439_v35 }
 0x317   : > { %6045 = vmatpush1.bf16.msra.mxu0 %v18230_v42  ;;  %6332 = vmatpush1.bf16.msra.mxu1 %v18232_v43  ;;  %v18287_v42 = vcombine.high %v1435_v34, %v1439_v35  ;;  %v18289_v43 = vcombine.high %v1436_v52, %v1440_v37  ;;  %v1488_v34 = vld [vmem:[%s23097_s15 + $0x1228] sm:$0xff]  ;;  %v18328_v52 = vcombine.low %v1476_v23, %v1480_v24 }
 0x318   : > { %6046 = vmatprep.subr.bf16.mxu0 %v18239_v44  ;;  %6333 = vmatprep.subr.bf16.mxu1 %v18241_v45  ;;  %v1443_v44 = vld [vmem:[%s23097_s15 + $0x10c0] sm:$0xff] }
 0x319   : > { %v1447_v45 = vld [vmem:[%s23097_s15 + $0x10e0] sm:$0xff] }
 0x31a   : > { %v18294_v58 = vcombine.low %v1443_v44, %v1447_v45 }
 0x31b   : > { %6047 = vmatpush1.bf16.msra.mxu0 %v18238_v51  ;;  %6334 = vmatpush1.bf16.msra.mxu1 %v18240_v20  ;;  %v18295_v51 = vcombine.high %v1443_v44, %v1447_v45  ;;  %v18297_v20 = vcombine.high %v1444_v46, %v1448_v47  ;;  %v1496_v44 = vld [vmem:[%s23097_s15 + $0x1268] sm:$0xff] }
 0x31c   : > { %6048 = vmatprep.subr.bf16.mxu0 %v18247_v53  ;;  %6335 = vmatprep.subr.bf16.mxu1 %v18249_v54  ;;  %v1451_v53 = vld [vmem:[%s23097_s15 + $0x1100] sm:$0xff] }
 0x31d   : > { %v1455_v54 = vld [vmem:[%s23097_s15 + $0x1120] sm:$0xff] }
 0x31e   : > { %v18302_v4 = vcombine.low %v1451_v53, %v1455_v54 }
 0x31f   : > { %6049 = vmatpush1.bf16.msra.mxu0 %v18246_v61  ;;  %6336 = vmatpush1.bf16.msra.mxu1 %v18248_v62  ;;  %v18303_v61 = vcombine.high %v1451_v53, %v1455_v54  ;;  %v18305_v62 = vcombine.high %v1452_v55, %v1456_v57  ;;  %v1504_v53 = vld [vmem:[%s23097_s15 + $0x12a8] sm:$0xff] }
 0x320   : > { %6050 = vmatprep.subr.bf16.mxu0 %v18255_v0  ;;  %6337 = vmatprep.subr.bf16.mxu1 %v18257_v1  ;;  %v1459_v0 = vld [vmem:[%s23097_s15 + $0x1140] sm:$0xff] }
 0x321   : > { %v1463_v1 = vld [vmem:[%s23097_s15 + $0x1160] sm:$0xff] }
 0x322   : > { %v18310_v15 = vcombine.low %v1459_v0, %v1463_v1 }
 0x323   : > { %6051 = vmatpush1.bf16.msra.mxu0 %v18254_v8  ;;  %6338 = vmatpush1.bf16.msra.mxu1 %v18256_v28  ;;  %v18311_v8 = vcombine.high %v1459_v0, %v1463_v1  ;;  %v18313_v28 = vcombine.high %v1460_v2, %v1464_v3  ;;  %v1512_v0 = vld [vmem:[%s23097_s15 + $0x12e8] sm:$0xff] }
 0x324   : > { %6052 = vmatprep.subr.bf16.mxu0 %v18263_v10  ;;  %6339 = vmatprep.subr.bf16.mxu1 %v18265_v11  ;;  %v1467_v10 = vld [vmem:[%s23097_s15 + $0x1180] sm:$0xff] }
 0x325   : > { %v1471_v11 = vld [vmem:[%s23097_s15 + $0x11a0] sm:$0xff] }
 0x326   : > { %v18318_v25 = vcombine.low %v1467_v10, %v1471_v11 }
 0x327   : > { %6053 = vmatpush1.bf16.msra.mxu0 %v18262_v17  ;;  %6340 = vmatpush1.bf16.msra.mxu1 %v18264_v18  ;;  %v18319_v17 = vcombine.high %v1467_v10, %v1471_v11  ;;  %v18321_v18 = vcombine.high %v1468_v12, %v1472_v56  ;;  %v1520_v10 = vld [vmem:[%s23097_s15 + $0x1328] sm:$0xff] }
 0x328   : > { %6063 = vmatprep.subr.bf16.mxu0 %v18271_v19  ;;  %6350 = vmatprep.subr.bf16.mxu1 %v18273_v21  ;;  %v1475_v19 = vld [vmem:[%s23097_s15 + $0x11c0] sm:$0xff] }
 0x329   : > { %v1479_v21 = vld [vmem:[%s23097_s15 + $0x11e0] sm:$0xff] }
 0x32a   : > { %6055 = vmatmul.mubr.bf16.vlgmr.msra.gmra.mrb[0].mxu0 %v23489_v26  ;;  %6342 = vmatmul.mubr.bf16.vlgmr.msra.gmra.mrb[0].mxu1 %v23489_v26  ;;  %v18327_v29 = vcombine.high %v1475_v19, %v1479_v21  ;;  %v18326_v35 = vcombine.low %v1475_v19, %v1479_v21  ;;  %v1528_v19 = vld [vmem:[%s23097_s15 + $0x1368] sm:$0xff] }
 0x32b   : > { %6064 = vmatpush1.bf16.msra.mxu0 %v18270_v30  ;;  %6351 = vmatpush1.bf16.msra.mxu1 %v18272_v60  ;;  %v18329_v30 = vcombine.high %v1476_v23, %v1480_v24  ;;  %v1483_v60 = vld [vmem:[%s23097_s15 + $0x1200] sm:$0xff] }
 0x32c   : > { %6065 = vmatprep.subr.bf16.mxu0 %v18279_v32  ;;  %6352 = vmatprep.subr.bf16.mxu1 %v18281_v33  ;;  %v1487_v32 = vld [vmem:[%s23097_s15 + $0x1220] sm:$0xff]  ;;  %v1484_v33 = vld [vmem:[%s23097_s15 + $0x1208] sm:$0xff] }
 0x32d   : > { %6095 = vmatprep.mubr.bf16.mxu0 %v23495_v36  ;;  %6382 = vmatprep.mubr.bf16.mxu1 %v23495_v36  ;;  %v18335_v37 = vcombine.high %v1483_v60, %v1487_v32  ;;  %v18334_v45 = vcombine.low %v1483_v60, %v1487_v32  ;;  %v18336_v46 = vcombine.low %v1484_v33, %v1488_v34  ;;  %v1536_v60 = vld [vmem:[%s23097_s15 + $0x13a8] sm:$0xff] }
 0x32f   : > { %6066 = vmatpush1.bf16.msra.mxu0 %v18278_v39  ;;  %6353 = vmatpush1.bf16.msra.mxu1 %v18280_v40  ;;  %v18337_v39 = vcombine.high %v1484_v33, %v1488_v34  ;;  %v1491_v40 = vld [vmem:[%s23097_s15 + $0x1240] sm:$0xff] }
 0x330   : > { %6067 = vmatprep.subr.bf16.mxu0 %v18287_v42  ;;  %6354 = vmatprep.subr.bf16.mxu1 %v18289_v43  ;;  %v1495_v42 = vld [vmem:[%s23097_s15 + $0x1260] sm:$0xff]  ;;  %v1492_v43 = vld [vmem:[%s23097_s15 + $0x1248] sm:$0xff] }
 0x331   : > { %v18343_v47 = vcombine.high %v1491_v40, %v1495_v42  ;;  %v18342_v54 = vcombine.low %v1491_v40, %v1495_v42  ;;  %v18344_v55 = vcombine.low %v1492_v43, %v1496_v44  ;;  %v1540_v40 = vld [vmem:[%s23097_s15 + $0x13c8] sm:$0xff] }
 0x332   : > { %v1544_v42 = vld [vmem:[%s23097_s15 + $0x13e8] sm:$0xff] }
 0x333   : > { %6068 = vmatpush1.bf16.msra.mxu0 %v18286_v13  ;;  %6355 = vmatpush1.bf16.msra.mxu1 %v18288_v49  ;;  %v18345_v13 = vcombine.high %v1492_v43, %v1496_v44  ;;  %v1499_v49 = vld [vmem:[%s23097_s15 + $0x1280] sm:$0xff] }
 0x334   : > { %6069 = vmatprep.subr.bf16.mxu0 %v18295_v51  ;;  %6356 = vmatprep.subr.bf16.mxu1 %v18297_v20  ;;  %v1503_v51 = vld [vmem:[%s23097_s15 + $0x12a0] sm:$0xff]  ;;  %v1500_v20 = vld [vmem:[%s23097_s15 + $0x1288] sm:$0xff] }
 0x335   : > { %v18351_v57 = vcombine.high %v1499_v49, %v1503_v51  ;;  %v18350_v1 = vcombine.low %v1499_v49, %v1503_v51  ;;  %v18352_v2 = vcombine.low %v1500_v20, %v1504_v53  ;;  %v1552_v51 = vld [vmem:[%s23097_s15 + $0x1428] sm:$0xff] }
 0x337   : > { %6070 = vmatpush1.bf16.msra.mxu0 %v18294_v58  ;;  %6357 = vmatpush1.bf16.msra.mxu1 %v18296_v59  ;;  %v18353_v58 = vcombine.high %v1500_v20, %v1504_v53  ;;  %v1507_v59 = vld [vmem:[%s23097_s15 + $0x12c0] sm:$0xff]  ;;  %v18392_v53 = vcombine.low %v1540_v40, %v1544_v42 }
 0x338   : > { %6071 = vmatprep.subr.bf16.mxu0 %v18303_v61  ;;  %6358 = vmatprep.subr.bf16.mxu1 %v18305_v62  ;;  %v1511_v61 = vld [vmem:[%s23097_s15 + $0x12e0] sm:$0xff]  ;;  %v1508_v62 = vld [vmem:[%s23097_s15 + $0x12c8] sm:$0xff] }
 0x339   : > { %v18359_v3 = vcombine.high %v1507_v59, %v1511_v61  ;;  %v18358_v11 = vcombine.low %v1507_v59, %v1511_v61  ;;  %v18360_v12 = vcombine.low %v1508_v62, %v1512_v0  ;;  %v23570_v61 = vpack.c.bf16 %v23479_v14, %v23479_v14  ;;  %v1564_v14 = vld [vmem:[%s23097_s15 + $0x1488] sm:$0xff] }
 0x33b   : > { %6072 = vmatpush1.bf16.msra.mxu0 %v18302_v4  ;;  %6359 = vmatpush1.bf16.msra.mxu1 %v18304_v5  ;;  %v18361_v4 = vcombine.high %v1508_v62, %v1512_v0  ;;  %v1515_v5 = vld [vmem:[%s23097_s15 + $0x1300] sm:$0xff]  ;;  %v1556_v62 = vld [vmem:[%s23097_s15 + $0x1448] sm:$0xff] }
 0x33c   : > { %6073 = vmatprep.subr.bf16.mxu0 %v18311_v8  ;;  %6360 = vmatprep.subr.bf16.mxu1 %v18313_v28  ;;  %v1519_v8 = vld [vmem:[%s23097_s15 + $0x1320] sm:$0xff]  ;;  %v1516_v28 = vld [vmem:[%s23097_s15 + $0x1308] sm:$0xff] }
 0x33d   : > { %v18367_v56 = vcombine.high %v1515_v5, %v1519_v8  ;;  %v18366_v21 = vcombine.low %v1515_v5, %v1519_v8  ;;  %v18368_v23 = vcombine.low %v1516_v28, %v1520_v10  ;;  %v1560_v0 = vld [vmem:[%s23097_s15 + $0x1468] sm:$0xff]  ;;  %v1563_v5 = vld [vmem:[%s23097_s15 + $0x1480] sm:$0xff] }
 0x33e   : > { %v1567_v8 = vld [vmem:[%s23097_s15 + $0x14a0] sm:$0xff] }
 0x33f   : > { %6074 = vmatpush1.bf16.msra.mxu0 %v18310_v15  ;;  %6361 = vmatpush1.bf16.msra.mxu1 %v18312_v16  ;;  %v18369_v15 = vcombine.high %v1516_v28, %v1520_v10  ;;  %v1523_v16 = vld [vmem:[%s23097_s15 + $0x1340] sm:$0xff]  ;;  %v1568_v10 = vld [vmem:[%s23097_s15 + $0x14a8] sm:$0xff] }
 0x340   : > { %6075 = vmatprep.subr.bf16.mxu0 %v18319_v17  ;;  %6362 = vmatprep.subr.bf16.mxu1 %v18321_v18  ;;  %v1527_v17 = vld [vmem:[%s23097_s15 + $0x1360] sm:$0xff]  ;;  %v1524_v18 = vld [vmem:[%s23097_s15 + $0x1348] sm:$0xff] }
 0x341   : > { %v18375_v24 = vcombine.high %v1523_v16, %v1527_v17  ;;  %v18374_v32 = vcombine.low %v1523_v16, %v1527_v17  ;;  %v18376_v33 = vcombine.low %v1524_v18, %v1528_v19  ;;  %v1571_v16 = vld [vmem:[%s23097_s15 + $0x14c0] sm:$0xff] }
 0x342   : > { %v1575_v17 = vld [vmem:[%s23097_s15 + $0x14e0] sm:$0xff] }
 0x343   : > { %6076 = vmatpush1.bf16.msra.mxu0 %v18318_v25  ;;  %6363 = vmatpush1.bf16.msra.mxu1 %v18320_v27  ;;  %v18377_v25 = vcombine.high %v1524_v18, %v1528_v19  ;;  %v1531_v27 = vld [vmem:[%s23097_s15 + $0x1380] sm:$0xff]  ;;  %v1572_v18 = vld [vmem:[%s23097_s15 + $0x14c8] sm:$0xff] }
 0x344   : > { %6077 = vmatprep.subr.bf16.mxu0 %v18327_v29  ;;  %6364 = vmatprep.subr.bf16.mxu1 %v18329_v30  ;;  %v1535_v29 = vld [vmem:[%s23097_s15 + $0x13a0] sm:$0xff]  ;;  %v1532_v30 = vld [vmem:[%s23097_s15 + $0x1388] sm:$0xff] }
 0x345   : > { %v18383_v34 = vcombine.high %v1531_v27, %v1535_v29  ;;  %v18382_v43 = vcombine.low %v1531_v27, %v1535_v29  ;;  %v18384_v44 = vcombine.low %v1532_v30, %v1536_v60  ;;  %v1576_v19 = vld [vmem:[%s23097_s15 + $0x14e8] sm:$0xff]  ;;  %v1579_v27 = vld [vmem:[%s23097_s15 + $0x1500] sm:$0xff] }
 0x346   : > { %v1583_v29 = vld [vmem:[%s23097_s15 + $0x1520] sm:$0xff] }
 0x347   : > { %6078 = vmatpush1.bf16.msra.mxu0 %v18326_v35  ;;  %6365 = vmatpush1.bf16.msra.mxu1 %v18328_v52  ;;  %v18385_v35 = vcombine.high %v1532_v30, %v1536_v60  ;;  %v1539_v52 = vld [vmem:[%s23097_s15 + $0x13c0] sm:$0xff]  ;;  %v1580_v30 = vld [vmem:[%s23097_s15 + $0x1508] sm:$0xff] }
 0x348   : > { %6079 = vmatprep.subr.bf16.mxu0 %v18335_v37  ;;  %6366 = vmatprep.subr.bf16.mxu1 %v18337_v39  ;;  %v1543_v37 = vld [vmem:[%s23097_s15 + $0x13e0] sm:$0xff]  ;;  %v857_v39 = vcombine.high %v23473_v7, %v23473_v7  ;;  %v1548_v7 = vld [vmem:[%s23097_s15 + $0x1408] sm:$0xff] }
 0x349   : > { %v18390_v20 = vcombine.low %v1539_v52, %v1543_v37  ;;  %v1584_v60 = vld [vmem:[%s23097_s15 + $0x1528] sm:$0xff] }
 0x34a   : > { %v23560_v49 = vrot.slane %v857_v39, %v23174_v50  ;;  %v1588_v39 = vld [vmem:[%s23097_s15 + $0x1548] sm:$0xff] }
 0x34b   : > { %6080 = vmatpush1.bf16.msra.mxu0 %v18334_v45  ;;  %6367 = vmatpush1.bf16.msra.mxu1 %v18336_v46  ;;  %v18391_v45 = vcombine.high %v1539_v52, %v1543_v37  ;;  %v18393_v46 = vcombine.high %v1540_v40, %v1544_v42  ;;  %v1587_v52 = vld [vmem:[%s23097_s15 + $0x1540] sm:$0xff]  ;;  %v1592_v40 = vld [vmem:[%s23097_s15 + $0x1568] sm:$0xff]  ;;  %v18430_v42 = vcombine.low %v1579_v27, %v1583_v29 }
 0x34c   : > { %6081 = vmatprep.subr.bf16.mxu0 %v18343_v47  ;;  %6368 = vmatprep.subr.bf16.mxu1 %v18345_v13  ;;  %v1547_v47 = vld [vmem:[%s23097_s15 + $0x1400] sm:$0xff]  ;;  %v873_v59 = vcombine.high %v23560_v49, %v23560_v49 }
 0x34d   : > { %v1551_v13 = vld [vmem:[%s23097_s15 + $0x1420] sm:$0xff] }
 0x34e   : > { %v23576_v28 = vpack.c.bf16 %v873_v59, %v873_v59  ;;  %v1591_v37 = vld [vmem:[%s23097_s15 + $0x1560] sm:$0xff]  ;;  %v1608_v59 = vld [vmem:[%s23097_s15 + $0x15e8] sm:$0xff] }
 0x34f   : > { %6082 = vmatpush1.bf16.msra.mxu0 %v18342_v54  ;;  %6369 = vmatpush1.bf16.msra.mxu1 %v18344_v55  ;;  %v18399_v54 = vcombine.high %v1547_v47, %v1551_v13  ;;  %v18401_v55 = vcombine.high %v1548_v7, %v1552_v51 }
 0x350   : > { %6083 = vmatprep.subr.bf16.mxu0 %v18351_v57  ;;  %6370 = vmatprep.subr.bf16.mxu1 %v18353_v58  ;;  %v1555_v57 = vld [vmem:[%s23097_s15 + $0x1440] sm:$0xff] }
 0x351   : > { %v1559_v58 = vld [vmem:[%s23097_s15 + $0x1460] sm:$0xff] }
 0x353   : > { %6084 = vmatpush1.bf16.msra.mxu0 %v18350_v1  ;;  %6371 = vmatpush1.bf16.msra.mxu1 %v18352_v2  ;;  %v18398_v1 = vcombine.low %v1547_v47, %v1551_v13  ;;  %v18400_v2 = vcombine.low %v1548_v7, %v1552_v51  ;;  %v1599_v47 = vld [vmem:[%s23097_s15 + $0x15a0] sm:$0xff]  ;;  %v1596_v13 = vld [vmem:[%s23097_s15 + $0x1588] sm:$0xff]  ;;  %v18438_v51 = vcombine.low %v1587_v52, %v1591_v37 }
 0x354   : > { %6085 = vmatprep.subr.bf16.mxu0 %v18359_v3  ;;  %6372 = vmatprep.subr.bf16.mxu1 %v18361_v4  ;;  %v18407_v3 = vcombine.high %v1555_v57, %v1559_v58  ;;  %v18409_v4 = vcombine.high %v1556_v62, %v1560_v0  ;;  %v1600_v7 = vld [vmem:[%s23097_s15 + $0x15a8] sm:$0xff] }
 0x357   : > { %6086 = vmatpush1.bf16.msra.mxu0 %v18358_v11  ;;  %6373 = vmatpush1.bf16.msra.mxu1 %v18360_v12  ;;  %v18406_v11 = vcombine.low %v1555_v57, %v1559_v58  ;;  %v18408_v12 = vcombine.low %v1556_v62, %v1560_v0  ;;  %v1607_v57 = vld [vmem:[%s23097_s15 + $0x15e0] sm:$0xff]  ;;  %v1604_v58 = vld [vmem:[%s23097_s15 + $0x15c8] sm:$0xff]  ;;  %v18448_v0 = vcombine.low %v1596_v13, %v1600_v7 }
 0x358   : > { %6087 = vmatprep.subr.bf16.mxu0 %v18367_v56  ;;  %6374 = vmatprep.subr.bf16.mxu1 %v18369_v15  ;;  %v18415_v56 = vcombine.high %v1563_v5, %v1567_v8  ;;  %v18417_v15 = vcombine.high %v1564_v14, %v1568_v10 }
 0x35b   : > { %6088 = vmatpush1.bf16.msra.mxu0 %v18366_v21  ;;  %6375 = vmatpush1.bf16.msra.mxu1 %v18368_v23  ;;  %v18414_v21 = vcombine.low %v1563_v5, %v1567_v8  ;;  %v18416_v23 = vcombine.low %v1564_v14, %v1568_v10  ;;  %v1612_v5 = vld [vmem:[%s23097_s15 + $0x1608] sm:$0xff]  ;;  %v18456_v10 = vcombine.low %v1604_v58, %v1608_v59 }
 0x35c   : > { %6089 = vmatprep.subr.bf16.mxu0 %v18375_v24  ;;  %6376 = vmatprep.subr.bf16.mxu1 %v18377_v25  ;;  %v18423_v24 = vcombine.high %v1571_v16, %v1575_v17  ;;  %v18425_v25 = vcombine.high %v1572_v18, %v1576_v19  ;;  %v1616_v8 = vld [vmem:[%s23097_s15 + $0x1628] sm:$0xff] }
 0x35f   : > { %6090 = vmatpush1.bf16.msra.mxu0 %v18374_v32  ;;  %6377 = vmatpush1.bf16.msra.mxu1 %v18376_v33  ;;  %v18422_v32 = vcombine.low %v1571_v16, %v1575_v17  ;;  %v18424_v33 = vcombine.low %v1572_v18, %v1576_v19  ;;  %v1620_v16 = vld [vmem:[%s23097_s15 + $0x1648] sm:$0xff]  ;;  %v18464_v19 = vcombine.low %v1612_v5, %v1616_v8 }
 0x360   : > { %6091 = vmatprep.subr.bf16.mxu0 %v18383_v34  ;;  %6378 = vmatprep.subr.bf16.mxu1 %v18385_v35  ;;  %v18431_v34 = vcombine.high %v1579_v27, %v1583_v29  ;;  %v18433_v35 = vcombine.high %v1580_v30, %v1584_v60  ;;  %v1624_v17 = vld [vmem:[%s23097_s15 + $0x1668] sm:$0xff] }
 0x361   : > { %v1628_v27 = vld [vmem:[%s23097_s15 + $0x1688] sm:$0xff] }
 0x362   : > { %v1632_v29 = vld [vmem:[%s23097_s15 + $0x16a8] sm:$0xff] }
 0x363   : > { %6092 = vmatpush1.bf16.msra.mxu0 %v18382_v43  ;;  %6379 = vmatpush1.bf16.msra.mxu1 %v18384_v44  ;;  %v18432_v43 = vcombine.low %v1580_v30, %v1584_v60  ;;  %v18439_v44 = vcombine.high %v1587_v52, %v1591_v37  ;;  %v18472_v60 = vcombine.low %v1620_v16, %v1624_v17  ;;  %v1636_v52 = vld [vmem:[%s23097_s15 + $0x16c8] sm:$0xff] }
 0x364   : > { %6093 = vmatprep.subr.bf16.mxu0 %v18391_v45  ;;  %6380 = vmatprep.subr.bf16.mxu1 %v18393_v46  ;;  %v18441_v45 = vcombine.high %v1588_v39, %v1592_v40  ;;  %v1595_v46 = vld [vmem:[%s23097_s15 + $0x1580] sm:$0xff]  ;;  %v1640_v37 = vld [vmem:[%s23097_s15 + $0x16e8] sm:$0xff] }
 0x365   : > { %v18446_v62 = vcombine.low %v1595_v46, %v1599_v47 }
 0x367   : > { %6094 = vmatpush1.bf16.msra.mxu0 %v18390_v20  ;;  %6381 = vmatpush1.bf16.msra.mxu1 %v18392_v53  ;;  %v18440_v20 = vcombine.low %v1588_v39, %v1592_v40  ;;  %v18447_v53 = vcombine.high %v1595_v46, %v1599_v47  ;;  %v18480_v40 = vcombine.low %v1628_v27, %v1632_v29  ;;  %v1644_v46 = vld [vmem:[%s23097_s15 + $0x1708] sm:$0xff] }
 0x368   : > { %6104 = vmatprep.subr.bf16.mxu0 %v18399_v54  ;;  %6391 = vmatprep.subr.bf16.mxu1 %v18401_v55  ;;  %v18449_v54 = vcombine.high %v1596_v13, %v1600_v7  ;;  %v1603_v55 = vld [vmem:[%s23097_s15 + $0x15c0] sm:$0xff]  ;;  %v1648_v47 = vld [vmem:[%s23097_s15 + $0x1728] sm:$0xff]  ;;  %v18488_v7 = vcombine.low %v1636_v52, %v1640_v37 }
 0x369   : > { %v18454_v14 = vcombine.low %v1603_v55, %v1607_v57 }
 0x36a   : > { %6096 = vmatmul.mubr.bf16.vlgmr.msra.gmra.mrb[0].mxu0 %v23570_v61  ;;  %6383 = vmatmul.mubr.bf16.vlgmr.msra.gmra.mrb[0].mxu1 %v23570_v61 }
 0x36b   : > { %6105 = vmatpush1.bf16.msra.mxu0 %v18398_v1  ;;  %6392 = vmatpush1.bf16.msra.mxu1 %v18400_v2  ;;  %v18455_v1 = vcombine.high %v1603_v55, %v1607_v57  ;;  %v18457_v2 = vcombine.high %v1604_v58, %v1608_v59  ;;  %v1652_v55 = vld [vmem:[%s23097_s15 + $0x1748] sm:$0xff]  ;;  %v18496_v59 = vcombine.low %v1644_v46, %v1648_v47 }
 0x36c   : > { %6106 = vmatprep.subr.bf16.mxu0 %v18407_v3  ;;  %6393 = vmatprep.subr.bf16.mxu1 %v18409_v4  ;;  %v1611_v3 = vld [vmem:[%s23097_s15 + $0x1600] sm:$0xff]  ;;  %v1656_v57 = vld [vmem:[%s23097_s15 + $0x1768] sm:$0xff] }
 0x36d   : > { %6136 = vmatprep.mubr.bf16.mxu0 %v23576_v28  ;;  %6423 = vmatprep.mubr.bf16.mxu1 %v23576_v28  ;;  %v1615_v4 = vld [vmem:[%s23097_s15 + $0x1620] sm:$0xff] }
 0x36e   : > { %v18462_v18 = vcombine.low %v1611_v3, %v1615_v4 }
 0x36f   : > { %6107 = vmatpush1.bf16.msra.mxu0 %v18406_v11  ;;  %6394 = vmatpush1.bf16.msra.mxu1 %v18408_v12  ;;  %v18463_v11 = vcombine.high %v1611_v3, %v1615_v4  ;;  %v18465_v12 = vcombine.high %v1612_v5, %v1616_v8  ;;  %v1660_v3 = vld [vmem:[%s23097_s15 + $0x1788] sm:$0xff]  ;;  %v18504_v8 = vcombine.low %v1652_v55, %v1656_v57 }
 0x370   : > { %6108 = vmatprep.subr.bf16.mxu0 %v18415_v56  ;;  %6395 = vmatprep.subr.bf16.mxu1 %v18417_v15  ;;  %v1619_v56 = vld [vmem:[%s23097_s15 + $0x1640] sm:$0xff]  ;;  %v1664_v4 = vld [vmem:[%s23097_s15 + $0x17a8] sm:$0xff] }
 0x371   : > { %v1623_v15 = vld [vmem:[%s23097_s15 + $0x1660] sm:$0xff] }
 0x372   : > { %v18470_v30 = vcombine.low %v1619_v56, %v1623_v15 }
 0x373   : > { %6109 = vmatpush1.bf16.msra.mxu0 %v18414_v21  ;;  %6396 = vmatpush1.bf16.msra.mxu1 %v18416_v23  ;;  %v18471_v21 = vcombine.high %v1619_v56, %v1623_v15  ;;  %v18473_v23 = vcombine.high %v1620_v16, %v1624_v17  ;;  %v1668_v56 = vld [vmem:[%s23097_s15 + $0x17c8] sm:$0xff]  ;;  %v18512_v17 = vcombine.low %v1660_v3, %v1664_v4 }
 0x374   : > { %6110 = vmatprep.subr.bf16.mxu0 %v18423_v24  ;;  %6397 = vmatprep.subr.bf16.mxu1 %v18425_v25  ;;  %v1627_v24 = vld [vmem:[%s23097_s15 + $0x1680] sm:$0xff]  ;;  %v1672_v15 = vld [vmem:[%s23097_s15 + $0x17e8] sm:$0xff] }
 0x375   : > { %v1631_v25 = vld [vmem:[%s23097_s15 + $0x16a0] sm:$0xff] }
 0x376   : > { %v18478_v39 = vcombine.low %v1627_v24, %v1631_v25 }
 0x377   : > { %6111 = vmatpush1.bf16.msra.mxu0 %v18422_v32  ;;  %6398 = vmatpush1.bf16.msra.mxu1 %v18424_v33  ;;  %v18479_v32 = vcombine.high %v1627_v24, %v1631_v25  ;;  %v18481_v33 = vcombine.high %v1628_v27, %v1632_v29  ;;  %v1676_v24 = vld [vmem:[%s23097_s15 + $0x1808] sm:$0xff]  ;;  %v18520_v29 = vcombine.low %v1668_v56, %v1672_v15 }
 0x378   : > { %6112 = vmatprep.subr.bf16.mxu0 %v18431_v34  ;;  %6399 = vmatprep.subr.bf16.mxu1 %v18433_v35  ;;  %v1635_v34 = vld [vmem:[%s23097_s15 + $0x16c0] sm:$0xff]  ;;  %v1680_v25 = vld [vmem:[%s23097_s15 + $0x1828] sm:$0xff] }
 0x379   : > { %v1639_v35 = vld [vmem:[%s23097_s15 + $0x16e0] sm:$0xff] }
 0x37a   : > { %v18486_v13 = vcombine.low %v1635_v34, %v1639_v35 }
 0x37b   : > { %6113 = vmatpush1.bf16.msra.mxu0 %v18430_v42  ;;  %6400 = vmatpush1.bf16.msra.mxu1 %v18432_v43  ;;  %v18487_v42 = vcombine.high %v1635_v34, %v1639_v35  ;;  %v18489_v43 = vcombine.high %v1636_v52, %v1640_v37  ;;  %v23644_v34 = vpack.c.bf16 %v23560_v49, %v23560_v49  ;;  %v1684_v35 = vld [vmem:[%s23097_s15 + $0x1848] sm:$0xff] }
 0x37c   : > { %6114 = vmatprep.subr.bf16.mxu0 %v18439_v44  ;;  %6401 = vmatprep.subr.bf16.mxu1 %v18441_v45  ;;  %v1643_v44 = vld [vmem:[%s23097_s15 + $0x1700] sm:$0xff]  ;;  %v1688_v52 = vld [vmem:[%s23097_s15 + $0x1868] sm:$0xff] }
 0x37d   : > { %v1647_v45 = vld [vmem:[%s23097_s15 + $0x1720] sm:$0xff]  ;;  %v1696_v49 = vld [vmem:[%s23097_s15 + $0x18a8] sm:$0xff] }
 0x37e   : > { %v18494_v58 = vcombine.low %v1643_v44, %v1647_v45 }
 0x37f   : > { %6115 = vmatpush1.bf16.msra.mxu0 %v18438_v51  ;;  %6402 = vmatpush1.bf16.msra.mxu1 %v18440_v20  ;;  %v18495_v51 = vcombine.high %v1643_v44, %v1647_v45  ;;  %v18497_v20 = vcombine.high %v1644_v46, %v1648_v47  ;;  %v1695_v44 = vld [vmem:[%s23097_s15 + $0x18a0] sm:$0xff]  ;;  %v1692_v45 = vld [vmem:[%s23097_s15 + $0x1888] sm:$0xff]  ;;  %v18536_v47 = vcombine.low %v1684_v35, %v1688_v52 }
 0x380   : > { %6116 = vmatprep.subr.bf16.mxu0 %v18447_v53  ;;  %6403 = vmatprep.subr.bf16.mxu1 %v18449_v54  ;;  %v1651_v53 = vld [vmem:[%s23097_s15 + $0x1740] sm:$0xff] }
 0x381   : > { %v1655_v54 = vld [vmem:[%s23097_s15 + $0x1760] sm:$0xff] }
 0x382   : > { %v18502_v5 = vcombine.low %v1651_v53, %v1655_v54 }
 0x383   : > { %6117 = vmatpush1.bf16.msra.mxu0 %v18446_v62  ;;  %6404 = vmatpush1.bf16.msra.mxu1 %v18448_v0  ;;  %v18503_v62 = vcombine.high %v1651_v53, %v1655_v54  ;;  %v18505_v0 = vcombine.high %v1652_v55, %v1656_v57  ;;  %v22545_v53 = vmov 0   ;;  %v1700_v54 = vld [vmem:[%s23097_s15 + $0x18c8] sm:$0xff] }
 0x384   : > { %6118 = vmatprep.subr.bf16.mxu0 %v18455_v1  ;;  %6405 = vmatprep.subr.bf16.mxu1 %v18457_v2  ;;  %v1659_v1 = vld [vmem:[%s23097_s15 + $0x1780] sm:$0xff]  ;;  %v1704_v55 = vld [vmem:[%s23097_s15 + $0x18e8] sm:$0xff] }
 0x385   : > { %v1663_v2 = vld [vmem:[%s23097_s15 + $0x17a0] sm:$0xff] }
 0x386   : > { %v18510_v16 = vcombine.low %v1659_v1, %v1663_v2 }
 0x387   : > { %6119 = vmatpush1.bf16.msra.mxu0 %v18454_v14  ;;  %6406 = vmatpush1.bf16.msra.mxu1 %v18456_v10  ;;  %v18511_v14 = vcombine.high %v1659_v1, %v1663_v2  ;;  %v18513_v10 = vcombine.high %v1660_v3, %v1664_v4  ;;  %v1711_v1 = vld [vmem:[%s23097_s15 + $0x1920] sm:$0xff]  ;;  %v1708_v2 = vld [vmem:[%s23097_s15 + $0x1908] sm:$0xff] }
 0x388   : > { %6120 = vmatprep.subr.bf16.mxu0 %v18463_v11  ;;  %6407 = vmatprep.subr.bf16.mxu1 %v18465_v12  ;;  %v1667_v11 = vld [vmem:[%s23097_s15 + $0x17c0] sm:$0xff]  ;;  %v1712_v3 = vld [vmem:[%s23097_s15 + $0x1928] sm:$0xff] }
 0x389   : > { %v1671_v12 = vld [vmem:[%s23097_s15 + $0x17e0] sm:$0xff] }
 0x38a   : > { %v18518_v27 = vcombine.low %v1667_v11, %v1671_v12 }
 0x38b   : > { %6121 = vmatpush1.bf16.msra.mxu0 %v18462_v18  ;;  %6408 = vmatpush1.bf16.msra.mxu1 %v18464_v19  ;;  %v18519_v18 = vcombine.high %v1667_v11, %v1671_v12  ;;  %v18521_v19 = vcombine.high %v1668_v56, %v1672_v15  ;;  %v1719_v11 = vld [vmem:[%s23097_s15 + $0x1960] sm:$0xff]  ;;  %v1716_v12 = vld [vmem:[%s23097_s15 + $0x1948] sm:$0xff] }
 0x38c   : > { %6122 = vmatprep.subr.bf16.mxu0 %v18471_v21  ;;  %6409 = vmatprep.subr.bf16.mxu1 %v18473_v23  ;;  %v1675_v21 = vld [vmem:[%s23097_s15 + $0x1800] sm:$0xff]  ;;  %v1720_v56 = vld [vmem:[%s23097_s15 + $0x1968] sm:$0xff] }
 0x38d   : > { %v1679_v23 = vld [vmem:[%s23097_s15 + $0x1820] sm:$0xff] }
 0x38e   : > { %v18526_v37 = vcombine.low %v1675_v21, %v1679_v23 }
 0x38f   : > { %6123 = vmatpush1.bf16.msra.mxu0 %v18470_v30  ;;  %6410 = vmatpush1.bf16.msra.mxu1 %v18472_v60  ;;  %v18527_v30 = vcombine.high %v1675_v21, %v1679_v23  ;;  %v18529_v60 = vcombine.high %v1676_v24, %v1680_v25  ;;  %v1727_v21 = vld [vmem:[%s23097_s15 + $0x19a0] sm:$0xff]  ;;  %v1724_v23 = vld [vmem:[%s23097_s15 + $0x1988] sm:$0xff] }
 0x390   : > { %6124 = vmatprep.subr.bf16.mxu0 %v18479_v32  ;;  %6411 = vmatprep.subr.bf16.mxu1 %v18481_v33  ;;  %v1683_v32 = vld [vmem:[%s23097_s15 + $0x1840] sm:$0xff] }
 0x391   : > { %v1687_v33 = vld [vmem:[%s23097_s15 + $0x1860] sm:$0xff] }
 0x392   : > { %v18534_v46 = vcombine.low %v1683_v32, %v1687_v33 }
 0x393   : > { %6125 = vmatpush1.bf16.msra.mxu0 %v18478_v39  ;;  %6412 = vmatpush1.bf16.msra.mxu1 %v18480_v40  ;;  %v18528_v39 = vcombine.low %v1676_v24, %v1680_v25  ;;  %v18535_v40 = vcombine.high %v1683_v32, %v1687_v33  ;;  %v1728_v24 = vld [vmem:[%s23097_s15 + $0x19a8] sm:$0xff]  ;;  %v1735_v32 = vld [vmem:[%s23097_s15 + $0x19e0] sm:$0xff] }
 0x394   : > { %6126 = vmatprep.subr.bf16.mxu0 %v18487_v42  ;;  %6413 = vmatprep.subr.bf16.mxu1 %v18489_v43  ;;  %v18537_v42 = vcombine.high %v1684_v35, %v1688_v52  ;;  %v1691_v43 = vld [vmem:[%s23097_s15 + $0x1880] sm:$0xff]  ;;  %v1732_v33 = vld [vmem:[%s23097_s15 + $0x19c8] sm:$0xff] }
 0x395   : > { %v18542_v57 = vcombine.low %v1691_v43, %v1695_v44  ;;  %v1736_v35 = vld [vmem:[%s23097_s15 + $0x19e8] sm:$0xff] }
 0x397   : > { %6127 = vmatpush1.bf16.msra.mxu0 %v18486_v13  ;;  %6414 = vmatpush1.bf16.msra.mxu1 %v18488_v7  ;;  %v18543_v13 = vcombine.high %v1691_v43, %v1695_v44  ;;  %v18545_v7 = vcombine.high %v1692_v45, %v1696_v49  ;;  %v913_v43 = vld [vmem:[%s23097_s15 + $0x30] sm:$0xff]  ;;  %v910_v44 = vld [vmem:[%s23097_s15 + $0x18] sm:$0xff] }
 0x398   : > { %6128 = vmatprep.subr.bf16.mxu0 %v18495_v51  ;;  %6415 = vmatprep.subr.bf16.mxu1 %v18497_v20  ;;  %v1699_v51 = vld [vmem:[%s23097_s15 + $0x18c0] sm:$0xff] }
 0x399   : > { %v1703_v20 = vld [vmem:[%s23097_s15 + $0x18e0] sm:$0xff] }
 0x39a   : > { %v18550_v4 = vcombine.low %v1699_v51, %v1703_v20 }
 0x39b   : > { %6129 = vmatpush1.bf16.msra.mxu0 %v18494_v58  ;;  %6416 = vmatpush1.bf16.msra.mxu1 %v18496_v59  ;;  %v18544_v58 = vcombine.low %v1692_v45, %v1696_v49  ;;  %v18551_v59 = vcombine.high %v1699_v51, %v1703_v20  ;;  %v914_v45 = vld [vmem:[%s23097_s15 + $0x38] sm:$0xff]  ;;  %v917_v51 = vld [vmem:[%s23097_s15 + $0x50] sm:$0xff] }
 0x39c   : > { %6130 = vmatprep.subr.bf16.mxu0 %v18503_v62  ;;  %6417 = vmatprep.subr.bf16.mxu1 %v18505_v0  ;;  %v18553_v62 = vcombine.high %v1700_v54, %v1704_v55  ;;  %v1707_v0 = vld [vmem:[%s23097_s15 + $0x1900] sm:$0xff]  ;;  %v921_v20 = vld [vmem:[%s23097_s15 + $0x70] sm:$0xff] }
 0x39d   : > { %v18558_v15 = vcombine.low %v1707_v0, %v1711_v1 }
 0x39f   : > { %6131 = vmatpush1.bf16.msra.mxu0 %v18502_v5  ;;  %6418 = vmatpush1.bf16.msra.mxu1 %v18504_v8  ;;  %v18552_v5 = vcombine.low %v1700_v54, %v1704_v55  ;;  %v18559_v8 = vcombine.high %v1707_v0, %v1711_v1  ;;  %v918_v55 = vld [vmem:[%s23097_s15 + $0x58] sm:$0xff]  ;;  %v925_v1 = vld [vmem:[%s23097_s15 + $0x90] sm:$0xff] }
 0x3a0   : > { %6132 = vmatprep.subr.bf16.mxu0 %v18511_v14  ;;  %6419 = vmatprep.subr.bf16.mxu1 %v18513_v10  ;;  %v18561_v14 = vcombine.high %v1708_v2, %v1712_v3  ;;  %v1715_v10 = vld [vmem:[%s23097_s15 + $0x1940] sm:$0xff] }
 0x3a1   : > { %v18566_v25 = vcombine.low %v1715_v10, %v1719_v11 }
 0x3a3   : > { %6133 = vmatpush1.bf16.msra.mxu0 %v18510_v16  ;;  %6420 = vmatpush1.bf16.msra.mxu1 %v18512_v17  ;;  %v18560_v16 = vcombine.low %v1708_v2, %v1712_v3  ;;  %v18567_v17 = vcombine.high %v1715_v10, %v1719_v11  ;;  %v929_v2 = vld [vmem:[%s23097_s15 + $0xb0] sm:$0xff]  ;;  %v926_v3 = vld [vmem:[%s23097_s15 + $0x98] sm:$0xff] }
 0x3a4   : > { %6134 = vmatprep.subr.bf16.mxu0 %v18519_v18  ;;  %6421 = vmatprep.subr.bf16.mxu1 %v18521_v19  ;;  %v18569_v18 = vcombine.high %v1716_v12, %v1720_v56  ;;  %v1723_v19 = vld [vmem:[%s23097_s15 + $0x1980] sm:$0xff]  ;;  %v933_v11 = vld [vmem:[%s23097_s15 + $0xd0] sm:$0xff] }
 0x3a5   : > { %v18574_v52 = vcombine.low %v1723_v19, %v1727_v21 }
 0x3a7   : > { %6135 = vmatpush1.bf16.msra.mxu0 %v18518_v27  ;;  %6422 = vmatpush1.bf16.msra.mxu1 %v18520_v29  ;;  %v18568_v27 = vcombine.low %v1716_v12, %v1720_v56  ;;  %v18575_v29 = vcombine.high %v1723_v19, %v1727_v21  ;;  %v937_v12 = vld [vmem:[%s23097_s15 + $0xf0] sm:$0xff]  ;;  %v934_v56 = vld [vmem:[%s23097_s15 + $0xd8] sm:$0xff] }
 0x3a8   : > { %6145 = vmatprep.subr.bf16.mxu0 %v18527_v30  ;;  %6432 = vmatprep.subr.bf16.mxu1 %v18529_v60  ;;  %v18577_v30 = vcombine.high %v1724_v23, %v1728_v24  ;;  %v1731_v60 = vld [vmem:[%s23097_s15 + $0x19c0] sm:$0xff]  ;;  %v941_v21 = vld [vmem:[%s23097_s15 + $0x110] sm:$0xff] }
 0x3a9   : > { %v18582_v49 = vcombine.low %v1731_v60, %v1735_v32 }
 0x3aa   : > { %6137 = vmatmul.mubr.bf16.vlgmr.msra.gmra.mrb[0].mxu0 %v23644_v34  ;;  %6424 = vmatmul.mubr.bf16.vlgmr.msra.gmra.mrb[0].mxu1 %v23644_v34 }
 0x3ab   : > { %6146 = vmatpush1.bf16.msra.mxu0 %v18526_v37  ;;  %6433 = vmatpush1.bf16.msra.mxu1 %v18528_v39  ;;  %v18576_v37 = vcombine.low %v1724_v23, %v1728_v24  ;;  %v18583_v39 = vcombine.high %v1731_v60, %v1735_v32  ;;  %v945_v23 = vld [vmem:[%s23097_s15 + $0x130] sm:$0xff]  ;;  %v942_v24 = vld [vmem:[%s23097_s15 + $0x118] sm:$0xff] }
 0x3ac   : > { %6147 = vmatprep.subr.bf16.mxu0 %v18535_v40  ;;  %6434 = vmatprep.subr.bf16.mxu1 %v18537_v42  ;;  %v18585_v40 = vcombine.high %v1732_v33, %v1736_v35  ;;  %v909_v42 = vld [vmem:[%s23097_s15 + $0x10] sm:$0xff] }
 0x3ad   : > { %6177 = vmatprep.mubr.bf16.mxu0 %v22545_v53  ;;  %6464 = vmatprep.mubr.bf16.mxu1 %v22545_v53  ;;  %v949_v60 = vld [vmem:[%s23097_s15 + $0x150] sm:$0xff] }
 0x3ae   : > { %v953_v32 = vld [vmem:[%s23097_s15 + $0x170] sm:$0xff] }
 0x3af   : > { %6148 = vmatpush1.bf16.msra.mxu0 %v18534_v46  ;;  %6435 = vmatpush1.bf16.msra.mxu1 %v18536_v47  ;;  %v17757_v46 = vld.sshfl [vmem:[%s23090_s30 + $0x18] sm:$0x3 pattern:$0x76325410]  ;;  %v18584_v47 = vcombine.low %v1732_v33, %v1736_v35 }
 0x3b0   : > { %6149 = vmatprep.subr.bf16.mxu0 %v18543_v13  ;;  %6436 = vmatprep.subr.bf16.mxu1 %v18545_v7  ;;  %v17763_v13 = vcombine.high %v909_v42, %v913_v43  ;;  %v17765_v7 = vcombine.high %v910_v44, %v914_v45  ;;  %v23683_v54 = vpack.c.bf16 %v17757_v46, %v17757_v46  ;;  %v950_v33 = vld [vmem:[%s23097_s15 + $0x158] sm:$0xff] }
 0x3b1   : > { %v954_v35 = vld [vmem:[%s23097_s15 + $0x178] sm:$0xff] }
 0x3b2   : > { %v17804_v46 = vcombine.low %v950_v33, %v954_v35 }
 0x3b3   : > { %6150 = vmatpush1.bf16.msra.mxu0 %v18542_v57  ;;  %6437 = vmatpush1.bf16.msra.mxu1 %v18544_v58  ;;  %v922_v57 = vld [vmem:[%s23097_s15 + $0x78] sm:$0xff]  ;;  %v17762_v58 = vcombine.low %v909_v42, %v913_v43  ;;  %v957_v42 = vld [vmem:[%s23097_s15 + $0x190] sm:$0xff] }
 0x3b4   : > { %6151 = vmatprep.subr.bf16.mxu0 %v18551_v59  ;;  %6438 = vmatprep.subr.bf16.mxu1 %v18553_v62  ;;  %v17764_v59 = vcombine.low %v910_v44, %v914_v45  ;;  %v17771_v62 = vcombine.high %v917_v51, %v921_v20  ;;  %v17773_v0 = vcombine.high %v918_v55, %v922_v57  ;;  %v961_v43 = vld [vmem:[%s23097_s15 + $0x1b0] sm:$0xff]  ;;  %v958_v44 = vld [vmem:[%s23097_s15 + $0x198] sm:$0xff] }
 0x3b5   : > { %v962_v45 = vld [vmem:[%s23097_s15 + $0x1b8] sm:$0xff] }
 0x3b7   : > { %6152 = vmatpush1.bf16.msra.mxu0 %v18550_v4  ;;  %6439 = vmatpush1.bf16.msra.mxu1 %v18552_v5  ;;  %v930_v4 = vld [vmem:[%s23097_s15 + $0xb8] sm:$0xff]  ;;  %v17770_v5 = vcombine.low %v917_v51, %v921_v20  ;;  %v969_v51 = vld [vmem:[%s23097_s15 + $0x1f0] sm:$0xff] }
 0x3b8   : > { %6153 = vmatprep.subr.bf16.mxu0 %v18559_v8  ;;  %6440 = vmatprep.subr.bf16.mxu1 %v18561_v14  ;;  %v17772_v8 = vcombine.low %v918_v55, %v922_v57  ;;  %v17779_v14 = vcombine.high %v925_v1, %v929_v2  ;;  %v17781_v10 = vcombine.high %v926_v3, %v930_v4  ;;  %v966_v20 = vld [vmem:[%s23097_s15 + $0x1d8] sm:$0xff] }
 0x3b9   : > { %v970_v55 = vld [vmem:[%s23097_s15 + $0x1f8] sm:$0xff]  ;;  %v17810_v57 = vcombine.low %v957_v42, %v961_v43 }
 0x3bb   : > { %6154 = vmatpush1.bf16.msra.mxu0 %v18558_v15  ;;  %6441 = vmatpush1.bf16.msra.mxu1 %v18560_v16  ;;  %v938_v15 = vld [vmem:[%s23097_s15 + $0xf8] sm:$0xff]  ;;  %v17778_v16 = vcombine.low %v925_v1, %v929_v2  ;;  %v977_v1 = vld [vmem:[%s23097_s15 + $0x230] sm:$0xff] }
 0x3bc   : > { %6155 = vmatprep.subr.bf16.mxu0 %v18567_v17  ;;  %6442 = vmatprep.subr.bf16.mxu1 %v18569_v18  ;;  %v17780_v17 = vcombine.low %v926_v3, %v930_v4  ;;  %v17787_v18 = vcombine.high %v933_v11, %v937_v12  ;;  %v17789_v19 = vcombine.high %v934_v56, %v938_v15  ;;  %v974_v2 = vld [vmem:[%s23097_s15 + $0x218] sm:$0xff] }
 0x3bd   : > { %v978_v3 = vld [vmem:[%s23097_s15 + $0x238] sm:$0xff] }
 0x3bf   : > { %6156 = vmatpush1.bf16.msra.mxu0 %v18566_v25  ;;  %6443 = vmatpush1.bf16.msra.mxu1 %v18568_v27  ;;  %v946_v25 = vld [vmem:[%s23097_s15 + $0x138] sm:$0xff]  ;;  %v17786_v27 = vcombine.low %v933_v11, %v937_v12  ;;  %v985_v11 = vld [vmem:[%s23097_s15 + $0x270] sm:$0xff] }
 0x3c0   : > { %6157 = vmatprep.subr.bf16.mxu0 %v18575_v29  ;;  %6444 = vmatprep.subr.bf16.mxu1 %v18577_v30  ;;  %v17795_v29 = vcombine.high %v941_v21, %v945_v23  ;;  %v17797_v30 = vcombine.high %v942_v24, %v946_v25  ;;  %v982_v12 = vld [vmem:[%s23097_s15 + $0x258] sm:$0xff] }
 0x3c3   : > { %6158 = vmatpush1.bf16.msra.mxu0 %v18574_v52  ;;  %6445 = vmatpush1.bf16.msra.mxu1 %v18576_v37  ;;  %v17794_v52 = vcombine.low %v941_v21, %v945_v23  ;;  %v17796_v37 = vcombine.low %v942_v24, %v946_v25  ;;  %v993_v21 = vld [vmem:[%s23097_s15 + $0x2b0] sm:$0xff]  ;;  %v990_v23 = vld [vmem:[%s23097_s15 + $0x298] sm:$0xff] }
 0x3c4   : > { %6159 = vmatprep.subr.bf16.mxu0 %v18583_v39  ;;  %6446 = vmatprep.subr.bf16.mxu1 %v18585_v40  ;;  %v17803_v39 = vcombine.high %v949_v60, %v953_v32  ;;  %v17805_v40 = vcombine.high %v950_v33, %v954_v35  ;;  %v994_v24 = vld [vmem:[%s23097_s15 + $0x2b8] sm:$0xff] }
 0x3c5   : > { %v1002_v33 = vld [vmem:[%s23097_s15 + $0x2f8] sm:$0xff] }
 0x3c7   : > { %6160 = vmatpush1.bf16.msra.mxu0 %v18582_v49  ;;  %6447 = vmatpush1.bf16.msra.mxu1 %v18584_v47  ;;  %v17802_v49 = vcombine.low %v949_v60, %v953_v32  ;;  %v17811_v47 = vcombine.high %v957_v42, %v961_v43  ;;  %v1001_v60 = vld [vmem:[%s23097_s15 + $0x2f0] sm:$0xff]  ;;  %v998_v32 = vld [vmem:[%s23097_s15 + $0x2d8] sm:$0xff] }
 0x3c8   : > { %6473 = vmatprep.subr.bf16.mxu0 %v17763_v13  ;;  %6760 = vmatprep.subr.bf16.mxu1 %v17765_v7  ;;  %v17813_v13 = vcombine.high %v958_v44, %v962_v45  ;;  %v965_v7 = vld [vmem:[%s23097_s15 + $0x1d0] sm:$0xff]  ;;  %v1006_v43 = vld [vmem:[%s23097_s15 + $0x318] sm:$0xff] }
 0x3c9   : > { %v17818_v4 = vcombine.low %v965_v7, %v969_v51  ;;  %v1009_v42 = vld [vmem:[%s23097_s15 + $0x330] sm:$0xff] }
 0x3ca   : > { %6178 = vmatmul.mubr.bf16.vlgmr.msra.gmra.mrb[0].mxu0 %v23683_v54  ;;  %6465 = vmatmul.mubr.bf16.vlgmr.msra.gmra.mrb[0].mxu1 %v23683_v54 }
 0x3cb   : > { %6474 = vmatpush1.bf16.msra.mxu0 %v17762_v58  ;;  %6761 = vmatpush1.bf16.msra.mxu1 %v17764_v59  ;;  %v17812_v58 = vcombine.low %v958_v44, %v962_v45  ;;  %v17819_v59 = vcombine.high %v965_v7, %v969_v51  ;;  %v1010_v44 = vld [vmem:[%s23097_s15 + $0x338] sm:$0xff]  ;;  %v1017_v7 = vld [vmem:[%s23097_s15 + $0x370] sm:$0xff] }
 0x3cc   : > { %6475 = vmatprep.subr.bf16.mxu0 %v17771_v62  ;;  %6762 = vmatprep.subr.bf16.mxu1 %v17773_v0  ;;  %v17821_v62 = vcombine.high %v966_v20, %v970_v55  ;;  %v973_v0 = vld [vmem:[%s23097_s15 + $0x210] sm:$0xff]  ;;  %v1014_v51 = vld [vmem:[%s23097_s15 + $0x358] sm:$0xff] }
 0x3cd   : > { %6505 = vmatprep.mubr.bf16.mxu0 %v23193_v6  ;;  %6792 = vmatprep.mubr.bf16.mxu1 %v23193_v6  ;;  %v17788_v6 = vcombine.low %v934_v56, %v938_v15  ;;  %v986_v56 = vld [vmem:[%s23097_s15 + $0x278] sm:$0xff]  ;;  %v17826_v15 = vcombine.low %v973_v0, %v977_v1 }
 0x3cf   : > { %6476 = vmatpush1.bf16.msra.mxu0 %v17770_v5  ;;  %6763 = vmatpush1.bf16.msra.mxu1 %v17772_v8  ;;  %v17820_v5 = vcombine.low %v966_v20, %v970_v55  ;;  %v17827_v8 = vcombine.high %v973_v0, %v977_v1  ;;  %v1018_v20 = vld [vmem:[%s23097_s15 + $0x378] sm:$0xff]  ;;  %v1025_v0 = vld [vmem:[%s23097_s15 + $0x3b0] sm:$0xff] }
 0x3d0   : > { %6477 = vmatprep.subr.bf16.mxu0 %v17779_v14  ;;  %6764 = vmatprep.subr.bf16.mxu1 %v17781_v10  ;;  %v17829_v14 = vcombine.high %v974_v2, %v978_v3  ;;  %v981_v10 = vld [vmem:[%s23097_s15 + $0x250] sm:$0xff]  ;;  %v1022_v1 = vld [vmem:[%s23097_s15 + $0x398] sm:$0xff] }
 0x3d1   : > { %v17834_v25 = vcombine.low %v981_v10, %v985_v11 }
 0x3d3   : > { %6478 = vmatpush1.bf16.msra.mxu0 %v17778_v16  ;;  %6765 = vmatpush1.bf16.msra.mxu1 %v17780_v17  ;;  %v17828_v16 = vcombine.low %v974_v2, %v978_v3  ;;  %v17835_v17 = vcombine.high %v981_v10, %v985_v11  ;;  %v1026_v2 = vld [vmem:[%s23097_s15 + $0x3b8] sm:$0xff]  ;;  %v1033_v10 = vld [vmem:[%s23097_s15 + $0x3f0] sm:$0xff] }
 0x3d4   : > { %6479 = vmatprep.subr.bf16.mxu0 %v17787_v18  ;;  %6766 = vmatprep.subr.bf16.mxu1 %v17789_v19  ;;  %v17837_v18 = vcombine.high %v982_v12, %v986_v56  ;;  %v989_v19 = vld [vmem:[%s23097_s15 + $0x290] sm:$0xff]  ;;  %v1030_v11 = vld [vmem:[%s23097_s15 + $0x3d8] sm:$0xff] }
 0x3d5   : > { %v17842_v35 = vcombine.low %v989_v19, %v993_v21 }
 0x3d7   : > { %6480 = vmatpush1.bf16.msra.mxu0 %v17786_v27  ;;  %6767 = vmatpush1.bf16.msra.mxu1 %v17788_v6  ;;  %v17836_v27 = vcombine.low %v982_v12, %v986_v56  ;;  %v17843_v6 = vcombine.high %v989_v19, %v993_v21  ;;  %v1034_v12 = vld [vmem:[%s23097_s15 + $0x3f8] sm:$0xff]  ;;  %v1041_v19 = vld [vmem:[%s23097_s15 + $0x430] sm:$0xff] }
 0x3d8   : > { %6481 = vmatprep.subr.bf16.mxu0 %v17795_v29  ;;  %6768 = vmatprep.subr.bf16.mxu1 %v17797_v30  ;;  %v17845_v29 = vcombine.high %v990_v23, %v994_v24  ;;  %v997_v30 = vld [vmem:[%s23097_s15 + $0x2d0] sm:$0xff]  ;;  %v1038_v21 = vld [vmem:[%s23097_s15 + $0x418] sm:$0xff] }
 0x3d9   : > { %v17850_v45 = vcombine.low %v997_v30, %v1001_v60 }
 0x3db   : > { %6482 = vmatpush1.bf16.msra.mxu0 %v17794_v52  ;;  %6769 = vmatpush1.bf16.msra.mxu1 %v17796_v37  ;;  %v17844_v52 = vcombine.low %v990_v23, %v994_v24  ;;  %v17851_v37 = vcombine.high %v997_v30, %v1001_v60  ;;  %v1042_v23 = vld [vmem:[%s23097_s15 + $0x438] sm:$0xff]  ;;  %v1049_v30 = vld [vmem:[%s23097_s15 + $0x470] sm:$0xff] }
 0x3dc   : > { %6483 = vmatprep.subr.bf16.mxu0 %v17803_v39  ;;  %6770 = vmatprep.subr.bf16.mxu1 %v17805_v40  ;;  %v17853_v39 = vcombine.high %v998_v32, %v1002_v33  ;;  %v1005_v40 = vld [vmem:[%s23097_s15 + $0x310] sm:$0xff]  ;;  %v1046_v60 = vld [vmem:[%s23097_s15 + $0x458] sm:$0xff] }
 0x3dd   : > { %v17858_v55 = vcombine.low %v1005_v40, %v1009_v42 }
 0x3df   : > { %6484 = vmatpush1.bf16.msra.mxu0 %v17802_v49  ;;  %6771 = vmatpush1.bf16.msra.mxu1 %v17804_v46  ;;  %v17852_v49 = vcombine.low %v998_v32, %v1002_v33  ;;  %v17859_v46 = vcombine.high %v1005_v40, %v1009_v42  ;;  %v1050_v32 = vld [vmem:[%s23097_s15 + $0x478] sm:$0xff]  ;;  %v1057_v40 = vld [vmem:[%s23097_s15 + $0x4b0] sm:$0xff] }
 0x3e0   : > { %6485 = vmatprep.subr.bf16.mxu0 %v17811_v47  ;;  %6772 = vmatprep.subr.bf16.mxu1 %v17813_v13  ;;  %v17861_v47 = vcombine.high %v1006_v43, %v1010_v44  ;;  %v1013_v13 = vld [vmem:[%s23097_s15 + $0x350] sm:$0xff]  ;;  %v1054_v42 = vld [vmem:[%s23097_s15 + $0x498] sm:$0xff] }
 0x3e1   : > { %v17866_v3 = vcombine.low %v1013_v13, %v1017_v7 }
 0x3e3   : > { %6486 = vmatpush1.bf16.msra.mxu0 %v17810_v57  ;;  %6773 = vmatpush1.bf16.msra.mxu1 %v17812_v58  ;;  %v17860_v57 = vcombine.low %v1006_v43, %v1010_v44  ;;  %v17867_v58 = vcombine.high %v1013_v13, %v1017_v7  ;;  %v1058_v43 = vld [vmem:[%s23097_s15 + $0x4b8] sm:$0xff]  ;;  %v1065_v13 = vld [vmem:[%s23097_s15 + $0x4f0] sm:$0xff] }
 0x3e4   : > { %6487 = vmatprep.subr.bf16.mxu0 %v17819_v59  ;;  %6774 = vmatprep.subr.bf16.mxu1 %v17821_v62  ;;  %v17869_v59 = vcombine.high %v1014_v51, %v1018_v20  ;;  %v1021_v62 = vld [vmem:[%s23097_s15 + $0x390] sm:$0xff]  ;;  %v1062_v7 = vld [vmem:[%s23097_s15 + $0x4d8] sm:$0xff] }
 0x3e5   : > { %v17874_v56 = vcombine.low %v1021_v62, %v1025_v0 }
 0x3e7   : > { %6488 = vmatpush1.bf16.msra.mxu0 %v17818_v4  ;;  %6775 = vmatpush1.bf16.msra.mxu1 %v17820_v5  ;;  %v17868_v4 = vcombine.low %v1014_v51, %v1018_v20  ;;  %v17875_v5 = vcombine.high %v1021_v62, %v1025_v0  ;;  %v1066_v51 = vld [vmem:[%s23097_s15 + $0x4f8] sm:$0xff]  ;;  %v17908_v20 = vcombine.low %v1054_v42, %v1058_v43 }
 0x3e8   : > { %6489 = vmatprep.subr.bf16.mxu0 %v17827_v8  ;;  %6776 = vmatprep.subr.bf16.mxu1 %v17829_v14  ;;  %v17877_v8 = vcombine.high %v1022_v1, %v1026_v2  ;;  %v1029_v14 = vld [vmem:[%s23097_s15 + $0x3d0] sm:$0xff]  ;;  %v1070_v62 = vld [vmem:[%s23097_s15 + $0x518] sm:$0xff] }
 0x3e9   : > { %v17882_v24 = vcombine.low %v1029_v14, %v1033_v10  ;;  %v1074_v0 = vld [vmem:[%s23097_s15 + $0x538] sm:$0xff] }
 0x3eb   : > { %6490 = vmatpush1.bf16.msra.mxu0 %v17826_v15  ;;  %6777 = vmatpush1.bf16.msra.mxu1 %v17828_v16  ;;  %v17876_v15 = vcombine.low %v1022_v1, %v1026_v2  ;;  %v17883_v16 = vcombine.high %v1029_v14, %v1033_v10  ;;  %v1082_v14 = vld [vmem:[%s23097_s15 + $0x578] sm:$0xff] }
 0x3ec   : > { %6491 = vmatprep.subr.bf16.mxu0 %v17835_v17  ;;  %6778 = vmatprep.subr.bf16.mxu1 %v17837_v18  ;;  %v17885_v17 = vcombine.high %v1030_v11, %v1034_v12  ;;  %v1037_v18 = vld [vmem:[%s23097_s15 + $0x410] sm:$0xff] }
 0x3ed   : > { %v17890_v33 = vcombine.low %v1037_v18, %v1041_v19 }
 0x3ef   : > { %6492 = vmatpush1.bf16.msra.mxu0 %v17834_v25  ;;  %6779 = vmatpush1.bf16.msra.mxu1 %v17836_v27  ;;  %v17884_v25 = vcombine.low %v1030_v11, %v1034_v12  ;;  %v17891_v27 = vcombine.high %v1037_v18, %v1041_v19  ;;  %v17924_v11 = vcombine.low %v1070_v62, %v1074_v0  ;;  %v1090_v18 = vld [vmem:[%s23097_s15 + $0x5b8] sm:$0xff] }
 0x3f0   : > { %6493 = vmatprep.subr.bf16.mxu0 %v17843_v6  ;;  %6780 = vmatprep.subr.bf16.mxu1 %v17845_v29  ;;  %v17893_v6 = vcombine.high %v1038_v21, %v1042_v23  ;;  %v1045_v29 = vld [vmem:[%s23097_s15 + $0x450] sm:$0xff] }
 0x3f1   : > { %v17898_v44 = vcombine.low %v1045_v29, %v1049_v30 }
 0x3f3   : > { %6494 = vmatpush1.bf16.msra.mxu0 %v17842_v35  ;;  %6781 = vmatpush1.bf16.msra.mxu1 %v17844_v52  ;;  %v17892_v35 = vcombine.low %v1038_v21, %v1042_v23  ;;  %v17899_v52 = vcombine.high %v1045_v29, %v1049_v30  ;;  %v1098_v29 = vld [vmem:[%s23097_s15 + $0x5f8] sm:$0xff] }
 0x3f4   : > { %6495 = vmatprep.subr.bf16.mxu0 %v17851_v37  ;;  %6782 = vmatprep.subr.bf16.mxu1 %v17853_v39  ;;  %v17901_v37 = vcombine.high %v1046_v60, %v1050_v32  ;;  %v1053_v39 = vld [vmem:[%s23097_s15 + $0x490] sm:$0xff] }
 0x3f7   : > { %6496 = vmatpush1.bf16.msra.mxu0 %v17850_v45  ;;  %6783 = vmatpush1.bf16.msra.mxu1 %v17852_v49  ;;  %v17900_v45 = vcombine.low %v1046_v60, %v1050_v32  ;;  %v17907_v49 = vcombine.high %v1053_v39, %v1057_v40 }
 0x3f8   : > { %6497 = vmatprep.subr.bf16.mxu0 %v17859_v46  ;;  %6784 = vmatprep.subr.bf16.mxu1 %v17861_v47  ;;  %v17909_v46 = vcombine.high %v1054_v42, %v1058_v43  ;;  %v1061_v47 = vld [vmem:[%s23097_s15 + $0x4d0] sm:$0xff] }
 0x3f9   : > { %v17914_v1 = vcombine.low %v1061_v47, %v1065_v13 }
 0x3fb   : > { %6498 = vmatpush1.bf16.msra.mxu0 %v17858_v55  ;;  %6785 = vmatpush1.bf16.msra.mxu1 %v17860_v57  ;;  %v17915_v55 = vcombine.high %v1061_v47, %v1065_v13  ;;  %v17917_v57 = vcombine.high %v1062_v7, %v1066_v51  ;;  %v1114_v47 = vld [vmem:[%s23097_s15 + $0x678] sm:$0xff] }
 0x3fc   : > { %6499 = vmatprep.subr.bf16.mxu0 %v17867_v58  ;;  %6786 = vmatprep.subr.bf16.mxu1 %v17869_v59  ;;  %v1069_v58 = vld [vmem:[%s23097_s15 + $0x510] sm:$0xff] }
 0x3fd   : > { %v1073_v59 = vld [vmem:[%s23097_s15 + $0x530] sm:$0xff] }
 0x3fe   : > { %v17923_v2 = vcombine.high %v1069_v58, %v1073_v59  ;;  %v17922_v10 = vcombine.low %v1069_v58, %v1073_v59  ;;  %v1122_v58 = vld [vmem:[%s23097_s15 + $0x6b8] sm:$0xff] }
 0x3ff   : > { %6500 = vmatpush1.bf16.msra.mxu0 %v17866_v3  ;;  %6787 = vmatpush1.bf16.msra.mxu1 %v17868_v4  ;;  %v17925_v3 = vcombine.high %v1070_v62, %v1074_v0  ;;  %v1077_v4 = vld [vmem:[%s23097_s15 + $0x550] sm:$0xff] }
 0x400   : > { %6501 = vmatprep.subr.bf16.mxu0 %v17875_v5  ;;  %6788 = vmatprep.subr.bf16.mxu1 %v17877_v8  ;;  %v1081_v5 = vld [vmem:[%s23097_s15 + $0x570] sm:$0xff]  ;;  %v1078_v8 = vld [vmem:[%s23097_s15 + $0x558] sm:$0xff] }
 0x401   : > { %v17931_v12 = vcombine.high %v1077_v4, %v1081_v5  ;;  %v17930_v19 = vcombine.low %v1077_v4, %v1081_v5  ;;  %v17932_v21 = vcombine.low %v1078_v8, %v1082_v14  ;;  %v1130_v4 = vld [vmem:[%s23097_s15 + $0x6f8] sm:$0xff] }
 0x403   : > { %6502 = vmatpush1.bf16.msra.mxu0 %v17874_v56  ;;  %6789 = vmatpush1.bf16.msra.mxu1 %v17876_v15  ;;  %v17933_v56 = vcombine.high %v1078_v8, %v1082_v14  ;;  %v1085_v15 = vld [vmem:[%s23097_s15 + $0x590] sm:$0xff] }
 0x404   : > { %6503 = vmatprep.subr.bf16.mxu0 %v17883_v16  ;;  %6790 = vmatprep.subr.bf16.mxu1 %v17885_v17  ;;  %v1089_v16 = vld [vmem:[%s23097_s15 + $0x5b0] sm:$0xff]  ;;  %v1086_v17 = vld [vmem:[%s23097_s15 + $0x598] sm:$0xff] }
 0x405   : > { %v17939_v23 = vcombine.high %v1085_v15, %v1089_v16  ;;  %v17938_v30 = vcombine.low %v1085_v15, %v1089_v16  ;;  %v17940_v60 = vcombine.low %v1086_v17, %v1090_v18  ;;  %v1138_v15 = vld [vmem:[%s23097_s15 + $0x738] sm:$0xff] }
 0x407   : > { %6504 = vmatpush1.bf16.msra.mxu0 %v17882_v24  ;;  %6791 = vmatpush1.bf16.msra.mxu1 %v17884_v25  ;;  %v17941_v24 = vcombine.high %v1086_v17, %v1090_v18  ;;  %v1093_v25 = vld [vmem:[%s23097_s15 + $0x5d0] sm:$0xff] }
 0x408   : > { %6514 = vmatprep.subr.bf16.mxu0 %v17891_v27  ;;  %6801 = vmatprep.subr.bf16.mxu1 %v17893_v6  ;;  %v1097_v27 = vld [vmem:[%s23097_s15 + $0x5f0] sm:$0xff]  ;;  %v1094_v6 = vld [vmem:[%s23097_s15 + $0x5d8] sm:$0xff] }
 0x409   : > { %v17947_v32 = vcombine.high %v1093_v25, %v1097_v27  ;;  %v17948_v42 = vcombine.low %v1094_v6, %v1098_v29 }
 0x40a   : > { %6506 = vmatmul.mubr.bf16.vlgmr.msra.gmra.mrb[4].mxu0 %v23242_v22  ;;  %6793 = vmatmul.mubr.bf16.vlgmr.msra.gmra.mrb[4].mxu1 %v23242_v22  ;;  %v17906_v22 = vcombine.low %v1053_v39, %v1057_v40  ;;  %v1106_v39 = vld [vmem:[%s23097_s15 + $0x638] sm:$0xff]  ;;  %v17946_v40 = vcombine.low %v1093_v25, %v1097_v27 }
 0x40b   : > { %6515 = vmatpush1.bf16.msra.mxu0 %v17890_v33  ;;  %6802 = vmatpush1.bf16.msra.mxu1 %v17892_v35  ;;  %v17949_v33 = vcombine.high %v1094_v6, %v1098_v29  ;;  %v1101_v35 = vld [vmem:[%s23097_s15 + $0x610] sm:$0xff]  ;;  %v1146_v25 = vld [vmem:[%s23097_s15 + $0x778] sm:$0xff] }
 0x40c   : > { %6516 = vmatprep.subr.bf16.mxu0 %v17899_v52  ;;  %6803 = vmatprep.subr.bf16.mxu1 %v17901_v37  ;;  %v1105_v52 = vld [vmem:[%s23097_s15 + $0x630] sm:$0xff]  ;;  %v1102_v37 = vld [vmem:[%s23097_s15 + $0x618] sm:$0xff] }
 0x40d   : > { %6546 = vmatprep.mubr.bf16.mxu0 %v23248_v31  ;;  %6833 = vmatprep.mubr.bf16.mxu1 %v23248_v31  ;;  %v17916_v31 = vcombine.low %v1062_v7, %v1066_v51  ;;  %v17955_v43 = vcombine.high %v1101_v35, %v1105_v52  ;;  %v17954_v13 = vcombine.low %v1101_v35, %v1105_v52  ;;  %v1154_v35 = vld [vmem:[%s23097_s15 + $0x7b8] sm:$0xff] }
 0x40e   : > { %v17956_v7 = vcombine.low %v1102_v37, %v1106_v39 }
 0x40f   : > { %6517 = vmatpush1.bf16.msra.mxu0 %v17898_v44  ;;  %6804 = vmatpush1.bf16.msra.mxu1 %v17900_v45  ;;  %v17957_v44 = vcombine.high %v1102_v37, %v1106_v39  ;;  %v1109_v45 = vld [vmem:[%s23097_s15 + $0x650] sm:$0xff] }
 0x410   : > { %6518 = vmatprep.subr.bf16.mxu0 %v17907_v49  ;;  %6805 = vmatprep.subr.bf16.mxu1 %v17909_v46  ;;  %v1113_v49 = vld [vmem:[%s23097_s15 + $0x670] sm:$0xff]  ;;  %v1110_v46 = vld [vmem:[%s23097_s15 + $0x658] sm:$0xff] }
 0x411   : > { %v17963_v51 = vcombine.high %v1109_v45, %v1113_v49  ;;  %v17962_v59 = vcombine.low %v1109_v45, %v1113_v49  ;;  %v17964_v62 = vcombine.low %v1110_v46, %v1114_v47  ;;  %v1162_v45 = vld [vmem:[%s23097_s15 + $0x7f8] sm:$0xff] }
 0x413   : > { %6519 = vmatpush1.bf16.msra.mxu0 %v17906_v22  ;;  %6806 = vmatpush1.bf16.msra.mxu1 %v17908_v20  ;;  %v17965_v22 = vcombine.high %v1110_v46, %v1114_v47  ;;  %v1117_v20 = vld [vmem:[%s23097_s15 + $0x690] sm:$0xff] }
 0x414   : > { %6520 = vmatprep.subr.bf16.mxu0 %v17915_v55  ;;  %6807 = vmatprep.subr.bf16.mxu1 %v17917_v57  ;;  %v1121_v55 = vld [vmem:[%s23097_s15 + $0x6b0] sm:$0xff]  ;;  %v1118_v57 = vld [vmem:[%s23097_s15 + $0x698] sm:$0xff] }
 0x415   : > { %v17971_v0 = vcombine.high %v1117_v20, %v1121_v55  ;;  %v17970_v5 = vcombine.low %v1117_v20, %v1121_v55  ;;  %v17972_v8 = vcombine.low %v1118_v57, %v1122_v58  ;;  %v1170_v20 = vld [vmem:[%s23097_s15 + $0x838] sm:$0xff] }
 0x417   : > { %6521 = vmatpush1.bf16.msra.mxu0 %v17914_v1  ;;  %6808 = vmatpush1.bf16.msra.mxu1 %v17916_v31  ;;  %v17973_v1 = vcombine.high %v1118_v57, %v1122_v58  ;;  %v1125_v31 = vld [vmem:[%s23097_s15 + $0x6d0] sm:$0xff] }
 0x418   : > { %6522 = vmatprep.subr.bf16.mxu0 %v17923_v2  ;;  %6809 = vmatprep.subr.bf16.mxu1 %v17925_v3  ;;  %v1129_v2 = vld [vmem:[%s23097_s15 + $0x6f0] sm:$0xff]  ;;  %v1126_v3 = vld [vmem:[%s23097_s15 + $0x6d8] sm:$0xff] }
 0x419   : > { %v17979_v14 = vcombine.high %v1125_v31, %v1129_v2  ;;  %v17978_v16 = vcombine.low %v1125_v31, %v1129_v2  ;;  %v17980_v17 = vcombine.low %v1126_v3, %v1130_v4  ;;  %v1178_v31 = vld [vmem:[%s23097_s15 + $0x878] sm:$0xff] }
 0x41b   : > { %6523 = vmatpush1.bf16.msra.mxu0 %v17922_v10  ;;  %6810 = vmatpush1.bf16.msra.mxu1 %v17924_v11  ;;  %v17981_v10 = vcombine.high %v1126_v3, %v1130_v4  ;;  %v1133_v11 = vld [vmem:[%s23097_s15 + $0x710] sm:$0xff] }
 0x41c   : > { %6524 = vmatprep.subr.bf16.mxu0 %v17931_v12  ;;  %6811 = vmatprep.subr.bf16.mxu1 %v17933_v56  ;;  %v1137_v12 = vld [vmem:[%s23097_s15 + $0x730] sm:$0xff]  ;;  %v1134_v56 = vld [vmem:[%s23097_s15 + $0x718] sm:$0xff] }
 0x41d   : > { %v17987_v18 = vcombine.high %v1133_v11, %v1137_v12  ;;  %v17986_v27 = vcombine.low %v1133_v11, %v1137_v12  ;;  %v17988_v6 = vcombine.low %v1134_v56, %v1138_v15  ;;  %v1186_v11 = vld [vmem:[%s23097_s15 + $0x8b8] sm:$0xff] }
 0x41f   : > { %6525 = vmatpush1.bf16.msra.mxu0 %v17930_v19  ;;  %6812 = vmatpush1.bf16.msra.mxu1 %v17932_v21  ;;  %v17989_v19 = vcombine.high %v1134_v56, %v1138_v15  ;;  %v1141_v21 = vld [vmem:[%s23097_s15 + $0x750] sm:$0xff] }
 0x420   : > { %6526 = vmatprep.subr.bf16.mxu0 %v17939_v23  ;;  %6813 = vmatprep.subr.bf16.mxu1 %v17941_v24  ;;  %v1145_v23 = vld [vmem:[%s23097_s15 + $0x770] sm:$0xff]  ;;  %v1142_v24 = vld [vmem:[%s23097_s15 + $0x758] sm:$0xff] }
 0x421   : > { %v17995_v29 = vcombine.high %v1141_v21, %v1145_v23  ;;  %v17994_v52 = vcombine.low %v1141_v21, %v1145_v23  ;;  %v17996_v37 = vcombine.low %v1142_v24, %v1146_v25  ;;  %v1194_v21 = vld [vmem:[%s23097_s15 + $0x8f8] sm:$0xff] }
 0x423   : > { %6527 = vmatpush1.bf16.msra.mxu0 %v17938_v30  ;;  %6814 = vmatpush1.bf16.msra.mxu1 %v17940_v60  ;;  %v17997_v30 = vcombine.high %v1142_v24, %v1146_v25  ;;  %v1149_v60 = vld [vmem:[%s23097_s15 + $0x790] sm:$0xff] }
 0x424   : > { %6528 = vmatprep.subr.bf16.mxu0 %v17947_v32  ;;  %6815 = vmatprep.subr.bf16.mxu1 %v17949_v33  ;;  %v1153_v32 = vld [vmem:[%s23097_s15 + $0x7b0] sm:$0xff]  ;;  %v1150_v33 = vld [vmem:[%s23097_s15 + $0x798] sm:$0xff] }
 0x425   : > { %v18003_v39 = vcombine.high %v1149_v60, %v1153_v32  ;;  %v18002_v49 = vcombine.low %v1149_v60, %v1153_v32  ;;  %v18004_v46 = vcombine.low %v1150_v33, %v1154_v35 }
 0x427   : > { %6529 = vmatpush1.bf16.msra.mxu0 %v17946_v40  ;;  %6816 = vmatpush1.bf16.msra.mxu1 %v17948_v42  ;;  %v18005_v40 = vcombine.high %v1150_v33, %v1154_v35  ;;  %v1157_v42 = vld [vmem:[%s23097_s15 + $0x7d0] sm:$0xff] }
 0x428   : > { %6530 = vmatprep.subr.bf16.mxu0 %v17955_v43  ;;  %6817 = vmatprep.subr.bf16.mxu1 %v17957_v44  ;;  %v1161_v43 = vld [vmem:[%s23097_s15 + $0x7f0] sm:$0xff]  ;;  %v1158_v44 = vld [vmem:[%s23097_s15 + $0x7d8] sm:$0xff] }
 0x429   : > { %v18011_v47 = vcombine.high %v1157_v42, %v1161_v43  ;;  %v18010_v55 = vcombine.low %v1157_v42, %v1161_v43  ;;  %v18012_v57 = vcombine.low %v1158_v44, %v1162_v45  ;;  %v1205_v35 = vld [vmem:[%s23097_s15 + $0x950] sm:$0xff] }
 0x42b   : > { %6531 = vmatpush1.bf16.msra.mxu0 %v17954_v13  ;;  %6818 = vmatpush1.bf16.msra.mxu1 %v17956_v7  ;;  %v18013_v13 = vcombine.high %v1158_v44, %v1162_v45  ;;  %v1165_v7 = vld [vmem:[%s23097_s15 + $0x810] sm:$0xff] }
 0x42c   : > { %6532 = vmatprep.subr.bf16.mxu0 %v17963_v51  ;;  %6819 = vmatprep.subr.bf16.mxu1 %v17965_v22  ;;  %v1169_v51 = vld [vmem:[%s23097_s15 + $0x830] sm:$0xff]  ;;  %v1166_v22 = vld [vmem:[%s23097_s15 + $0x818] sm:$0xff] }
 0x42d   : > { %v18019_v58 = vcombine.high %v1165_v7, %v1169_v51  ;;  %v18018_v2 = vcombine.low %v1165_v7, %v1169_v51  ;;  %v18020_v3 = vcombine.low %v1166_v22, %v1170_v20  ;;  %v1213_v45 = vld [vmem:[%s23097_s15 + $0x990] sm:$0xff] }
 0x42f   : > { %6533 = vmatpush1.bf16.msra.mxu0 %v17962_v59  ;;  %6820 = vmatpush1.bf16.msra.mxu1 %v17964_v62  ;;  %v18021_v59 = vcombine.high %v1166_v22, %v1170_v20  ;;  %v1173_v62 = vld [vmem:[%s23097_s15 + $0x850] sm:$0xff] }
 0x430   : > { %6534 = vmatprep.subr.bf16.mxu0 %v17971_v0  ;;  %6821 = vmatprep.subr.bf16.mxu1 %v17973_v1  ;;  %v1177_v0 = vld [vmem:[%s23097_s15 + $0x870] sm:$0xff]  ;;  %v1174_v1 = vld [vmem:[%s23097_s15 + $0x858] sm:$0xff] }
 0x431   : > { %v18027_v4 = vcombine.high %v1173_v62, %v1177_v0  ;;  %v18026_v12 = vcombine.low %v1173_v62, %v1177_v0  ;;  %v18028_v56 = vcombine.low %v1174_v1, %v1178_v31  ;;  %v1221_v20 = vld [vmem:[%s23097_s15 + $0x9d0] sm:$0xff] }
 0x433   : > { %6535 = vmatpush1.bf16.msra.mxu0 %v17970_v5  ;;  %6822 = vmatpush1.bf16.msra.mxu1 %v17972_v8  ;;  %v18029_v5 = vcombine.high %v1174_v1, %v1178_v31  ;;  %v1181_v8 = vld [vmem:[%s23097_s15 + $0x890] sm:$0xff] }
 0x434   : > { %6536 = vmatprep.subr.bf16.mxu0 %v17979_v14  ;;  %6823 = vmatprep.subr.bf16.mxu1 %v17981_v10  ;;  %v1185_v14 = vld [vmem:[%s23097_s15 + $0x8b0] sm:$0xff]  ;;  %v1182_v10 = vld [vmem:[%s23097_s15 + $0x898] sm:$0xff] }
 0x435   : > { %v18035_v15 = vcombine.high %v1181_v8, %v1185_v14  ;;  %v18036_v23 = vcombine.low %v1182_v10, %v1186_v11  ;;  %v1229_v31 = vld [vmem:[%s23097_s15 + $0xa10] sm:$0xff] }
 0x437   : > { %6537 = vmatpush1.bf16.msra.mxu0 %v17978_v16  ;;  %6824 = vmatpush1.bf16.msra.mxu1 %v17980_v17  ;;  %v18037_v16 = vcombine.high %v1182_v10, %v1186_v11  ;;  %v1189_v17 = vld [vmem:[%s23097_s15 + $0x8d0] sm:$0xff] }
 0x438   : > { %6538 = vmatprep.subr.bf16.mxu0 %v17987_v18  ;;  %6825 = vmatprep.subr.bf16.mxu1 %v17989_v19  ;;  %v1193_v18 = vld [vmem:[%s23097_s15 + $0x8f0] sm:$0xff]  ;;  %v1190_v19 = vld [vmem:[%s23097_s15 + $0x8d8] sm:$0xff] }
 0x439   : > { %v18043_v24 = vcombine.high %v1189_v17, %v1193_v18  ;;  %v18045_v25 = vcombine.high %v1190_v19, %v1194_v21  ;;  %v18042_v60 = vcombine.low %v1189_v17, %v1193_v18  ;;  %v1237_v11 = vld [vmem:[%s23097_s15 + $0xa50] sm:$0xff] }
 0x43b   : > { %6539 = vmatpush1.bf16.msra.mxu0 %v17986_v27  ;;  %6826 = vmatpush1.bf16.msra.mxu1 %v17988_v6  ;;  %v1197_v27 = vld [vmem:[%s23097_s15 + $0x910] sm:$0xff] }
 0x43c   : > { %6540 = vmatprep.subr.bf16.mxu0 %v17995_v29  ;;  %6827 = vmatprep.subr.bf16.mxu1 %v17997_v30  ;;  %v1201_v6 = vld [vmem:[%s23097_s15 + $0x930] sm:$0xff]  ;;  %v1198_v29 = vld [vmem:[%s23097_s15 + $0x918] sm:$0xff] }
 0x43d   : > { %v1202_v30 = vld [vmem:[%s23097_s15 + $0x938] sm:$0xff]  ;;  %v18051_v32 = vcombine.high %v1197_v27, %v1201_v6 }
 0x43e   : > { %v18053_v33 = vcombine.high %v1198_v29, %v1202_v30  ;;  %v18052_v42 = vcombine.low %v1198_v29, %v1202_v30  ;;  %v1253_v30 = vld [vmem:[%s23097_s15 + $0xad0] sm:$0xff] }
 0x43f   : > { %6541 = vmatpush1.bf16.msra.mxu0 %v17994_v52  ;;  %6828 = vmatpush1.bf16.msra.mxu1 %v17996_v37  ;;  %v1209_v52 = vld [vmem:[%s23097_s15 + $0x970] sm:$0xff]  ;;  %v1206_v37 = vld [vmem:[%s23097_s15 + $0x958] sm:$0xff] }
 0x440   : > { %6542 = vmatprep.subr.bf16.mxu0 %v18003_v39  ;;  %6829 = vmatprep.subr.bf16.mxu1 %v18005_v40  ;;  %v1210_v39 = vld [vmem:[%s23097_s15 + $0x978] sm:$0xff]  ;;  %v18050_v40 = vcombine.low %v1197_v27, %v1201_v6  ;;  %v18059_v43 = vcombine.high %v1205_v35, %v1209_v52 }
 0x441   : > { %v18061_v44 = vcombine.high %v1206_v37, %v1210_v39  ;;  %v18060_v7 = vcombine.low %v1206_v37, %v1210_v39  ;;  %v1261_v39 = vld [vmem:[%s23097_s15 + $0xb10] sm:$0xff] }
 0x443   : > { %6543 = vmatpush1.bf16.msra.mxu0 %v18002_v49  ;;  %6830 = vmatpush1.bf16.msra.mxu1 %v18004_v46  ;;  %v1217_v49 = vld [vmem:[%s23097_s15 + $0x9b0] sm:$0xff]  ;;  %v1214_v46 = vld [vmem:[%s23097_s15 + $0x998] sm:$0xff] }
 0x444   : > { %6544 = vmatprep.subr.bf16.mxu0 %v18011_v47  ;;  %6831 = vmatprep.subr.bf16.mxu1 %v18013_v13  ;;  %v1218_v47 = vld [vmem:[%s23097_s15 + $0x9b8] sm:$0xff]  ;;  %v18058_v13 = vcombine.low %v1205_v35, %v1209_v52  ;;  %v18067_v51 = vcombine.high %v1213_v45, %v1217_v49 }
 0x445   : > { %v18069_v22 = vcombine.high %v1214_v46, %v1218_v47  ;;  %v18068_v62 = vcombine.low %v1214_v46, %v1218_v47  ;;  %v1269_v47 = vld [vmem:[%s23097_s15 + $0xb50] sm:$0xff] }
 0x447   : > { %6545 = vmatpush1.bf16.msra.mxu0 %v18010_v55  ;;  %6832 = vmatpush1.bf16.msra.mxu1 %v18012_v57  ;;  %v1225_v55 = vld [vmem:[%s23097_s15 + $0x9f0] sm:$0xff]  ;;  %v1222_v57 = vld [vmem:[%s23097_s15 + $0x9d8] sm:$0xff] }
 0x448   : > { %6555 = vmatprep.subr.bf16.mxu0 %v18019_v58  ;;  %6842 = vmatprep.subr.bf16.mxu1 %v18021_v59  ;;  %v1226_v58 = vld [vmem:[%s23097_s15 + $0x9f8] sm:$0xff]  ;;  %v18066_v59 = vcombine.low %v1213_v45, %v1217_v49  ;;  %v18075_v0 = vcombine.high %v1221_v20, %v1225_v55 }
 0x449   : > { %v18077_v1 = vcombine.high %v1222_v57, %v1226_v58 }
 0x44a   : > { %6547 = vmatmul.mubr.bf16.vlgmr.msra.gmra.mrb[4].mxu0 %v23325_v38  ;;  %6834 = vmatmul.mubr.bf16.vlgmr.msra.gmra.mrb[4].mxu1 %v23325_v38  ;;  %v18034_v38 = vcombine.low %v1181_v8, %v1185_v14  ;;  %v18076_v8 = vcombine.low %v1222_v57, %v1226_v58  ;;  %v1277_v58 = vld [vmem:[%s23097_s15 + $0xb90] sm:$0xff] }
 0x44b   : > { %6556 = vmatpush1.bf16.msra.mxu0 %v18018_v2  ;;  %6843 = vmatpush1.bf16.msra.mxu1 %v18020_v3  ;;  %v1233_v2 = vld [vmem:[%s23097_s15 + $0xa30] sm:$0xff]  ;;  %v1230_v3 = vld [vmem:[%s23097_s15 + $0xa18] sm:$0xff] }
 0x44c   : > { %6557 = vmatprep.subr.bf16.mxu0 %v18027_v4  ;;  %6844 = vmatprep.subr.bf16.mxu1 %v18029_v5  ;;  %v1234_v4 = vld [vmem:[%s23097_s15 + $0xa38] sm:$0xff]  ;;  %v18074_v5 = vcombine.low %v1221_v20, %v1225_v55  ;;  %v18083_v14 = vcombine.high %v1229_v31, %v1233_v2 }
 0x44d   : > { %6587 = vmatprep.mubr.bf16.mxu0 %v23331_v48  ;;  %6874 = vmatprep.mubr.bf16.mxu1 %v23331_v48  ;;  %v18044_v48 = vcombine.low %v1190_v19, %v1194_v21  ;;  %v18085_v10 = vcombine.high %v1230_v3, %v1234_v4  ;;  %v18084_v17 = vcombine.low %v1230_v3, %v1234_v4  ;;  %v1245_v21 = vld [vmem:[%s23097_s15 + $0xa90] sm:$0xff] }
 0x44e   : > { %v1285_v4 = vld [vmem:[%s23097_s15 + $0xbd0] sm:$0xff] }
 0x44f   : > { %6558 = vmatpush1.bf16.msra.mxu0 %v18026_v12  ;;  %6845 = vmatpush1.bf16.msra.mxu1 %v18028_v56  ;;  %v1241_v12 = vld [vmem:[%s23097_s15 + $0xa70] sm:$0xff]  ;;  %v1238_v56 = vld [vmem:[%s23097_s15 + $0xa58] sm:$0xff] }
 0x450   : > { %6559 = vmatprep.subr.bf16.mxu0 %v18035_v15  ;;  %6846 = vmatprep.subr.bf16.mxu1 %v18037_v16  ;;  %v1242_v15 = vld [vmem:[%s23097_s15 + $0xa78] sm:$0xff]  ;;  %v18082_v16 = vcombine.low %v1229_v31, %v1233_v2  ;;  %v18091_v18 = vcombine.high %v1237_v11, %v1241_v12 }
 0x451   : > { %v18093_v19 = vcombine.high %v1238_v56, %v1242_v15  ;;  %v18092_v27 = vcombine.low %v1238_v56, %v1242_v15  ;;  %v1293_v15 = vld [vmem:[%s23097_s15 + $0xc10] sm:$0xff] }
 0x453   : > { %6560 = vmatpush1.bf16.msra.mxu0 %v18034_v38  ;;  %6847 = vmatpush1.bf16.msra.mxu1 %v18036_v23  ;;  %v1249_v38 = vld [vmem:[%s23097_s15 + $0xab0] sm:$0xff]  ;;  %v1246_v23 = vld [vmem:[%s23097_s15 + $0xa98] sm:$0xff] }
 0x454   : > { %6561 = vmatprep.subr.bf16.mxu0 %v18043_v24  ;;  %6848 = vmatprep.subr.bf16.mxu1 %v18045_v25  ;;  %v1250_v24 = vld [vmem:[%s23097_s15 + $0xab8] sm:$0xff]  ;;  %v18090_v25 = vcombine.low %v1237_v11, %v1241_v12  ;;  %v18099_v6 = vcombine.high %v1245_v21, %v1249_v38 }
 0x455   : > { %v18101_v29 = vcombine.high %v1246_v23, %v1250_v24  ;;  %v18100_v35 = vcombine.low %v1246_v23, %v1250_v24  ;;  %v1301_v24 = vld [vmem:[%s23097_s15 + $0xc50] sm:$0xff] }
 0x457   : > { %6562 = vmatpush1.bf16.msra.mxu0 %v18042_v60  ;;  %6849 = vmatpush1.bf16.msra.mxu1 %v18044_v48  ;;  %v1257_v60 = vld [vmem:[%s23097_s15 + $0xaf0] sm:$0xff]  ;;  %v1254_v48 = vld [vmem:[%s23097_s15 + $0xad8] sm:$0xff] }
 0x458   : > { %6563 = vmatprep.subr.bf16.mxu0 %v18051_v32  ;;  %6850 = vmatprep.subr.bf16.mxu1 %v18053_v33  ;;  %v1258_v32 = vld [vmem:[%s23097_s15 + $0xaf8] sm:$0xff]  ;;  %v18098_v33 = vcombine.low %v1245_v21, %v1249_v38  ;;  %v18107_v52 = vcombine.high %v1253_v30, %v1257_v60 }
 0x459   : > { %v18109_v37 = vcombine.high %v1254_v48, %v1258_v32  ;;  %v18108_v45 = vcombine.low %v1254_v48, %v1258_v32  ;;  %v1309_v32 = vld [vmem:[%s23097_s15 + $0xc90] sm:$0xff] }
 0x45b   : > { %6564 = vmatpush1.bf16.msra.mxu0 %v18050_v40  ;;  %6851 = vmatpush1.bf16.msra.mxu1 %v18052_v42  ;;  %v1265_v40 = vld [vmem:[%s23097_s15 + $0xb30] sm:$0xff]  ;;  %v1262_v42 = vld [vmem:[%s23097_s15 + $0xb18] sm:$0xff] }
 0x45c   : > { %6565 = vmatprep.subr.bf16.mxu0 %v18059_v43  ;;  %6852 = vmatprep.subr.bf16.mxu1 %v18061_v44  ;;  %v1266_v43 = vld [vmem:[%s23097_s15 + $0xb38] sm:$0xff]  ;;  %v18106_v44 = vcombine.low %v1253_v30, %v1257_v60  ;;  %v18115_v49 = vcombine.high %v1261_v39, %v1265_v40 }
 0x45d   : > { %v18117_v46 = vcombine.high %v1262_v42, %v1266_v43  ;;  %v18116_v20 = vcombine.low %v1262_v42, %v1266_v43  ;;  %v1317_v43 = vld [vmem:[%s23097_s15 + $0xcd0] sm:$0xff] }
 0x45f   : > { %6566 = vmatpush1.bf16.msra.mxu0 %v18058_v13  ;;  %6853 = vmatpush1.bf16.msra.mxu1 %v18060_v7  ;;  %v1273_v13 = vld [vmem:[%s23097_s15 + $0xb70] sm:$0xff]  ;;  %v1270_v7 = vld [vmem:[%s23097_s15 + $0xb58] sm:$0xff] }
 0x460   : > { %6567 = vmatprep.subr.bf16.mxu0 %v18067_v51  ;;  %6854 = vmatprep.subr.bf16.mxu1 %v18069_v22  ;;  %v1274_v51 = vld [vmem:[%s23097_s15 + $0xb78] sm:$0xff]  ;;  %v18114_v22 = vcombine.low %v1261_v39, %v1265_v40  ;;  %v18123_v55 = vcombine.high %v1269_v47, %v1273_v13 }
 0x461   : > { %v18125_v57 = vcombine.high %v1270_v7, %v1274_v51  ;;  %v18124_v31 = vcombine.low %v1270_v7, %v1274_v51  ;;  %v1325_v7 = vld [vmem:[%s23097_s15 + $0xd10] sm:$0xff] }
 0x462   : > { %v1329_v51 = vld [vmem:[%s23097_s15 + $0xd30] sm:$0xff] }
 0x463   : > { %6568 = vmatpush1.bf16.msra.mxu0 %v18066_v59  ;;  %6855 = vmatpush1.bf16.msra.mxu1 %v18068_v62  ;;  %v1281_v59 = vld [vmem:[%s23097_s15 + $0xbb0] sm:$0xff]  ;;  %v1278_v62 = vld [vmem:[%s23097_s15 + $0xb98] sm:$0xff] }
 0x464   : > { %6569 = vmatprep.subr.bf16.mxu0 %v18075_v0  ;;  %6856 = vmatprep.subr.bf16.mxu1 %v18077_v1  ;;  %v1282_v0 = vld [vmem:[%s23097_s15 + $0xbb8] sm:$0xff]  ;;  %v18122_v1 = vcombine.low %v1269_v47, %v1273_v13  ;;  %v18131_v2 = vcombine.high %v1277_v58, %v1281_v59 }
 0x465   : > { %v18133_v3 = vcombine.high %v1278_v62, %v1282_v0  ;;  %v18132_v11 = vcombine.low %v1278_v62, %v1282_v0  ;;  %v1337_v62 = vld [vmem:[%s23097_s15 + $0xd70] sm:$0xff]  ;;  %v1334_v0 = vld [vmem:[%s23097_s15 + $0xd58] sm:$0xff] }
 0x467   : > { %6570 = vmatpush1.bf16.msra.mxu0 %v18074_v5  ;;  %6857 = vmatpush1.bf16.msra.mxu1 %v18076_v8  ;;  %v1289_v5 = vld [vmem:[%s23097_s15 + $0xbf0] sm:$0xff]  ;;  %v1286_v8 = vld [vmem:[%s23097_s15 + $0xbd8] sm:$0xff] }
 0x468   : > { %6571 = vmatprep.subr.bf16.mxu0 %v18083_v14  ;;  %6858 = vmatprep.subr.bf16.mxu1 %v18085_v10  ;;  %v1290_v14 = vld [vmem:[%s23097_s15 + $0xbf8] sm:$0xff]  ;;  %v18130_v10 = vcombine.low %v1277_v58, %v1281_v59  ;;  %v18139_v12 = vcombine.high %v1285_v4, %v1289_v5  ;;  %v1333_v59 = vld [vmem:[%s23097_s15 + $0xd50] sm:$0xff] }
 0x469   : > { %v18141_v56 = vcombine.high %v1286_v8, %v1290_v14  ;;  %v18140_v21 = vcombine.low %v1286_v8, %v1290_v14  ;;  %v1345_v8 = vld [vmem:[%s23097_s15 + $0xdb0] sm:$0xff]  ;;  %v1342_v14 = vld [vmem:[%s23097_s15 + $0xd98] sm:$0xff] }
 0x46b   : > { %6572 = vmatpush1.bf16.msra.mxu0 %v18082_v16  ;;  %6859 = vmatpush1.bf16.msra.mxu1 %v18084_v17  ;;  %v1297_v16 = vld [vmem:[%s23097_s15 + $0xc30] sm:$0xff]  ;;  %v1294_v17 = vld [vmem:[%s23097_s15 + $0xc18] sm:$0xff] }
 0x46c   : > { %6573 = vmatprep.subr.bf16.mxu0 %v18091_v18  ;;  %6860 = vmatprep.subr.bf16.mxu1 %v18093_v19  ;;  %v1298_v18 = vld [vmem:[%s23097_s15 + $0xc38] sm:$0xff]  ;;  %v18138_v19 = vcombine.low %v1285_v4, %v1289_v5  ;;  %v18147_v38 = vcombine.high %v1293_v15, %v1297_v16  ;;  %v1341_v5 = vld [vmem:[%s23097_s15 + $0xd90] sm:$0xff] }
 0x46d   : > { %v18149_v23 = vcombine.high %v1294_v17, %v1298_v18  ;;  %v18148_v30 = vcombine.low %v1294_v17, %v1298_v18  ;;  %v1349_v17 = vld [vmem:[%s23097_s15 + $0xdd0] sm:$0xff] }
 0x46e   : > { %v1353_v18 = vld [vmem:[%s23097_s15 + $0xdf0] sm:$0xff] }
 0x46f   : > { %6574 = vmatpush1.bf16.msra.mxu0 %v18090_v25  ;;  %6861 = vmatpush1.bf16.msra.mxu1 %v18092_v27  ;;  %v1305_v25 = vld [vmem:[%s23097_s15 + $0xc70] sm:$0xff]  ;;  %v1302_v27 = vld [vmem:[%s23097_s15 + $0xc58] sm:$0xff] }
 0x470   : > { %6575 = vmatprep.subr.bf16.mxu0 %v18099_v6  ;;  %6862 = vmatprep.subr.bf16.mxu1 %v18101_v29  ;;  %v1306_v6 = vld [vmem:[%s23097_s15 + $0xc78] sm:$0xff]  ;;  %v18146_v29 = vcombine.low %v1293_v15, %v1297_v16  ;;  %v18155_v60 = vcombine.high %v1301_v24, %v1305_v25 }
 0x471   : > { %v18157_v48 = vcombine.high %v1302_v27, %v1306_v6  ;;  %v18156_v39 = vcombine.low %v1302_v27, %v1306_v6  ;;  %v18194_v6 = vcombine.low %v1341_v5, %v1345_v8 }
 0x473   : > { %6576 = vmatpush1.bf16.msra.mxu0 %v18098_v33  ;;  %6863 = vmatpush1.bf16.msra.mxu1 %v18100_v35  ;;  %v1313_v33 = vld [vmem:[%s23097_s15 + $0xcb0] sm:$0xff]  ;;  %v1310_v35 = vld [vmem:[%s23097_s15 + $0xc98] sm:$0xff] }
 0x474   : > { %6577 = vmatprep.subr.bf16.mxu0 %v18107_v52  ;;  %6864 = vmatprep.subr.bf16.mxu1 %v18109_v37  ;;  %v1314_v52 = vld [vmem:[%s23097_s15 + $0xcb8] sm:$0xff]  ;;  %v18154_v37 = vcombine.low %v1301_v24, %v1305_v25  ;;  %v18163_v40 = vcombine.high %v1309_v32, %v1313_v33 }
 0x475   : > { %v18165_v42 = vcombine.high %v1310_v35, %v1314_v52 }
 0x477   : > { %6578 = vmatpush1.bf16.msra.mxu0 %v18106_v44  ;;  %6865 = vmatpush1.bf16.msra.mxu1 %v18108_v45  ;;  %v1321_v44 = vld [vmem:[%s23097_s15 + $0xcf0] sm:$0xff]  ;;  %v1318_v45 = vld [vmem:[%s23097_s15 + $0xcd8] sm:$0xff] }
 0x478   : > { %6579 = vmatprep.subr.bf16.mxu0 %v18115_v49  ;;  %6866 = vmatprep.subr.bf16.mxu1 %v18117_v46  ;;  %v1322_v49 = vld [vmem:[%s23097_s15 + $0xcf8] sm:$0xff]  ;;  %v18164_v46 = vcombine.low %v1310_v35, %v1314_v52  ;;  %v18171_v47 = vcombine.high %v1317_v43, %v1321_v44 }
 0x479   : > { %v18173_v13 = vcombine.high %v1318_v45, %v1322_v49 }
 0x47b   : > { %6580 = vmatpush1.bf16.msra.mxu0 %v18114_v22  ;;  %6867 = vmatpush1.bf16.msra.mxu1 %v18116_v20  ;;  %v1326_v22 = vld [vmem:[%s23097_s15 + $0xd18] sm:$0xff] }
 0x47c   : > { %6581 = vmatprep.subr.bf16.mxu0 %v18123_v55  ;;  %6868 = vmatprep.subr.bf16.mxu1 %v18125_v57  ;;  %v1330_v20 = vld [vmem:[%s23097_s15 + $0xd38] sm:$0xff]  ;;  %v18170_v55 = vcombine.low %v1317_v43, %v1321_v44  ;;  %v18179_v57 = vcombine.high %v1325_v7, %v1329_v51 }
 0x47d   : > { %v18181_v58 = vcombine.high %v1326_v22, %v1330_v20  ;;  %v1362_v43 = vld [vmem:[%s23097_s15 + $0xe38] sm:$0xff] }
 0x47e   : > { %v813_v44 = vld [vmem:[#allocation2] sm:$0xff] }
 0x47f   : > { %6582 = vmatpush1.bf16.msra.mxu0 %v18122_v1  ;;  %6869 = vmatpush1.bf16.msra.mxu1 %v18124_v31  ;;  %v1338_v1 = vld [vmem:[%s23097_s15 + $0xd78] sm:$0xff]  ;;  %v18178_v31 = vcombine.low %v1325_v7, %v1329_v51  ;;  %v1369_v7 = vld [vmem:[%s23097_s15 + $0xe70] sm:$0xff] }
 0x480   : > { %6583 = vmatprep.subr.bf16.mxu0 %v18131_v2  ;;  %6870 = vmatprep.subr.bf16.mxu1 %v18133_v3  ;;  %v18180_v2 = vcombine.low %v1326_v22, %v1330_v20  ;;  %v18187_v3 = vcombine.high %v1333_v59, %v1337_v62  ;;  %v18189_v4 = vcombine.high %v1334_v0, %v1338_v1  ;;  %v1366_v22 = vld [vmem:[%s23097_s15 + $0xe58] sm:$0xff] }
 0x481   : > { %v1370_v20 = vld [vmem:[%s23097_s15 + $0xe78] sm:$0xff] }
 0x483   : > { %6584 = vmatpush1.bf16.msra.mxu0 %v18130_v10  ;;  %6871 = vmatpush1.bf16.msra.mxu1 %v18132_v11  ;;  %v1346_v10 = vld [vmem:[%s23097_s15 + $0xdb8] sm:$0xff]  ;;  %v18186_v11 = vcombine.low %v1333_v59, %v1337_v62  ;;  %v1373_v59 = vld [vmem:[%s23097_s15 + $0xe90] sm:$0xff] }
 0x484   : > { %6585 = vmatprep.subr.bf16.mxu0 %v18139_v12  ;;  %6872 = vmatprep.subr.bf16.mxu1 %v18141_v56  ;;  %v18188_v12 = vcombine.low %v1334_v0, %v1338_v1  ;;  %v18195_v56 = vcombine.high %v1341_v5, %v1345_v8  ;;  %v18197_v16 = vcombine.high %v1342_v14, %v1346_v10  ;;  %v1377_v62 = vld [vmem:[%s23097_s15 + $0xeb0] sm:$0xff]  ;;  %v1374_v0 = vld [vmem:[%s23097_s15 + $0xe98] sm:$0xff] }
 0x485   : > { %v1378_v1 = vld [vmem:[%s23097_s15 + $0xeb8] sm:$0xff]  ;;  %v1381_v5 = vld [vmem:[%s23097_s15 + $0xed0] sm:$0xff] }
 0x486   : > { %v1385_v8 = vld [vmem:[%s23097_s15 + $0xef0] sm:$0xff] }
 0x487   : > { %6586 = vmatpush1.bf16.msra.mxu0 %v18138_v19  ;;  %6873 = vmatpush1.bf16.msra.mxu1 %v18140_v21 }
 0x488   : > { %6596 = vmatprep.subr.bf16.mxu0 %v18147_v38  ;;  %6883 = vmatprep.subr.bf16.mxu1 %v18149_v23  ;;  %v1350_v38 = vld [vmem:[%s23097_s15 + $0xdd8] sm:$0xff] }
 0x489   : > { %v1354_v23 = vld [vmem:[%s23097_s15 + $0xdf8] sm:$0xff] }
 0x48a   : > { %6588 = vmatmul.mubr.bf16.vlgmr.msra.gmra.mrb[4].mxu0 %v23406_v63  ;;  %6875 = vmatmul.mubr.bf16.vlgmr.msra.gmra.mrb[4].mxu1 %v23406_v63  ;;  %v18162_v63 = vcombine.low %v1309_v32, %v1313_v33  ;;  %v18203_v32 = vcombine.high %v1349_v17, %v1353_v18  ;;  %v18205_v52 = vcombine.high %v1350_v38, %v1354_v23 }
 0x48b   : > { %6597 = vmatpush1.bf16.msra.mxu0 %v18146_v29  ;;  %6884 = vmatpush1.bf16.msra.mxu1 %v18148_v30 }
 0x48c   : > { %6598 = vmatprep.subr.bf16.mxu0 %v18155_v60  ;;  %6885 = vmatprep.subr.bf16.mxu1 %v18157_v48  ;;  %v18196_v48 = vcombine.low %v1342_v14, %v1346_v10  ;;  %v1382_v14 = vld [vmem:[%s23097_s15 + $0xed8] sm:$0xff] }
 0x48d   : > { %6628 = vmatprep.mubr.bf16.mxu0 %v23412_v9  ;;  %6915 = vmatprep.mubr.bf16.mxu1 %v23412_v9  ;;  %v18172_v9 = vcombine.low %v1318_v45, %v1322_v49  ;;  %v18202_v45 = vcombine.low %v1349_v17, %v1353_v18  ;;  %v1386_v10 = vld [vmem:[%s23097_s15 + $0xef8] sm:$0xff]  ;;  %v1393_v17 = vld [vmem:[%s23097_s15 + $0xf30] sm:$0xff] }
 0x48e   : > { %v1390_v18 = vld [vmem:[%s23097_s15 + $0xf18] sm:$0xff] }
 0x48f   : > { %6599 = vmatpush1.bf16.msra.mxu0 %v18154_v37  ;;  %6886 = vmatpush1.bf16.msra.mxu1 %v18156_v39  ;;  %v1357_v37 = vld [vmem:[%s23097_s15 + $0xe10] sm:$0xff] }
 0x490   : > { %6600 = vmatprep.subr.bf16.mxu0 %v18163_v40  ;;  %6887 = vmatprep.subr.bf16.mxu1 %v18165_v42  ;;  %v1361_v39 = vld [vmem:[%s23097_s15 + $0xe30] sm:$0xff]  ;;  %v1358_v42 = vld [vmem:[%s23097_s15 + $0xe18] sm:$0xff] }
 0x493   : > { %6601 = vmatpush1.bf16.msra.mxu0 %v18162_v63  ;;  %6888 = vmatpush1.bf16.msra.mxu1 %v18164_v46  ;;  %v18204_v63 = vcombine.low %v1350_v38, %v1354_v23  ;;  %v18211_v46 = vcombine.high %v1357_v37, %v1361_v39  ;;  %v18236_v38 = vcombine.low %v1382_v14, %v1386_v10 }
 0x494   : > { %6602 = vmatprep.subr.bf16.mxu0 %v18171_v47  ;;  %6889 = vmatprep.subr.bf16.mxu1 %v18173_v13  ;;  %v18213_v47 = vcombine.high %v1358_v42, %v1362_v43  ;;  %v1365_v13 = vld [vmem:[%s23097_s15 + $0xe50] sm:$0xff] }
 0x497   : > { %6603 = vmatpush1.bf16.msra.mxu0 %v18170_v55  ;;  %6890 = vmatpush1.bf16.msra.mxu1 %v18172_v9  ;;  %v18210_v55 = vcombine.low %v1357_v37, %v1361_v39  ;;  %v18212_v9 = vcombine.low %v1358_v42, %v1362_v43  ;;  %v1410_v37 = vld [vmem:[%s23097_s15 + $0xfb8] sm:$0xff] }
 0x498   : > { %6604 = vmatprep.subr.bf16.mxu0 %v18179_v57  ;;  %6891 = vmatprep.subr.bf16.mxu1 %v18181_v58  ;;  %v18219_v57 = vcombine.high %v1365_v13, %v1369_v7  ;;  %v18221_v58 = vcombine.high %v1366_v22, %v1370_v20 }
 0x49b   : > { %6605 = vmatpush1.bf16.msra.mxu0 %v18178_v31  ;;  %6892 = vmatpush1.bf16.msra.mxu1 %v18180_v2  ;;  %v18218_v31 = vcombine.low %v1365_v13, %v1369_v7  ;;  %v18220_v2 = vcombine.low %v1366_v22, %v1370_v20  ;;  %v1425_v22 = vld [vmem:[%s23097_s15 + $0x1030] sm:$0xff]  ;;  %v1422_v20 = vld [vmem:[%s23097_s15 + $0x1018] sm:$0xff] }
 0x49c   : > { %6606 = vmatprep.subr.bf16.mxu0 %v18187_v3  ;;  %6893 = vmatprep.subr.bf16.mxu1 %v18189_v4  ;;  %v18227_v3 = vcombine.high %v1373_v59, %v1377_v62  ;;  %v18229_v4 = vcombine.high %v1374_v0, %v1378_v1 }
 0x49d   : > { %v6179_v15 = vpop.f32.mrb[0].mxu0  ;;  %v6466_v19 = vpop.f32.mrb[0].mxu1 }
 0x49e   : > { %v6181_v21 = vpop.f32.mrb[1].mxu0  ;;  %v6468_v25 = vpop.f32.mrb[1].mxu1 }
 0x49f   : > { %v7055_v24 = vcombine.low %v6179_v15, %v6181_v21  ;;  %v6183_v27 = vpop.f32.mrb[2].mxu0  ;;  %6607 = vmatpush1.bf16.msra.mxu0 %v18186_v11  ;;  %v7056_v29 = vcombine.low %v6466_v19, %v6468_v25  ;;  %v6470_v30 = vpop.f32.mrb[2].mxu1  ;;  %6894 = vmatpush1.bf16.msra.mxu1 %v18188_v12  ;;  %v18226_v11 = vcombine.low %v1373_v59, %v1377_v62  ;;  %v1394_v19 = vld [vmem:[%s23097_s15 + $0xf38] sm:$0xff]  ;;  %v1397_v25 = vld [vmem:[%s23097_s15 + $0xf50] sm:$0xff] }
 0x4a0   : > { %v6184_v60 = vpop.f32.mrb[3].mxu0  ;;  %6608 = vmatprep.subr.bf16.mxu0 %v18195_v56  ;;  %v6471_v35 = vpop.f32.mrb[3].mxu1  ;;  %6895 = vmatprep.subr.bf16.mxu1 %v18197_v16  ;;  %v18228_v12 = vcombine.low %v1374_v0, %v1378_v1  ;;  %v18235_v56 = vcombine.high %v1381_v5, %v1385_v8  ;;  %v18237_v15 = vcombine.high %v1382_v14, %v1386_v10  ;;  %v1389_v16 = vld [vmem:[%s23097_s15 + $0xf10] sm:$0xff]  ;;  %v1430_v1 = vld [vmem:[%s23097_s15 + $0x1058] sm:$0xff] }
 0x4a1   : > { %v7063_v33 = vrot.slane %v7055_v24, %v23174_v50  ;;  %v7070_v40 = vrot.slane %v7056_v29, %v23174_v50  ;;  %v18234_v21 = vcombine.low %v1381_v5, %v1385_v8  ;;  %v18243_v23 = vcombine.high %v1389_v16, %v1393_v17  ;;  %v1401_v27 = vld [vmem:[%s23097_s15 + $0xf70] sm:$0xff]  ;;  %v1402_v29 = vld [vmem:[%s23097_s15 + $0xf78] sm:$0xff] }
 0x4a2   : > { %v18245_v24 = vcombine.high %v1390_v18, %v1394_v19  ;;  %v18242_v30 = vcombine.low %v1389_v16, %v1393_v17  ;;  %v18244_v60 = vcombine.low %v1390_v18, %v1394_v19  ;;  %v1409_v35 = vld [vmem:[%s23097_s15 + $0xfb0] sm:$0xff]  ;;  %v18250_v39 = vcombine.low %v1397_v25, %v1401_v27  ;;  %v1438_v10 = vld [vmem:[%s23097_s15 + $0x1098] sm:$0xff] }
 0x4a3   : > { %6609 = vmatpush1.bf16.msra.mxu0 %v18194_v6  ;;  %v7071_v49 = vcombine.low %v7063_v33, %v7070_v40  ;;  %6896 = vmatpush1.bf16.msra.mxu1 %v18196_v48  ;;  %v1398_v6 = vld [vmem:[%s23097_s15 + $0xf58] sm:$0xff]  ;;  %v18251_v48 = vcombine.high %v1397_v25, %v1401_v27  ;;  %v1405_v33 = vld [vmem:[%s23097_s15 + $0xf90] sm:$0xff] }
 0x4a4   : > { %6610 = vmatprep.subr.bf16.mxu0 %v18203_v32  ;;  %6897 = vmatprep.subr.bf16.mxu1 %v18205_v52  ;;  %v18253_v32 = vcombine.high %v1398_v6, %v1402_v29  ;;  %v1406_v52 = vld [vmem:[%s23097_s15 + $0xf98] sm:$0xff]  ;;  %v18252_v40 = vcombine.low %v1398_v6, %v1402_v29  ;;  %v18259_v42 = vcombine.high %v1405_v33, %v1409_v35  ;;  %v1429_v62 = vld [vmem:[%s23097_s15 + $0x1050] sm:$0xff] }
 0x4a5   : > { %v7091_v51 = vadd.f32 %v7071_v49, %v813_v44  ;;  %v18261_v43 = vcombine.high %v1406_v52, %v1410_v37  ;;  %v1413_v44 = vld [vmem:[%s23097_s15 + $0xfd0] sm:$0xff]  ;;  %v1414_v49 = vld [vmem:[%s23097_s15 + $0xfd8] sm:$0xff] }
 0x4a6   : > { %v1433_v0 = vld [vmem:[%s23097_s15 + $0x1070] sm:$0xff]  ;;  %v1446_v19 = vld [vmem:[%s23097_s15 + $0x10d8] sm:$0xff] }
 0x4a7   : > { %6611 = vmatpush1.bf16.msra.mxu0 %v18202_v45  ;;  %7093 = vst [vmem:[#allocation2] sm:$0xff] %v7091_v51  ;;  %6898 = vmatpush1.bf16.msra.mxu1 %v18204_v63  ;;  %v1417_v45 = vld [vmem:[%s23097_s15 + $0xff0] sm:$0xff]  ;;  %v1418_v63 = vld [vmem:[%s23097_s15 + $0xff8] sm:$0xff] }
 0x4a8   : > { %6612 = vmatprep.subr.bf16.mxu0 %v18211_v46  ;;  %6899 = vmatprep.subr.bf16.mxu1 %v18213_v47  ;;  %v18258_v46 = vcombine.low %v1405_v33, %v1409_v35  ;;  %v18260_v47 = vcombine.low %v1406_v52, %v1410_v37  ;;  %v18267_v13 = vcombine.high %v1413_v44, %v1417_v45  ;;  %v1421_v51 = vld [vmem:[%s23097_s15 + $0x1010] sm:$0xff]  ;;  %v1454_v6 = vld [vmem:[%s23097_s15 + $0x1118] sm:$0xff] }
 0x4a9   : > { %v18269_v7 = vcombine.high %v1414_v49, %v1418_v63  ;;  %v1437_v8 = vld [vmem:[%s23097_s15 + $0x1090] sm:$0xff]  ;;  %v1458_v29 = vld [vmem:[%s23097_s15 + $0x1138] sm:$0xff] }
 0x4aa   : > { %v1441_v14 = vld [vmem:[%s23097_s15 + $0x10b0] sm:$0xff]  ;;  %v1462_v35 = vld [vmem:[%s23097_s15 + $0x1158] sm:$0xff] }
 0x4ab   : > { %6613 = vmatpush1.bf16.msra.mxu0 %v18210_v55  ;;  %6900 = vmatpush1.bf16.msra.mxu1 %v18212_v9  ;;  %v1426_v55 = vld [vmem:[%s23097_s15 + $0x1038] sm:$0xff]  ;;  %v18266_v9 = vcombine.low %v1413_v44, %v1417_v45  ;;  %v1445_v17 = vld [vmem:[%s23097_s15 + $0x10d0] sm:$0xff] }
 0x4ac   : > { %6614 = vmatprep.subr.bf16.mxu0 %v18219_v57  ;;  %6901 = vmatprep.subr.bf16.mxu1 %v18221_v58  ;;  %v18268_v57 = vcombine.low %v1414_v49, %v1418_v63  ;;  %v18275_v58 = vcombine.high %v1421_v51, %v1425_v22  ;;  %v18277_v59 = vcombine.high %v1422_v20, %v1426_v55  ;;  %v1449_v18 = vld [vmem:[%s23097_s15 + $0x10f0] sm:$0xff]  ;;  %v1466_v52 = vld [vmem:[%s23097_s15 + $0x1178] sm:$0xff] }
 0x4ad   : > { %v1453_v25 = vld [vmem:[%s23097_s15 + $0x1110] sm:$0xff]  ;;  %v1470_v45 = vld [vmem:[%s23097_s15 + $0x1198] sm:$0xff] }
 0x4ae   : > { %v1457_v27 = vld [vmem:[%s23097_s15 + $0x1130] sm:$0xff]  ;;  %v1474_v49 = vld [vmem:[%s23097_s15 + $0x11b8] sm:$0xff] }
 0x4af   : > { %6615 = vmatpush1.bf16.msra.mxu0 %v18218_v31  ;;  %6902 = vmatpush1.bf16.msra.mxu1 %v18220_v2  ;;  %v1434_v31 = vld [vmem:[%s23097_s15 + $0x1078] sm:$0xff]  ;;  %v18274_v2 = vcombine.low %v1421_v51, %v1425_v22  ;;  %v1465_v33 = vld [vmem:[%s23097_s15 + $0x1170] sm:$0xff]  ;;  %v18306_v37 = vcombine.low %v1453_v25, %v1457_v27 }
 0x4b0   : > { %6616 = vmatprep.subr.bf16.mxu0 %v18227_v3  ;;  %6903 = vmatprep.subr.bf16.mxu1 %v18229_v4  ;;  %v18276_v3 = vcombine.low %v1422_v20, %v1426_v55  ;;  %v18283_v4 = vcombine.high %v1429_v62, %v1433_v0  ;;  %v18285_v5 = vcombine.high %v1430_v1, %v1434_v31  ;;  %v1473_v44 = vld [vmem:[%s23097_s15 + $0x11b0] sm:$0xff]  ;;  %v1478_v22 = vld [vmem:[%s23097_s15 + $0x11d8] sm:$0xff] }
 0x4b1   : > { %v1481_v51 = vld [vmem:[%s23097_s15 + $0x11f0] sm:$0xff]  ;;  %v1482_v20 = vld [vmem:[%s23097_s15 + $0x11f8] sm:$0xff] }
 0x4b3   : > { %6617 = vmatpush1.bf16.msra.mxu0 %v18226_v11  ;;  %6904 = vmatpush1.bf16.msra.mxu1 %v18228_v12  ;;  %v1442_v11 = vld [vmem:[%s23097_s15 + $0x10b8] sm:$0xff]  ;;  %v18282_v12 = vcombine.low %v1429_v62, %v1433_v0  ;;  %v1489_v62 = vld [vmem:[%s23097_s15 + $0x1230] sm:$0xff] }
 0x4b4   : > { %6618 = vmatprep.subr.bf16.mxu0 %v18235_v56  ;;  %6905 = vmatprep.subr.bf16.mxu1 %v18237_v15  ;;  %v18284_v56 = vcombine.low %v1430_v1, %v1434_v31  ;;  %v18291_v15 = vcombine.high %v1437_v8, %v1441_v14  ;;  %v18293_v16 = vcombine.high %v1438_v10, %v1442_v11  ;;  %v1486_v0 = vld [vmem:[%s23097_s15 + $0x1218] sm:$0xff] }
 0x4b5   : > { %v1490_v1 = vld [vmem:[%s23097_s15 + $0x1238] sm:$0xff] }
 0x4b7   : > { %6619 = vmatpush1.bf16.msra.mxu0 %v18234_v21  ;;  %6906 = vmatpush1.bf16.msra.mxu1 %v18236_v38  ;;  %v1450_v21 = vld [vmem:[%s23097_s15 + $0x10f8] sm:$0xff]  ;;  %v18292_v38 = vcombine.low %v1438_v10, %v1442_v11 }
 0x4b8   : > { %6620 = vmatprep.subr.bf16.mxu0 %v18243_v23  ;;  %6907 = vmatprep.subr.bf16.mxu1 %v18245_v24  ;;  %v18299_v23 = vcombine.high %v1445_v17, %v1449_v18  ;;  %v18301_v24 = vcombine.high %v1446_v19, %v1450_v21  ;;  %v1498_v10 = vld [vmem:[%s23097_s15 + $0x1278] sm:$0xff] }
 0x4bb   : > { %6621 = vmatpush1.bf16.msra.mxu0 %v18242_v30  ;;  %6908 = vmatpush1.bf16.msra.mxu1 %v18244_v60  ;;  %v18298_v30 = vcombine.low %v1445_v17, %v1449_v18  ;;  %v18307_v60 = vcombine.high %v1453_v25, %v1457_v27  ;;  %v1505_v17 = vld [vmem:[%s23097_s15 + $0x12b0] sm:$0xff]  ;;  %v1502_v18 = vld [vmem:[%s23097_s15 + $0x1298] sm:$0xff] }
 0x4bc   : > { %6622 = vmatprep.subr.bf16.mxu0 %v18251_v48  ;;  %6909 = vmatprep.subr.bf16.mxu1 %v18253_v32  ;;  %v18309_v48 = vcombine.high %v1454_v6, %v1458_v29  ;;  %v1461_v32 = vld [vmem:[%s23097_s15 + $0x1150] sm:$0xff]  ;;  %v1510_v27 = vld [vmem:[%s23097_s15 + $0x12d8] sm:$0xff] }
 0x4bd   : > { %v18314_v63 = vcombine.low %v1461_v32, %v1465_v33  ;;  %v1513_v25 = vld [vmem:[%s23097_s15 + $0x12f0] sm:$0xff] }
 0x4bf   : > { %6623 = vmatpush1.bf16.msra.mxu0 %v18250_v39  ;;  %6910 = vmatpush1.bf16.msra.mxu1 %v18252_v40  ;;  %v18308_v39 = vcombine.low %v1454_v6, %v1458_v29  ;;  %v18315_v40 = vcombine.high %v1461_v32, %v1465_v33  ;;  %v1514_v6 = vld [vmem:[%s23097_s15 + $0x12f8] sm:$0xff]  ;;  %v1521_v32 = vld [vmem:[%s23097_s15 + $0x1330] sm:$0xff] }
 0x4c0   : > { %6624 = vmatprep.subr.bf16.mxu0 %v18259_v42  ;;  %6911 = vmatprep.subr.bf16.mxu1 %v18261_v43  ;;  %v18317_v42 = vcombine.high %v1462_v35, %v1466_v52  ;;  %v1469_v43 = vld [vmem:[%s23097_s15 + $0x1190] sm:$0xff]  ;;  %v1518_v33 = vld [vmem:[%s23097_s15 + $0x1318] sm:$0xff] }
 0x4c1   : > { %v18322_v55 = vcombine.low %v1469_v43, %v1473_v44 }
 0x4c3   : > { %6625 = vmatpush1.bf16.msra.mxu0 %v18258_v46  ;;  %6912 = vmatpush1.bf16.msra.mxu1 %v18260_v47  ;;  %v18316_v46 = vcombine.low %v1462_v35, %v1466_v52  ;;  %v18323_v47 = vcombine.high %v1469_v43, %v1473_v44  ;;  %v1522_v35 = vld [vmem:[%s23097_s15 + $0x1338] sm:$0xff]  ;;  %v1529_v43 = vld [vmem:[%s23097_s15 + $0x1370] sm:$0xff] }
 0x4c4   : > { %6626 = vmatprep.subr.bf16.mxu0 %v18267_v13  ;;  %6913 = vmatprep.subr.bf16.mxu1 %v18269_v7  ;;  %v18325_v13 = vcombine.high %v1470_v45, %v1474_v49  ;;  %v1477_v7 = vld [vmem:[%s23097_s15 + $0x11d0] sm:$0xff]  ;;  %v1526_v44 = vld [vmem:[%s23097_s15 + $0x1358] sm:$0xff] }
 0x4c5   : > { %v18330_v31 = vcombine.low %v1477_v7, %v1481_v51 }
 0x4c7   : > { %6627 = vmatpush1.bf16.msra.mxu0 %v18266_v9  ;;  %6914 = vmatpush1.bf16.msra.mxu1 %v18268_v57  ;;  %v18324_v9 = vcombine.low %v1470_v45, %v1474_v49  ;;  %v18331_v57 = vcombine.high %v1477_v7, %v1481_v51  ;;  %v1530_v45 = vld [vmem:[%s23097_s15 + $0x1378] sm:$0xff]  ;;  %v1537_v7 = vld [vmem:[%s23097_s15 + $0x13b0] sm:$0xff] }
 0x4c8   : > { %6637 = vmatprep.subr.bf16.mxu0 %v18275_v58  ;;  %6924 = vmatprep.subr.bf16.mxu1 %v18277_v59  ;;  %v18333_v58 = vcombine.high %v1478_v22, %v1482_v20  ;;  %v1485_v59 = vld [vmem:[%s23097_s15 + $0x1210] sm:$0xff]  ;;  %v1534_v51 = vld [vmem:[%s23097_s15 + $0x1398] sm:$0xff] }
 0x4c9   : > { %v18338_v11 = vcombine.low %v1485_v59, %v1489_v62 }
 0x4ca   : > { %6629 = vmatmul.mubr.bf16.vlgmr.msra.gmra.mrb[4].mxu0 %v23489_v26  ;;  %6916 = vmatmul.mubr.bf16.vlgmr.msra.gmra.mrb[4].mxu1 %v23489_v26  ;;  %v18290_v26 = vcombine.low %v1437_v8, %v1441_v14  ;;  %v1497_v8 = vld [vmem:[%s23097_s15 + $0x1270] sm:$0xff]  ;;  %v1494_v14 = vld [vmem:[%s23097_s15 + $0x1258] sm:$0xff] }
 0x4cb   : > { %6638 = vmatpush1.bf16.msra.mxu0 %v18274_v2  ;;  %6925 = vmatpush1.bf16.msra.mxu1 %v18276_v3  ;;  %v18332_v2 = vcombine.low %v1478_v22, %v1482_v20  ;;  %v18339_v3 = vcombine.high %v1485_v59, %v1489_v62  ;;  %v1538_v22 = vld [vmem:[%s23097_s15 + $0x13b8] sm:$0xff]  ;;  %v1545_v59 = vld [vmem:[%s23097_s15 + $0x13f0] sm:$0xff] }
 0x4cc   : > { %6639 = vmatprep.subr.bf16.mxu0 %v18283_v4  ;;  %6926 = vmatprep.subr.bf16.mxu1 %v18285_v5  ;;  %v18341_v4 = vcombine.high %v1486_v0, %v1490_v1  ;;  %v1493_v5 = vld [vmem:[%s23097_s15 + $0x1250] sm:$0xff]  ;;  %v1542_v62 = vld [vmem:[%s23097_s15 + $0x13d8] sm:$0xff] }
 0x4cd   : > { %6669 = vmatprep.mubr.bf16.mxu0 %v23495_v36  ;;  %6956 = vmatprep.mubr.bf16.mxu1 %v23495_v36  ;;  %v18300_v36 = vcombine.low %v1446_v19, %v1450_v21  ;;  %v1506_v19 = vld [vmem:[%s23097_s15 + $0x12b8] sm:$0xff]  ;;  %v18346_v21 = vcombine.low %v1493_v5, %v1497_v8 }
 0x4cf   : > { %6640 = vmatpush1.bf16.msra.mxu0 %v18282_v12  ;;  %6927 = vmatpush1.bf16.msra.mxu1 %v18284_v56  ;;  %v18340_v12 = vcombine.low %v1486_v0, %v1490_v1  ;;  %v18347_v56 = vcombine.high %v1493_v5, %v1497_v8  ;;  %v1546_v0 = vld [vmem:[%s23097_s15 + $0x13f8] sm:$0xff]  ;;  %v1553_v5 = vld [vmem:[%s23097_s15 + $0x1430] sm:$0xff] }
 0x4d0   : > { %6641 = vmatprep.subr.bf16.mxu0 %v18291_v15  ;;  %6928 = vmatprep.subr.bf16.mxu1 %v18293_v16  ;;  %v18349_v15 = vcombine.high %v1494_v14, %v1498_v10  ;;  %v1501_v16 = vld [vmem:[%s23097_s15 + $0x1290] sm:$0xff]  ;;  %v1550_v8 = vld [vmem:[%s23097_s15 + $0x1418] sm:$0xff] }
 0x4d1   : > { %v18354_v29 = vcombine.low %v1501_v16, %v1505_v17 }
 0x4d3   : > { %6642 = vmatpush1.bf16.msra.mxu0 %v18290_v26  ;;  %6929 = vmatpush1.bf16.msra.mxu1 %v18292_v38  ;;  %v18348_v26 = vcombine.low %v1494_v14, %v1498_v10  ;;  %v18355_v38 = vcombine.high %v1501_v16, %v1505_v17  ;;  %v1554_v14 = vld [vmem:[%s23097_s15 + $0x1438] sm:$0xff]  ;;  %v1561_v16 = vld [vmem:[%s23097_s15 + $0x1470] sm:$0xff] }
 0x4d4   : > { %6643 = vmatprep.subr.bf16.mxu0 %v18299_v23  ;;  %6930 = vmatprep.subr.bf16.mxu1 %v18301_v24  ;;  %v18357_v23 = vcombine.high %v1502_v18, %v1506_v19  ;;  %v1509_v24 = vld [vmem:[%s23097_s15 + $0x12d0] sm:$0xff]  ;;  %v1558_v17 = vld [vmem:[%s23097_s15 + $0x1458] sm:$0xff] }
 0x4d5   : > { %v18362_v52 = vcombine.low %v1509_v24, %v1513_v25 }
 0x4d7   : > { %6644 = vmatpush1.bf16.msra.mxu0 %v18298_v30  ;;  %6931 = vmatpush1.bf16.msra.mxu1 %v18300_v36  ;;  %v18356_v30 = vcombine.low %v1502_v18, %v1506_v19  ;;  %v18363_v36 = vcombine.high %v1509_v24, %v1513_v25  ;;  %v1562_v18 = vld [vmem:[%s23097_s15 + $0x1478] sm:$0xff]  ;;  %v1569_v24 = vld [vmem:[%s23097_s15 + $0x14b0] sm:$0xff] }
 0x4d8   : > { %6645 = vmatprep.subr.bf16.mxu0 %v18307_v60  ;;  %6932 = vmatprep.subr.bf16.mxu1 %v18309_v48  ;;  %v18365_v60 = vcombine.high %v1510_v27, %v1514_v6  ;;  %v1517_v48 = vld [vmem:[%s23097_s15 + $0x1310] sm:$0xff]  ;;  %v1566_v25 = vld [vmem:[%s23097_s15 + $0x1498] sm:$0xff] }
 0x4d9   : > { %v18370_v49 = vcombine.low %v1517_v48, %v1521_v32 }
 0x4db   : > { %6646 = vmatpush1.bf16.msra.mxu0 %v18306_v37  ;;  %6933 = vmatpush1.bf16.msra.mxu1 %v18308_v39  ;;  %v18364_v37 = vcombine.low %v1510_v27, %v1514_v6  ;;  %v18371_v39 = vcombine.high %v1517_v48, %v1521_v32  ;;  %v1570_v27 = vld [vmem:[%s23097_s15 + $0x14b8] sm:$0xff]  ;;  %v1577_v48 = vld [vmem:[%s23097_s15 + $0x14f0] sm:$0xff] }
 0x4dc   : > { %6647 = vmatprep.subr.bf16.mxu0 %v18315_v40  ;;  %6934 = vmatprep.subr.bf16.mxu1 %v18317_v42  ;;  %v18373_v40 = vcombine.high %v1518_v33, %v1522_v35  ;;  %v1525_v42 = vld [vmem:[%s23097_s15 + $0x1350] sm:$0xff]  ;;  %v1574_v32 = vld [vmem:[%s23097_s15 + $0x14d8] sm:$0xff] }
 0x4dd   : > { %v18378_v20 = vcombine.low %v1525_v42, %v1529_v43 }
 0x4df   : > { %6648 = vmatpush1.bf16.msra.mxu0 %v18314_v63  ;;  %6935 = vmatpush1.bf16.msra.mxu1 %v18316_v46  ;;  %v18372_v63 = vcombine.low %v1518_v33, %v1522_v35  ;;  %v18379_v46 = vcombine.high %v1525_v42, %v1529_v43  ;;  %v1578_v33 = vld [vmem:[%s23097_s15 + $0x14f8] sm:$0xff]  ;;  %v18420_v35 = vcombine.low %v1566_v25, %v1570_v27 }
 0x4e0   : > { %6649 = vmatprep.subr.bf16.mxu0 %v18323_v47  ;;  %6936 = vmatprep.subr.bf16.mxu1 %v18325_v13  ;;  %v18381_v47 = vcombine.high %v1526_v44, %v1530_v45  ;;  %v1533_v13 = vld [vmem:[%s23097_s15 + $0x1390] sm:$0xff]  ;;  %v1582_v42 = vld [vmem:[%s23097_s15 + $0x1518] sm:$0xff] }
 0x4e1   : > { %v18386_v1 = vcombine.low %v1533_v13, %v1537_v7  ;;  %v1586_v43 = vld [vmem:[%s23097_s15 + $0x1538] sm:$0xff] }
 0x4e3   : > { %6650 = vmatpush1.bf16.msra.mxu0 %v18322_v55  ;;  %6937 = vmatpush1.bf16.msra.mxu1 %v18324_v9  ;;  %v18380_v55 = vcombine.low %v1526_v44, %v1530_v45  ;;  %v18387_v9 = vcombine.high %v1533_v13, %v1537_v7  ;;  %v1594_v13 = vld [vmem:[%s23097_s15 + $0x1578] sm:$0xff] }
 0x4e4   : > { %6651 = vmatprep.subr.bf16.mxu0 %v18331_v57  ;;  %6938 = vmatprep.subr.bf16.mxu1 %v18333_v58  ;;  %v18389_v57 = vcombine.high %v1534_v51, %v1538_v22  ;;  %v1541_v58 = vld [vmem:[%s23097_s15 + $0x13d0] sm:$0xff] }
 0x4e5   : > { %v18394_v10 = vcombine.low %v1541_v58, %v1545_v59 }
 0x4e7   : > { %6652 = vmatpush1.bf16.msra.mxu0 %v18330_v31  ;;  %6939 = vmatpush1.bf16.msra.mxu1 %v18332_v2  ;;  %v18388_v31 = vcombine.low %v1534_v51, %v1538_v22  ;;  %v18395_v2 = vcombine.high %v1541_v58, %v1545_v59  ;;  %v18436_v51 = vcombine.low %v1582_v42, %v1586_v43  ;;  %v1602_v58 = vld [vmem:[%s23097_s15 + $0x15b8] sm:$0xff] }
 0x4e8   : > { %6653 = vmatprep.subr.bf16.mxu0 %v18339_v3  ;;  %6940 = vmatprep.subr.bf16.mxu1 %v18341_v4  ;;  %v18397_v3 = vcombine.high %v1542_v62, %v1546_v0  ;;  %v1549_v4 = vld [vmem:[%s23097_s15 + $0x1410] sm:$0xff] }
 0x4e9   : > { %v18402_v19 = vcombine.low %v1549_v4, %v1553_v5 }
 0x4eb   : > { %6654 = vmatpush1.bf16.msra.mxu0 %v18338_v11  ;;  %6941 = vmatpush1.bf16.msra.mxu1 %v18340_v12  ;;  %v18396_v11 = vcombine.low %v1542_v62, %v1546_v0  ;;  %v18403_v12 = vcombine.high %v1549_v4, %v1553_v5  ;;  %v1610_v4 = vld [vmem:[%s23097_s15 + $0x15f8] sm:$0xff] }
 0x4ec   : > { %6655 = vmatprep.subr.bf16.mxu0 %v18347_v56  ;;  %6942 = vmatprep.subr.bf16.mxu1 %v18349_v15  ;;  %v18405_v56 = vcombine.high %v1550_v8, %v1554_v14  ;;  %v1557_v15 = vld [vmem:[%s23097_s15 + $0x1450] sm:$0xff] }
 0x4ed   : > { %v18410_v6 = vcombine.low %v1557_v15, %v1561_v16 }
 0x4ef   : > { %6656 = vmatpush1.bf16.msra.mxu0 %v18346_v21  ;;  %6943 = vmatpush1.bf16.msra.mxu1 %v18348_v26  ;;  %v18404_v21 = vcombine.low %v1550_v8, %v1554_v14  ;;  %v18411_v26 = vcombine.high %v1557_v15, %v1561_v16  ;;  %v1618_v15 = vld [vmem:[%s23097_s15 + $0x1638] sm:$0xff] }
 0x4f0   : > { %6657 = vmatprep.subr.bf16.mxu0 %v18355_v38  ;;  %6944 = vmatprep.subr.bf16.mxu1 %v18357_v23  ;;  %v18413_v38 = vcombine.high %v1558_v17, %v1562_v18  ;;  %v1565_v23 = vld [vmem:[%s23097_s15 + $0x1490] sm:$0xff] }
 0x4f3   : > { %6658 = vmatpush1.bf16.msra.mxu0 %v18354_v29  ;;  %6945 = vmatpush1.bf16.msra.mxu1 %v18356_v30  ;;  %v18412_v29 = vcombine.low %v1558_v17, %v1562_v18  ;;  %v18419_v30 = vcombine.high %v1565_v23, %v1569_v24 }
 0x4f4   : > { %6659 = vmatprep.subr.bf16.mxu0 %v18363_v36  ;;  %6946 = vmatprep.subr.bf16.mxu1 %v18365_v60  ;;  %v18421_v36 = vcombine.high %v1566_v25, %v1570_v27  ;;  %v1573_v60 = vld [vmem:[%s23097_s15 + $0x14d0] sm:$0xff] }
 0x4f5   : > { %v18426_v44 = vcombine.low %v1573_v60, %v1577_v48 }
 0x4f7   : > { %6660 = vmatpush1.bf16.msra.mxu0 %v18362_v52  ;;  %6947 = vmatpush1.bf16.msra.mxu1 %v18364_v37  ;;  %v18427_v52 = vcombine.high %v1573_v60, %v1577_v48  ;;  %v18429_v37 = vcombine.high %v1574_v32, %v1578_v33  ;;  %v1634_v60 = vld [vmem:[%s23097_s15 + $0x16b8] sm:$0xff] }
 0x4f8   : > { %6661 = vmatprep.subr.bf16.mxu0 %v18371_v39  ;;  %6948 = vmatprep.subr.bf16.mxu1 %v18373_v40  ;;  %v1581_v39 = vld [vmem:[%s23097_s15 + $0x1510] sm:$0xff] }
 0x4f9   : > { %v1585_v40 = vld [vmem:[%s23097_s15 + $0x1530] sm:$0xff] }
 0x4fa   : > { %v18435_v45 = vcombine.high %v1581_v39, %v1585_v40  ;;  %v18434_v7 = vcombine.low %v1581_v39, %v1585_v40  ;;  %v1642_v39 = vld [vmem:[%s23097_s15 + $0x16f8] sm:$0xff] }
 0x4fb   : > { %6662 = vmatpush1.bf16.msra.mxu0 %v18370_v49  ;;  %6949 = vmatpush1.bf16.msra.mxu1 %v18372_v63  ;;  %v18437_v49 = vcombine.high %v1582_v42, %v1586_v43  ;;  %v1589_v63 = vld [vmem:[%s23097_s15 + $0x1550] sm:$0xff] }
 0x4fc   : > { %6663 = vmatprep.subr.bf16.mxu0 %v18379_v46  ;;  %6950 = vmatprep.subr.bf16.mxu1 %v18381_v47  ;;  %v1593_v46 = vld [vmem:[%s23097_s15 + $0x1570] sm:$0xff]  ;;  %v1590_v47 = vld [vmem:[%s23097_s15 + $0x1558] sm:$0xff] }
 0x4fd   : > { %v18443_v22 = vcombine.high %v1589_v63, %v1593_v46  ;;  %v18442_v59 = vcombine.low %v1589_v63, %v1593_v46  ;;  %v18444_v62 = vcombine.low %v1590_v47, %v1594_v13  ;;  %v1650_v63 = vld [vmem:[%s23097_s15 + $0x1738] sm:$0xff] }
 0x4ff   : > { %6664 = vmatpush1.bf16.msra.mxu0 %v18378_v20  ;;  %6951 = vmatpush1.bf16.msra.mxu1 %v18380_v55  ;;  %v18445_v20 = vcombine.high %v1590_v47, %v1594_v13  ;;  %v1597_v55 = vld [vmem:[%s23097_s15 + $0x1590] sm:$0xff] }
 0x500   : > { %6665 = vmatprep.subr.bf16.mxu0 %v18387_v9  ;;  %6952 = vmatprep.subr.bf16.mxu1 %v18389_v57  ;;  %v1601_v9 = vld [vmem:[%s23097_s15 + $0x15b0] sm:$0xff]  ;;  %v1598_v57 = vld [vmem:[%s23097_s15 + $0x1598] sm:$0xff] }
 0x501   : > { %v18451_v0 = vcombine.high %v1597_v55, %v1601_v9  ;;  %v18450_v5 = vcombine.low %v1597_v55, %v1601_v9  ;;  %v18452_v8 = vcombine.low %v1598_v57, %v1602_v58  ;;  %v1658_v55 = vld [vmem:[%s23097_s15 + $0x1778] sm:$0xff] }
 0x503   : > { %6666 = vmatpush1.bf16.msra.mxu0 %v18386_v1  ;;  %6953 = vmatpush1.bf16.msra.mxu1 %v18388_v31  ;;  %v18453_v1 = vcombine.high %v1598_v57, %v1602_v58  ;;  %v1605_v31 = vld [vmem:[%s23097_s15 + $0x15d0] sm:$0xff] }
 0x504   : > { %6667 = vmatprep.subr.bf16.mxu0 %v18395_v2  ;;  %6954 = vmatprep.subr.bf16.mxu1 %v18397_v3  ;;  %v1609_v2 = vld [vmem:[%s23097_s15 + $0x15f0] sm:$0xff]  ;;  %v1606_v3 = vld [vmem:[%s23097_s15 + $0x15d8] sm:$0xff] }
 0x505   : > { %v18459_v14 = vcombine.high %v1605_v31, %v1609_v2  ;;  %v18458_v16 = vcombine.low %v1605_v31, %v1609_v2  ;;  %v18460_v17 = vcombine.low %v1606_v3, %v1610_v4  ;;  %v1666_v31 = vld [vmem:[%s23097_s15 + $0x17b8] sm:$0xff] }
 0x507   : > { %6668 = vmatpush1.bf16.msra.mxu0 %v18394_v10  ;;  %6955 = vmatpush1.bf16.msra.mxu1 %v18396_v11  ;;  %v18461_v10 = vcombine.high %v1606_v3, %v1610_v4  ;;  %v1613_v11 = vld [vmem:[%s23097_s15 + $0x1610] sm:$0xff] }
 0x508   : > { %6678 = vmatprep.subr.bf16.mxu0 %v18403_v12  ;;  %6965 = vmatprep.subr.bf16.mxu1 %v18405_v56  ;;  %v1617_v12 = vld [vmem:[%s23097_s15 + $0x1630] sm:$0xff]  ;;  %v1614_v56 = vld [vmem:[%s23097_s15 + $0x1618] sm:$0xff] }
 0x509   : > { %v18467_v18 = vcombine.high %v1613_v11, %v1617_v12  ;;  %v18468_v25 = vcombine.low %v1614_v56, %v1618_v15 }
 0x50a   : > { %6670 = vmatmul.mubr.bf16.vlgmr.msra.gmra.mrb[4].mxu0 %v23570_v61  ;;  %6957 = vmatmul.mubr.bf16.vlgmr.msra.gmra.mrb[4].mxu1 %v23570_v61  ;;  %v18418_v61 = vcombine.low %v1565_v23, %v1569_v24  ;;  %v1626_v23 = vld [vmem:[%s23097_s15 + $0x1678] sm:$0xff]  ;;  %v18466_v24 = vcombine.low %v1613_v11, %v1617_v12 }
 0x50b   : > { %6679 = vmatpush1.bf16.msra.mxu0 %v18402_v19  ;;  %6966 = vmatpush1.bf16.msra.mxu1 %v18404_v21  ;;  %v18469_v19 = vcombine.high %v1614_v56, %v1618_v15  ;;  %v1621_v21 = vld [vmem:[%s23097_s15 + $0x1650] sm:$0xff]  ;;  %v1674_v11 = vld [vmem:[%s23097_s15 + $0x17f8] sm:$0xff] }
 0x50c   : > { %6680 = vmatprep.subr.bf16.mxu0 %v18411_v26  ;;  %6967 = vmatprep.subr.bf16.mxu1 %v18413_v38  ;;  %v1625_v26 = vld [vmem:[%s23097_s15 + $0x1670] sm:$0xff]  ;;  %v1622_v38 = vld [vmem:[%s23097_s15 + $0x1658] sm:$0xff] }
 0x50d   : > { %6710 = vmatprep.mubr.bf16.mxu0 %v23576_v28  ;;  %6997 = vmatprep.mubr.bf16.mxu1 %v23576_v28  ;;  %v18428_v28 = vcombine.low %v1574_v32, %v1578_v33  ;;  %v18475_v27 = vcombine.high %v1621_v21, %v1625_v26  ;;  %v18474_v48 = vcombine.low %v1621_v21, %v1625_v26  ;;  %v1682_v21 = vld [vmem:[%s23097_s15 + $0x1838] sm:$0xff] }
 0x50e   : > { %v18476_v32 = vcombine.low %v1622_v38, %v1626_v23 }
 0x50f   : > { %6681 = vmatpush1.bf16.msra.mxu0 %v18410_v6  ;;  %6968 = vmatpush1.bf16.msra.mxu1 %v18412_v29  ;;  %v18477_v6 = vcombine.high %v1622_v38, %v1626_v23  ;;  %v1629_v29 = vld [vmem:[%s23097_s15 + $0x1690] sm:$0xff] }
 0x510   : > { %6682 = vmatprep.subr.bf16.mxu0 %v18419_v30  ;;  %6969 = vmatprep.subr.bf16.mxu1 %v18421_v36  ;;  %v1633_v30 = vld [vmem:[%s23097_s15 + $0x16b0] sm:$0xff]  ;;  %v1630_v36 = vld [vmem:[%s23097_s15 + $0x1698] sm:$0xff] }
 0x511   : > { %v18483_v33 = vcombine.high %v1629_v29, %v1633_v30  ;;  %v18482_v40 = vcombine.low %v1629_v29, %v1633_v30  ;;  %v18484_v42 = vcombine.low %v1630_v36, %v1634_v60  ;;  %v1690_v29 = vld [vmem:[%s23097_s15 + $0x1878] sm:$0xff] }
 0x513   : > { %6683 = vmatpush1.bf16.msra.mxu0 %v18418_v61  ;;  %6970 = vmatpush1.bf16.msra.mxu1 %v18420_v35  ;;  %v18485_v61 = vcombine.high %v1630_v36, %v1634_v60  ;;  %v1637_v35 = vld [vmem:[%s23097_s15 + $0x16d0] sm:$0xff] }
 0x514   : > { %6684 = vmatprep.subr.bf16.mxu0 %v18427_v52  ;;  %6971 = vmatprep.subr.bf16.mxu1 %v18429_v37  ;;  %v1641_v52 = vld [vmem:[%s23097_s15 + $0x16f0] sm:$0xff]  ;;  %v1638_v37 = vld [vmem:[%s23097_s15 + $0x16d8] sm:$0xff] }
 0x515   : > { %v18491_v43 = vcombine.high %v1637_v35, %v1641_v52  ;;  %v18490_v46 = vcombine.low %v1637_v35, %v1641_v52  ;;  %v18492_v47 = vcombine.low %v1638_v37, %v1642_v39  ;;  %v1698_v35 = vld [vmem:[%s23097_s15 + $0x18b8] sm:$0xff] }
 0x517   : > { %6685 = vmatpush1.bf16.msra.mxu0 %v18426_v44  ;;  %6972 = vmatpush1.bf16.msra.mxu1 %v18428_v28  ;;  %v18493_v44 = vcombine.high %v1638_v37, %v1642_v39  ;;  %v1645_v28 = vld [vmem:[%s23097_s15 + $0x1710] sm:$0xff] }
 0x518   : > { %6686 = vmatprep.subr.bf16.mxu0 %v18435_v45  ;;  %6973 = vmatprep.subr.bf16.mxu1 %v18437_v49  ;;  %v1649_v45 = vld [vmem:[%s23097_s15 + $0x1730] sm:$0xff]  ;;  %v1646_v49 = vld [vmem:[%s23097_s15 + $0x1718] sm:$0xff] }
 0x519   : > { %v18499_v13 = vcombine.high %v1645_v28, %v1649_v45  ;;  %v18498_v9 = vcombine.low %v1645_v28, %v1649_v45  ;;  %v18500_v57 = vcombine.low %v1646_v49, %v1650_v63  ;;  %v1706_v28 = vld [vmem:[%s23097_s15 + $0x18f8] sm:$0xff] }
 0x51b   : > { %6687 = vmatpush1.bf16.msra.mxu0 %v18434_v7  ;;  %6974 = vmatpush1.bf16.msra.mxu1 %v18436_v51  ;;  %v18501_v7 = vcombine.high %v1646_v49, %v1650_v63  ;;  %v1653_v51 = vld [vmem:[%s23097_s15 + $0x1750] sm:$0xff] }
 0x51c   : > { %6688 = vmatprep.subr.bf16.mxu0 %v18443_v22  ;;  %6975 = vmatprep.subr.bf16.mxu1 %v18445_v20  ;;  %v1657_v22 = vld [vmem:[%s23097_s15 + $0x1770] sm:$0xff]  ;;  %v1654_v20 = vld [vmem:[%s23097_s15 + $0x1758] sm:$0xff] }
 0x51d   : > { %v18507_v58 = vcombine.high %v1653_v51, %v1657_v22  ;;  %v18506_v2 = vcombine.low %v1653_v51, %v1657_v22  ;;  %v18508_v3 = vcombine.low %v1654_v20, %v1658_v55 }
 0x51f   : > { %6689 = vmatpush1.bf16.msra.mxu0 %v18442_v59  ;;  %6976 = vmatpush1.bf16.msra.mxu1 %v18444_v62  ;;  %v18509_v59 = vcombine.high %v1654_v20, %v1658_v55  ;;  %v1661_v62 = vld [vmem:[%s23097_s15 + $0x1790] sm:$0xff] }
 0x520   : > { %6690 = vmatprep.subr.bf16.mxu0 %v18451_v0  ;;  %6977 = vmatprep.subr.bf16.mxu1 %v18453_v1  ;;  %v1665_v0 = vld [vmem:[%s23097_s15 + $0x17b0] sm:$0xff]  ;;  %v1662_v1 = vld [vmem:[%s23097_s15 + $0x1798] sm:$0xff] }
 0x521   : > { %v18515_v4 = vcombine.high %v1661_v62, %v1665_v0  ;;  %v18514_v12 = vcombine.low %v1661_v62, %v1665_v0  ;;  %v18516_v56 = vcombine.low %v1662_v1, %v1666_v31  ;;  %v1717_v55 = vld [vmem:[%s23097_s15 + $0x1950] sm:$0xff] }
 0x523   : > { %6691 = vmatpush1.bf16.msra.mxu0 %v18450_v5  ;;  %6978 = vmatpush1.bf16.msra.mxu1 %v18452_v8  ;;  %v18517_v5 = vcombine.high %v1662_v1, %v1666_v31  ;;  %v1669_v8 = vld [vmem:[%s23097_s15 + $0x17d0] sm:$0xff] }
 0x524   : > { %6692 = vmatprep.subr.bf16.mxu0 %v18459_v14  ;;  %6979 = vmatprep.subr.bf16.mxu1 %v18461_v10  ;;  %v1673_v14 = vld [vmem:[%s23097_s15 + $0x17f0] sm:$0xff]  ;;  %v1670_v10 = vld [vmem:[%s23097_s15 + $0x17d8] sm:$0xff] }
 0x525   : > { %v18523_v15 = vcombine.high %v1669_v8, %v1673_v14  ;;  %v18522_v26 = vcombine.low %v1669_v8, %v1673_v14  ;;  %v18524_v38 = vcombine.low %v1670_v10, %v1674_v11  ;;  %v1725_v31 = vld [vmem:[%s23097_s15 + $0x1990] sm:$0xff] }
 0x527   : > { %6693 = vmatpush1.bf16.msra.mxu0 %v18458_v16  ;;  %6980 = vmatpush1.bf16.msra.mxu1 %v18460_v17  ;;  %v18525_v16 = vcombine.high %v1670_v10, %v1674_v11  ;;  %v1677_v17 = vld [vmem:[%s23097_s15 + $0x1810] sm:$0xff] }
 0x528   : > { %6694 = vmatprep.subr.bf16.mxu0 %v18467_v18  ;;  %6981 = vmatprep.subr.bf16.mxu1 %v18469_v19  ;;  %v1681_v18 = vld [vmem:[%s23097_s15 + $0x1830] sm:$0xff]  ;;  %v1678_v19 = vld [vmem:[%s23097_s15 + $0x1818] sm:$0xff] }
 0x529   : > { %v18531_v23 = vcombine.high %v1677_v17, %v1681_v18  ;;  %v18530_v30 = vcombine.low %v1677_v17, %v1681_v18  ;;  %v18532_v36 = vcombine.low %v1678_v19, %v1682_v21  ;;  %v1733_v11 = vld [vmem:[%s23097_s15 + $0x19d0] sm:$0xff] }
 0x52b   : > { %6695 = vmatpush1.bf16.msra.mxu0 %v18466_v24  ;;  %6982 = vmatpush1.bf16.msra.mxu1 %v18468_v25  ;;  %v18533_v24 = vcombine.high %v1678_v19, %v1682_v21  ;;  %v1685_v25 = vld [vmem:[%s23097_s15 + $0x1850] sm:$0xff] }
 0x52c   : > { %6696 = vmatprep.subr.bf16.mxu0 %v18475_v27  ;;  %6983 = vmatprep.subr.bf16.mxu1 %v18477_v6  ;;  %v1689_v27 = vld [vmem:[%s23097_s15 + $0x1870] sm:$0xff]  ;;  %v1686_v6 = vld [vmem:[%s23097_s15 + $0x1858] sm:$0xff] }
 0x52d   : > { %v18539_v60 = vcombine.high %v1685_v25, %v1689_v27  ;;  %v18538_v52 = vcombine.low %v1685_v25, %v1689_v27  ;;  %v18540_v37 = vcombine.low %v1686_v6, %v1690_v29 }
 0x52f   : > { %6697 = vmatpush1.bf16.msra.mxu0 %v18474_v48  ;;  %6984 = vmatpush1.bf16.msra.mxu1 %v18476_v32  ;;  %v18541_v48 = vcombine.high %v1686_v6, %v1690_v29  ;;  %v1693_v32 = vld [vmem:[%s23097_s15 + $0x1890] sm:$0xff] }
 0x530   : > { %6698 = vmatprep.subr.bf16.mxu0 %v18483_v33  ;;  %6985 = vmatprep.subr.bf16.mxu1 %v18485_v61  ;;  %v1697_v33 = vld [vmem:[%s23097_s15 + $0x18b0] sm:$0xff]  ;;  %v1694_v61 = vld [vmem:[%s23097_s15 + $0x1898] sm:$0xff] }
 0x531   : > { %v18547_v39 = vcombine.high %v1693_v32, %v1697_v33  ;;  %v18548_v45 = vcombine.low %v1694_v61, %v1698_v35 }
 0x533   : > { %6699 = vmatpush1.bf16.msra.mxu0 %v18482_v40  ;;  %6986 = vmatpush1.bf16.msra.mxu1 %v18484_v42  ;;  %v18549_v40 = vcombine.high %v1694_v61, %v1698_v35  ;;  %v1701_v42 = vld [vmem:[%s23097_s15 + $0x18d0] sm:$0xff] }
 0x534   : > { %6700 = vmatprep.subr.bf16.mxu0 %v18491_v43  ;;  %6987 = vmatprep.subr.bf16.mxu1 %v18493_v44  ;;  %v1705_v43 = vld [vmem:[%s23097_s15 + $0x18f0] sm:$0xff]  ;;  %v1702_v44 = vld [vmem:[%s23097_s15 + $0x18d8] sm:$0xff] }
 0x535   : > { %v18555_v49 = vcombine.high %v1701_v42, %v1705_v43  ;;  %v18557_v63 = vcombine.high %v1702_v44, %v1706_v28  ;;  %v18554_v51 = vcombine.low %v1701_v42, %v1705_v43  ;;  %v20475_v42 = vld [vmem:[#allocation11 + $0x2c] ss:$16 sps:$4 sm:$0xff] (!%p18590_p1)   ;;  %v20477_v43 = vld [vmem:[#allocation11 + $0x20] ss:$16 sps:$4 sm:$0xff] (!%p18590_p1)  }
 0x537   : > { %6701 = vmatpush1.bf16.msra.mxu0 %v18490_v46  ;;  %6988 = vmatpush1.bf16.msra.mxu1 %v18492_v47  ;;  %v1709_v46 = vld [vmem:[%s23097_s15 + $0x1910] sm:$0xff] }
 0x538   : > { %6702 = vmatprep.subr.bf16.mxu0 %v18499_v13  ;;  %6989 = vmatprep.subr.bf16.mxu1 %v18501_v7  ;;  %v1713_v47 = vld [vmem:[%s23097_s15 + $0x1930] sm:$0xff]  ;;  %v1710_v13 = vld [vmem:[%s23097_s15 + $0x1918] sm:$0xff] }
 0x539   : > { %v1714_v7 = vld [vmem:[%s23097_s15 + $0x1938] sm:$0xff]  ;;  %v18563_v22 = vcombine.high %v1709_v46, %v1713_v47 }
 0x53a   : > { %v18565_v20 = vcombine.high %v1710_v13, %v1714_v7  ;;  %v18564_v62 = vcombine.low %v1710_v13, %v1714_v7  ;;  %v20490_v13 = vld [vmem:[#allocation11 + $0x68] ss:$16 sps:$4 sm:$0xff] (!%p18590_p1)   ;;  %v20491_v7 = vld [vmem:[#allocation11 + $0x84] ss:$16 sps:$4 sm:$0xff] (!%p18590_p1)  }
 0x53b   : > { %6703 = vmatpush1.bf16.msra.mxu0 %v18498_v9  ;;  %6990 = vmatpush1.bf16.msra.mxu1 %v18500_v57  ;;  %v1721_v9 = vld [vmem:[%s23097_s15 + $0x1970] sm:$0xff]  ;;  %v1718_v57 = vld [vmem:[%s23097_s15 + $0x1958] sm:$0xff] }
 0x53c   : > { %6704 = vmatprep.subr.bf16.mxu0 %v18507_v58  ;;  %6991 = vmatprep.subr.bf16.mxu1 %v18509_v59  ;;  %v1722_v58 = vld [vmem:[%s23097_s15 + $0x1978] sm:$0xff]  ;;  %v18562_v59 = vcombine.low %v1709_v46, %v1713_v47  ;;  %v18571_v0 = vcombine.high %v1717_v55, %v1721_v9  ;;  %v20489_v47 = vld [vmem:[#allocation11 + $0x60] ss:$16 sps:$4 sm:$0xff] (!%p18590_p1)  }
 0x53d   : > { %v18573_v1 = vcombine.high %v1718_v57, %v1722_v58  ;;  %v18572_v8 = vcombine.low %v1718_v57, %v1722_v58  ;;  %v20487_v46 = vld [vmem:[#allocation11 + $0x6c] ss:$16 sps:$4 sm:$0xff] (!%p18590_p1)   ;;  %v20502_v57 = vld [vmem:[#allocation11 + $0xa8] ss:$16 sps:$4 sm:$0xff] (!%p18590_p1)   ;;  %v20503_v58 = vld [vmem:[#allocation11 + $0xc4] ss:$16 sps:$4 sm:$0xff] (!%p18590_p1)  }
 0x53f   : > { %6705 = vmatpush1.bf16.msra.mxu0 %v18506_v2  ;;  %6992 = vmatpush1.bf16.msra.mxu1 %v18508_v3  ;;  %v1729_v2 = vld [vmem:[%s23097_s15 + $0x19b0] sm:$0xff]  ;;  %v1726_v3 = vld [vmem:[%s23097_s15 + $0x1998] sm:$0xff] }
 0x540   : > { %6706 = vmatprep.subr.bf16.mxu0 %v18515_v4  ;;  %6993 = vmatprep.subr.bf16.mxu1 %v18517_v5  ;;  %v1730_v4 = vld [vmem:[%s23097_s15 + $0x19b8] sm:$0xff]  ;;  %v18570_v5 = vcombine.low %v1717_v55, %v1721_v9  ;;  %v18579_v14 = vcombine.high %v1725_v31, %v1729_v2  ;;  %v20501_v9 = vld [vmem:[#allocation11 + $0xa0] ss:$16 sps:$4 sm:$0xff] (!%p18590_p1)  }
 0x541   : > { %v18581_v10 = vcombine.high %v1726_v3, %v1730_v4  ;;  %v18580_v17 = vcombine.low %v1726_v3, %v1730_v4  ;;  %v20499_v55 = vld [vmem:[#allocation11 + $0xac] ss:$16 sps:$4 sm:$0xff] (!%p18590_p1)   ;;  %v20514_v3 = vld [vmem:[#allocation11 + $0xe8] ss:$16 sps:$4 sm:$0xff] (!%p18590_p1)   ;;  %v20515_v4 = vld [vmem:[#allocation11 + $0x104] ss:$16 sps:$4 sm:$0xff] (!%p18590_p1)  }
 0x543   : > { %6707 = vmatpush1.bf16.msra.mxu0 %v18514_v12  ;;  %6994 = vmatpush1.bf16.msra.mxu1 %v18516_v56  ;;  %v1737_v12 = vld [vmem:[%s23097_s15 + $0x19f0] sm:$0xff]  ;;  %v1734_v56 = vld [vmem:[%s23097_s15 + $0x19d8] sm:$0xff] }
 0x544   : > { %6708 = vmatprep.subr.bf16.mxu0 %v18523_v15  ;;  %6995 = vmatprep.subr.bf16.mxu1 %v18525_v16  ;;  %v1738_v15 = vld [vmem:[%s23097_s15 + $0x19f8] sm:$0xff]  ;;  %v18578_v16 = vcombine.low %v1725_v31, %v1729_v2  ;;  %v18587_v18 = vcombine.high %v1733_v11, %v1737_v12  ;;  %v18586_v21 = vcombine.low %v1733_v11, %v1737_v12  ;;  %v20513_v2 = vld [vmem:[#allocation11 + $0xe0] ss:$16 sps:$4 sm:$0xff] (!%p18590_p1)  }
 0x545   : > { %v18589_v19 = vcombine.high %v1734_v56, %v1738_v15  ;;  %v20511_v31 = vld [vmem:[#allocation11 + $0xec] ss:$16 sps:$4 sm:$0xff] (!%p18590_p1)   ;;  %v20525_v12 = vld [vmem:[#allocation11 + $0x120] ss:$16 sps:$4 sm:$0xff] (!%p18590_p1)  }
 0x546   : > { %v20523_v11 = vld [vmem:[#allocation11 + $0x12c] ss:$16 sps:$4 sm:$0xff] (!%p18590_p1)  }
 0x547   : > { %6709 = vmatpush1.bf16.msra.mxu0 %v18522_v26  ;;  %6996 = vmatpush1.bf16.msra.mxu1 %v18524_v38  ;;  %v18588_v26 = vcombine.low %v1734_v56, %v1738_v15  ;;  %v20526_v56 = vld [vmem:[#allocation11 + $0x128] ss:$16 sps:$4 sm:$0xff] (!%p18590_p1)   ;;  %v20527_v15 = vld [vmem:[#allocation11 + $0x144] ss:$16 sps:$4 sm:$0xff] (!%p18590_p1)  }
 0x548   : > { %6719 = vmatprep.subr.bf16.mxu0 %v18531_v23  ;;  %7006 = vmatprep.subr.bf16.mxu1 %v18533_v24 }
 0x54a   : > { %6711 = vmatmul.mubr.bf16.vlgmr.msra.gmra.mrb[4].mxu0 %v23644_v34  ;;  %6998 = vmatmul.mubr.bf16.vlgmr.msra.gmra.mrb[4].mxu1 %v23644_v34  ;;  %v18546_v34 = vcombine.low %v1693_v32, %v1697_v33  ;;  %v814_v33 = vld [vmem:[#allocation2 + $0x8] sm:$0xff] }
 0x54b   : > { %6720 = vmatpush1.bf16.msra.mxu0 %v18530_v30  ;;  %7007 = vmatpush1.bf16.msra.mxu1 %v18532_v36 }
 0x54c   : > { %6721 = vmatprep.subr.bf16.mxu0 %v18539_v60  ;;  %7008 = vmatprep.subr.bf16.mxu1 %v18541_v48 }
 0x54d   : > { %6751 = vmatprep.mubr.bf16.mxu0 %v22545_v53  ;;  %7038 = vmatprep.mubr.bf16.mxu1 %v22545_v53  ;;  %v18556_v53 = vcombine.low %v1702_v44, %v1706_v28  ;;  %v20478_v44 = vld [vmem:[#allocation11 + $0x28] ss:$16 sps:$4 sm:$0xff] (!%p18590_p1)   ;;  %v20479_v28 = vld [vmem:[#allocation11 + $0x44] ss:$16 sps:$4 sm:$0xff] (!%p18590_p1)  }
 0x54f   : > { %6722 = vmatpush1.bf16.msra.mxu0 %v18538_v52  ;;  %7009 = vmatpush1.bf16.msra.mxu1 %v18540_v37  ;;  %v20469_v52 = vld [vmem:[#allocation11 + $0xc] ss:$16 sps:$4 sm:$0xff] (!%p18590_p1)   ;;  %v20471_v37 = vld [vmem:[#allocation11] ss:$16 sps:$4 sm:$0xff] (!%p18590_p1)  }
 0x550   : > { %6723 = vmatprep.subr.bf16.mxu0 %v18547_v39  ;;  %7010 = vmatprep.subr.bf16.mxu1 %v18549_v40  ;;  %v20472_v39 = vld [vmem:[#allocation11 + $0x8] ss:$16 sps:$4 sm:$0xff] (!%p18590_p1)   ;;  %v20473_v40 = vld [vmem:[#allocation11 + $0x24] ss:$16 sps:$4 sm:$0xff] (!%p18590_p1)  }
 0x553   : > { %6724 = vmatpush1.bf16.msra.mxu0 %v18546_v34  ;;  %7011 = vmatpush1.bf16.msra.mxu1 %v18548_v45  ;;  %v20481_v34 = vld [vmem:[#allocation11 + $0x4c] ss:$16 sps:$4 sm:$0xff] (!%p18590_p1)   ;;  %v20483_v45 = vld [vmem:[#allocation11 + $0x40] ss:$16 sps:$4 sm:$0xff] (!%p18590_p1)  }
 0x554   : > { %6725 = vmatprep.subr.bf16.mxu0 %v18555_v49  ;;  %7012 = vmatprep.subr.bf16.mxu1 %v18557_v63  ;;  %v20484_v49 = vld [vmem:[#allocation11 + $0x48] ss:$16 sps:$4 sm:$0xff] (!%p18590_p1)   ;;  %v20485_v63 = vld [vmem:[#allocation11 + $0x64] ss:$16 sps:$4 sm:$0xff] (!%p18590_p1)  }
 0x557   : > { %6726 = vmatpush1.bf16.msra.mxu0 %v18554_v51  ;;  %7013 = vmatpush1.bf16.msra.mxu1 %v18556_v53  ;;  %v20493_v51 = vld [vmem:[#allocation11 + $0x8c] ss:$16 sps:$4 sm:$0xff] (!%p18590_p1)   ;;  %v20495_v53 = vld [vmem:[#allocation11 + $0x80] ss:$16 sps:$4 sm:$0xff] (!%p18590_p1)  }
 0x558   : > { %6727 = vmatprep.subr.bf16.mxu0 %v18563_v22  ;;  %7014 = vmatprep.subr.bf16.mxu1 %v18565_v20  ;;  %v20496_v22 = vld [vmem:[#allocation11 + $0x88] ss:$16 sps:$4 sm:$0xff] (!%p18590_p1)   ;;  %v20497_v20 = vld [vmem:[#allocation11 + $0xa4] ss:$16 sps:$4 sm:$0xff] (!%p18590_p1)  }
 0x55b   : > { %6728 = vmatpush1.bf16.msra.mxu0 %v18562_v59  ;;  %7015 = vmatpush1.bf16.msra.mxu1 %v18564_v62  ;;  %v20505_v59 = vld [vmem:[#allocation11 + $0xcc] ss:$16 sps:$4 sm:$0xff] (!%p18590_p1)   ;;  %v20507_v62 = vld [vmem:[#allocation11 + $0xc0] ss:$16 sps:$4 sm:$0xff] (!%p18590_p1)  }
 0x55c   : > { %6729 = vmatprep.subr.bf16.mxu0 %v18571_v0  ;;  %7016 = vmatprep.subr.bf16.mxu1 %v18573_v1  ;;  %v20508_v0 = vld [vmem:[#allocation11 + $0xc8] ss:$16 sps:$4 sm:$0xff] (!%p18590_p1)   ;;  %v20509_v1 = vld [vmem:[#allocation11 + $0xe4] ss:$16 sps:$4 sm:$0xff] (!%p18590_p1)  }
 0x55f   : > { %6730 = vmatpush1.bf16.msra.mxu0 %v18570_v5  ;;  %7017 = vmatpush1.bf16.msra.mxu1 %v18572_v8  ;;  %v20517_v5 = vld [vmem:[#allocation11 + $0x10c] ss:$16 sps:$4 sm:$0xff] (!%p18590_p1)   ;;  %v20519_v8 = vld [vmem:[#allocation11 + $0x100] ss:$16 sps:$4 sm:$0xff] (!%p18590_p1)  }
 0x560   : > { %6731 = vmatprep.subr.bf16.mxu0 %v18579_v14  ;;  %7018 = vmatprep.subr.bf16.mxu1 %v18581_v10  ;;  %v20520_v14 = vld [vmem:[#allocation11 + $0x108] ss:$16 sps:$4 sm:$0xff] (!%p18590_p1)   ;;  %v20521_v10 = vld [vmem:[#allocation11 + $0x124] ss:$16 sps:$4 sm:$0xff] (!%p18590_p1)  }
 0x563   : > { %6732 = vmatpush1.bf16.msra.mxu0 %v18578_v16  ;;  %7019 = vmatpush1.bf16.msra.mxu1 %v18580_v17  ;;  %v20529_v16 = vld [vmem:[#allocation11 + $0x14c] ss:$16 sps:$4 sm:$0xff] (!%p18590_p1)   ;;  %v20531_v17 = vld [vmem:[#allocation11 + $0x140] ss:$16 sps:$4 sm:$0xff] (!%p18590_p1)  }
 0x564   : > { %6733 = vmatprep.subr.bf16.mxu0 %v18587_v18  ;;  %7020 = vmatprep.subr.bf16.mxu1 %v18589_v19  ;;  %v20532_v18 = vld [vmem:[#allocation11 + $0x148] ss:$16 sps:$4 sm:$0xff] (!%p18590_p1)   ;;  %v20533_v19 = vld [vmem:[#allocation11 + $0x164] ss:$16 sps:$4 sm:$0xff] (!%p18590_p1)  }
 0x567   : > { %6734 = vmatpush1.bf16.msra.mxu0 %v18586_v21  ;;  %7021 = vmatpush1.bf16.msra.mxu1 %v18588_v26  ;;  %v20535_v21 = vld [vmem:[#allocation11 + $0x16c] ss:$16 sps:$4 sm:$0xff] (!%p18590_p1)  }
 0x568   : > { %8889 = vmatprep.subr.bf16.mxu1 (!%p18590_p1), %v20469_v52  ;;  %v7099_v26 = vld [vmem:[#allocation2] sm:$0xff] (!%p18590_p1) }
 0x56a   : > { %6752 = vmatmul.mubr.bf16.vlgmr.msra.gmra.mrb[4].mxu0 %v23683_v54  ;;  %7039 = vmatmul.mubr.bf16.vlgmr.msra.gmra.mrb[4].mxu1 %v23683_v54  ;;  %v20467_v54 = vld [vmem:[#allocation11 + $0x4] ss:$16 sps:$4 sm:$0xff] (!%p18590_p1)  }
 0x56b   : > { %8725 = vmatprep.subr.bf16.mxu0 (!%p18590_p1), %v20467_v54  ;;  %8890 = vmatpush1.bf16.msra.mxu1 (!%p18590_p1), %v20472_v39  ;;  %v20556_v54 = vld [vmem:[#allocation11 + $0x1c8] ss:$16 sps:$4 sm:$0xff] (!%p18590_p1)   ;;  %v20559_v39 = vld [vmem:[#allocation11 + $0x1ec] ss:$16 sps:$4 sm:$0xff] (!%p18590_p1)  }
 0x56c   : > { %8726 = vmatpush1.bf16.msra.mxu0 (!%p18590_p1), %v20471_v37  ;;  %8891 = vmatprep.subr.bf16.mxu1 (!%p18590_p1), %v20475_v42  ;;  %v20557_v37 = vld [vmem:[#allocation11 + $0x1e4] ss:$16 sps:$4 sm:$0xff] (!%p18590_p1)   ;;  %v20562_v42 = vld [vmem:[#allocation11 + $0x1e8] ss:$16 sps:$4 sm:$0xff] (!%p18590_p1)  }
 0x56d   : > { %8727 = vmatprep.subr.bf16.mxu0 (!%p18590_p1), %v20473_v40  ;;  %v20561_v40 = vld [vmem:[#allocation11 + $0x1e0] ss:$16 sps:$4 sm:$0xff] (!%p18590_p1)  }
 0x56f   : > { %8892 = vmatpush1.bf16.msra.mxu1 (!%p18590_p1), %v20478_v44  ;;  %v20568_v44 = vld [vmem:[#allocation11 + $0x20c] ss:$16 sps:$4 sm:$0xff] (!%p18590_p1)  }
 0x570   : > { %8728 = vmatpush1.bf16.msra.mxu0 (!%p18590_p1), %v20477_v43  ;;  %8893 = vmatprep.subr.bf16.mxu1 (!%p18590_p1), %v20481_v34  ;;  %v20565_v43 = vld [vmem:[#allocation11 + $0x204] ss:$16 sps:$4 sm:$0xff] (!%p18590_p1)  }
 0x571   : > { %8729 = vmatprep.subr.bf16.mxu0 (!%p18590_p1), %v20479_v28 }
 0x573   : > { %8894 = vmatpush1.bf16.msra.mxu1 (!%p18590_p1), %v20484_v49 }
 0x574   : > { %8730 = vmatpush1.bf16.msra.mxu0 (!%p18590_p1), %v20483_v45  ;;  %8895 = vmatprep.subr.bf16.mxu1 (!%p18590_p1), %v20487_v46 }
 0x575   : > { %8731 = vmatprep.subr.bf16.mxu0 (!%p18590_p1), %v20485_v63 }
 0x577   : > { %8896 = vmatpush1.bf16.msra.mxu1 (!%p18590_p1), %v20490_v13  ;;  %v20566_v13 = vld [vmem:[#allocation11 + $0x208] ss:$16 sps:$4 sm:$0xff] (!%p18590_p1)  }
 0x578   : > { %8732 = vmatpush1.bf16.msra.mxu0 (!%p18590_p1), %v20489_v47  ;;  %8897 = vmatprep.subr.bf16.mxu1 (!%p18590_p1), %v20493_v51  ;;  %v20563_v47 = vld [vmem:[#allocation11 + $0x200] ss:$16 sps:$4 sm:$0xff] (!%p18590_p1)  }
 0x579   : > { %8733 = vmatprep.subr.bf16.mxu0 (!%p18590_p1), %v20491_v7 }
 0x57b   : > { %8898 = vmatpush1.bf16.msra.mxu1 (!%p18590_p1), %v20496_v22 }
 0x57c   : > { %8734 = vmatpush1.bf16.msra.mxu0 (!%p18590_p1), %v20495_v53  ;;  %8899 = vmatprep.subr.bf16.mxu1 (!%p18590_p1), %v20499_v55  ;;  %v20571_v53 = vld [vmem:[#allocation11 + $0x224] ss:$16 sps:$4 sm:$0xff] (!%p18590_p1)  }
 0x57d   : > { %8735 = vmatprep.subr.bf16.mxu0 (!%p18590_p1), %v20497_v20  ;;  %v20574_v20 = vld [vmem:[#allocation11 + $0x22c] ss:$16 sps:$4 sm:$0xff] (!%p18590_p1)  }
 0x57f   : > { %8900 = vmatpush1.bf16.msra.mxu1 (!%p18590_p1), %v20502_v57  ;;  %v20572_v57 = vld [vmem:[#allocation11 + $0x228] ss:$16 sps:$4 sm:$0xff] (!%p18590_p1)  }
 0x580   : > { %8736 = vmatpush1.bf16.msra.mxu0 (!%p18590_p1), %v20501_v9  ;;  %8901 = vmatprep.subr.bf16.mxu1 (!%p18590_p1), %v20505_v59  ;;  %v20569_v9 = vld [vmem:[#allocation11 + $0x220] ss:$16 sps:$4 sm:$0xff] (!%p18590_p1)   ;;  %v20580_v59 = vld [vmem:[#allocation11 + $0x24c] ss:$16 sps:$4 sm:$0xff] (!%p18590_p1)  }
 0x581   : > { %8737 = vmatprep.subr.bf16.mxu0 (!%p18590_p1), %v20503_v58  ;;  %v20577_v58 = vld [vmem:[#allocation11 + $0x244] ss:$16 sps:$4 sm:$0xff] (!%p18590_p1)  }
 0x583   : > { %8902 = vmatpush1.bf16.msra.mxu1 (!%p18590_p1), %v20508_v0  ;;  %v20578_v0 = vld [vmem:[#allocation11 + $0x248] ss:$16 sps:$4 sm:$0xff] (!%p18590_p1)  }
 0x584   : > { %8738 = vmatpush1.bf16.msra.mxu0 (!%p18590_p1), %v20507_v62  ;;  %8903 = vmatprep.subr.bf16.mxu1 (!%p18590_p1), %v20511_v31  ;;  %v20575_v62 = vld [vmem:[#allocation11 + $0x240] ss:$16 sps:$4 sm:$0xff] (!%p18590_p1)   ;;  %v20586_v31 = vld [vmem:[#allocation11 + $0x26c] ss:$16 sps:$4 sm:$0xff] (!%p18590_p1)  }
 0x585   : > { %8739 = vmatprep.subr.bf16.mxu0 (!%p18590_p1), %v20509_v1  ;;  %v20583_v1 = vld [vmem:[#allocation11 + $0x264] ss:$16 sps:$4 sm:$0xff] (!%p18590_p1)  }
 0x587   : > { %8904 = vmatpush1.bf16.msra.mxu1 (!%p18590_p1), %v20514_v3  ;;  %v20584_v3 = vld [vmem:[#allocation11 + $0x268] ss:$16 sps:$4 sm:$0xff] (!%p18590_p1)  }
 0x588   : > { %8740 = vmatpush1.bf16.msra.mxu0 (!%p18590_p1), %v20513_v2  ;;  %8905 = vmatprep.subr.bf16.mxu1 (!%p18590_p1), %v20517_v5  ;;  %v20581_v2 = vld [vmem:[#allocation11 + $0x260] ss:$16 sps:$4 sm:$0xff] (!%p18590_p1)   ;;  %v20592_v5 = vld [vmem:[#allocation11 + $0x28c] ss:$16 sps:$4 sm:$0xff] (!%p18590_p1)  }
 0x589   : > { %8741 = vmatprep.subr.bf16.mxu0 (!%p18590_p1), %v20515_v4  ;;  %v20589_v4 = vld [vmem:[#allocation11 + $0x284] ss:$16 sps:$4 sm:$0xff] (!%p18590_p1)  }
 0x58b   : > { %8906 = vmatpush1.bf16.msra.mxu1 (!%p18590_p1), %v20520_v14  ;;  %v20590_v14 = vld [vmem:[#allocation11 + $0x288] ss:$16 sps:$4 sm:$0xff] (!%p18590_p1)  }
 0x58c   : > { %8742 = vmatpush1.bf16.msra.mxu0 (!%p18590_p1), %v20519_v8  ;;  %8907 = vmatprep.subr.bf16.mxu1 (!%p18590_p1), %v20523_v11  ;;  %v20587_v8 = vld [vmem:[#allocation11 + $0x280] ss:$16 sps:$4 sm:$0xff] (!%p18590_p1)   ;;  %v20598_v11 = vld [vmem:[#allocation11 + $0x2ac] ss:$16 sps:$4 sm:$0xff] (!%p18590_p1)  }
 0x58d   : > { %8743 = vmatprep.subr.bf16.mxu0 (!%p18590_p1), %v20521_v10  ;;  %v20595_v10 = vld [vmem:[#allocation11 + $0x2a4] ss:$16 sps:$4 sm:$0xff] (!%p18590_p1)  }
 0x58f   : > { %8908 = vmatpush1.bf16.msra.mxu1 (!%p18590_p1), %v20526_v56  ;;  %v20596_v56 = vld [vmem:[#allocation11 + $0x2a8] ss:$16 sps:$4 sm:$0xff] (!%p18590_p1)  }
 0x590   : > { %8744 = vmatpush1.bf16.msra.mxu0 (!%p18590_p1), %v20525_v12  ;;  %8909 = vmatprep.subr.bf16.mxu1 (!%p18590_p1), %v20529_v16  ;;  %v20593_v12 = vld [vmem:[#allocation11 + $0x2a0] ss:$16 sps:$4 sm:$0xff] (!%p18590_p1)   ;;  %v20604_v16 = vld [vmem:[#allocation11 + $0x2cc] ss:$16 sps:$4 sm:$0xff] (!%p18590_p1)  }
 0x591   : > { %8745 = vmatprep.subr.bf16.mxu0 (!%p18590_p1), %v20527_v15  ;;  %v20601_v15 = vld [vmem:[#allocation11 + $0x2c4] ss:$16 sps:$4 sm:$0xff] (!%p18590_p1)  }
 0x593   : > { %8910 = vmatpush1.bf16.msra.mxu1 (!%p18590_p1), %v20532_v18  ;;  %v20602_v18 = vld [vmem:[#allocation11 + $0x2c8] ss:$16 sps:$4 sm:$0xff] (!%p18590_p1)  }
 0x594   : > { %8746 = vmatpush1.bf16.msra.mxu0 (!%p18590_p1), %v20531_v17  ;;  %8911 = vmatprep.subr.bf16.mxu1 (!%p18590_p1), %v20535_v21  ;;  %v20599_v17 = vld [vmem:[#allocation11 + $0x2c0] ss:$16 sps:$4 sm:$0xff] (!%p18590_p1)   ;;  %v20610_v21 = vld [vmem:[#allocation11 + $0x2ec] ss:$16 sps:$4 sm:$0xff] (!%p18590_p1)  }
 0x595   : > { %8747 = vmatprep.subr.bf16.mxu0 (!%p18590_p1), %v20533_v19  ;;  %v20607_v19 = vld [vmem:[#allocation11 + $0x2e4] ss:$16 sps:$4 sm:$0xff] (!%p18590_p1)  }
 0x63d   : > { %v6753_v38 = vpop.f32.mrb[4].mxu0  ;;  %v7040_v23 = vpop.f32.mrb[4].mxu1 }
 0x63e   : > { %v6755_v24 = vpop.f32.mrb[5].mxu0  ;;  %v7042_v27 = vpop.f32.mrb[5].mxu1 }
 0x63f   : > { %v7072_v25 = vcombine.low %v6753_v38, %v6755_v24  ;;  %v6757_v6 = vpop.f32.mrb[6].mxu0  ;;  %v7073_v29 = vcombine.low %v7040_v23, %v7042_v27  ;;  %v7044_v30 = vpop.f32.mrb[6].mxu1  ;;  %v20537_v38 = vld [vmem:[#allocation11 + $0x160] ss:$16 sps:$4 sm:$0xff] (!%p18590_p1)   ;;  %v18591_v23 = vmul.f32 (!%p18590_p1), -1.442695, %v7099_v26 }
 0x640   : > { %v6758_v36 = vpop.f32.mrb[7].mxu0  ;;  %v7045_v48 = vpop.f32.mrb[7].mxu1  ;;  %v20538_v24 = vld [vmem:[#allocation11 + $0x168] ss:$16 sps:$4 sm:$0xff] (!%p18590_p1)   ;;  %v20541_v27 = vld [vmem:[#allocation11 + $0x18c] ss:$16 sps:$4 sm:$0xff] (!%p18590_p1)   ;;  %8748 = vmatpush1.bf16.msra.mxu0 (!%p18590_p1), %v20537_v38 }
 0x641   : > { %v7080_v60 = vrot.slane %v7072_v25, %v23174_v50  ;;  %v7087_v32 = vrot.slane %v7073_v29, %v23174_v50  ;;  %7098 = sbr.rel (%p18590_p1) target bundleno = 2487 (0x9b7), region = 116  ;;  %v20539_v25 = vld [vmem:[#allocation11 + $0x184] ss:$16 sps:$4 sm:$0xff] (!%p18590_p1)   ;;  %20851 = vpow2.f32 (!%p18590_p1), %v18591_v23  ;;  %v20543_v6 = vld [vmem:[#allocation11 + $0x180] ss:$16 sps:$4 sm:$0xff] (!%p18590_p1)   ;;  %8912 = vmatpush1.bf16.msra.mxu1 (!%p18590_p1), %v20538_v24 }
 0x642   : > { %v20544_v29 = vld [vmem:[#allocation11 + $0x188] ss:$16 sps:$4 sm:$0xff] (!%p18590_p1)   ;;  %8749 = vmatprep.subr.bf16.mxu0 (!%p18590_p1), %v20539_v25  ;;  %8913 = vmatprep.subr.bf16.mxu1 (!%p18590_p1), %v20541_v27  ;;  %v20545_v30 = vld [vmem:[#allocation11 + $0x1a4] ss:$16 sps:$4 sm:$0xff] (!%p18590_p1)   ;;  %v20547_v36 = vld [vmem:[#allocation11 + $0x1ac] ss:$16 sps:$4 sm:$0xff] (!%p18590_p1)  }
 0x643   : > { %v7088_v61 = vcombine.low %v7080_v60, %v7087_v32  ;;  %v20549_v60 = vld [vmem:[#allocation11 + $0x1a0] ss:$16 sps:$4 sm:$0xff] (!%p18590_p1)   ;;  %v20550_v48 = vld [vmem:[#allocation11 + $0x1a8] ss:$16 sps:$4 sm:$0xff] (!%p18590_p1)   ;;  %v20551_v32 = vld [vmem:[#allocation11 + $0x1c4] ss:$16 sps:$4 sm:$0xff] (!%p18590_p1)  }
 0x644   : > { %8750 = vmatpush1.bf16.msra.mxu0 (!%p18590_p1), %v20543_v6  ;;  %v20608_v38 = vld [vmem:[#allocation11 + $0x2e8] ss:$16 sps:$4 sm:$0xff] (!%p18590_p1)   ;;  %v20613_v23 = vld [vmem:[#allocation11 + $0x304] ss:$16 sps:$4 sm:$0xff] (!%p18590_p1)   ;;  %v20616_v24 = vld [vmem:[#allocation11 + $0x30c] ss:$16 sps:$4 sm:$0xff] (!%p18590_p1)  }
 0x645   : > { %v7092_v35 = vadd.f32 %v7088_v61, %v814_v33  ;;  %8914 = vmatpush1.bf16.msra.mxu1 (!%p18590_p1), %v20544_v29  ;;  %8751 = vmatprep.subr.bf16.mxu0 (!%p18590_p1), %v20545_v30  ;;  %v20553_v33 = vld [vmem:[#allocation11 + $0x1cc] ss:$16 sps:$4 sm:$0xff] (!%p18590_p1)   ;;  %v20611_v25 = vld [vmem:[#allocation11 + $0x300] ss:$16 sps:$4 sm:$0xff] (!%p18590_p1)   ;;  %v20614_v27 = vld [vmem:[#allocation11 + $0x308] ss:$16 sps:$4 sm:$0xff] (!%p18590_p1)  }
 0x646   : > { %8915 = vmatprep.subr.bf16.mxu1 (!%p18590_p1), %v20547_v36  ;;  %v20619_v6 = vld [vmem:[#allocation11 + $0x324] ss:$16 sps:$4 sm:$0xff] (!%p18590_p1)   ;;  %v20622_v29 = vld [vmem:[#allocation11 + $0x32c] ss:$16 sps:$4 sm:$0xff] (!%p18590_p1)   ;;  %v20617_v30 = vld [vmem:[#allocation11 + $0x320] ss:$16 sps:$4 sm:$0xff] (!%p18590_p1)  }
 0x647   : > { %7094 = vst [vmem:[#allocation2 + $0x8] sm:$0xff] %v7092_v35  ;;  %v20555_v35 = vld [vmem:[#allocation11 + $0x1c0] ss:$16 sps:$4 sm:$0xff] (!%p18590_p1)   ;;  %v20620_v36 = vld [vmem:[#allocation11 + $0x328] ss:$16 sps:$4 sm:$0xff] (!%p18590_p1)  }
 0x648   : > { %8752 = vmatpush1.bf16.msra.mxu0 %v20549_v60  ;;  %v20625_v60 = vld [vmem:[#allocation11 + $0x344] ss:$16 sps:$4 sm:$0xff]  }
 0x649   : > { %8916 = vmatpush1.bf16.msra.mxu1 %v20550_v48  ;;  %8753 = vmatprep.subr.bf16.mxu0 %v20551_v32  ;;  %v20628_v48 = vld [vmem:[#allocation11 + $0x34c] ss:$16 sps:$4 sm:$0xff]   ;;  %v20623_v32 = vld [vmem:[#allocation11 + $0x340] ss:$16 sps:$4 sm:$0xff]  }
 0x64a   : > { %8917 = vmatprep.subr.bf16.mxu1 %v20553_v33  ;;  %v20626_v33 = vld [vmem:[#allocation11 + $0x348] ss:$16 sps:$4 sm:$0xff]  }
 0x64b   : > { %v20852_v61 = vpop.eup %20851 }
 0x64c   : > { %v7107_v52 = vadd.f32 1.0, %v20852_v61  ;;  %8754 = vmatpush1.bf16.msra.mxu0 %v20555_v35  ;;  %v20631_v61 = vld [vmem:[#allocation11 + $0x364] ss:$16 sps:$4 sm:$0xff]   ;;  %v20634_v35 = vld [vmem:[#allocation11 + $0x36c] ss:$16 sps:$4 sm:$0xff]  }
 0x64d   : > { %8918 = vmatpush1.bf16.msra.mxu1 %v20556_v54  ;;  %8755 = vmatprep.subr.bf16.mxu0 %v20557_v37  ;;  %v20629_v54 = vld [vmem:[#allocation11 + $0x360] ss:$16 sps:$4 sm:$0xff]   ;;  %v20637_v37 = vld [vmem:[#allocation11 + $0x384] ss:$16 sps:$4 sm:$0xff]  }
 0x64e   : > { %20853 = vrcp.f32 %v7107_v52  ;;  %8919 = vmatprep.subr.bf16.mxu1 %v20559_v39  ;;  %v20632_v52 = vld [vmem:[#allocation11 + $0x368] ss:$16 sps:$4 sm:$0xff]   ;;  %v20640_v39 = vld [vmem:[#allocation11 + $0x38c] ss:$16 sps:$4 sm:$0xff]  }
 0x650   : > { %8756 = vmatpush1.bf16.msra.mxu0 %v20561_v40  ;;  %v20635_v40 = vld [vmem:[#allocation11 + $0x380] ss:$16 sps:$4 sm:$0xff]  }
 0x651   : > { %8920 = vmatpush1.bf16.msra.mxu1 %v20562_v42  ;;  %8766 = vmatprep.subr.bf16.mxu0 %v20565_v43  ;;  %v20638_v42 = vld [vmem:[#allocation11 + $0x388] ss:$16 sps:$4 sm:$0xff]   ;;  %v20643_v43 = vld [vmem:[#allocation11 + $0x3a4] ss:$16 sps:$4 sm:$0xff]  }
 0x652   : > { %8930 = vmatprep.subr.bf16.mxu1 %v20568_v44  ;;  %v20646_v44 = vld [vmem:[#allocation11 + $0x3ac] ss:$16 sps:$4 sm:$0xff]  }
 0x658   : > { %v20854_v28 = vpop.eup %20853 }
 0x659   : > { %v7113_v34 = vmul.f32 %v20854_v28, %v7099_v26  ;;  %v20605_v26 = vld [vmem:[#allocation11 + $0x2e0] ss:$16 sps:$4 sm:$0xff]  }
 0x65a   : > { %v20641_v28 = vld [vmem:[#allocation11 + $0x3a0] ss:$16 sps:$4 sm:$0xff]  }
 0x65b   : > { %v7124_v45 = vrot.slane %v7113_v34, %v23174_v50  ;;  %v7117_v49 = vcombine.high %v7113_v34, %v7113_v34  ;;  %v20644_v34 = vld [vmem:[#allocation11 + $0x3a8] ss:$16 sps:$4 sm:$0xff]  }
 0x65d   : > { %v7132_v63 = vcombine.high %v7124_v45, %v7124_v45  ;;  %v24132_v46 = vrot.slane %v7117_v49, %v23174_v50  ;;  %v7159_v7 = vpack.c.bf16 %v7124_v45, %v7124_v45  ;;  %v20649_v45 = vld [vmem:[#allocation11 + $0x3c4] ss:$16 sps:$4 sm:$0xff]   ;;  %v20652_v49 = vld [vmem:[#allocation11 + $0x3cc] ss:$16 sps:$4 sm:$0xff]  }
 0x65f   : > { %v7160_v51 = vpack.c.bf16 %v7132_v63, %v7132_v63  ;;  %v7133_v22 = vcombine.high %v24132_v46, %v24132_v46  ;;  %v7100_v63 = vld [vmem:[#allocation2 + $0x8] sm:$0xff] }
 0x661   : > { %8757 = vmatprep.mubr.bf16.mxu0 %v7160_v51  ;;  %8921 = vmatprep.mubr.bf16.mxu1 %v7160_v51  ;;  %v7162_v55 = vpack.c.bf16 %v7133_v22, %v7133_v22  ;;  %v20655_v51 = vld [vmem:[#allocation11 + $0x3e4] ss:$16 sps:$4 sm:$0xff]   ;;  %v20653_v22 = vld [vmem:[#allocation11 + $0x3e0] ss:$16 sps:$4 sm:$0xff]  }
 0x662   : > { %8758 = vmatmul.mubr.bf16.vlgmr.msra.gmra.mrb[0].mxu0 %v7159_v7  ;;  %8922 = vmatmul.mubr.bf16.vlgmr.msra.gmra.mrb[0].mxu1 %v7159_v7  ;;  %v20650_v7 = vld [vmem:[#allocation11 + $0x3c8] ss:$16 sps:$4 sm:$0xff]  }
 0x663   : > { %8767 = vmatpush1.bf16.msra.mxu0 %v20563_v47  ;;  %8931 = vmatpush1.bf16.msra.mxu1 %v20566_v13  ;;  %v18592_v47 = vmul.f32 -1.442695, %v7100_v63  ;;  %v20647_v13 = vld [vmem:[#allocation11 + $0x3c0] ss:$16 sps:$4 sm:$0xff]  }
 0x664   : > { %8768 = vmatprep.subr.bf16.mxu0 %v20571_v53  ;;  %8932 = vmatprep.subr.bf16.mxu1 %v20574_v20  ;;  %v20658_v53 = vld [vmem:[#allocation11 + $0x3ec] ss:$16 sps:$4 sm:$0xff]   ;;  %v20656_v20 = vld [vmem:[#allocation11 + $0x3e8] ss:$16 sps:$4 sm:$0xff]  }
 0x665   : > { %8798 = vmatprep.mubr.bf16.mxu0 %v7162_v55  ;;  %8962 = vmatprep.mubr.bf16.mxu1 %v7162_v55  ;;  %20855 = vpow2.f32 %v18592_v47  ;;  %v20661_v55 = vld [vmem:[#allocation11 + $0x404] ss:$16 sps:$4 sm:$0xff]   ;;  %v20728_v47 = vld [vmem:[#allocation11 + $0x568] ss:$16 sps:$4 sm:$0xff]  }
 0x667   : > { %8769 = vmatpush1.bf16.msra.mxu0 %v20569_v9  ;;  %8933 = vmatpush1.bf16.msra.mxu1 %v20572_v57  ;;  %v20664_v9 = vld [vmem:[#allocation11 + $0x40c] ss:$16 sps:$4 sm:$0xff]   ;;  %v20659_v57 = vld [vmem:[#allocation11 + $0x400] ss:$16 sps:$4 sm:$0xff]  }
 0x668   : > { %8770 = vmatprep.subr.bf16.mxu0 %v20577_v58  ;;  %8934 = vmatprep.subr.bf16.mxu1 %v20580_v59  ;;  %v7161_v58 = vpack.c.bf16 %v24132_v46, %v24132_v46  ;;  %v20662_v59 = vld [vmem:[#allocation11 + $0x408] ss:$16 sps:$4 sm:$0xff]   ;;  %v20671_v46 = vld [vmem:[#allocation11 + $0x440] ss:$16 sps:$4 sm:$0xff]  }
 0x66b   : > { %8771 = vmatpush1.bf16.msra.mxu0 %v20575_v62  ;;  %8935 = vmatpush1.bf16.msra.mxu1 %v20578_v0  ;;  %v20667_v62 = vld [vmem:[#allocation11 + $0x424] ss:$16 sps:$4 sm:$0xff]   ;;  %v20670_v0 = vld [vmem:[#allocation11 + $0x42c] ss:$16 sps:$4 sm:$0xff]  }
 0x66c   : > { %8772 = vmatprep.subr.bf16.mxu0 %v20583_v1  ;;  %8936 = vmatprep.subr.bf16.mxu1 %v20586_v31  ;;  %v20665_v31 = vld [vmem:[#allocation11 + $0x420] ss:$16 sps:$4 sm:$0xff]  }
 0x66f   : > { %8773 = vmatpush1.bf16.msra.mxu0 %v20581_v2  ;;  %8937 = vmatpush1.bf16.msra.mxu1 %v20584_v3  ;;  %v20856_v1 = vpop.eup %20855  ;;  %v20668_v3 = vld [vmem:[#allocation11 + $0x428] ss:$16 sps:$4 sm:$0xff]  }
 0x670   : > { %8774 = vmatprep.subr.bf16.mxu0 %v20589_v4  ;;  %8938 = vmatprep.subr.bf16.mxu1 %v20592_v5  ;;  %v7108_v2 = vadd.f32 1.0, %v20856_v1  ;;  %v20673_v4 = vld [vmem:[#allocation11 + $0x444] ss:$16 sps:$4 sm:$0xff]   ;;  %v20676_v5 = vld [vmem:[#allocation11 + $0x44c] ss:$16 sps:$4 sm:$0xff]  }
 0x671   : > { %v20751_v1 = vld [vmem:[#allocation11 + $0x5e4] ss:$16 sps:$4 sm:$0xff]  }
 0x672   : > { %20857 = vrcp.f32 %v7108_v2 }
 0x673   : > { %8775 = vmatpush1.bf16.msra.mxu0 %v20587_v8  ;;  %8939 = vmatpush1.bf16.msra.mxu1 %v20590_v14  ;;  %v20674_v8 = vld [vmem:[#allocation11 + $0x448] ss:$16 sps:$4 sm:$0xff]   ;;  %v20679_v14 = vld [vmem:[#allocation11 + $0x464] ss:$16 sps:$4 sm:$0xff]  }
 0x674   : > { %8776 = vmatprep.subr.bf16.mxu0 %v20595_v10  ;;  %8940 = vmatprep.subr.bf16.mxu1 %v20598_v11  ;;  %v20682_v10 = vld [vmem:[#allocation11 + $0x46c] ss:$16 sps:$4 sm:$0xff]   ;;  %v20677_v11 = vld [vmem:[#allocation11 + $0x460] ss:$16 sps:$4 sm:$0xff]  }
 0x677   : > { %8777 = vmatpush1.bf16.msra.mxu0 %v20593_v12  ;;  %8941 = vmatpush1.bf16.msra.mxu1 %v20596_v56  ;;  %v20680_v12 = vld [vmem:[#allocation11 + $0x468] ss:$16 sps:$4 sm:$0xff]   ;;  %v20685_v56 = vld [vmem:[#allocation11 + $0x484] ss:$16 sps:$4 sm:$0xff]  }
 0x678   : > { %8778 = vmatprep.subr.bf16.mxu0 %v20601_v15  ;;  %8942 = vmatprep.subr.bf16.mxu1 %v20604_v16  ;;  %v20688_v15 = vld [vmem:[#allocation11 + $0x48c] ss:$16 sps:$4 sm:$0xff]  }
 0x67b   : > { %8779 = vmatpush1.bf16.msra.mxu0 %v20599_v17  ;;  %8943 = vmatpush1.bf16.msra.mxu1 %v20602_v18  ;;  %v20683_v17 = vld [vmem:[#allocation11 + $0x480] ss:$16 sps:$4 sm:$0xff]   ;;  %v20686_v18 = vld [vmem:[#allocation11 + $0x488] ss:$16 sps:$4 sm:$0xff]  }
 0x67c   : > { %8780 = vmatprep.subr.bf16.mxu0 %v20607_v19  ;;  %8944 = vmatprep.subr.bf16.mxu1 %v20610_v21  ;;  %v20858_v16 = vpop.eup %20857  ;;  %v20691_v21 = vld [vmem:[#allocation11 + $0x4a4] ss:$16 sps:$4 sm:$0xff]  }
 0x67d   : > { %v24138_v19 = vmul.f32 %v20858_v16, %v7100_v63  ;;  %v20725_v63 = vld [vmem:[#allocation11 + $0x560] ss:$16 sps:$4 sm:$0xff]  }
 0x67e   : > { %v20761_v16 = vld [vmem:[#allocation11 + $0x620] ss:$16 sps:$4 sm:$0xff]  }
 0x67f   : > { %8781 = vmatpush1.bf16.msra.mxu0 %v20605_v26  ;;  %8945 = vmatpush1.bf16.msra.mxu1 %v20608_v38  ;;  %v20694_v26 = vld [vmem:[#allocation11 + $0x4ac] ss:$16 sps:$4 sm:$0xff]   ;;  %v24142_v38 = vrot.slane %v24138_v19, %v23174_v50 }
 0x680   : > { %8782 = vmatprep.subr.bf16.mxu0 %v20613_v23  ;;  %8946 = vmatprep.subr.bf16.mxu1 %v20616_v24  ;;  %v20689_v23 = vld [vmem:[#allocation11 + $0x4a0] ss:$16 sps:$4 sm:$0xff]   ;;  %v20692_v24 = vld [vmem:[#allocation11 + $0x4a8] ss:$16 sps:$4 sm:$0xff]  }
 0x683   : > { %8783 = vmatpush1.bf16.msra.mxu0 %v20611_v25  ;;  %8947 = vmatpush1.bf16.msra.mxu1 %v20614_v27  ;;  %v7149_v25 = vcombine.high %v24142_v38, %v24142_v38  ;;  %v20697_v27 = vld [vmem:[#allocation11 + $0x4c4] ss:$16 sps:$4 sm:$0xff]  }
 0x684   : > { %8784 = vmatprep.subr.bf16.mxu0 %v20619_v6  ;;  %8948 = vmatprep.subr.bf16.mxu1 %v20622_v29  ;;  %v20700_v6 = vld [vmem:[#allocation11 + $0x4cc] ss:$16 sps:$4 sm:$0xff]  }
 0x685   : > { %v7164_v29 = vpack.c.bf16 %v7149_v25, %v7149_v25  ;;  %v20776_v25 = vld [vmem:[#allocation11 + $0x668] ss:$16 sps:$4 sm:$0xff]  }
 0x687   : > { %8785 = vmatpush1.bf16.msra.mxu0 %v20617_v30  ;;  %8949 = vmatpush1.bf16.msra.mxu1 %v20620_v36  ;;  %v20695_v30 = vld [vmem:[#allocation11 + $0x4c0] ss:$16 sps:$4 sm:$0xff]   ;;  %v20698_v36 = vld [vmem:[#allocation11 + $0x4c8] ss:$16 sps:$4 sm:$0xff]  }
 0x688   : > { %8786 = vmatprep.subr.bf16.mxu0 %v20625_v60  ;;  %8950 = vmatprep.subr.bf16.mxu1 %v20628_v48  ;;  %v20703_v60 = vld [vmem:[#allocation11 + $0x4e4] ss:$16 sps:$4 sm:$0xff]   ;;  %v20706_v48 = vld [vmem:[#allocation11 + $0x4ec] ss:$16 sps:$4 sm:$0xff]  }
 0x68b   : > { %8787 = vmatpush1.bf16.msra.mxu0 %v20623_v32  ;;  %8951 = vmatpush1.bf16.msra.mxu1 %v20626_v33  ;;  %v20701_v32 = vld [vmem:[#allocation11 + $0x4e0] ss:$16 sps:$4 sm:$0xff]   ;;  %v20704_v33 = vld [vmem:[#allocation11 + $0x4e8] ss:$16 sps:$4 sm:$0xff]  }
 0x68c   : > { %8788 = vmatprep.subr.bf16.mxu0 %v20631_v61  ;;  %8952 = vmatprep.subr.bf16.mxu1 %v20634_v35  ;;  %v20709_v61 = vld [vmem:[#allocation11 + $0x504] ss:$16 sps:$4 sm:$0xff]   ;;  %v20712_v35 = vld [vmem:[#allocation11 + $0x50c] ss:$16 sps:$4 sm:$0xff]  }
 0x68f   : > { %8789 = vmatpush1.bf16.msra.mxu0 %v20629_v54  ;;  %8953 = vmatpush1.bf16.msra.mxu1 %v20632_v52  ;;  %v20707_v54 = vld [vmem:[#allocation11 + $0x500] ss:$16 sps:$4 sm:$0xff]   ;;  %v20710_v52 = vld [vmem:[#allocation11 + $0x508] ss:$16 sps:$4 sm:$0xff]  }
 0x690   : > { %8790 = vmatprep.subr.bf16.mxu0 %v20637_v37  ;;  %8954 = vmatprep.subr.bf16.mxu1 %v20640_v39  ;;  %v20715_v37 = vld [vmem:[#allocation11 + $0x524] ss:$16 sps:$4 sm:$0xff]   ;;  %v20718_v39 = vld [vmem:[#allocation11 + $0x52c] ss:$16 sps:$4 sm:$0xff]  }
 0x693   : > { %8791 = vmatpush1.bf16.msra.mxu0 %v20635_v40  ;;  %8955 = vmatpush1.bf16.msra.mxu1 %v20638_v42  ;;  %v20713_v40 = vld [vmem:[#allocation11 + $0x520] ss:$16 sps:$4 sm:$0xff]   ;;  %v20716_v42 = vld [vmem:[#allocation11 + $0x528] ss:$16 sps:$4 sm:$0xff]  }
 0x694   : > { %8792 = vmatprep.subr.bf16.mxu0 %v20643_v43  ;;  %8956 = vmatprep.subr.bf16.mxu1 %v20646_v44  ;;  %v20721_v43 = vld [vmem:[#allocation11 + $0x544] ss:$16 sps:$4 sm:$0xff]   ;;  %v20724_v44 = vld [vmem:[#allocation11 + $0x54c] ss:$16 sps:$4 sm:$0xff]  }
 0x697   : > { %8793 = vmatpush1.bf16.msra.mxu0 %v20641_v28  ;;  %8957 = vmatpush1.bf16.msra.mxu1 %v20644_v34  ;;  %v20719_v28 = vld [vmem:[#allocation11 + $0x540] ss:$16 sps:$4 sm:$0xff]   ;;  %v20722_v34 = vld [vmem:[#allocation11 + $0x548] ss:$16 sps:$4 sm:$0xff]  }
 0x698   : > { %8794 = vmatprep.subr.bf16.mxu0 %v20649_v45  ;;  %8958 = vmatprep.subr.bf16.mxu1 %v20652_v49  ;;  %v20727_v45 = vld [vmem:[#allocation11 + $0x564] ss:$16 sps:$4 sm:$0xff]   ;;  %v20730_v49 = vld [vmem:[#allocation11 + $0x56c] ss:$16 sps:$4 sm:$0xff]  }
 0x69b   : > { %8795 = vmatpush1.bf16.msra.mxu0 %v20647_v13  ;;  %8959 = vmatpush1.bf16.msra.mxu1 %v20650_v7  ;;  %v20733_v13 = vld [vmem:[#allocation11 + $0x584] ss:$16 sps:$4 sm:$0xff]   ;;  %v20736_v7 = vld [vmem:[#allocation11 + $0x58c] ss:$16 sps:$4 sm:$0xff]  }
 0x69c   : > { %8796 = vmatprep.subr.bf16.mxu0 %v20655_v51  ;;  %8960 = vmatprep.subr.bf16.mxu1 %v20658_v53  ;;  %v20731_v51 = vld [vmem:[#allocation11 + $0x580] ss:$16 sps:$4 sm:$0xff]   ;;  %v20734_v53 = vld [vmem:[#allocation11 + $0x588] ss:$16 sps:$4 sm:$0xff]  }
 0x69f   : > { %8797 = vmatpush1.bf16.msra.mxu0 %v20653_v22  ;;  %8961 = vmatpush1.bf16.msra.mxu1 %v20656_v20  ;;  %v20739_v22 = vld [vmem:[#allocation11 + $0x5a4] ss:$16 sps:$4 sm:$0xff]   ;;  %v20742_v20 = vld [vmem:[#allocation11 + $0x5ac] ss:$16 sps:$4 sm:$0xff]  }
 0x6a0   : > { %8807 = vmatprep.subr.bf16.mxu0 %v20661_v55  ;;  %8971 = vmatprep.subr.bf16.mxu1 %v20664_v9  ;;  %v20737_v55 = vld [vmem:[#allocation11 + $0x5a0] ss:$16 sps:$4 sm:$0xff]   ;;  %v20740_v9 = vld [vmem:[#allocation11 + $0x5a8] ss:$16 sps:$4 sm:$0xff]  }
 0x6a2   : > { %8799 = vmatmul.mubr.bf16.vlgmr.msra.gmra.mrb[0].mxu0 %v7161_v58  ;;  %8963 = vmatmul.mubr.bf16.vlgmr.msra.gmra.mrb[0].mxu1 %v7161_v58  ;;  %v20748_v58 = vld [vmem:[#allocation11 + $0x5cc] ss:$16 sps:$4 sm:$0xff]  }
 0x6a3   : > { %8808 = vmatpush1.bf16.msra.mxu0 %v20659_v57  ;;  %8972 = vmatpush1.bf16.msra.mxu1 %v20662_v59  ;;  %v20745_v57 = vld [vmem:[#allocation11 + $0x5c4] ss:$16 sps:$4 sm:$0xff]   ;;  %v7134_v59 = vcombine.high %v24138_v19, %v24138_v19  ;;  %v20772_v19 = vld [vmem:[#allocation11 + $0x64c] ss:$16 sps:$4 sm:$0xff]  }
 0x6a4   : > { %8809 = vmatprep.subr.bf16.mxu0 %v20667_v62  ;;  %8973 = vmatprep.subr.bf16.mxu1 %v20670_v0  ;;  %v20743_v62 = vld [vmem:[#allocation11 + $0x5c0] ss:$16 sps:$4 sm:$0xff]   ;;  %v20746_v0 = vld [vmem:[#allocation11 + $0x5c8] ss:$16 sps:$4 sm:$0xff]  }
 0x6a5   : > { %8839 = vmatprep.mubr.bf16.mxu0 %v7164_v29  ;;  %9003 = vmatprep.mubr.bf16.mxu1 %v7164_v29  ;;  %v24149_v2 = vrot.slane %v7134_v59, %v23174_v50  ;;  %v20779_v29 = vld [vmem:[#allocation11 + $0x680] ss:$16 sps:$4 sm:$0xff]   ;;  %v20830_v59 = vld [vmem:[#allocation11 + $0x788] ss:$16 sps:$4 sm:$0xff]  }
 0x6a7   : > { %8810 = vmatpush1.bf16.msra.mxu0 %v20665_v31  ;;  %8974 = vmatpush1.bf16.msra.mxu1 %v20668_v3  ;;  %v20754_v31 = vld [vmem:[#allocation11 + $0x5ec] ss:$16 sps:$4 sm:$0xff]   ;;  %v20749_v3 = vld [vmem:[#allocation11 + $0x5e0] ss:$16 sps:$4 sm:$0xff]  }
 0x6a8   : > { %8811 = vmatprep.subr.bf16.mxu0 %v20673_v4  ;;  %8975 = vmatprep.subr.bf16.mxu1 %v20676_v5  ;;  %v20752_v4 = vld [vmem:[#allocation11 + $0x5e8] ss:$16 sps:$4 sm:$0xff]   ;;  %v20757_v5 = vld [vmem:[#allocation11 + $0x604] ss:$16 sps:$4 sm:$0xff]  }
 0x6ab   : > { %8812 = vmatpush1.bf16.msra.mxu0 %v20671_v46  ;;  %8976 = vmatpush1.bf16.msra.mxu1 %v20674_v8  ;;  %v20760_v46 = vld [vmem:[#allocation11 + $0x60c] ss:$16 sps:$4 sm:$0xff]   ;;  %v7150_v8 = vcombine.high %v24149_v2, %v24149_v2 }
 0x6ac   : > { %8813 = vmatprep.subr.bf16.mxu0 %v20679_v14  ;;  %8977 = vmatprep.subr.bf16.mxu1 %v20682_v10  ;;  %v7163_v14 = vpack.c.bf16 %v24142_v38, %v24142_v38  ;;  %v20755_v10 = vld [vmem:[#allocation11 + $0x600] ss:$16 sps:$4 sm:$0xff]   ;;  %v20775_v38 = vld [vmem:[#allocation11 + $0x664] ss:$16 sps:$4 sm:$0xff]  }
 0x6af   : > { %8814 = vmatpush1.bf16.msra.mxu0 %v20677_v11  ;;  %8978 = vmatpush1.bf16.msra.mxu1 %v20680_v12  ;;  %v20758_v11 = vld [vmem:[#allocation11 + $0x608] ss:$16 sps:$4 sm:$0xff]   ;;  %v20763_v12 = vld [vmem:[#allocation11 + $0x624] ss:$16 sps:$4 sm:$0xff]  }
 0x6b0   : > { %8815 = vmatprep.subr.bf16.mxu0 %v20685_v56  ;;  %8979 = vmatprep.subr.bf16.mxu1 %v20688_v15  ;;  %v20766_v56 = vld [vmem:[#allocation11 + $0x62c] ss:$16 sps:$4 sm:$0xff]   ;;  %v7166_v15 = vpack.c.bf16 %v7150_v8, %v7150_v8  ;;  %v20847_v8 = vld [vmem:[#allocation11 + $0x7e4] ss:$16 sps:$4 sm:$0xff]  }
 0x6b3   : > { %8816 = vmatpush1.bf16.msra.mxu0 %v20683_v17  ;;  %8980 = vmatpush1.bf16.msra.mxu1 %v20686_v18  ;;  %v20764_v17 = vld [vmem:[#allocation11 + $0x628] ss:$16 sps:$4 sm:$0xff]   ;;  %v20769_v18 = vld [vmem:[#allocation11 + $0x644] ss:$16 sps:$4 sm:$0xff]  }
 0x6b4   : > { %8817 = vmatprep.subr.bf16.mxu0 %v20691_v21  ;;  %8981 = vmatprep.subr.bf16.mxu1 %v20694_v26  ;;  %v20767_v21 = vld [vmem:[#allocation11 + $0x640] ss:$16 sps:$4 sm:$0xff]   ;;  %v20770_v26 = vld [vmem:[#allocation11 + $0x648] ss:$16 sps:$4 sm:$0xff]  }
 0x6b7   : > { %8818 = vmatpush1.bf16.msra.mxu0 %v20689_v23  ;;  %8982 = vmatpush1.bf16.msra.mxu1 %v20692_v24  ;;  %v20778_v23 = vld [vmem:[#allocation11 + $0x66c] ss:$16 sps:$4 sm:$0xff]   ;;  %v20773_v24 = vld [vmem:[#allocation11 + $0x660] ss:$16 sps:$4 sm:$0xff]  }
 0x6b8   : > { %8819 = vmatprep.subr.bf16.mxu0 %v20697_v27  ;;  %8983 = vmatprep.subr.bf16.mxu1 %v20700_v6  ;;  %v20781_v27 = vld [vmem:[#allocation11 + $0x684] ss:$16 sps:$4 sm:$0xff]   ;;  %v20784_v6 = vld [vmem:[#allocation11 + $0x68c] ss:$16 sps:$4 sm:$0xff]  }
 0x6bb   : > { %8820 = vmatpush1.bf16.msra.mxu0 %v20695_v30  ;;  %8984 = vmatpush1.bf16.msra.mxu1 %v20698_v36  ;;  %v20782_v30 = vld [vmem:[#allocation11 + $0x688] ss:$16 sps:$4 sm:$0xff]   ;;  %v20787_v36 = vld [vmem:[#allocation11 + $0x6a4] ss:$16 sps:$4 sm:$0xff]  }
 0x6bc   : > { %8821 = vmatprep.subr.bf16.mxu0 %v20703_v60  ;;  %8985 = vmatprep.subr.bf16.mxu1 %v20706_v48  ;;  %v20790_v60 = vld [vmem:[#allocation11 + $0x6ac] ss:$16 sps:$4 sm:$0xff]   ;;  %v20785_v48 = vld [vmem:[#allocation11 + $0x6a0] ss:$16 sps:$4 sm:$0xff]  }
 0x6bf   : > { %8822 = vmatpush1.bf16.msra.mxu0 %v20701_v32  ;;  %8986 = vmatpush1.bf16.msra.mxu1 %v20704_v33  ;;  %v20788_v32 = vld [vmem:[#allocation11 + $0x6a8] ss:$16 sps:$4 sm:$0xff]   ;;  %v20793_v33 = vld [vmem:[#allocation11 + $0x6c4] ss:$16 sps:$4 sm:$0xff]  }
 0x6c0   : > { %8823 = vmatprep.subr.bf16.mxu0 %v20709_v61  ;;  %8987 = vmatprep.subr.bf16.mxu1 %v20712_v35  ;;  %v20796_v61 = vld [vmem:[#allocation11 + $0x6cc] ss:$16 sps:$4 sm:$0xff]   ;;  %v20791_v35 = vld [vmem:[#allocation11 + $0x6c0] ss:$16 sps:$4 sm:$0xff]  }
 0x6c3   : > { %8824 = vmatpush1.bf16.msra.mxu0 %v20707_v54  ;;  %8988 = vmatpush1.bf16.msra.mxu1 %v20710_v52  ;;  %v20794_v54 = vld [vmem:[#allocation11 + $0x6c8] ss:$16 sps:$4 sm:$0xff]   ;;  %v20799_v52 = vld [vmem:[#allocation11 + $0x6e4] ss:$16 sps:$4 sm:$0xff]  }
 0x6c4   : > { %8825 = vmatprep.subr.bf16.mxu0 %v20715_v37  ;;  %8989 = vmatprep.subr.bf16.mxu1 %v20718_v39  ;;  %v20802_v37 = vld [vmem:[#allocation11 + $0x6ec] ss:$16 sps:$4 sm:$0xff]   ;;  %v20797_v39 = vld [vmem:[#allocation11 + $0x6e0] ss:$16 sps:$4 sm:$0xff]  }
 0x6c7   : > { %8826 = vmatpush1.bf16.msra.mxu0 %v20713_v40  ;;  %8990 = vmatpush1.bf16.msra.mxu1 %v20716_v42  ;;  %v20800_v40 = vld [vmem:[#allocation11 + $0x6e8] ss:$16 sps:$4 sm:$0xff]   ;;  %v20805_v42 = vld [vmem:[#allocation11 + $0x704] ss:$16 sps:$4 sm:$0xff]  }
 0x6c8   : > { %8827 = vmatprep.subr.bf16.mxu0 %v20721_v43  ;;  %8991 = vmatprep.subr.bf16.mxu1 %v20724_v44  ;;  %v20808_v43 = vld [vmem:[#allocation11 + $0x70c] ss:$16 sps:$4 sm:$0xff]   ;;  %v20803_v44 = vld [vmem:[#allocation11 + $0x700] ss:$16 sps:$4 sm:$0xff]  }
 0x6cb   : > { %8828 = vmatpush1.bf16.msra.mxu0 %v20719_v28  ;;  %8992 = vmatpush1.bf16.msra.mxu1 %v20722_v34  ;;  %v20806_v28 = vld [vmem:[#allocation11 + $0x708] ss:$16 sps:$4 sm:$0xff]   ;;  %v20811_v34 = vld [vmem:[#allocation11 + $0x724] ss:$16 sps:$4 sm:$0xff]  }
 0x6cc   : > { %8829 = vmatprep.subr.bf16.mxu0 %v20727_v45  ;;  %8993 = vmatprep.subr.bf16.mxu1 %v20730_v49  ;;  %v20814_v45 = vld [vmem:[#allocation11 + $0x72c] ss:$16 sps:$4 sm:$0xff]   ;;  %v20809_v49 = vld [vmem:[#allocation11 + $0x720] ss:$16 sps:$4 sm:$0xff]  }
 0x6cf   : > { %8830 = vmatpush1.bf16.msra.mxu0 %v20725_v63  ;;  %8994 = vmatpush1.bf16.msra.mxu1 %v20728_v47  ;;  %v20812_v63 = vld [vmem:[#allocation11 + $0x728] ss:$16 sps:$4 sm:$0xff]   ;;  %v20817_v47 = vld [vmem:[#allocation11 + $0x744] ss:$16 sps:$4 sm:$0xff]  }
 0x6d0   : > { %8831 = vmatprep.subr.bf16.mxu0 %v20733_v13  ;;  %8995 = vmatprep.subr.bf16.mxu1 %v20736_v7  ;;  %v20820_v13 = vld [vmem:[#allocation11 + $0x74c] ss:$16 sps:$4 sm:$0xff]   ;;  %v20815_v7 = vld [vmem:[#allocation11 + $0x740] ss:$16 sps:$4 sm:$0xff]  }
 0x6d3   : > { %8832 = vmatpush1.bf16.msra.mxu0 %v20731_v51  ;;  %8996 = vmatpush1.bf16.msra.mxu1 %v20734_v53  ;;  %v20818_v51 = vld [vmem:[#allocation11 + $0x748] ss:$16 sps:$4 sm:$0xff]   ;;  %v20823_v53 = vld [vmem:[#allocation11 + $0x764] ss:$16 sps:$4 sm:$0xff]  }
 0x6d4   : > { %8833 = vmatprep.subr.bf16.mxu0 %v20739_v22  ;;  %8997 = vmatprep.subr.bf16.mxu1 %v20742_v20  ;;  %v20826_v22 = vld [vmem:[#allocation11 + $0x76c] ss:$16 sps:$4 sm:$0xff]   ;;  %v20821_v20 = vld [vmem:[#allocation11 + $0x760] ss:$16 sps:$4 sm:$0xff]  }
 0x6d7   : > { %8834 = vmatpush1.bf16.msra.mxu0 %v20737_v55  ;;  %8998 = vmatpush1.bf16.msra.mxu1 %v20740_v9  ;;  %v20824_v55 = vld [vmem:[#allocation11 + $0x768] ss:$16 sps:$4 sm:$0xff]   ;;  %v20829_v9 = vld [vmem:[#allocation11 + $0x784] ss:$16 sps:$4 sm:$0xff]  }
 0x6d8   : > { %8835 = vmatprep.subr.bf16.mxu0 %v20745_v57  ;;  %8999 = vmatprep.subr.bf16.mxu1 %v20748_v58  ;;  %v20832_v57 = vld [vmem:[#allocation11 + $0x78c] ss:$16 sps:$4 sm:$0xff]   ;;  %v20827_v58 = vld [vmem:[#allocation11 + $0x780] ss:$16 sps:$4 sm:$0xff]  }
 0x6db   : > { %8836 = vmatpush1.bf16.msra.mxu0 %v20743_v62  ;;  %9000 = vmatpush1.bf16.msra.mxu1 %v20746_v0  ;;  %v20835_v62 = vld [vmem:[#allocation11 + $0x7a4] ss:$16 sps:$4 sm:$0xff]   ;;  %v20838_v0 = vld [vmem:[#allocation11 + $0x7ac] ss:$16 sps:$4 sm:$0xff]  }
 0x6dc   : > { %8837 = vmatprep.subr.bf16.mxu0 %v20751_v1  ;;  %9001 = vmatprep.subr.bf16.mxu1 %v20754_v31  ;;  %v20833_v1 = vld [vmem:[#allocation11 + $0x7a0] ss:$16 sps:$4 sm:$0xff]   ;;  %v20836_v31 = vld [vmem:[#allocation11 + $0x7a8] ss:$16 sps:$4 sm:$0xff]  }
 0x6df   : > { %8838 = vmatpush1.bf16.msra.mxu0 %v20749_v3  ;;  %9002 = vmatpush1.bf16.msra.mxu1 %v20752_v4  ;;  %v20841_v3 = vld [vmem:[#allocation11 + $0x7c4] ss:$16 sps:$4 sm:$0xff]   ;;  %v20844_v4 = vld [vmem:[#allocation11 + $0x7cc] ss:$16 sps:$4 sm:$0xff]  }
 0x6e0   : > { %8848 = vmatprep.subr.bf16.mxu0 %v20757_v5  ;;  %9012 = vmatprep.subr.bf16.mxu1 %v20760_v46  ;;  %v20839_v5 = vld [vmem:[#allocation11 + $0x7c0] ss:$16 sps:$4 sm:$0xff]   ;;  %v20842_v46 = vld [vmem:[#allocation11 + $0x7c8] ss:$16 sps:$4 sm:$0xff]  }
 0x6e2   : > { %8840 = vmatmul.mubr.bf16.vlgmr.msra.gmra.mrb[0].mxu0 %v7163_v14  ;;  %9004 = vmatmul.mubr.bf16.vlgmr.msra.gmra.mrb[0].mxu1 %v7163_v14  ;;  %v20850_v14 = vld [vmem:[#allocation11 + $0x7ec] ss:$16 sps:$4 sm:$0xff]  }
 0x6e3   : > { %8849 = vmatpush1.bf16.msra.mxu0 %v20755_v10  ;;  %9013 = vmatpush1.bf16.msra.mxu1 %v20758_v11  ;;  %v9085_v10 = vld [vmem:[#allocation14] sm:$0xff] }
 0x6e4   : > { %8850 = vmatprep.subr.bf16.mxu0 %v20763_v12  ;;  %9014 = vmatprep.subr.bf16.mxu1 %v20766_v56  ;;  %v9089_v11 = vld [vmem:[#allocation14 + $0x20] sm:$0xff]  ;;  %v9086_v12 = vld [vmem:[#allocation14 + $0x8] sm:$0xff] }
 0x6e5   : > { %8880 = vmatprep.mubr.bf16.mxu0 %v7166_v15  ;;  %9044 = vmatprep.mubr.bf16.mxu1 %v7166_v15  ;;  %v9090_v56 = vld [vmem:[#allocation14 + $0x28] sm:$0xff] }
 0x6e6   : > { %v20845_v15 = vld [vmem:[#allocation11 + $0x7e0] ss:$16 sps:$4 sm:$0xff]  }
 0x6e7   : > { %8851 = vmatpush1.bf16.msra.mxu0 %v20761_v16  ;;  %9015 = vmatpush1.bf16.msra.mxu1 %v20764_v17  ;;  %v20848_v16 = vld [vmem:[#allocation11 + $0x7e8] ss:$16 sps:$4 sm:$0xff]   ;;  %v18854_v17 = vcombine.high %v9085_v10, %v9089_v11 }
 0x6e8   : > { %8852 = vmatprep.subr.bf16.mxu0 %v20769_v18  ;;  %9016 = vmatprep.subr.bf16.mxu1 %v20772_v19  ;;  %v18856_v18 = vcombine.high %v9086_v12, %v9090_v56  ;;  %v9093_v19 = vld [vmem:[#allocation14 + $0x40] sm:$0xff] }
 0x6eb   : > { %8853 = vmatpush1.bf16.msra.mxu0 %v20767_v21  ;;  %9017 = vmatpush1.bf16.msra.mxu1 %v20770_v26  ;;  %v9097_v21 = vld [vmem:[#allocation14 + $0x60] sm:$0xff]  ;;  %v9094_v26 = vld [vmem:[#allocation14 + $0x48] sm:$0xff] }
 0x6ec   : > { %8854 = vmatprep.subr.bf16.mxu0 %v20775_v38  ;;  %9018 = vmatprep.subr.bf16.mxu1 %v20778_v23  ;;  %v9098_v38 = vld [vmem:[#allocation14 + $0x68] sm:$0xff]  ;;  %v7165_v23 = vpack.c.bf16 %v24149_v2, %v24149_v2 }
 0x6ef   : > { %8855 = vmatpush1.bf16.msra.mxu0 %v20773_v24  ;;  %9019 = vmatpush1.bf16.msra.mxu1 %v20776_v25  ;;  %v18853_v24 = vcombine.low %v9085_v10, %v9089_v11  ;;  %v18855_v25 = vcombine.low %v9086_v12, %v9090_v56 }
 0x6f0   : > { %8856 = vmatprep.subr.bf16.mxu0 %v20781_v27  ;;  %9020 = vmatprep.subr.bf16.mxu1 %v20784_v6  ;;  %v18862_v27 = vcombine.high %v9093_v19, %v9097_v21  ;;  %v18864_v6 = vcombine.high %v9094_v26, %v9098_v38 }
 0x6f3   : > { %8857 = vmatpush1.bf16.msra.mxu0 %v20779_v29  ;;  %9021 = vmatpush1.bf16.msra.mxu1 %v20782_v30  ;;  %v9101_v29 = vld [vmem:[#allocation14 + $0x80] sm:$0xff] }
 0x6f4   : > { %8858 = vmatprep.subr.bf16.mxu0 %v20787_v36  ;;  %9022 = vmatprep.subr.bf16.mxu1 %v20790_v60  ;;  %v9105_v30 = vld [vmem:[#allocation14 + $0xa0] sm:$0xff]  ;;  %v9102_v36 = vld [vmem:[#allocation14 + $0x88] sm:$0xff] }
 0x6f5   : > { %v9106_v60 = vld [vmem:[#allocation14 + $0xa8] sm:$0xff]  ;;  %v18870_v2 = vcombine.high %v9101_v29, %v9105_v30 }
 0x6f7   : > { %8859 = vmatpush1.bf16.msra.mxu0 %v20785_v48  ;;  %9023 = vmatpush1.bf16.msra.mxu1 %v20788_v32  ;;  %v18861_v48 = vcombine.low %v9093_v19, %v9097_v21  ;;  %v18863_v32 = vcombine.low %v9094_v26, %v9098_v38  ;;  %v9154_v21 = vld [vmem:[#allocation14 + $0x228] sm:$0xff] }
 0x6f8   : > { %8860 = vmatprep.subr.bf16.mxu0 %v20793_v33  ;;  %9024 = vmatprep.subr.bf16.mxu1 %v20796_v61  ;;  %v18872_v33 = vcombine.high %v9102_v36, %v9106_v60  ;;  %v9109_v61 = vld [vmem:[#allocation14 + $0xc0] sm:$0xff] }
 0x6fb   : > { %8861 = vmatpush1.bf16.msra.mxu0 %v20791_v35  ;;  %9025 = vmatpush1.bf16.msra.mxu1 %v20794_v54  ;;  %v9113_v35 = vld [vmem:[#allocation14 + $0xe0] sm:$0xff]  ;;  %v9110_v54 = vld [vmem:[#allocation14 + $0xc8] sm:$0xff] }
 0x6fc   : > { %8862 = vmatprep.subr.bf16.mxu0 %v20799_v52  ;;  %9026 = vmatprep.subr.bf16.mxu1 %v20802_v37  ;;  %v9114_v52 = vld [vmem:[#allocation14 + $0xe8] sm:$0xff]  ;;  %v18869_v37 = vcombine.low %v9101_v29, %v9105_v30 }
 0x6fd   : > { %v9162_v29 = vld [vmem:[#allocation14 + $0x268] sm:$0xff] }
 0x6ff   : > { %8863 = vmatpush1.bf16.msra.mxu0 %v20797_v39  ;;  %9027 = vmatpush1.bf16.msra.mxu1 %v20800_v40  ;;  %v18871_v39 = vcombine.low %v9102_v36, %v9106_v60  ;;  %v18878_v40 = vcombine.high %v9109_v61, %v9113_v35 }
 0x700   : > { %8864 = vmatprep.subr.bf16.mxu0 %v20805_v42  ;;  %9028 = vmatprep.subr.bf16.mxu1 %v20808_v43  ;;  %v18880_v42 = vcombine.high %v9110_v54, %v9114_v52  ;;  %v9117_v43 = vld [vmem:[#allocation14 + $0x100] sm:$0xff] }
 0x703   : > { %8865 = vmatpush1.bf16.msra.mxu0 %v20803_v44  ;;  %9029 = vmatpush1.bf16.msra.mxu1 %v20806_v28  ;;  %v9121_v44 = vld [vmem:[#allocation14 + $0x120] sm:$0xff]  ;;  %v9118_v28 = vld [vmem:[#allocation14 + $0x108] sm:$0xff] }
 0x704   : > { %8866 = vmatprep.subr.bf16.mxu0 %v20811_v34  ;;  %9030 = vmatprep.subr.bf16.mxu1 %v20814_v45  ;;  %v9122_v34 = vld [vmem:[#allocation14 + $0x128] sm:$0xff]  ;;  %v18877_v45 = vcombine.low %v9109_v61, %v9113_v35 }
 0x705   : > { %v9170_v61 = vld [vmem:[#allocation14 + $0x2a8] sm:$0xff] }
 0x707   : > { %8867 = vmatpush1.bf16.msra.mxu0 %v20809_v49  ;;  %9031 = vmatpush1.bf16.msra.mxu1 %v20812_v63  ;;  %v18879_v49 = vcombine.low %v9110_v54, %v9114_v52  ;;  %v18886_v63 = vcombine.high %v9117_v43, %v9121_v44 }
 0x708   : > { %8868 = vmatprep.subr.bf16.mxu0 %v20817_v47  ;;  %9032 = vmatprep.subr.bf16.mxu1 %v20820_v13  ;;  %v18888_v47 = vcombine.high %v9118_v28, %v9122_v34  ;;  %v9125_v13 = vld [vmem:[#allocation14 + $0x140] sm:$0xff] }
 0x70b   : > { %8869 = vmatpush1.bf16.msra.mxu0 %v20815_v7  ;;  %9033 = vmatpush1.bf16.msra.mxu1 %v20818_v51  ;;  %v9129_v7 = vld [vmem:[#allocation14 + $0x160] sm:$0xff]  ;;  %v9126_v51 = vld [vmem:[#allocation14 + $0x148] sm:$0xff] }
 0x70c   : > { %8870 = vmatprep.subr.bf16.mxu0 %v20823_v53  ;;  %9034 = vmatprep.subr.bf16.mxu1 %v20826_v22  ;;  %v9130_v53 = vld [vmem:[#allocation14 + $0x168] sm:$0xff]  ;;  %v18885_v22 = vcombine.low %v9117_v43, %v9121_v44 }
 0x70d   : > { %v9178_v43 = vld [vmem:[#allocation14 + $0x2e8] sm:$0xff] }
 0x70f   : > { %8871 = vmatpush1.bf16.msra.mxu0 %v20821_v20  ;;  %9035 = vmatpush1.bf16.msra.mxu1 %v20824_v55  ;;  %v18887_v20 = vcombine.low %v9118_v28, %v9122_v34  ;;  %v18894_v55 = vcombine.high %v9125_v13, %v9129_v7 }
 0x710   : > { %8872 = vmatprep.subr.bf16.mxu0 %v20829_v9  ;;  %9036 = vmatprep.subr.bf16.mxu1 %v20832_v57  ;;  %v18896_v9 = vcombine.high %v9126_v51, %v9130_v53  ;;  %v9133_v57 = vld [vmem:[#allocation14 + $0x180] sm:$0xff] }
 0x713   : > { %8873 = vmatpush1.bf16.msra.mxu0 %v20827_v58  ;;  %9037 = vmatpush1.bf16.msra.mxu1 %v20830_v59  ;;  %v9137_v58 = vld [vmem:[#allocation14 + $0x1a0] sm:$0xff]  ;;  %v9134_v59 = vld [vmem:[#allocation14 + $0x188] sm:$0xff] }
 0x714   : > { %8874 = vmatprep.subr.bf16.mxu0 %v20835_v62  ;;  %9038 = vmatprep.subr.bf16.mxu1 %v20838_v0  ;;  %v9138_v62 = vld [vmem:[#allocation14 + $0x1a8] sm:$0xff]  ;;  %v18893_v0 = vcombine.low %v9125_v13, %v9129_v7 }
 0x715   : > { %v18903_v10 = vcombine.low %v9134_v59, %v9138_v62  ;;  %v9186_v13 = vld [vmem:[#allocation14 + $0x328] sm:$0xff] }
 0x717   : > { %8875 = vmatpush1.bf16.msra.mxu0 %v20833_v1  ;;  %9039 = vmatpush1.bf16.msra.mxu1 %v20836_v31  ;;  %v18895_v1 = vcombine.low %v9126_v51, %v9130_v53  ;;  %v18902_v31 = vcombine.high %v9133_v57, %v9137_v58 }
 0x718   : > { %8876 = vmatprep.subr.bf16.mxu0 %v20841_v3  ;;  %9040 = vmatprep.subr.bf16.mxu1 %v20844_v4  ;;  %v18904_v3 = vcombine.high %v9134_v59, %v9138_v62  ;;  %v9141_v4 = vld [vmem:[#allocation14 + $0x1c0] sm:$0xff] }
 0x71b   : > { %8877 = vmatpush1.bf16.msra.mxu0 %v20839_v5  ;;  %9041 = vmatpush1.bf16.msra.mxu1 %v20842_v46  ;;  %v9145_v5 = vld [vmem:[#allocation14 + $0x1e0] sm:$0xff]  ;;  %v9142_v46 = vld [vmem:[#allocation14 + $0x1c8] sm:$0xff] }
 0x71c   : > { %8878 = vmatprep.subr.bf16.mxu0 %v20847_v8  ;;  %9042 = vmatprep.subr.bf16.mxu1 %v20850_v14  ;;  %v9146_v8 = vld [vmem:[#allocation14 + $0x1e8] sm:$0xff]  ;;  %v18901_v14 = vcombine.low %v9133_v57, %v9137_v58  ;;  %v18910_v11 = vcombine.high %v9141_v4, %v9145_v5  ;;  %v18909_v56 = vcombine.low %v9141_v4, %v9145_v5 }
 0x71d   : > { %v18912_v12 = vcombine.high %v9142_v46, %v9146_v8  ;;  %v9194_v57 = vld [vmem:[#allocation14 + $0x368] sm:$0xff] }
 0x71e   : > { %v9202_v4 = vld [vmem:[#allocation14 + $0x3a8] sm:$0xff] }
 0x71f   : > { %8879 = vmatpush1.bf16.msra.mxu0 %v20845_v15  ;;  %9043 = vmatpush1.bf16.msra.mxu1 %v20848_v16  ;;  %v18911_v15 = vcombine.low %v9142_v46, %v9146_v8  ;;  %v9149_v16 = vld [vmem:[#allocation14 + $0x200] sm:$0xff] }
 0x720   : > { %10663 = vmatprep.subr.bf16.mxu0 %v18854_v17  ;;  %10745 = vmatprep.subr.bf16.mxu1 %v18856_v18  ;;  %v9153_v17 = vld [vmem:[#allocation14 + $0x220] sm:$0xff]  ;;  %v9150_v18 = vld [vmem:[#allocation14 + $0x208] sm:$0xff] }
 0x721   : > { %v18918_v19 = vcombine.high %v9149_v16, %v9153_v17  ;;  %v18917_v26 = vcombine.low %v9149_v16, %v9153_v17  ;;  %v18919_v38 = vcombine.low %v9150_v18, %v9154_v21 }
 0x722   : > { %8881 = vmatmul.mubr.bf16.vlgmr.msra.gmra.mrb[0].mxu0 %v7165_v23  ;;  %9045 = vmatmul.mubr.bf16.vlgmr.msra.gmra.mrb[0].mxu1 %v7165_v23  ;;  %v18920_v23 = vcombine.high %v9150_v18, %v9154_v21  ;;  %v24157_v18 = vld [vmem:[#allocation14 + $0x400] sm:$0xff]  ;;  %v24161_v21 = vld [vmem:[#allocation14 + $0x408] sm:$0xff] }
 0x723   : > { %10664 = vmatpush1.bf16.msra.mxu0 %v18853_v24  ;;  %10746 = vmatpush1.bf16.msra.mxu1 %v18855_v25  ;;  %v9157_v24 = vld [vmem:[#allocation14 + $0x240] sm:$0xff] }
 0x724   : > { %10665 = vmatprep.subr.bf16.mxu0 %v18862_v27  ;;  %10747 = vmatprep.subr.bf16.mxu1 %v18864_v6  ;;  %v9161_v25 = vld [vmem:[#allocation14 + $0x260] sm:$0xff]  ;;  %v9158_v27 = vld [vmem:[#allocation14 + $0x248] sm:$0xff] }
 0x725   : > { %v18926_v6 = vcombine.high %v9157_v24, %v9161_v25  ;;  %v18925_v30 = vcombine.low %v9157_v24, %v9161_v25  ;;  %v18927_v36 = vcombine.low %v9158_v27, %v9162_v29  ;;  %v18928_v60 = vcombine.high %v9158_v27, %v9162_v29 }
 0x726   : > { %v7427_v27 = vsub.s32 0, %v23167_v41  ;;  %v7431_v29 = vsub.s32 1, %v23167_v41 }
 0x727   : > { %10666 = vmatpush1.bf16.msra.mxu0 %v18861_v48  ;;  %10748 = vmatpush1.bf16.msra.mxu1 %v18863_v32  ;;  %v9165_v48 = vld [vmem:[#allocation14 + $0x280] sm:$0xff] }
 0x728   : > { %10667 = vmatprep.subr.bf16.mxu0 %v18870_v2  ;;  %10749 = vmatprep.subr.bf16.mxu1 %v18872_v33  ;;  %v9169_v32 = vld [vmem:[#allocation14 + $0x2a0] sm:$0xff]  ;;  %v9166_v2 = vld [vmem:[#allocation14 + $0x288] sm:$0xff] }
 0x729   : > { %v18934_v33 = vcombine.high %v9165_v48, %v9169_v32  ;;  %v18933_v35 = vcombine.low %v9165_v48, %v9169_v32  ;;  %v18935_v54 = vcombine.low %v9166_v2, %v9170_v61  ;;  %v18936_v52 = vcombine.high %v9166_v2, %v9170_v61 }
 0x72b   : > { %10668 = vmatpush1.bf16.msra.mxu0 %v18869_v37  ;;  %10750 = vmatpush1.bf16.msra.mxu1 %v18871_v39  ;;  %v9173_v37 = vld [vmem:[#allocation14 + $0x2c0] sm:$0xff] }
 0x72c   : > { %10669 = vmatprep.subr.bf16.mxu0 %v18878_v40  ;;  %10751 = vmatprep.subr.bf16.mxu1 %v18880_v42  ;;  %v9177_v39 = vld [vmem:[#allocation14 + $0x2e0] sm:$0xff]  ;;  %v9174_v40 = vld [vmem:[#allocation14 + $0x2c8] sm:$0xff] }
 0x72d   : > { %v18942_v42 = vcombine.high %v9173_v37, %v9177_v39  ;;  %v18941_v44 = vcombine.low %v9173_v37, %v9177_v39  ;;  %v18943_v28 = vcombine.low %v9174_v40, %v9178_v43  ;;  %v18944_v34 = vcombine.high %v9174_v40, %v9178_v43 }
 0x72f   : > { %10670 = vmatpush1.bf16.msra.mxu0 %v18877_v45  ;;  %10752 = vmatpush1.bf16.msra.mxu1 %v18879_v49  ;;  %v9181_v45 = vld [vmem:[#allocation14 + $0x300] sm:$0xff] }
 0x730   : > { %10671 = vmatprep.subr.bf16.mxu0 %v18886_v63  ;;  %10753 = vmatprep.subr.bf16.mxu1 %v18888_v47  ;;  %v9185_v49 = vld [vmem:[#allocation14 + $0x320] sm:$0xff]  ;;  %v9182_v63 = vld [vmem:[#allocation14 + $0x308] sm:$0xff] }
 0x731   : > { %v18950_v47 = vcombine.high %v9181_v45, %v9185_v49  ;;  %v18949_v7 = vcombine.low %v9181_v45, %v9185_v49  ;;  %v18951_v51 = vcombine.low %v9182_v63, %v9186_v13  ;;  %v18952_v53 = vcombine.high %v9182_v63, %v9186_v13 }
 0x733   : > { %10672 = vmatpush1.bf16.msra.mxu0 %v18885_v22  ;;  %10754 = vmatpush1.bf16.msra.mxu1 %v18887_v20  ;;  %v9189_v22 = vld [vmem:[#allocation14 + $0x340] sm:$0xff] }
 0x734   : > { %10673 = vmatprep.subr.bf16.mxu0 %v18894_v55  ;;  %10755 = vmatprep.subr.bf16.mxu1 %v18896_v9  ;;  %v9193_v20 = vld [vmem:[#allocation14 + $0x360] sm:$0xff]  ;;  %v9190_v55 = vld [vmem:[#allocation14 + $0x348] sm:$0xff] }
 0x735   : > { %v18958_v9 = vcombine.high %v9189_v22, %v9193_v20  ;;  %v18957_v58 = vcombine.low %v9189_v22, %v9193_v20  ;;  %v18959_v59 = vcombine.low %v9190_v55, %v9194_v57  ;;  %v18960_v62 = vcombine.high %v9190_v55, %v9194_v57  ;;  %v9221_v55 = vld [vmem:[#allocation14 + $0x440] sm:$0xff] }
 0x736   : > { %v9225_v57 = vld [vmem:[#allocation14 + $0x460] sm:$0xff] }
 0x737   : > { %10674 = vmatpush1.bf16.msra.mxu0 %v18893_v0  ;;  %10756 = vmatpush1.bf16.msra.mxu1 %v18895_v1  ;;  %v9197_v0 = vld [vmem:[#allocation14 + $0x380] sm:$0xff] }
 0x738   : > { %10675 = vmatprep.subr.bf16.mxu0 %v18902_v31  ;;  %10757 = vmatprep.subr.bf16.mxu1 %v18904_v3  ;;  %v9201_v1 = vld [vmem:[#allocation14 + $0x3a0] sm:$0xff]  ;;  %v9198_v31 = vld [vmem:[#allocation14 + $0x388] sm:$0xff] }
 0x739   : > { %v18966_v3 = vcombine.high %v9197_v0, %v9201_v1  ;;  %v18965_v5 = vcombine.low %v9197_v0, %v9201_v1  ;;  %v18967_v46 = vcombine.low %v9198_v31, %v9202_v4  ;;  %v18968_v8 = vcombine.high %v9198_v31, %v9202_v4  ;;  %v9229_v1 = vld [vmem:[#allocation14 + $0x480] sm:$0xff] }
 0x73a   : > { %v18990_v31 = vcombine.high %v9221_v55, %v9225_v57  ;;  %v9233_v4 = vld [vmem:[#allocation14 + $0x4a0] sm:$0xff] }
 0x73b   : > { %10676 = vmatpush1.bf16.msra.mxu0 %v18901_v14  ;;  %10758 = vmatpush1.bf16.msra.mxu1 %v18903_v10  ;;  %v9205_v14 = vld [vmem:[#allocation14 + $0x3c0] sm:$0xff] }
 0x73c   : > { %10677 = vmatprep.subr.bf16.mxu0 %v18910_v11  ;;  %10759 = vmatprep.subr.bf16.mxu1 %v18912_v12  ;;  %v9209_v10 = vld [vmem:[#allocation14 + $0x3e0] sm:$0xff]  ;;  %v9206_v11 = vld [vmem:[#allocation14 + $0x3c8] sm:$0xff] }
 0x73d   : > { %v18974_v12 = vcombine.high %v9205_v14, %v9209_v10 }
 0x73f   : > { %10678 = vmatpush1.bf16.msra.mxu0 %v18909_v56  ;;  %10760 = vmatpush1.bf16.msra.mxu1 %v18911_v15  ;;  %v9210_v56 = vld [vmem:[#allocation14 + $0x3e8] sm:$0xff]  ;;  %v18973_v15 = vcombine.low %v9205_v14, %v9209_v10  ;;  %v18989_v14 = vcombine.low %v9221_v55, %v9225_v57 }
 0x740   : > { %10679 = vmatprep.subr.bf16.mxu0 %v18918_v19  ;;  %10761 = vmatprep.subr.bf16.mxu1 %v18920_v23  ;;  %v18975_v16 = vcombine.low %v9206_v11, %v9210_v56  ;;  %v18976_v17 = vcombine.high %v9206_v11, %v9210_v56  ;;  %v24159_v19 = vld [vmem:[#allocation14 + $0x420] sm:$0xff]  ;;  %v18998_v11 = vcombine.high %v9229_v1, %v9233_v4 }
 0x741   : > { %v18981_v23 = vcombine.low %v24157_v18, %v24159_v19  ;;  %v9237_v56 = vld [vmem:[#allocation14 + $0x4c0] sm:$0xff] }
 0x743   : > { %10680 = vmatpush1.bf16.msra.mxu0 %v18917_v26  ;;  %10762 = vmatpush1.bf16.msra.mxu1 %v18919_v38  ;;  %v18982_v26 = vcombine.high %v24157_v18, %v24159_v19  ;;  %v24165_v38 = vld [vmem:[#allocation14 + $0x428] sm:$0xff]  ;;  %v18997_v18 = vcombine.low %v9229_v1, %v9233_v4 }
 0x744   : > { %10681 = vmatprep.subr.bf16.mxu0 %v18926_v6  ;;  %10763 = vmatprep.subr.bf16.mxu1 %v18928_v60  ;;  %v18983_v24 = vcombine.low %v24161_v21, %v24165_v38  ;;  %v18984_v25 = vcombine.high %v24161_v21, %v24165_v38  ;;  %v24174_v6 = vld [vmem:[#allocation12] sm:$0xf]  ;;  %v9245_v38 = vld [vmem:[#allocation14 + $0x500] sm:$0xff]  ;;  %v9278_v1 = vld [vmem:[#allocation14 + $0x608] sm:$0xff] }
 0x745   : > { %v7432_v60 = vrot.slane %v24174_v6, %v7431_v29 }
 0x747   : > { %10682 = vmatpush1.bf16.msra.mxu0 %v18925_v30  ;;  %10764 = vmatpush1.bf16.msra.mxu1 %v18927_v36  ;;  %v7439_v30 = vsub.s32 3, %v23167_v41  ;;  %v7428_v36 = vrot.slane %v24174_v6, %v7427_v27 }
 0x748   : > { %10683 = vmatprep.subr.bf16.mxu0 %v18934_v33  ;;  %10765 = vmatprep.subr.bf16.mxu1 %v18936_v52 }
 0x749   : > { %v7440_v48 = vrot.slane %v24174_v6, %v7439_v30 }
 0x74b   : > { %10684 = vmatpush1.bf16.msra.mxu0 %v18933_v35  ;;  %10766 = vmatpush1.bf16.msra.mxu1 %v18935_v54 }
 0x74c   : > { %10685 = vmatprep.subr.bf16.mxu0 %v18942_v42  ;;  %10767 = vmatprep.subr.bf16.mxu1 %v18944_v34 }
 0x74f   : > { %10686 = vmatpush1.bf16.msra.mxu0 %v18941_v44  ;;  %10768 = vmatpush1.bf16.msra.mxu1 %v18943_v28 }
 0x750   : > { %10687 = vmatprep.subr.bf16.mxu0 %v18950_v47  ;;  %10769 = vmatprep.subr.bf16.mxu1 %v18952_v53 }
 0x753   : > { %10688 = vmatpush1.bf16.msra.mxu0 %v18949_v7  ;;  %10770 = vmatpush1.bf16.msra.mxu1 %v18951_v51 }
 0x754   : > { %10689 = vmatprep.subr.bf16.mxu0 %v18958_v9  ;;  %10771 = vmatprep.subr.bf16.mxu1 %v18960_v62 }
 0x757   : > { %10690 = vmatpush1.bf16.msra.mxu0 %v18957_v58  ;;  %10772 = vmatpush1.bf16.msra.mxu1 %v18959_v59  ;;  %v9222_v58 = vld [vmem:[#allocation14 + $0x448] sm:$0xff] }
 0x758   : > { %10691 = vmatprep.subr.bf16.mxu0 %v18966_v3  ;;  %10773 = vmatprep.subr.bf16.mxu1 %v18968_v8  ;;  %v9226_v59 = vld [vmem:[#allocation14 + $0x468] sm:$0xff] }
 0x759   : > { %v18992_v3 = vcombine.high %v9222_v58, %v9226_v59  ;;  %v18991_v10 = vcombine.low %v9222_v58, %v9226_v59  ;;  %v9277_v58 = vld [vmem:[#allocation14 + $0x600] sm:$0xff] }
 0x75a   : > { %v9281_v59 = vld [vmem:[#allocation14 + $0x620] sm:$0xff] }
 0x75b   : > { %10692 = vmatpush1.bf16.msra.mxu0 %v18965_v5  ;;  %10774 = vmatpush1.bf16.msra.mxu1 %v18967_v46  ;;  %v9230_v5 = vld [vmem:[#allocation14 + $0x488] sm:$0xff] }
 0x75c   : > { %10693 = vmatprep.subr.bf16.mxu0 %v18974_v12  ;;  %10775 = vmatprep.subr.bf16.mxu1 %v18976_v17  ;;  %v9234_v46 = vld [vmem:[#allocation14 + $0x4a8] sm:$0xff] }
 0x75d   : > { %v19000_v12 = vcombine.high %v9230_v5, %v9234_v46  ;;  %v9242_v17 = vld [vmem:[#allocation14 + $0x4e8] sm:$0xff]  ;;  %v18999_v19 = vcombine.low %v9230_v5, %v9234_v46 }
 0x75f   : > { %10694 = vmatpush1.bf16.msra.mxu0 %v18973_v15  ;;  %10776 = vmatpush1.bf16.msra.mxu1 %v18975_v16  ;;  %v9241_v15 = vld [vmem:[#allocation14 + $0x4e0] sm:$0xff]  ;;  %v9238_v16 = vld [vmem:[#allocation14 + $0x4c8] sm:$0xff] }
 0x760   : > { %10704 = vmatprep.subr.bf16.mxu0 %v18982_v26  ;;  %10786 = vmatprep.subr.bf16.mxu1 %v18984_v25  ;;  %v19006_v21 = vcombine.high %v9237_v56, %v9241_v15  ;;  %v19008_v26 = vcombine.high %v9238_v16, %v9242_v17  ;;  %v9250_v25 = vld [vmem:[#allocation14 + $0x528] sm:$0xff] }
 0x7f5   : > { %v8882_v32 = vpop.f32.mrb[0].mxu0  ;;  %v24187_v2 = vpop.f32.mrb[0].mxu1 }
 0x7f6   : > { %v20136_v33 = vadd.f32 %v8882_v32, %v7428_v36  ;;  %v8884_v61 = vpop.f32.mrb[1].mxu0  ;;  %v9048_v35 = vpop.f32.mrb[1].mxu1  ;;  %v19005_v36 = vcombine.low %v9237_v56, %v9241_v15  ;;  %v19045_v56 = vcombine.low %v9277_v58, %v9281_v59 }
 0x7f7   : > { %v20137_v54 = vadd.f32 %v8884_v61, %v7432_v60  ;;  %v20139_v52 = vadd.f32 %v9048_v35, %v7440_v48  ;;  %v8886_v37 = vpop.f32.mrb[2].mxu0  ;;  %v9050_v39 = vpop.f32.mrb[2].mxu1  ;;  %v19007_v60 = vcombine.low %v9238_v16, %v9242_v17  ;;  %v9257_v61 = vld [vmem:[#allocation14 + $0x560] sm:$0xff]  ;;  %v9254_v35 = vld [vmem:[#allocation14 + $0x548] sm:$0xff] }
 0x7f8   : > { %v18849_v40 = vmul.f32 -1.442695, %v20136_v33  ;;  %v8887_v42 = vpop.f32.mrb[3].mxu0  ;;  %v9051_v43 = vpop.f32.mrb[3].mxu1 }
 0x7f9   : > { %v18850_v44 = vmul.f32 -1.442695, %v20137_v54  ;;  %v18852_v28 = vmul.f32 -1.442695, %v20139_v52  ;;  %v9261_v43 = vld [vmem:[#allocation14 + $0x580] sm:$0xff] }
 0x7fa   : > { %20859 = vpow2.f32 %v18849_v40 }
 0x7fb   : > { %20861 = vpow2.f32 %v18850_v44  ;;  %v9265_v44 = vld [vmem:[#allocation14 + $0x5a0] sm:$0xff] }
 0x7fc   : > { %20863 = vpow2.f32 %v18852_v28  ;;  %v9262_v28 = vld [vmem:[#allocation14 + $0x588] sm:$0xff]  ;;  %v19029_v55 = vcombine.low %v9261_v43, %v9265_v44 }
 0x804   : > { %v20860_v34 = vpop.eup %20859 }
 0x805   : > { %v9065_v45 = vadd.f32 1.0, %v20860_v34  ;;  %v20862_v49 = vpop.eup %20861  ;;  %v9266_v34 = vld [vmem:[#allocation14 + $0x5a8] sm:$0xff] }
 0x806   : > { %v20864_v63 = vpop.eup %20863  ;;  %v9066_v47 = vadd.f32 1.0, %v20862_v49 }
 0x807   : > { %20865 = vrcp.f32 %v9065_v45  ;;  %v9068_v13 = vadd.f32 1.0, %v20864_v63 }
 0x808   : > { %20867 = vrcp.f32 %v9066_v47  ;;  %v19030_v47 = vcombine.high %v9261_v43, %v9265_v44  ;;  %v9314_v43 = vld [vmem:[#allocation14 + $0x728] sm:$0xff] }
 0x809   : > { %20869 = vrcp.f32 %v9068_v13  ;;  %v19032_v13 = vcombine.high %v9262_v28, %v9266_v34 }
 0x811   : > { %v20866_v7 = vpop.eup %20865 }
 0x812   : > { %v20868_v51 = vpop.eup %20867  ;;  %v9077_v53 = vmul.f32 %v20866_v7, %v20136_v33  ;;  %v9253_v33 = vld [vmem:[#allocation14 + $0x540] sm:$0xff] }
 0x813   : > { %v20870_v22 = vpop.eup %20869  ;;  %v9078_v20 = vmul.f32 %v20868_v51, %v20137_v54  ;;  %v9258_v54 = vld [vmem:[#allocation14 + $0x568] sm:$0xff]  ;;  %v19022_v40 = vcombine.high %v9253_v33, %v9257_v61  ;;  %v19021_v49 = vcombine.low %v9253_v33, %v9257_v61  ;;  %v9269_v7 = vld [vmem:[#allocation14 + $0x5c0] sm:$0xff] }
 0x814   : > { %v9080_v9 = vmul.f32 %v20870_v22, %v20139_v52  ;;  %v24191_v0 = vpack.c.bf16 %v9077_v53, %v9077_v53  ;;  %v7435_v52 = vsub.s32 2, %v23167_v41  ;;  %v19024_v42 = vcombine.high %v9254_v35, %v9258_v54  ;;  %v9273_v51 = vld [vmem:[#allocation14 + $0x5e0] sm:$0xff]  ;;  %v9270_v53 = vld [vmem:[#allocation14 + $0x5c8] sm:$0xff] }
 0x815   : > { %v24189_v62 = vpack.c.bf16 %v9078_v20, %v9078_v20  ;;  %v19023_v63 = vcombine.low %v9254_v35, %v9258_v54  ;;  %v9274_v22 = vld [vmem:[#allocation14 + $0x5e8] sm:$0xff]  ;;  %v19037_v4 = vcombine.low %v9269_v7, %v9273_v51 }
 0x816   : > { %v24195_v8 = vpack.c.bf16 %v9080_v9, %v9080_v9  ;;  %v7436_v45 = vrot.slane %v24174_v6, %v7435_v52  ;;  %v19031_v9 = vcombine.low %v9262_v28, %v9266_v34  ;;  %v19038_v6 = vcombine.high %v9269_v7, %v9273_v51  ;;  %v9322_v7 = vld [vmem:[#allocation14 + $0x768] sm:$0xff] }
 0x817   : > { %10695 = vmatprep.mubr.bf16.mxu0 %v24189_v62  ;;  %10777 = vmatprep.mubr.bf16.mxu1 %v24189_v62  ;;  %v19040_v57 = vcombine.high %v9270_v53, %v9274_v22  ;;  %v19039_v5 = vcombine.low %v9270_v53, %v9274_v22 }
 0x818   : > { %10696 = vmatmul.mubr.bf16.vlgmr.msra.gmra.mrb[4].mxu0 %v24191_v0  ;;  %10778 = vmatmul.mubr.bf16.vlgmr.msra.gmra.mrb[4].mxu1 %v24191_v0  ;;  %v24206_v20 = vadd.f32 %v24187_v2, %v7436_v45  ;;  %v19046_v2 = vcombine.high %v9277_v58, %v9281_v59  ;;  %v9330_v58 = vld [vmem:[#allocation14 + $0x7a8] sm:$0xff] }
 0x819   : > { %10705 = vmatpush1.bf16.msra.mxu0 %v18981_v23  ;;  %10787 = vmatpush1.bf16.msra.mxu1 %v18983_v24  ;;  %v9249_v23 = vld [vmem:[#allocation14 + $0x520] sm:$0xff]  ;;  %v9246_v24 = vld [vmem:[#allocation14 + $0x508] sm:$0xff] }
 0x81a   : > { %10736 = vmatprep.mubr.bf16.mxu0 %v24195_v8  ;;  %10818 = vmatprep.mubr.bf16.mxu1 %v24195_v8  ;;  %v19014_v48 = vcombine.high %v9245_v38, %v9249_v23  ;;  %v19016_v32 = vcombine.high %v9246_v24, %v9250_v25  ;;  %v19013_v37 = vcombine.low %v9245_v38, %v9249_v23 }
 0x81b   : > { %10706 = vmatprep.subr.bf16.mxu0 %v18990_v31  ;;  %10788 = vmatprep.subr.bf16.mxu1 %v18992_v3  ;;  %v19015_v39 = vcombine.low %v9246_v24, %v9250_v25  ;;  %v9282_v31 = vld [vmem:[#allocation14 + $0x628] sm:$0xff]  ;;  %v18851_v3 = vmul.f32 -1.442695, %v24206_v20 }
 0x81c   : > { %v19048_v46 = vcombine.high %v9278_v1, %v9282_v31  ;;  %v19047_v15 = vcombine.low %v9278_v1, %v9282_v31 }
 0x81d   : > { %10707 = vmatpush1.bf16.msra.mxu0 %v18989_v14  ;;  %10789 = vmatpush1.bf16.msra.mxu1 %v18991_v10  ;;  %v9285_v14 = vld [vmem:[#allocation14 + $0x640] sm:$0xff]  ;;  %20871 = vpow2.f32 %v18851_v3 }
 0x81e   : > { %10708 = vmatprep.subr.bf16.mxu0 %v18998_v11  ;;  %10790 = vmatprep.subr.bf16.mxu1 %v19000_v12  ;;  %v9289_v10 = vld [vmem:[#allocation14 + $0x660] sm:$0xff]  ;;  %v9286_v11 = vld [vmem:[#allocation14 + $0x648] sm:$0xff] }
 0x81f   : > { %v9290_v12 = vld [vmem:[#allocation14 + $0x668] sm:$0xff]  ;;  %v19054_v16 = vcombine.high %v9285_v14, %v9289_v10  ;;  %v19053_v38 = vcombine.low %v9285_v14, %v9289_v10 }
 0x820   : > { %v19056_v17 = vcombine.high %v9286_v11, %v9290_v12  ;;  %v19055_v23 = vcombine.low %v9286_v11, %v9290_v12 }
 0x821   : > { %10709 = vmatpush1.bf16.msra.mxu0 %v18997_v18  ;;  %10791 = vmatpush1.bf16.msra.mxu1 %v18999_v19  ;;  %v9293_v18 = vld [vmem:[#allocation14 + $0x680] sm:$0xff] }
 0x822   : > { %10710 = vmatprep.subr.bf16.mxu0 %v19006_v21  ;;  %10792 = vmatprep.subr.bf16.mxu1 %v19008_v26  ;;  %v9297_v19 = vld [vmem:[#allocation14 + $0x6a0] sm:$0xff]  ;;  %v9294_v21 = vld [vmem:[#allocation14 + $0x688] sm:$0xff] }
 0x823   : > { %v9298_v26 = vld [vmem:[#allocation14 + $0x6a8] sm:$0xff]  ;;  %v19062_v24 = vcombine.high %v9293_v18, %v9297_v19  ;;  %v19061_v33 = vcombine.low %v9293_v18, %v9297_v19  ;;  %v9092_v18 = vld [vmem:[#allocation14 + $0x38] sm:$0xff] }
 0x824   : > { %v19064_v25 = vcombine.high %v9294_v21, %v9298_v26  ;;  %v19063_v61 = vcombine.low %v9294_v21, %v9298_v26 }
 0x825   : > { %10711 = vmatpush1.bf16.msra.mxu0 %v19005_v36  ;;  %10793 = vmatpush1.bf16.msra.mxu1 %v19007_v60  ;;  %v9301_v36 = vld [vmem:[#allocation14 + $0x6c0] sm:$0xff] }
 0x826   : > { %10712 = vmatprep.subr.bf16.mxu0 %v19014_v48  ;;  %10794 = vmatprep.subr.bf16.mxu1 %v19016_v32  ;;  %v9305_v60 = vld [vmem:[#allocation14 + $0x6e0] sm:$0xff]  ;;  %v9302_v48 = vld [vmem:[#allocation14 + $0x6c8] sm:$0xff] }
 0x827   : > { %v9306_v32 = vld [vmem:[#allocation14 + $0x6e8] sm:$0xff]  ;;  %v20872_v35 = vpop.eup %20871  ;;  %v19070_v54 = vcombine.high %v9301_v36, %v9305_v60  ;;  %v19069_v28 = vcombine.low %v9301_v36, %v9305_v60  ;;  %v9096_v36 = vld [vmem:[#allocation14 + $0x58] sm:$0xff] }
 0x828   : > { %v9067_v44 = vadd.f32 1.0, %v20872_v35  ;;  %v19071_v34 = vcombine.low %v9302_v48, %v9306_v32  ;;  %v9100_v60 = vld [vmem:[#allocation14 + $0x78] sm:$0xff] }
 0x829   : > { %10713 = vmatpush1.bf16.msra.mxu0 %v19013_v37  ;;  %10795 = vmatpush1.bf16.msra.mxu1 %v19015_v39  ;;  %v19072_v37 = vcombine.high %v9302_v48, %v9306_v32  ;;  %v9309_v39 = vld [vmem:[#allocation14 + $0x700] sm:$0xff]  ;;  %v18868_v35 = vcombine.high %v9096_v36, %v9100_v60 }
 0x82a   : > { %10714 = vmatprep.subr.bf16.mxu0 %v19022_v40  ;;  %10796 = vmatprep.subr.bf16.mxu1 %v19024_v42  ;;  %v9313_v40 = vld [vmem:[#allocation14 + $0x720] sm:$0xff]  ;;  %v9310_v42 = vld [vmem:[#allocation14 + $0x708] sm:$0xff]  ;;  %20873 = vrcp.f32 %v9067_v44 }
 0x82b   : > { %v19078_v45 = vcombine.high %v9309_v39, %v9313_v40  ;;  %v19077_v51 = vcombine.low %v9309_v39, %v9313_v40  ;;  %v19079_v53 = vcombine.low %v9310_v42, %v9314_v43  ;;  %v9108_v39 = vld [vmem:[#allocation14 + $0xb8] sm:$0xff] }
 0x82d   : > { %10715 = vmatpush1.bf16.msra.mxu0 %v19021_v49  ;;  %10797 = vmatpush1.bf16.msra.mxu1 %v19023_v63  ;;  %v19080_v49 = vcombine.high %v9310_v42, %v9314_v43  ;;  %v9317_v63 = vld [vmem:[#allocation14 + $0x740] sm:$0xff]  ;;  %v18867_v42 = vcombine.low %v9096_v36, %v9100_v60  ;;  %v9155_v36 = vld [vmem:[#allocation14 + $0x230] sm:$0xff]  ;;  %v9152_v60 = vld [vmem:[#allocation14 + $0x218] sm:$0xff] }
 0x82e   : > { %10716 = vmatprep.subr.bf16.mxu0 %v19030_v47  ;;  %10798 = vmatprep.subr.bf16.mxu1 %v19032_v13  ;;  %v9321_v47 = vld [vmem:[#allocation14 + $0x760] sm:$0xff]  ;;  %v9318_v13 = vld [vmem:[#allocation14 + $0x748] sm:$0xff] }
 0x82f   : > { %v19086_v22 = vcombine.high %v9317_v63, %v9321_v47  ;;  %v19085_v59 = vcombine.low %v9317_v63, %v9321_v47  ;;  %v19087_v1 = vcombine.low %v9318_v13, %v9322_v7 }
 0x831   : > { %10717 = vmatpush1.bf16.msra.mxu0 %v19029_v55  ;;  %10799 = vmatpush1.bf16.msra.mxu1 %v19031_v9  ;;  %v19088_v55 = vcombine.high %v9318_v13, %v9322_v7  ;;  %v9325_v9 = vld [vmem:[#allocation14 + $0x780] sm:$0xff] }
 0x832   : > { %10718 = vmatprep.subr.bf16.mxu0 %v19038_v6  ;;  %10800 = vmatprep.subr.bf16.mxu1 %v19040_v57  ;;  %v9329_v6 = vld [vmem:[#allocation14 + $0x7a0] sm:$0xff]  ;;  %v9326_v57 = vld [vmem:[#allocation14 + $0x788] sm:$0xff] }
 0x833   : > { %v19094_v31 = vcombine.high %v9325_v9, %v9329_v6  ;;  %v19096_v3 = vcombine.high %v9326_v57, %v9330_v58  ;;  %v19093_v14 = vcombine.low %v9325_v9, %v9329_v6  ;;  %v19095_v10 = vcombine.low %v9326_v57, %v9330_v58  ;;  %v9127_v58 = vld [vmem:[#allocation14 + $0x150] sm:$0xff] }
 0x835   : > { %10719 = vmatpush1.bf16.msra.mxu0 %v19037_v4  ;;  %10801 = vmatpush1.bf16.msra.mxu1 %v19039_v5  ;;  %v9333_v4 = vld [vmem:[#allocation14 + $0x7c0] sm:$0xff] }
 0x836   : > { %10720 = vmatprep.subr.bf16.mxu0 %v19046_v2  ;;  %10802 = vmatprep.subr.bf16.mxu1 %v19048_v46  ;;  %v9337_v5 = vld [vmem:[#allocation14 + $0x7e0] sm:$0xff]  ;;  %v9334_v2 = vld [vmem:[#allocation14 + $0x7c8] sm:$0xff] }
 0x837   : > { %v9338_v46 = vld [vmem:[#allocation14 + $0x7e8] sm:$0xff]  ;;  %v19102_v11 = vcombine.high %v9333_v4, %v9337_v5  ;;  %v19101_v19 = vcombine.low %v9333_v4, %v9337_v5 }
 0x838   : > { %v19104_v12 = vcombine.high %v9334_v2, %v9338_v46  ;;  %v19103_v21 = vcombine.low %v9334_v2, %v9338_v46  ;;  %v9135_v46 = vld [vmem:[#allocation14 + $0x190] sm:$0xff] }
 0x839   : > { %10721 = vmatpush1.bf16.msra.mxu0 %v19045_v56  ;;  %10803 = vmatpush1.bf16.msra.mxu1 %v19047_v15  ;;  %v9087_v56 = vld [vmem:[#allocation14 + $0x10] sm:$0xff]  ;;  %v20874_v15 = vpop.eup %20873 }
 0x83a   : > { %10722 = vmatprep.subr.bf16.mxu0 %v19054_v16  ;;  %10804 = vmatprep.subr.bf16.mxu1 %v19056_v17  ;;  %v9091_v16 = vld [vmem:[#allocation14 + $0x30] sm:$0xff]  ;;  %v9088_v17 = vld [vmem:[#allocation14 + $0x18] sm:$0xff]  ;;  %v9079_v26 = vmul.f32 %v20874_v15, %v24206_v20 }
 0x83b   : > { %v18857_v48 = vcombine.low %v9087_v56, %v9091_v16  ;;  %v9107_v20 = vld [vmem:[#allocation14 + $0xb0] sm:$0xff] }
 0x83c   : > { %v24210_v32 = vpack.c.bf16 %v9079_v26, %v9079_v26 }
 0x83d   : > { %10723 = vmatpush1.bf16.msra.mxu0 %v19053_v38  ;;  %10805 = vmatpush1.bf16.msra.mxu1 %v19055_v23  ;;  %v18858_v38 = vcombine.high %v9087_v56, %v9091_v16  ;;  %v18860_v23 = vcombine.high %v9088_v17, %v9092_v18 }
 0x83e   : > { %10724 = vmatprep.subr.bf16.mxu0 %v19062_v24  ;;  %10806 = vmatprep.subr.bf16.mxu1 %v19064_v25  ;;  %v9095_v24 = vld [vmem:[#allocation14 + $0x50] sm:$0xff] }
 0x83f   : > { %v9099_v25 = vld [vmem:[#allocation14 + $0x70] sm:$0xff] }
 0x840   : > { %v18865_v40 = vcombine.low %v9095_v24, %v9099_v25 }
 0x841   : > { %10725 = vmatpush1.bf16.msra.mxu0 %v19061_v33  ;;  %10807 = vmatpush1.bf16.msra.mxu1 %v19063_v61  ;;  %v18859_v33 = vcombine.low %v9088_v17, %v9092_v18  ;;  %v18866_v61 = vcombine.high %v9095_v24, %v9099_v25  ;;  %v9143_v17 = vld [vmem:[#allocation14 + $0x1d0] sm:$0xff] }
 0x842   : > { %10726 = vmatprep.subr.bf16.mxu0 %v19070_v54  ;;  %10808 = vmatprep.subr.bf16.mxu1 %v19072_v37  ;;  %v9103_v54 = vld [vmem:[#allocation14 + $0x90] sm:$0xff]  ;;  %v9104_v37 = vld [vmem:[#allocation14 + $0x98] sm:$0xff] }
 0x843   : > { %v18874_v43 = vcombine.high %v9103_v54, %v9107_v20  ;;  %v18876_v44 = vcombine.high %v9104_v37, %v9108_v39  ;;  %v18873_v63 = vcombine.low %v9103_v54, %v9107_v20  ;;  %v18875_v47 = vcombine.low %v9104_v37, %v9108_v39  ;;  %v9147_v18 = vld [vmem:[#allocation14 + $0x1f0] sm:$0xff]  ;;  %v9160_v39 = vld [vmem:[#allocation14 + $0x258] sm:$0xff] }
 0x844   : > { %v9151_v25 = vld [vmem:[#allocation14 + $0x210] sm:$0xff] }
 0x845   : > { %10727 = vmatpush1.bf16.msra.mxu0 %v19069_v28  ;;  %10809 = vmatpush1.bf16.msra.mxu1 %v19071_v34  ;;  %v9111_v28 = vld [vmem:[#allocation14 + $0xd0] sm:$0xff] }
 0x846   : > { %10728 = vmatprep.subr.bf16.mxu0 %v19078_v45  ;;  %10810 = vmatprep.subr.bf16.mxu1 %v19080_v49  ;;  %v9115_v34 = vld [vmem:[#allocation14 + $0xf0] sm:$0xff]  ;;  %v9112_v45 = vld [vmem:[#allocation14 + $0xd8] sm:$0xff] }
 0x847   : > { %v9116_v49 = vld [vmem:[#allocation14 + $0xf8] sm:$0xff]  ;;  %v18882_v13 = vcombine.high %v9111_v28, %v9115_v34  ;;  %v9159_v20 = vld [vmem:[#allocation14 + $0x250] sm:$0xff] }
 0x848   : > { %v18884_v7 = vcombine.high %v9112_v45, %v9116_v49  ;;  %v18883_v9 = vcombine.low %v9112_v45, %v9116_v49  ;;  %v9163_v37 = vld [vmem:[#allocation14 + $0x270] sm:$0xff]  ;;  %v9168_v49 = vld [vmem:[#allocation14 + $0x298] sm:$0xff] }
 0x849   : > { %10729 = vmatpush1.bf16.msra.mxu0 %v19077_v51  ;;  %10811 = vmatpush1.bf16.msra.mxu1 %v19079_v53  ;;  %v9119_v51 = vld [vmem:[#allocation14 + $0x110] sm:$0xff] }
 0x84a   : > { %10730 = vmatprep.subr.bf16.mxu0 %v19086_v22  ;;  %10812 = vmatprep.subr.bf16.mxu1 %v19088_v55  ;;  %v9123_v53 = vld [vmem:[#allocation14 + $0x130] sm:$0xff]  ;;  %v9124_v22 = vld [vmem:[#allocation14 + $0x138] sm:$0xff]  ;;  %v18881_v55 = vcombine.low %v9111_v28, %v9115_v34 }
 0x84b   : > { %v18890_v6 = vcombine.high %v9119_v51, %v9123_v53  ;;  %v9167_v34 = vld [vmem:[#allocation14 + $0x290] sm:$0xff] }
 0x84c   : > { %v9171_v45 = vld [vmem:[#allocation14 + $0x2b0] sm:$0xff] }
 0x84d   : > { %10731 = vmatpush1.bf16.msra.mxu0 %v19085_v59  ;;  %10813 = vmatpush1.bf16.msra.mxu1 %v19087_v1  ;;  %v9131_v59 = vld [vmem:[#allocation14 + $0x170] sm:$0xff]  ;;  %v9128_v1 = vld [vmem:[#allocation14 + $0x158] sm:$0xff] }
 0x84e   : > { %10732 = vmatprep.subr.bf16.mxu0 %v19094_v31  ;;  %10814 = vmatprep.subr.bf16.mxu1 %v19096_v3  ;;  %v9132_v31 = vld [vmem:[#allocation14 + $0x178] sm:$0xff]  ;;  %v18889_v3 = vcombine.low %v9119_v51, %v9123_v53  ;;  %v18898_v5 = vcombine.high %v9127_v58, %v9131_v59  ;;  %v9175_v53 = vld [vmem:[#allocation14 + $0x2d0] sm:$0xff] }
 0x84f   : > { %v18900_v2 = vcombine.high %v9128_v1, %v9132_v31  ;;  %v18899_v56 = vcombine.low %v9128_v1, %v9132_v31  ;;  %v9187_v1 = vld [vmem:[#allocation14 + $0x330] sm:$0xff]  ;;  %v9184_v31 = vld [vmem:[#allocation14 + $0x318] sm:$0xff] }
 0x851   : > { %10733 = vmatpush1.bf16.msra.mxu0 %v19093_v14  ;;  %10815 = vmatpush1.bf16.msra.mxu1 %v19095_v10  ;;  %v9139_v14 = vld [vmem:[#allocation14 + $0x1b0] sm:$0xff]  ;;  %v9136_v10 = vld [vmem:[#allocation14 + $0x198] sm:$0xff] }
 0x852   : > { %10734 = vmatprep.subr.bf16.mxu0 %v19102_v11  ;;  %10816 = vmatprep.subr.bf16.mxu1 %v19104_v12  ;;  %v9140_v11 = vld [vmem:[#allocation14 + $0x1b8] sm:$0xff]  ;;  %v18897_v12 = vcombine.low %v9127_v58, %v9131_v59  ;;  %v18906_v15 = vcombine.high %v9135_v46, %v9139_v14  ;;  %v18905_v26 = vcombine.low %v9135_v46, %v9139_v14  ;;  %v9183_v59 = vld [vmem:[#allocation14 + $0x310] sm:$0xff] }
 0x853   : > { %v18908_v16 = vcombine.high %v9136_v10, %v9140_v11  ;;  %v9191_v14 = vld [vmem:[#allocation14 + $0x350] sm:$0xff] }
 0x855   : > { %10735 = vmatpush1.bf16.msra.mxu0 %v19101_v19  ;;  %10817 = vmatpush1.bf16.msra.mxu1 %v19103_v21  ;;  %v9144_v19 = vld [vmem:[#allocation14 + $0x1d8] sm:$0xff] }
 0x856   : > { %10827 = vmatprep.subr.bf16.mxu0 %v18858_v38  ;;  %10909 = vmatprep.subr.bf16.mxu1 %v18860_v23  ;;  %v9148_v21 = vld [vmem:[#allocation14 + $0x1f8] sm:$0xff]  ;;  %v18907_v38 = vcombine.low %v9136_v10, %v9140_v11  ;;  %v18914_v23 = vcombine.high %v9143_v17, %v9147_v18  ;;  %v9195_v10 = vld [vmem:[#allocation14 + $0x370] sm:$0xff] }
 0x857   : > { %v18916_v24 = vcombine.high %v9144_v19, %v9148_v21  ;;  %v9192_v11 = vld [vmem:[#allocation14 + $0x358] sm:$0xff] }
 0x858   : > { %10737 = vmatmul.mubr.bf16.vlgmr.msra.gmra.mrb[4].mxu0 %v24210_v32  ;;  %10819 = vmatmul.mubr.bf16.vlgmr.msra.gmra.mrb[4].mxu1 %v24210_v32 }
 0x859   : > { %10828 = vmatpush1.bf16.msra.mxu0 %v18857_v48  ;;  %10859 = vmatprep.mubr.bf16.mxu0 %v24189_v62  ;;  %v9156_v48 = vld [vmem:[#allocation14 + $0x238] sm:$0xff] }
 0x85a   : > { %10910 = vmatpush1.bf16.msra.mxu1 %v18859_v33  ;;  %10941 = vmatprep.mubr.bf16.mxu1 %v24189_v62  ;;  %v9120_v62 = vld [vmem:[#allocation14 + $0x118] sm:$0xff]  ;;  %v18913_v33 = vcombine.low %v9143_v17, %v9147_v18  ;;  %v18924_v54 = vcombine.high %v9152_v60, %v9156_v48  ;;  %v9199_v18 = vld [vmem:[#allocation14 + $0x390] sm:$0xff] }
 0x85b   : > { %10829 = vmatprep.subr.bf16.mxu0 %v18866_v61  ;;  %10911 = vmatprep.subr.bf16.mxu1 %v18868_v35  ;;  %v18892_v57 = vcombine.high %v9120_v62, %v9124_v22  ;;  %v18891_v4 = vcombine.low %v9120_v62, %v9124_v22  ;;  %v18915_v61 = vcombine.low %v9144_v19, %v9148_v21  ;;  %v9179_v62 = vld [vmem:[#allocation14 + $0x2f0] sm:$0xff]  ;;  %v9176_v22 = vld [vmem:[#allocation14 + $0x2d8] sm:$0xff] }
 0x85c   : > { %v18922_v35 = vcombine.high %v9151_v25, %v9155_v36  ;;  %v9203_v19 = vld [vmem:[#allocation14 + $0x3b0] sm:$0xff]  ;;  %v9200_v21 = vld [vmem:[#allocation14 + $0x398] sm:$0xff] }
 0x85d   : > { %10830 = vmatpush1.bf16.msra.mxu0 %v18865_v40  ;;  %v9164_v40 = vld [vmem:[#allocation14 + $0x278] sm:$0xff] }
 0x85e   : > { %10912 = vmatpush1.bf16.msra.mxu1 %v18867_v42  ;;  %10831 = vmatprep.subr.bf16.mxu0 %v18874_v43  ;;  %v18921_v42 = vcombine.low %v9151_v25, %v9155_v36  ;;  %v18923_v43 = vcombine.low %v9152_v60, %v9156_v48  ;;  %v18932_v28 = vcombine.high %v9160_v39, %v9164_v40  ;;  %v9207_v36 = vld [vmem:[#allocation14 + $0x3d0] sm:$0xff]  ;;  %v9208_v48 = vld [vmem:[#allocation14 + $0x3d8] sm:$0xff] }
 0x85f   : > { %10913 = vmatprep.subr.bf16.mxu1 %v18876_v44  ;;  %v18930_v44 = vcombine.high %v9159_v20, %v9163_v37  ;;  %v9211_v60 = vld [vmem:[#allocation14 + $0x3f0] sm:$0xff] }
 0x861   : > { %10832 = vmatpush1.bf16.msra.mxu0 %v18873_v63  ;;  %v9172_v63 = vld [vmem:[#allocation14 + $0x2b8] sm:$0xff] }
 0x862   : > { %10914 = vmatpush1.bf16.msra.mxu1 %v18875_v47  ;;  %10833 = vmatprep.subr.bf16.mxu0 %v18882_v13  ;;  %v18929_v47 = vcombine.low %v9159_v20, %v9163_v37  ;;  %v18931_v13 = vcombine.low %v9160_v39, %v9164_v40  ;;  %v18940_v51 = vcombine.high %v9168_v49, %v9172_v63  ;;  %v9215_v37 = vld [vmem:[#allocation14 + $0x410] sm:$0xff]  ;;  %v9216_v40 = vld [vmem:[#allocation14 + $0x418] sm:$0xff] }
 0x863   : > { %10915 = vmatprep.subr.bf16.mxu1 %v18884_v7  ;;  %v18938_v7 = vcombine.high %v9167_v34, %v9171_v45  ;;  %v9219_v39 = vld [vmem:[#allocation14 + $0x430] sm:$0xff] }
 0x865   : > { %10834 = vmatpush1.bf16.msra.mxu0 %v18881_v55  ;;  %v9180_v55 = vld [vmem:[#allocation14 + $0x2f8] sm:$0xff] }
 0x866   : > { %10916 = vmatpush1.bf16.msra.mxu1 %v18883_v9  ;;  %10835 = vmatprep.subr.bf16.mxu0 %v18890_v6  ;;  %v18937_v9 = vcombine.low %v9167_v34, %v9171_v45  ;;  %v18939_v6 = vcombine.low %v9168_v49, %v9172_v63  ;;  %v18948_v58 = vcombine.high %v9176_v22, %v9180_v55  ;;  %v9223_v45 = vld [vmem:[#allocation14 + $0x450] sm:$0xff] }
 0x867   : > { %10917 = vmatprep.subr.bf16.mxu1 %v18892_v57  ;;  %v18946_v57 = vcombine.high %v9175_v53, %v9179_v62  ;;  %v9227_v49 = vld [vmem:[#allocation14 + $0x470] sm:$0xff]  ;;  %v18985_v63 = vcombine.low %v9215_v37, %v9219_v39 }
 0x869   : > { %10836 = vmatpush1.bf16.msra.mxu0 %v18889_v3  ;;  %v9188_v3 = vld [vmem:[#allocation14 + $0x338] sm:$0xff] }
 0x86a   : > { %10918 = vmatpush1.bf16.msra.mxu1 %v18891_v4  ;;  %10837 = vmatprep.subr.bf16.mxu0 %v18898_v5  ;;  %v18945_v4 = vcombine.low %v9175_v53, %v9179_v62  ;;  %v18947_v5 = vcombine.low %v9176_v22, %v9180_v55  ;;  %v18956_v46 = vcombine.high %v9184_v31, %v9188_v3  ;;  %v9231_v53 = vld [vmem:[#allocation14 + $0x490] sm:$0xff]  ;;  %v9232_v55 = vld [vmem:[#allocation14 + $0x498] sm:$0xff] }
 0x86b   : > { %10919 = vmatprep.subr.bf16.mxu1 %v18900_v2  ;;  %v18954_v2 = vcombine.high %v9183_v59, %v9187_v1  ;;  %v9235_v62 = vld [vmem:[#allocation14 + $0x4b0] sm:$0xff] }
 0x86d   : > { %10838 = vmatpush1.bf16.msra.mxu0 %v18897_v12  ;;  %v9196_v12 = vld [vmem:[#allocation14 + $0x378] sm:$0xff] }
 0x86e   : > { %10920 = vmatpush1.bf16.msra.mxu1 %v18899_v56  ;;  %10839 = vmatprep.subr.bf16.mxu0 %v18906_v15  ;;  %v18953_v56 = vcombine.low %v9183_v59, %v9187_v1  ;;  %v18955_v15 = vcombine.low %v9184_v31, %v9188_v3  ;;  %v18964_v17 = vcombine.high %v9192_v11, %v9196_v12  ;;  %v9239_v1 = vld [vmem:[#allocation14 + $0x4d0] sm:$0xff]  ;;  %v9240_v3 = vld [vmem:[#allocation14 + $0x4d8] sm:$0xff] }
 0x86f   : > { %10921 = vmatprep.subr.bf16.mxu1 %v18908_v16  ;;  %v18962_v16 = vcombine.high %v9191_v14, %v9195_v10  ;;  %v9243_v31 = vld [vmem:[#allocation14 + $0x4f0] sm:$0xff] }
 0x871   : > { %10840 = vmatpush1.bf16.msra.mxu0 %v18905_v26  ;;  %v9204_v26 = vld [vmem:[#allocation14 + $0x3b8] sm:$0xff] }
 0x872   : > { %10922 = vmatpush1.bf16.msra.mxu1 %v18907_v38  ;;  %10841 = vmatprep.subr.bf16.mxu0 %v18914_v23  ;;  %v18961_v38 = vcombine.low %v9191_v14, %v9195_v10  ;;  %v18963_v23 = vcombine.low %v9192_v11, %v9196_v12  ;;  %v18972_v25 = vcombine.high %v9200_v21, %v9204_v26  ;;  %v9247_v14 = vld [vmem:[#allocation14 + $0x510] sm:$0xff]  ;;  %v9248_v11 = vld [vmem:[#allocation14 + $0x518] sm:$0xff] }
 0x873   : > { %10923 = vmatprep.subr.bf16.mxu1 %v18916_v24  ;;  %v18970_v24 = vcombine.high %v9199_v18, %v9203_v19  ;;  %v9251_v10 = vld [vmem:[#allocation14 + $0x530] sm:$0xff]  ;;  %v9252_v12 = vld [vmem:[#allocation14 + $0x538] sm:$0xff] }
 0x875   : > { %10842 = vmatpush1.bf16.msra.mxu0 %v18913_v33  ;;  %v9212_v33 = vld [vmem:[#allocation14 + $0x3f8] sm:$0xff] }
 0x876   : > { %10924 = vmatpush1.bf16.msra.mxu1 %v18915_v61  ;;  %10843 = vmatprep.subr.bf16.mxu0 %v18922_v35  ;;  %v18969_v61 = vcombine.low %v9199_v18, %v9203_v19  ;;  %v18971_v35 = vcombine.low %v9200_v21, %v9204_v26  ;;  %v18980_v20 = vcombine.high %v9208_v48, %v9212_v33  ;;  %v9259_v18 = vld [vmem:[#allocation14 + $0x570] sm:$0xff]  ;;  %v9256_v19 = vld [vmem:[#allocation14 + $0x558] sm:$0xff] }
 0x877   : > { %10925 = vmatprep.subr.bf16.mxu1 %v18924_v54  ;;  %v18978_v54 = vcombine.high %v9207_v36, %v9211_v60  ;;  %v9260_v21 = vld [vmem:[#allocation14 + $0x578] sm:$0xff]  ;;  %v19017_v26 = vcombine.low %v9247_v14, %v9251_v10 }
 0x879   : > { %10844 = vmatpush1.bf16.msra.mxu0 %v18921_v42  ;;  %v9220_v42 = vld [vmem:[#allocation14 + $0x438] sm:$0xff] }
 0x87a   : > { %10926 = vmatpush1.bf16.msra.mxu1 %v18923_v43  ;;  %10845 = vmatprep.subr.bf16.mxu0 %v18930_v44  ;;  %v18977_v43 = vcombine.low %v9207_v36, %v9211_v60  ;;  %v18979_v44 = vcombine.low %v9208_v48, %v9212_v33  ;;  %v18988_v34 = vcombine.high %v9216_v40, %v9220_v42  ;;  %v9267_v36 = vld [vmem:[#allocation14 + $0x5b0] sm:$0xff]  ;;  %v9264_v60 = vld [vmem:[#allocation14 + $0x598] sm:$0xff] }
 0x87b   : > { %10927 = vmatprep.subr.bf16.mxu1 %v18932_v28  ;;  %v18986_v28 = vcombine.high %v9215_v37, %v9219_v39  ;;  %v9268_v48 = vld [vmem:[#allocation14 + $0x5b8] sm:$0xff]  ;;  %v9275_v37 = vld [vmem:[#allocation14 + $0x5f0] sm:$0xff] }
 0x87c   : > { %v9272_v39 = vld [vmem:[#allocation14 + $0x5d8] sm:$0xff] }
 0x87d   : > { %10846 = vmatpush1.bf16.msra.mxu0 %v18929_v47  ;;  %v9224_v47 = vld [vmem:[#allocation14 + $0x458] sm:$0xff] }
 0x87e   : > { %10928 = vmatpush1.bf16.msra.mxu1 %v18931_v13  ;;  %10847 = vmatprep.subr.bf16.mxu0 %v18938_v7  ;;  %v9228_v13 = vld [vmem:[#allocation14 + $0x478] sm:$0xff]  ;;  %v18987_v7 = vcombine.low %v9216_v40, %v9220_v42 }
 0x87f   : > { %10929 = vmatprep.subr.bf16.mxu1 %v18940_v51  ;;  %v18994_v51 = vcombine.high %v9223_v45, %v9227_v49  ;;  %v18996_v22 = vcombine.high %v9224_v47, %v9228_v13  ;;  %v9276_v40 = vld [vmem:[#allocation14 + $0x5f8] sm:$0xff] }
 0x881   : > { %10848 = vmatpush1.bf16.msra.mxu0 %v18937_v9  ;;  %v9236_v9 = vld [vmem:[#allocation14 + $0x4b8] sm:$0xff] }
 0x882   : > { %10930 = vmatpush1.bf16.msra.mxu1 %v18939_v6  ;;  %10849 = vmatprep.subr.bf16.mxu0 %v18946_v57  ;;  %v18993_v6 = vcombine.low %v9223_v45, %v9227_v49  ;;  %v18995_v57 = vcombine.low %v9224_v47, %v9228_v13  ;;  %v19004_v59 = vcombine.high %v9232_v55, %v9236_v9  ;;  %v9283_v45 = vld [vmem:[#allocation14 + $0x630] sm:$0xff]  ;;  %v9280_v49 = vld [vmem:[#allocation14 + $0x618] sm:$0xff] }
 0x883   : > { %10931 = vmatprep.subr.bf16.mxu1 %v18948_v58  ;;  %v19002_v58 = vcombine.high %v9231_v53, %v9235_v62  ;;  %v19043_v13 = vcombine.low %v9272_v39, %v9276_v40 }
 0x885   : > { %10850 = vmatpush1.bf16.msra.mxu0 %v18945_v4  ;;  %v9244_v4 = vld [vmem:[#allocation14 + $0x4f8] sm:$0xff] }
 0x886   : > { %10932 = vmatpush1.bf16.msra.mxu1 %v18947_v5  ;;  %10851 = vmatprep.subr.bf16.mxu0 %v18954_v2  ;;  %v19001_v5 = vcombine.low %v9231_v53, %v9235_v62  ;;  %v19010_v2 = vcombine.high %v9239_v1, %v9243_v31  ;;  %v9287_v53 = vld [vmem:[#allocation14 + $0x650] sm:$0xff] }
 0x887   : > { %10933 = vmatprep.subr.bf16.mxu1 %v18956_v46  ;;  %v19012_v46 = vcombine.high %v9240_v3, %v9244_v4  ;;  %v9291_v62 = vld [vmem:[#allocation14 + $0x670] sm:$0xff] }
 0x889   : > { %10852 = vmatpush1.bf16.msra.mxu0 %v18953_v56  ;;  %v19011_v56 = vcombine.low %v9240_v3, %v9244_v4  ;;  %v9300_v3 = vld [vmem:[#allocation14 + $0x6b8] sm:$0xff]  ;;  %v19057_v4 = vcombine.low %v9287_v53, %v9291_v62 }
 0x88a   : > { %10934 = vmatpush1.bf16.msra.mxu1 %v18955_v15  ;;  %10853 = vmatprep.subr.bf16.mxu0 %v18962_v16  ;;  %v19018_v15 = vcombine.high %v9247_v14, %v9251_v10  ;;  %v19020_v16 = vcombine.high %v9248_v11, %v9252_v12  ;;  %v9307_v14 = vld [vmem:[#allocation14 + $0x6f0] sm:$0xff]  ;;  %v9304_v10 = vld [vmem:[#allocation14 + $0x6d8] sm:$0xff] }
 0x88b   : > { %10935 = vmatprep.subr.bf16.mxu1 %v18964_v17  ;;  %v9255_v17 = vld [vmem:[#allocation14 + $0x550] sm:$0xff] }
 0x88c   : > { %v19025_v33 = vcombine.low %v9255_v17, %v9259_v18 }
 0x88d   : > { %10854 = vmatpush1.bf16.msra.mxu0 %v18961_v38  ;;  %v19019_v38 = vcombine.low %v9248_v11, %v9252_v12  ;;  %v9308_v11 = vld [vmem:[#allocation14 + $0x6f8] sm:$0xff] }
 0x88e   : > { %10936 = vmatpush1.bf16.msra.mxu1 %v18963_v23  ;;  %10855 = vmatprep.subr.bf16.mxu0 %v18970_v24  ;;  %v19026_v23 = vcombine.high %v9255_v17, %v9259_v18  ;;  %v19028_v24 = vcombine.high %v9256_v19, %v9260_v21  ;;  %v9315_v17 = vld [vmem:[#allocation14 + $0x730] sm:$0xff]  ;;  %v9312_v18 = vld [vmem:[#allocation14 + $0x718] sm:$0xff] }
 0x88f   : > { %10937 = vmatprep.subr.bf16.mxu1 %v18972_v25  ;;  %v9263_v25 = vld [vmem:[#allocation14 + $0x590] sm:$0xff] }
 0x890   : > { %v19033_v42 = vcombine.low %v9263_v25, %v9267_v36 }
 0x891   : > { %10856 = vmatpush1.bf16.msra.mxu0 %v18969_v61  ;;  %v19027_v61 = vcombine.low %v9256_v19, %v9260_v21  ;;  %v9316_v19 = vld [vmem:[#allocation14 + $0x738] sm:$0xff] }
 0x892   : > { %10938 = vmatpush1.bf16.msra.mxu1 %v18971_v35  ;;  %10857 = vmatprep.subr.bf16.mxu0 %v18978_v54  ;;  %v19034_v35 = vcombine.high %v9263_v25, %v9267_v36  ;;  %v19036_v54 = vcombine.high %v9264_v60, %v9268_v48  ;;  %v9323_v25 = vld [vmem:[#allocation14 + $0x770] sm:$0xff]  ;;  %v9320_v36 = vld [vmem:[#allocation14 + $0x758] sm:$0xff] }
 0x893   : > { %10939 = vmatprep.subr.bf16.mxu1 %v18980_v20  ;;  %v9271_v20 = vld [vmem:[#allocation14 + $0x5d0] sm:$0xff] }
 0x894   : > { %v19041_v47 = vcombine.low %v9271_v20, %v9275_v37 }
 0x895   : > { %10858 = vmatpush1.bf16.msra.mxu0 %v18977_v43  ;;  %v19035_v43 = vcombine.low %v9264_v60, %v9268_v48  ;;  %v9324_v60 = vld [vmem:[#allocation14 + $0x778] sm:$0xff] }
 0x896   : > { %10940 = vmatpush1.bf16.msra.mxu1 %v18979_v44  ;;  %10868 = vmatprep.subr.bf16.mxu0 %v18986_v28  ;;  %v19042_v44 = vcombine.high %v9271_v20, %v9275_v37  ;;  %v19044_v28 = vcombine.high %v9272_v39, %v9276_v40  ;;  %v9331_v20 = vld [vmem:[#allocation14 + $0x7b0] sm:$0xff]  ;;  %v9328_v37 = vld [vmem:[#allocation14 + $0x798] sm:$0xff] }
 0x897   : > { %10950 = vmatprep.subr.bf16.mxu1 %v18988_v34  ;;  %v9279_v34 = vld [vmem:[#allocation14 + $0x610] sm:$0xff]  ;;  %v9332_v39 = vld [vmem:[#allocation14 + $0x7b8] sm:$0xff] }
 0x898   : > { %10860 = vmatmul.mubr.bf16.vlgmr.msra.gmra.mrb[8].mxu0 %v24191_v0 }
 0x899   : > { %10942 = vmatmul.mubr.bf16.vlgmr.msra.gmra.mrb[8].mxu1 %v24191_v0  ;;  %10869 = vmatpush1.bf16.msra.mxu0 %v18985_v63  ;;  %v19003_v0 = vcombine.low %v9232_v55, %v9236_v9  ;;  %v9284_v63 = vld [vmem:[#allocation14 + $0x638] sm:$0xff]  ;;  %v19049_v9 = vcombine.low %v9279_v34, %v9283_v45 }
 0x89a   : > { %10900 = vmatprep.mubr.bf16.mxu0 %v24195_v8  ;;  %10951 = vmatpush1.bf16.msra.mxu1 %v18987_v7  ;;  %v19050_v7 = vcombine.high %v9279_v34, %v9283_v45  ;;  %v9292_v55 = vld [vmem:[#allocation14 + $0x678] sm:$0xff]  ;;  %v9339_v34 = vld [vmem:[#allocation14 + $0x7f0] sm:$0xff] }
 0x89b   : > { %10982 = vmatprep.mubr.bf16.mxu1 %v24195_v8  ;;  %10870 = vmatprep.subr.bf16.mxu0 %v18994_v51  ;;  %v19009_v8 = vcombine.low %v9239_v1, %v9243_v31  ;;  %v19052_v51 = vcombine.high %v9280_v49, %v9284_v63  ;;  %v9299_v1 = vld [vmem:[#allocation14 + $0x6b0] sm:$0xff]  ;;  %v9296_v31 = vld [vmem:[#allocation14 + $0x698] sm:$0xff] }
 0x89c   : > { %10952 = vmatprep.subr.bf16.mxu1 %v18996_v22  ;;  %v9288_v22 = vld [vmem:[#allocation14 + $0x658] sm:$0xff] }
 0x89d   : > { %10871 = vmatpush1.bf16.msra.mxu0 %v18993_v6  ;;  %v19051_v6 = vcombine.low %v9280_v49, %v9284_v63  ;;  %v9336_v45 = vld [vmem:[#allocation14 + $0x7d8] sm:$0xff] }
 0x89e   : > { %10953 = vmatpush1.bf16.msra.mxu1 %v18995_v57  ;;  %10872 = vmatprep.subr.bf16.mxu0 %v19002_v58  ;;  %v19058_v57 = vcombine.high %v9287_v53, %v9291_v62  ;;  %v19060_v58 = vcombine.high %v9288_v22, %v9292_v55  ;;  %v9340_v49 = vld [vmem:[#allocation14 + $0x7f8] sm:$0xff]  ;;  %v9341_v62 = vld [vmem:[#allocation15] sm:$0xff] }
 0x89f   : > { %10954 = vmatprep.subr.bf16.mxu1 %v19004_v59  ;;  %v9295_v59 = vld [vmem:[#allocation14 + $0x690] sm:$0xff]  ;;  %v19107_v53 = vcombine.low %v9336_v45, %v9340_v49 }
 0x8a0   : > { %v19065_v12 = vcombine.low %v9295_v59, %v9299_v1 }
 0x8a1   : > { %10873 = vmatpush1.bf16.msra.mxu0 %v19001_v5  ;;  %v19059_v5 = vcombine.low %v9288_v22, %v9292_v55  ;;  %v9346_v22 = vrot.slane %v9341_v62, %v7427_v27  ;;  %v9354_v55 = vrot.slane %v9341_v62, %v7435_v52 }
 0x8a2   : > { %10955 = vmatpush1.bf16.msra.mxu1 %v19003_v0  ;;  %10874 = vmatprep.subr.bf16.mxu0 %v19010_v2  ;;  %v19066_v0 = vcombine.high %v9295_v59, %v9299_v1  ;;  %v19068_v2 = vcombine.high %v9296_v31, %v9300_v3 }
 0x8a3   : > { %10956 = vmatprep.subr.bf16.mxu1 %v19012_v46  ;;  %v9303_v46 = vld [vmem:[#allocation14 + $0x6d0] sm:$0xff] }
 0x8a4   : > { %v19073_v21 = vcombine.low %v9303_v46, %v9307_v14 }
 0x8a5   : > { %10875 = vmatpush1.bf16.msra.mxu0 %v19009_v8  ;;  %v19067_v8 = vcombine.low %v9296_v31, %v9300_v3 }
 0x8a6   : > { %10957 = vmatpush1.bf16.msra.mxu1 %v19011_v56  ;;  %10876 = vmatprep.subr.bf16.mxu0 %v19018_v15  ;;  %v19074_v56 = vcombine.high %v9303_v46, %v9307_v14  ;;  %v19076_v15 = vcombine.high %v9304_v10, %v9308_v11 }
 0x8a7   : > { %10958 = vmatprep.subr.bf16.mxu1 %v19020_v16  ;;  %v9311_v16 = vld [vmem:[#allocation14 + $0x710] sm:$0xff] }
 0x8a8   : > { %v19081_v48 = vcombine.low %v9311_v16, %v9315_v17 }
 0x8a9   : > { %10877 = vmatpush1.bf16.msra.mxu0 %v19017_v26  ;;  %v19075_v26 = vcombine.low %v9304_v10, %v9308_v11  ;;  %v9369_v11 = vsub.s32 6, %v23167_v41 }
 0x8aa   : > { %10959 = vmatpush1.bf16.msra.mxu1 %v19019_v38  ;;  %10878 = vmatprep.subr.bf16.mxu0 %v19026_v23  ;;  %v19082_v38 = vcombine.high %v9311_v16, %v9315_v17  ;;  %v19084_v23 = vcombine.high %v9312_v18, %v9316_v19 }
 0x8ab   : > { %10960 = vmatprep.subr.bf16.mxu1 %v19028_v24  ;;  %v9319_v24 = vld [vmem:[#allocation14 + $0x750] sm:$0xff] }
 0x8ac   : > { %v19089_v40 = vcombine.low %v9319_v24, %v9323_v25 }
 0x8ad   : > { %10879 = vmatpush1.bf16.msra.mxu0 %v19025_v33  ;;  %v19083_v33 = vcombine.low %v9312_v18, %v9316_v19 }
 0x8ae   : > { %10961 = vmatpush1.bf16.msra.mxu1 %v19027_v61  ;;  %10880 = vmatprep.subr.bf16.mxu0 %v19034_v35  ;;  %v19090_v61 = vcombine.high %v9319_v24, %v9323_v25  ;;  %v19092_v35 = vcombine.high %v9320_v36, %v9324_v60 }
 0x8af   : > { %10962 = vmatprep.subr.bf16.mxu1 %v19036_v54  ;;  %v9327_v54 = vld [vmem:[#allocation14 + $0x790] sm:$0xff] }
 0x8b0   : > { %v19097_v63 = vcombine.low %v9327_v54, %v9331_v20 }
 0x8b1   : > { %10881 = vmatpush1.bf16.msra.mxu0 %v19033_v42  ;;  %v19091_v42 = vcombine.low %v9320_v36, %v9324_v60 }
 0x8b2   : > { %10963 = vmatpush1.bf16.msra.mxu1 %v19035_v43  ;;  %10882 = vmatprep.subr.bf16.mxu0 %v19042_v44  ;;  %v19098_v43 = vcombine.high %v9327_v54, %v9331_v20  ;;  %v19100_v44 = vcombine.high %v9328_v37, %v9332_v39 }
 0x8b3   : > { %10964 = vmatprep.subr.bf16.mxu1 %v19044_v28  ;;  %v9335_v28 = vld [vmem:[#allocation14 + $0x7d0] sm:$0xff] }
 0x8b5   : > { %10883 = vmatpush1.bf16.msra.mxu0 %v19041_v47  ;;  %v19099_v47 = vcombine.low %v9328_v37, %v9332_v39 }
 0x8b6   : > { %10965 = vmatpush1.bf16.msra.mxu1 %v19043_v13  ;;  %10884 = vmatprep.subr.bf16.mxu0 %v19050_v7  ;;  %v19106_v13 = vcombine.high %v9335_v28, %v9339_v34  ;;  %v19108_v7 = vcombine.high %v9336_v45, %v9340_v49 }
 0x8b7   : > { %10966 = vmatprep.subr.bf16.mxu1 %v19052_v51  ;;  %v19105_v51 = vcombine.low %v9335_v28, %v9339_v34 }
 0x8b9   : > { %10885 = vmatpush1.bf16.msra.mxu0 %v19049_v9  ;;  %v9350_v9 = vrot.slane %v9341_v62, %v7431_v29 }
 0x8ba   : > { %10967 = vmatpush1.bf16.msra.mxu1 %v19051_v6  ;;  %10886 = vmatprep.subr.bf16.mxu0 %v19058_v57  ;;  %v9358_v6 = vrot.slane %v9341_v62, %v7439_v30  ;;  %v9361_v30 = vsub.s32 4, %v23167_v41 }
 0x8bb   : > { %10968 = vmatprep.subr.bf16.mxu1 %v19060_v58 }
 0x8bd   : > { %10887 = vmatpush1.bf16.msra.mxu0 %v19057_v4 }
 0x8be   : > { %10969 = vmatpush1.bf16.msra.mxu1 %v19059_v5  ;;  %10888 = vmatprep.subr.bf16.mxu0 %v19066_v0 }
 0x8bf   : > { %10970 = vmatprep.subr.bf16.mxu1 %v19068_v2 }
 0x8c1   : > { %10889 = vmatpush1.bf16.msra.mxu0 %v19065_v12  ;;  %v9365_v12 = vsub.s32 5, %v23167_v41 }
 0x8c2   : > { %10971 = vmatpush1.bf16.msra.mxu1 %v19067_v8  ;;  %10890 = vmatprep.subr.bf16.mxu0 %v19074_v56  ;;  %v9373_v8 = vsub.s32 7, %v23167_v41  ;;  %v9362_v56 = vrot.slane %v9341_v62, %v9361_v30 }
 0x8c3   : > { %10972 = vmatprep.subr.bf16.mxu1 %v19076_v15  ;;  %v9370_v15 = vrot.slane %v9341_v62, %v9369_v11  ;;  %v9366_v16 = vrot.slane %v9341_v62, %v9365_v12 }
 0x8c4   : > { %v9374_v17 = vrot.slane %v9341_v62, %v9373_v8 }
 0x8c5   : > { %10891 = vmatpush1.bf16.msra.mxu0 %v19073_v21 }
 0x8c6   : > { %10973 = vmatpush1.bf16.msra.mxu1 %v19075_v26  ;;  %10892 = vmatprep.subr.bf16.mxu0 %v19082_v38 }
 0x8c7   : > { %10974 = vmatprep.subr.bf16.mxu1 %v19084_v23 }
 0x8c9   : > { %10893 = vmatpush1.bf16.msra.mxu0 %v19081_v48 }
 0x8ca   : > { %10975 = vmatpush1.bf16.msra.mxu1 %v19083_v33  ;;  %10894 = vmatprep.subr.bf16.mxu0 %v19090_v61 }
 0x8cb   : > { %10976 = vmatprep.subr.bf16.mxu1 %v19092_v35 }
 0x8cd   : > { %10895 = vmatpush1.bf16.msra.mxu0 %v19089_v40 }
 0x8ce   : > { %10977 = vmatpush1.bf16.msra.mxu1 %v19091_v42  ;;  %10896 = vmatprep.subr.bf16.mxu0 %v19098_v43 }
 0x8cf   : > { %10978 = vmatprep.subr.bf16.mxu1 %v19100_v44 }
 0x8d1   : > { %10897 = vmatpush1.bf16.msra.mxu0 %v19097_v63 }
 0x8d2   : > { %10979 = vmatpush1.bf16.msra.mxu1 %v19099_v47  ;;  %10898 = vmatprep.subr.bf16.mxu0 %v19106_v13 }
 0x8d3   : > { %10980 = vmatprep.subr.bf16.mxu1 %v19108_v7 }
 0x8d5   : > { %10899 = vmatpush1.bf16.msra.mxu0 %v19105_v51 }
 0x8d6   : > { %10981 = vmatpush1.bf16.msra.mxu1 %v19107_v53 }
 0x8d8   : > { %10901 = vmatmul.mubr.bf16.vlgmr.msra.gmra.mrb[8].mxu0 %v24210_v32 }
 0x8d9   : > { %10983 = vmatmul.mubr.bf16.vlgmr.msra.gmra.mrb[8].mxu1 %v24210_v32 }
 0x92b   : > { %v10738_v57 = vpop.f32.mrb[4].mxu0  ;;  %v10820_v58 = vpop.f32.mrb[4].mxu1 }
 0x92c   : > { %v20140_v59 = vadd.f32 %v10738_v57, %v9346_v22  ;;  %v20142_v1 = vadd.f32 %v10820_v58, %v9354_v55  ;;  %v10740_v31 = vpop.f32.mrb[5].mxu0  ;;  %v10822_v3 = vpop.f32.mrb[5].mxu1 }
 0x92d   : > { %v20141_v32 = vadd.f32 %v10740_v31, %v9350_v9  ;;  %v20143_v4 = vadd.f32 %v10822_v3, %v9358_v6  ;;  %v10742_v5 = vpop.f32.mrb[6].mxu0  ;;  %v10824_v0 = vpop.f32.mrb[6].mxu1 }
 0x92e   : > { %v10743_v27 = vpop.f32.mrb[7].mxu0  ;;  %v10825_v2 = vpop.f32.mrb[7].mxu1 }
 0x92f   : > { %v10999_v46 = vcombine.low %v20140_v59, %v20141_v32  ;;  %v11000_v52 = vcombine.low %v20142_v1, %v20143_v4 }
 0x931   : > { %v11007_v14 = vrot.slane %v10999_v46, %v23174_v50  ;;  %v11014_v29 = vrot.slane %v11000_v52, %v23174_v50 }
 0x933   : > { %v11015_v10 = vcombine.low %v11007_v14, %v11014_v29 }
 0x935   : > { %11035 = vst [vmem:[#allocation2] sm:$0xff] %v11015_v10 }
 0x9ab   : > { %v10902_v18 = vpop.f32.mrb[8].mxu0 }
 0x9ac   : > { %v20144_v19 = vadd.f32 %v10902_v18, %v9362_v56  ;;  %v10984_v21 = vpop.f32.mrb[8].mxu1  ;;  %v10904_v26 = vpop.f32.mrb[9].mxu0 }
 0x9ad   : > { %v20146_v38 = vadd.f32 %v10984_v21, %v9370_v15  ;;  %v20145_v23 = vadd.f32 %v10904_v26, %v9366_v16  ;;  %v10986_v24 = vpop.f32.mrb[9].mxu1  ;;  %v10906_v25 = vpop.f32.mrb[10].mxu0 }
 0x9ae   : > { %v20147_v36 = vadd.f32 %v10986_v24, %v9374_v17  ;;  %v10988_v60 = vpop.f32.mrb[10].mxu1  ;;  %v10907_v48 = vpop.f32.mrb[11].mxu0 }
 0x9af   : > { %v11016_v33 = vcombine.low %v20144_v19, %v20145_v23  ;;  %v10989_v61 = vpop.f32.mrb[11].mxu1 }
 0x9b0   : > { %v11017_v35 = vcombine.low %v20146_v38, %v20147_v36 }
 0x9b1   : > { %v11024_v41 = vrot.slane %v11016_v33, %v23174_v50 }
 0x9b2   : > { %v11031_v54 = vrot.slane %v11017_v35, %v23174_v50 }
 0x9b4   : > { %v11032_v20 = vcombine.low %v11024_v41, %v11031_v54 }
 0x9b6   : > { %11036 = vst [vmem:[#allocation2 + $0x8] sm:$0xff] %v11032_v20 }
 0x9b7 PF: > { %p19109_p4 = scmp.lt.s32.totalorder %s22659_s29, 5 }
 0x9b8   : > { %v20875_v37 = vld [vmem:[%s23123_s14 + $0x4] ss:$52 sps:$4 sm:$0xff] (!%p19109_p4)   ;;  %v20877_v50 = vld [vmem:[%s23123_s14 + $0xc] ss:$52 sps:$4 sm:$0xff] (!%p19109_p4)   ;;  %v20880_v40 = vld [vmem:[%s23123_s14 + $0x8] ss:$52 sps:$4 sm:$0xff] (!%p19109_p4)   ;;  %v11049_v10 = vlaneseq (!%p19109_p4) }
 0x9b9   : > { %11040 = sbr.rel (%p19109_p4) target bundleno = 3545 (0xdd9), region = 120  ;;  %16284 = vmatprep.subr.bf16.mxu0 (!%p19109_p4), %v20875_v37  ;;  %v20879_v39 = vld [vmem:[%s23123_s14] ss:$52 sps:$4 sm:$0xff] (!%p19109_p4)   ;;  %16448 = vmatprep.subr.bf16.mxu1 (!%p19109_p4), %v20877_v50  ;;  %v20885_v44 = vld [vmem:[%s23123_s14 + $0x68] ss:$52 sps:$4 sm:$0xff] (!%p19109_p4)  }
 0x9ba   : > { %v20881_v42 = vld [vmem:[%s23123_s14 + $0x6c] ss:$52 sps:$4 sm:$0xff] (!%p19109_p4)   ;;  %16285 = vmatpush1.bf16.msra.mxu0 (!%p19109_p4), %v20879_v39  ;;  %16449 = vmatpush1.bf16.msra.mxu1 (!%p19109_p4), %v20880_v40  ;;  %v20883_v43 = vld [vmem:[%s23123_s14 + $0x74] ss:$52 sps:$4 sm:$0xff] (!%p19109_p4)   ;;  %v20886_v28 = vld [vmem:[%s23123_s14 + $0x70] ss:$52 sps:$4 sm:$0xff] (!%p19109_p4)  }
 0x9bb   : > { %16286 = vmatprep.subr.bf16.mxu0 (!%p19109_p4), %v20881_v42  ;;  %16450 = vmatprep.subr.bf16.mxu1 (!%p19109_p4), %v20883_v43  ;;  %v20887_v34 = vld [vmem:[%s23123_s14 + $0xd4] ss:$52 sps:$4 sm:$0xff] (!%p19109_p4)   ;;  %v20889_v45 = vld [vmem:[%s23123_s14 + $0xdc] ss:$52 sps:$4 sm:$0xff] (!%p19109_p4)   ;;  %v20892_v63 = vld [vmem:[%s23123_s14 + $0xd8] ss:$52 sps:$4 sm:$0xff] (!%p19109_p4)  }
 0x9bc   : > { %v20891_v49 = vld [vmem:[%s23123_s14 + $0xd0] ss:$52 sps:$4 sm:$0xff] (!%p19109_p4)   ;;  %v20897_v7 = vld [vmem:[%s23123_s14 + $0x138] ss:$52 sps:$4 sm:$0xff] (!%p19109_p4)   ;;  %v20898_v51 = vld [vmem:[%s23123_s14 + $0x140] ss:$52 sps:$4 sm:$0xff] (!%p19109_p4)  }
 0x9bd   : > { %v20893_v47 = vld [vmem:[%s23123_s14 + $0x13c] ss:$52 sps:$4 sm:$0xff] (!%p19109_p4)   ;;  %v20895_v13 = vld [vmem:[%s23123_s14 + $0x144] ss:$52 sps:$4 sm:$0xff] (!%p19109_p4)   ;;  %v20901_v62 = vld [vmem:[%s23123_s14 + $0x1ac] ss:$52 sps:$4 sm:$0xff] (!%p19109_p4)  }
 0x9be   : > { %16287 = vmatpush1.bf16.msra.mxu0 (!%p19109_p4), %v20885_v44  ;;  %16451 = vmatpush1.bf16.msra.mxu1 (!%p19109_p4), %v20886_v28  ;;  %v20899_v53 = vld [vmem:[%s23123_s14 + $0x1a4] ss:$52 sps:$4 sm:$0xff] (!%p19109_p4)   ;;  %v20903_v22 = vld [vmem:[%s23123_s14 + $0x1a0] ss:$52 sps:$4 sm:$0xff] (!%p19109_p4)   ;;  %v20904_v55 = vld [vmem:[%s23123_s14 + $0x1a8] ss:$52 sps:$4 sm:$0xff] (!%p19109_p4)  }
 0x9bf   : > { %16288 = vmatprep.subr.bf16.mxu0 (!%p19109_p4), %v20887_v34  ;;  %16452 = vmatprep.subr.bf16.mxu1 (!%p19109_p4), %v20889_v45  ;;  %v20905_v9 = vld [vmem:[%s23123_s14 + $0x20c] ss:$52 sps:$4 sm:$0xff] (!%p19109_p4)   ;;  %v20907_v6 = vld [vmem:[%s23123_s14 + $0x214] ss:$52 sps:$4 sm:$0xff] (!%p19109_p4)   ;;  %v20910_v58 = vld [vmem:[%s23123_s14 + $0x210] ss:$52 sps:$4 sm:$0xff] (!%p19109_p4)  }
 0x9c0   : > { %v20909_v57 = vld [vmem:[%s23123_s14 + $0x208] ss:$52 sps:$4 sm:$0xff]   ;;  %v20915_v31 = vld [vmem:[%s23123_s14 + $0x270] ss:$52 sps:$4 sm:$0xff]   ;;  %v20916_v3 = vld [vmem:[%s23123_s14 + $0x278] ss:$52 sps:$4 sm:$0xff]  }
 0x9c1   : > { %v20911_v59 = vld [vmem:[%s23123_s14 + $0x274] ss:$52 sps:$4 sm:$0xff]   ;;  %v20913_v1 = vld [vmem:[%s23123_s14 + $0x27c] ss:$52 sps:$4 sm:$0xff]   ;;  %v20919_v4 = vld [vmem:[%s23123_s14 + $0x2e4] ss:$52 sps:$4 sm:$0xff]  }
 0x9c2   : > { %16289 = vmatpush1.bf16.msra.mxu0 %v20891_v49  ;;  %16453 = vmatpush1.bf16.msra.mxu1 %v20892_v63  ;;  %v20917_v32 = vld [vmem:[%s23123_s14 + $0x2dc] ss:$52 sps:$4 sm:$0xff]   ;;  %v20921_v5 = vld [vmem:[%s23123_s14 + $0x2d8] ss:$52 sps:$4 sm:$0xff]   ;;  %v20922_v0 = vld [vmem:[%s23123_s14 + $0x2e0] ss:$52 sps:$4 sm:$0xff]  }
 0x9c3   : > { %16290 = vmatprep.subr.bf16.mxu0 %v20893_v47  ;;  %16454 = vmatprep.subr.bf16.mxu1 %v20895_v13  ;;  %v20923_v27 = vld [vmem:[%s23123_s14 + $0x344] ss:$52 sps:$4 sm:$0xff]   ;;  %v20925_v2 = vld [vmem:[%s23123_s14 + $0x34c] ss:$52 sps:$4 sm:$0xff]   ;;  %v20928_v52 = vld [vmem:[%s23123_s14 + $0x348] ss:$52 sps:$4 sm:$0xff]  }
 0x9c4   : > { %v20927_v46 = vld [vmem:[%s23123_s14 + $0x340] ss:$52 sps:$4 sm:$0xff]   ;;  %v22546_v14 = vmov 1983009808   ;;  %v20933_v12 = vld [vmem:[%s23123_s14 + $0x3a8] ss:$52 sps:$4 sm:$0xff]  }
 0x9c5   : > { %v11047_v29 = vunpack.c.l.s4 %v22546_v14  ;;  %v20929_v30 = vld [vmem:[%s23123_s14 + $0x3ac] ss:$52 sps:$4 sm:$0xff]   ;;  %v20931_v11 = vld [vmem:[%s23123_s14 + $0x3b4] ss:$52 sps:$4 sm:$0xff]   ;;  %v24278_v56 = vshrl.u32 %v11049_v10, 7 }
 0x9c6   : > { %16291 = vmatpush1.bf16.msra.mxu0 %v20897_v7  ;;  %16455 = vmatpush1.bf16.msra.mxu1 %v20898_v51  ;;  %v20934_v15 = vld [vmem:[%s23123_s14 + $0x3b0] ss:$52 sps:$4 sm:$0xff]   ;;  %v20935_v16 = vld [vmem:[%s23123_s14 + $0x414] ss:$52 sps:$4 sm:$0xff]   ;;  %v20940_v19 = vld [vmem:[%s23123_s14 + $0x418] ss:$52 sps:$4 sm:$0xff]  }
 0x9c7   : > { %16292 = vmatprep.subr.bf16.mxu0 %v20899_v53  ;;  %16456 = vmatprep.subr.bf16.mxu1 %v20901_v62  ;;  %v11048_v8 = vunpack.c.0.s8 %v11047_v29  ;;  %v20937_v17 = vld [vmem:[%s23123_s14 + $0x41c] ss:$52 sps:$4 sm:$0xff]   ;;  %v20943_v38 = vld [vmem:[%s23123_s14 + $0x484] ss:$52 sps:$4 sm:$0xff]   ;;  %v20946_v36 = vld [vmem:[%s23123_s14 + $0x480] ss:$52 sps:$4 sm:$0xff]  }
 0x9c8   : > { %v20939_v18 = vld [vmem:[%s23123_s14 + $0x410] ss:$52 sps:$4 sm:$0xff]   ;;  %v20945_v24 = vld [vmem:[%s23123_s14 + $0x478] ss:$52 sps:$4 sm:$0xff]   ;;  %v20951_v61 = vld [vmem:[%s23123_s14 + $0x4e0] ss:$52 sps:$4 sm:$0xff]  }
 0x9c9   : > { %v24286_v21 = vsub.s32 %v11048_v8, %v24278_v56  ;;  %v20941_v26 = vld [vmem:[%s23123_s14 + $0x47c] ss:$52 sps:$4 sm:$0xff]   ;;  %v11041_v23 = vld [vmem:[#allocation2] sm:$0xff]  ;;  %v20955_v20 = vld [vmem:[%s23123_s14 + $0x554] ss:$52 sps:$4 sm:$0xff]  }
 0x9ca   : > { %16293 = vmatpush1.bf16.msra.mxu0 %v20903_v22  ;;  %16457 = vmatpush1.bf16.msra.mxu1 %v20904_v55  ;;  %v20947_v60 = vld [vmem:[%s23123_s14 + $0x4e4] ss:$52 sps:$4 sm:$0xff]   ;;  %v20949_v48 = vld [vmem:[%s23123_s14 + $0x4ec] ss:$52 sps:$4 sm:$0xff]   ;;  %v20952_v41 = vld [vmem:[%s23123_s14 + $0x4e8] ss:$52 sps:$4 sm:$0xff]   ;;  %v11045_v42 = vcombine.high %v11041_v23, %v11041_v23 }
 0x9cb   : > { %16294 = vmatprep.subr.bf16.mxu0 %v20905_v9  ;;  %16458 = vmatprep.subr.bf16.mxu1 %v20907_v6  ;;  %v11052_v25 = vrot.slane %v11041_v23, %v24286_v21  ;;  %v20953_v54 = vld [vmem:[%s23123_s14 + $0x54c] ss:$52 sps:$4 sm:$0xff]   ;;  %v20957_v37 = vld [vmem:[%s23123_s14 + $0x548] ss:$52 sps:$4 sm:$0xff]   ;;  %v20958_v50 = vld [vmem:[%s23123_s14 + $0x550] ss:$52 sps:$4 sm:$0xff]  }
 0x9cc   : > { %v20959_v39 = vld [vmem:[%s23123_s14 + $0x5b4] ss:$52 sps:$4 sm:$0xff]   ;;  %v20961_v40 = vld [vmem:[%s23123_s14 + $0x5bc] ss:$52 sps:$4 sm:$0xff]   ;;  %v20964_v44 = vld [vmem:[%s23123_s14 + $0x5b8] ss:$52 sps:$4 sm:$0xff]   ;;  %v24312_v45 = vrot.slane %v11045_v42, %v24286_v21 }
 0x9cd   : > { %v11060_v33 = vcombine.high %v11052_v25, %v11052_v25  ;;  %v20963_v43 = vld [vmem:[%s23123_s14 + $0x5b0] ss:$52 sps:$4 sm:$0xff]   ;;  %v20969_v49 = vld [vmem:[%s23123_s14 + $0x618] ss:$52 sps:$4 sm:$0xff]   ;;  %v20970_v63 = vld [vmem:[%s23123_s14 + $0x620] ss:$52 sps:$4 sm:$0xff]   ;;  %v24321_v53 = vpack.c.bf16 %v11052_v25, %v11052_v25 }
 0x9ce   : > { %16295 = vmatpush1.bf16.msra.mxu0 %v20909_v57  ;;  %16459 = vmatpush1.bf16.msra.mxu1 %v20910_v58  ;;  %v20965_v28 = vld [vmem:[%s23123_s14 + $0x61c] ss:$52 sps:$4 sm:$0xff]   ;;  %v20967_v34 = vld [vmem:[%s23123_s14 + $0x624] ss:$52 sps:$4 sm:$0xff]   ;;  %v20976_v13 = vld [vmem:[%s23123_s14 + $0x68c] ss:$52 sps:$4 sm:$0xff]   ;;  %v11061_v7 = vcombine.high %v24312_v45, %v24312_v45 }
 0x9cf   : > { %16296 = vmatprep.subr.bf16.mxu0 %v20911_v59  ;;  %16460 = vmatprep.subr.bf16.mxu1 %v20913_v1  ;;  %v24296_v35 = vpack.c.bf16 %v11060_v33, %v11060_v33  ;;  %v20973_v47 = vld [vmem:[%s23123_s14 + $0x684] ss:$52 sps:$4 sm:$0xff]   ;;  %v20971_v51 = vld [vmem:[%s23123_s14 + $0x680] ss:$52 sps:$4 sm:$0xff]   ;;  %v20974_v62 = vld [vmem:[%s23123_s14 + $0x688] ss:$52 sps:$4 sm:$0xff]  }
 0x9d0   : > { %v20979_v22 = vld [vmem:[%s23123_s14 + $0x6ec] ss:$52 sps:$4 sm:$0xff]   ;;  %v20982_v55 = vld [vmem:[%s23123_s14 + $0x6f4] ss:$52 sps:$4 sm:$0xff]   ;;  %v24326_v9 = vpack.c.bf16 %v11061_v7, %v11061_v7  ;;  %v20980_v57 = vld [vmem:[%s23123_s14 + $0x6f0] ss:$52 sps:$4 sm:$0xff]  }
 0x9d1   : > { %16316 = vmatprep.mubr.bf16.mxu0 %v24296_v35  ;;  %16480 = vmatprep.mubr.bf16.mxu1 %v24296_v35  ;;  %v20977_v6 = vld [vmem:[%s23123_s14 + $0x6e8] ss:$52 sps:$4 sm:$0xff]   ;;  %v20983_v1 = vld [vmem:[%s23123_s14 + $0x750] ss:$52 sps:$4 sm:$0xff]   ;;  %v21010_v8 = vld [vmem:[%s23123_s14 + $0x8f8] ss:$52 sps:$4 sm:$0xff]  }
 0x9d2   : > { %16297 = vmatpush1.bf16.msra.mxu0 %v20915_v31  ;;  %16461 = vmatpush1.bf16.msra.mxu1 %v20916_v3  ;;  %v20985_v58 = vld [vmem:[%s23123_s14 + $0x754] ss:$52 sps:$4 sm:$0xff]   ;;  %v20988_v59 = vld [vmem:[%s23123_s14 + $0x75c] ss:$52 sps:$4 sm:$0xff]   ;;  %v20986_v31 = vld [vmem:[%s23123_s14 + $0x758] ss:$52 sps:$4 sm:$0xff]  }
 0x9d3   : > { %16298 = vmatprep.subr.bf16.mxu0 %v20917_v32  ;;  %16462 = vmatprep.subr.bf16.mxu1 %v20919_v4  ;;  %v20991_v3 = vld [vmem:[%s23123_s14 + $0x7bc] ss:$52 sps:$4 sm:$0xff]   ;;  %v20994_v32 = vld [vmem:[%s23123_s14 + $0x7c4] ss:$52 sps:$4 sm:$0xff]   ;;  %v21006_v14 = vld [vmem:[%s23123_s14 + $0x894] ss:$52 sps:$4 sm:$0xff]  }
 0x9d4   : > { %v20989_v4 = vld [vmem:[%s23123_s14 + $0x7b8] ss:$52 sps:$4 sm:$0xff]   ;;  %v21001_v29 = vld [vmem:[%s23123_s14 + $0x888] ss:$52 sps:$4 sm:$0xff]   ;;  %v21004_v10 = vld [vmem:[%s23123_s14 + $0x890] ss:$52 sps:$4 sm:$0xff]  }
 0x9d5   : > { %v21022_v23 = vld [vmem:[%s23123_s14 + $0x9c8] ss:$52 sps:$4 sm:$0xff]   ;;  %v21043_v42 = vld [vmem:[%s23123_s14 + $0xb60] ss:$52 sps:$4 sm:$0xff]   ;;  %v21058_v7 = vld [vmem:[%s23123_s14 + $0xc38] ss:$52 sps:$4 sm:$0xff]  }
 0x9d6   : > { %16299 = vmatpush1.bf16.msra.mxu0 %v20921_v5  ;;  %16463 = vmatpush1.bf16.msra.mxu1 %v20922_v0  ;;  %v20992_v5 = vld [vmem:[%s23123_s14 + $0x7c0] ss:$52 sps:$4 sm:$0xff]   ;;  %v20997_v0 = vld [vmem:[%s23123_s14 + $0x824] ss:$52 sps:$4 sm:$0xff]   ;;  %v21036_v33 = vld [vmem:[%s23123_s14 + $0xa9c] ss:$52 sps:$4 sm:$0xff]  }
 0x9d7   : > { %16300 = vmatprep.subr.bf16.mxu0 %v20923_v27  ;;  %16464 = vmatprep.subr.bf16.mxu1 %v20925_v2  ;;  %v21000_v27 = vld [vmem:[%s23123_s14 + $0x82c] ss:$52 sps:$4 sm:$0xff]   ;;  %v21030_v25 = vld [vmem:[%s23123_s14 + $0xa34] ss:$52 sps:$4 sm:$0xff]  }
 0x9d8   : > { %v20995_v2 = vld [vmem:[%s23123_s14 + $0x820] ss:$52 sps:$4 sm:$0xff]  }
 0x9da   : > { %16301 = vmatpush1.bf16.msra.mxu0 %v20927_v46  ;;  %16465 = vmatpush1.bf16.msra.mxu1 %v20928_v52  ;;  %v20998_v46 = vld [vmem:[%s23123_s14 + $0x828] ss:$52 sps:$4 sm:$0xff]   ;;  %v21003_v52 = vld [vmem:[%s23123_s14 + $0x88c] ss:$52 sps:$4 sm:$0xff]  }
 0x9db   : > { %16302 = vmatprep.subr.bf16.mxu0 %v20929_v30  ;;  %16466 = vmatprep.subr.bf16.mxu1 %v20931_v11  ;;  %v21009_v30 = vld [vmem:[%s23123_s14 + $0x8f4] ss:$52 sps:$4 sm:$0xff]   ;;  %v21012_v11 = vld [vmem:[%s23123_s14 + $0x8fc] ss:$52 sps:$4 sm:$0xff]  }
 0x9de   : > { %16303 = vmatpush1.bf16.msra.mxu0 %v20933_v12  ;;  %16467 = vmatpush1.bf16.msra.mxu1 %v20934_v15  ;;  %v21007_v12 = vld [vmem:[%s23123_s14 + $0x8f0] ss:$52 sps:$4 sm:$0xff]  }
 0x9df   : > { %16304 = vmatprep.subr.bf16.mxu0 %v20935_v16  ;;  %16468 = vmatprep.subr.bf16.mxu1 %v20937_v17  ;;  %v21015_v15 = vld [vmem:[%s23123_s14 + $0x95c] ss:$52 sps:$4 sm:$0xff]   ;;  %v21018_v16 = vld [vmem:[%s23123_s14 + $0x964] ss:$52 sps:$4 sm:$0xff]  }
 0x9e0   : > { %v21013_v17 = vld [vmem:[%s23123_s14 + $0x958] ss:$52 sps:$4 sm:$0xff]  }
 0x9e2   : > { %16305 = vmatpush1.bf16.msra.mxu0 %v20939_v18  ;;  %16469 = vmatpush1.bf16.msra.mxu1 %v20940_v19  ;;  %v21016_v18 = vld [vmem:[%s23123_s14 + $0x960] ss:$52 sps:$4 sm:$0xff]   ;;  %v21021_v19 = vld [vmem:[%s23123_s14 + $0x9c4] ss:$52 sps:$4 sm:$0xff]  }
 0x9e3   : > { %16306 = vmatprep.subr.bf16.mxu0 %v20941_v26  ;;  %16470 = vmatprep.subr.bf16.mxu1 %v20943_v38  ;;  %v21024_v26 = vld [vmem:[%s23123_s14 + $0x9cc] ss:$52 sps:$4 sm:$0xff]  }
 0x9e4   : > { %v21019_v38 = vld [vmem:[%s23123_s14 + $0x9c0] ss:$52 sps:$4 sm:$0xff]  }
 0x9e6   : > { %16307 = vmatpush1.bf16.msra.mxu0 %v20945_v24  ;;  %16471 = vmatpush1.bf16.msra.mxu1 %v20946_v36  ;;  %v21027_v24 = vld [vmem:[%s23123_s14 + $0xa2c] ss:$52 sps:$4 sm:$0xff]   ;;  %v21025_v36 = vld [vmem:[%s23123_s14 + $0xa28] ss:$52 sps:$4 sm:$0xff]  }
 0x9e7   : > { %16308 = vmatprep.subr.bf16.mxu0 %v20947_v60  ;;  %16472 = vmatprep.subr.bf16.mxu1 %v20949_v48  ;;  %v21028_v60 = vld [vmem:[%s23123_s14 + $0xa30] ss:$52 sps:$4 sm:$0xff]   ;;  %v21033_v48 = vld [vmem:[%s23123_s14 + $0xa94] ss:$52 sps:$4 sm:$0xff]  }
 0x9ea   : > { %16309 = vmatpush1.bf16.msra.mxu0 %v20951_v61  ;;  %16473 = vmatpush1.bf16.msra.mxu1 %v20952_v41  ;;  %v21031_v61 = vld [vmem:[%s23123_s14 + $0xa90] ss:$52 sps:$4 sm:$0xff]   ;;  %v21034_v41 = vld [vmem:[%s23123_s14 + $0xa98] ss:$52 sps:$4 sm:$0xff]  }
 0x9eb   : > { %16310 = vmatprep.subr.bf16.mxu0 %v20953_v54  ;;  %16474 = vmatprep.subr.bf16.mxu1 %v20955_v20  ;;  %v21039_v54 = vld [vmem:[%s23123_s14 + $0xafc] ss:$52 sps:$4 sm:$0xff]   ;;  %v21042_v20 = vld [vmem:[%s23123_s14 + $0xb04] ss:$52 sps:$4 sm:$0xff]  }
 0x9ee   : > { %16311 = vmatpush1.bf16.msra.mxu0 %v20957_v37  ;;  %16475 = vmatpush1.bf16.msra.mxu1 %v20958_v50  ;;  %v21037_v37 = vld [vmem:[%s23123_s14 + $0xaf8] ss:$52 sps:$4 sm:$0xff]   ;;  %v21040_v50 = vld [vmem:[%s23123_s14 + $0xb00] ss:$52 sps:$4 sm:$0xff]  }
 0x9ef   : > { %16312 = vmatprep.subr.bf16.mxu0 %v20959_v39  ;;  %16476 = vmatprep.subr.bf16.mxu1 %v20961_v40  ;;  %v21045_v39 = vld [vmem:[%s23123_s14 + $0xb64] ss:$52 sps:$4 sm:$0xff]   ;;  %v21048_v40 = vld [vmem:[%s23123_s14 + $0xb6c] ss:$52 sps:$4 sm:$0xff]  }
 0x9f2   : > { %16313 = vmatpush1.bf16.msra.mxu0 %v20963_v43  ;;  %16477 = vmatpush1.bf16.msra.mxu1 %v20964_v44  ;;  %v21046_v43 = vld [vmem:[%s23123_s14 + $0xb68] ss:$52 sps:$4 sm:$0xff]   ;;  %v21051_v44 = vld [vmem:[%s23123_s14 + $0xbcc] ss:$52 sps:$4 sm:$0xff]  }
 0x9f3   : > { %16314 = vmatprep.subr.bf16.mxu0 %v20965_v28  ;;  %16478 = vmatprep.subr.bf16.mxu1 %v20967_v34  ;;  %v21054_v28 = vld [vmem:[%s23123_s14 + $0xbd4] ss:$52 sps:$4 sm:$0xff]  }
 0x9f4   : > { %v21049_v34 = vld [vmem:[%s23123_s14 + $0xbc8] ss:$52 sps:$4 sm:$0xff]  }
 0x9f6   : > { %16315 = vmatpush1.bf16.msra.mxu0 %v20969_v49  ;;  %16479 = vmatpush1.bf16.msra.mxu1 %v20970_v63  ;;  %v21052_v49 = vld [vmem:[%s23123_s14 + $0xbd0] ss:$52 sps:$4 sm:$0xff]   ;;  %v21057_v63 = vld [vmem:[%s23123_s14 + $0xc34] ss:$52 sps:$4 sm:$0xff]  }
 0x9f7   : > { %16325 = vmatprep.subr.bf16.mxu0 %v20973_v47  ;;  %16489 = vmatprep.subr.bf16.mxu1 %v20976_v13  ;;  %v21060_v47 = vld [vmem:[%s23123_s14 + $0xc3c] ss:$52 sps:$4 sm:$0xff]  }
 0x9f8   : > { %v21055_v13 = vld [vmem:[%s23123_s14 + $0xc30] ss:$52 sps:$4 sm:$0xff]  }
 0x9f9   : > { %16317 = vmatmul.mubr.bf16.vlgmr.msra.gmra.mrb[0].mxu0 %v24321_v53  ;;  %16481 = vmatmul.mubr.bf16.vlgmr.msra.gmra.mrb[0].mxu1 %v24321_v53 }
 0x9fa   : > { %16326 = vmatpush1.bf16.msra.mxu0 %v20971_v51  ;;  %16490 = vmatpush1.bf16.msra.mxu1 %v20974_v62  ;;  %v21063_v51 = vld [vmem:[%s23123_s14 + $0xc9c] ss:$52 sps:$4 sm:$0xff]   ;;  %v21066_v62 = vld [vmem:[%s23123_s14 + $0xca4] ss:$52 sps:$4 sm:$0xff]  }
 0x9fb   : > { %16327 = vmatprep.subr.bf16.mxu0 %v20979_v22  ;;  %16491 = vmatprep.subr.bf16.mxu1 %v20982_v55  ;;  %v21061_v22 = vld [vmem:[%s23123_s14 + $0xc98] ss:$52 sps:$4 sm:$0xff]   ;;  %v21064_v55 = vld [vmem:[%s23123_s14 + $0xca0] ss:$52 sps:$4 sm:$0xff]  }
 0x9fc   : > { %16357 = vmatprep.mubr.bf16.mxu0 %v24326_v9  ;;  %16521 = vmatprep.mubr.bf16.mxu1 %v24326_v9 }
 0x9fe   : > { %16328 = vmatpush1.bf16.msra.mxu0 %v20977_v6  ;;  %16492 = vmatpush1.bf16.msra.mxu1 %v20980_v57  ;;  %v21070_v6 = vld [vmem:[%s23123_s14 + $0xd04] ss:$52 sps:$4 sm:$0xff]   ;;  %v21073_v57 = vld [vmem:[%s23123_s14 + $0xd0c] ss:$52 sps:$4 sm:$0xff]  }
 0x9ff   : > { %16329 = vmatprep.subr.bf16.mxu0 %v20985_v58  ;;  %16493 = vmatprep.subr.bf16.mxu1 %v20988_v59  ;;  %v21068_v58 = vld [vmem:[%s23123_s14 + $0xd00] ss:$52 sps:$4 sm:$0xff]   ;;  %v24395_v59 = vpack.c.bf16 %v24312_v45, %v24312_v45 }
 0xa02   : > { %16330 = vmatpush1.bf16.msra.mxu0 %v20983_v1  ;;  %16494 = vmatpush1.bf16.msra.mxu1 %v20986_v31  ;;  %v21071_v1 = vld [vmem:[%s23123_s14 + $0xd08] ss:$52 sps:$4 sm:$0xff]  }
 0xa03   : > { %16331 = vmatprep.subr.bf16.mxu0 %v20991_v3  ;;  %16495 = vmatprep.subr.bf16.mxu1 %v20994_v32  ;;  %v24398_v31 = vld [vmem:[#allocation2 + $0x8] sm:$0xff] }
 0xa04   : > { %v21076_v3 = vld [vmem:[%s23123_s14 + $0xd6c] ss:$52 sps:$4 sm:$0xff]   ;;  %v21079_v32 = vld [vmem:[%s23123_s14 + $0xd74] ss:$52 sps:$4 sm:$0xff]  }
 0xa06   : > { %16332 = vmatpush1.bf16.msra.mxu0 %v20989_v4  ;;  %16496 = vmatpush1.bf16.msra.mxu1 %v20992_v5  ;;  %v24404_v4 = vrot.slane %v24398_v31, %v24286_v21  ;;  %v21074_v5 = vld [vmem:[%s23123_s14 + $0xd68] ss:$52 sps:$4 sm:$0xff]  }
 0xa07   : > { %16333 = vmatprep.subr.bf16.mxu0 %v20997_v0  ;;  %16497 = vmatprep.subr.bf16.mxu1 %v21000_v27  ;;  %v21077_v0 = vld [vmem:[%s23123_s14 + $0xd70] ss:$52 sps:$4 sm:$0xff]   ;;  %v21082_v27 = vld [vmem:[%s23123_s14 + $0xdd4] ss:$52 sps:$4 sm:$0xff]  }
 0xa08   : > { %v11077_v45 = vcombine.high %v24404_v4, %v24404_v4 }
 0xa0a   : > { %16334 = vmatpush1.bf16.msra.mxu0 %v20995_v2  ;;  %16498 = vmatpush1.bf16.msra.mxu1 %v20998_v46  ;;  %v21085_v2 = vld [vmem:[%s23123_s14 + $0xddc] ss:$52 sps:$4 sm:$0xff]   ;;  %v24414_v46 = vpack.c.bf16 %v11077_v45, %v11077_v45  ;;  %v21155_v45 = vld [vmem:[%s23123_s14 + $0x12b8] ss:$52 sps:$4 sm:$0xff]  }
 0xa0b   : > { %16335 = vmatprep.subr.bf16.mxu0 %v21003_v52  ;;  %16499 = vmatprep.subr.bf16.mxu1 %v21006_v14  ;;  %v21080_v52 = vld [vmem:[%s23123_s14 + $0xdd0] ss:$52 sps:$4 sm:$0xff]   ;;  %v21083_v14 = vld [vmem:[%s23123_s14 + $0xdd8] ss:$52 sps:$4 sm:$0xff]  }
 0xa0e   : > { %16336 = vmatpush1.bf16.msra.mxu0 %v21001_v29  ;;  %16500 = vmatpush1.bf16.msra.mxu1 %v21004_v10  ;;  %v21088_v29 = vld [vmem:[%s23123_s14 + $0xe3c] ss:$52 sps:$4 sm:$0xff]   ;;  %v21091_v10 = vld [vmem:[%s23123_s14 + $0xe44] ss:$52 sps:$4 sm:$0xff]  }
 0xa0f   : > { %16337 = vmatprep.subr.bf16.mxu0 %v21009_v30  ;;  %16501 = vmatprep.subr.bf16.mxu1 %v21012_v11  ;;  %v21086_v30 = vld [vmem:[%s23123_s14 + $0xe38] ss:$52 sps:$4 sm:$0xff]   ;;  %v21089_v11 = vld [vmem:[%s23123_s14 + $0xe40] ss:$52 sps:$4 sm:$0xff]  }
 0xa12   : > { %16338 = vmatpush1.bf16.msra.mxu0 %v21007_v12  ;;  %16502 = vmatpush1.bf16.msra.mxu1 %v21010_v8  ;;  %v21094_v12 = vld [vmem:[%s23123_s14 + $0xea4] ss:$52 sps:$4 sm:$0xff]   ;;  %v21097_v8 = vld [vmem:[%s23123_s14 + $0xeac] ss:$52 sps:$4 sm:$0xff]  }
 0xa13   : > { %16339 = vmatprep.subr.bf16.mxu0 %v21015_v15  ;;  %16503 = vmatprep.subr.bf16.mxu1 %v21018_v16  ;;  %v21092_v15 = vld [vmem:[%s23123_s14 + $0xea0] ss:$52 sps:$4 sm:$0xff]   ;;  %v21095_v16 = vld [vmem:[%s23123_s14 + $0xea8] ss:$52 sps:$4 sm:$0xff]  }
 0xa16   : > { %16340 = vmatpush1.bf16.msra.mxu0 %v21013_v17  ;;  %16504 = vmatpush1.bf16.msra.mxu1 %v21016_v18  ;;  %v21100_v17 = vld [vmem:[%s23123_s14 + $0xf0c] ss:$52 sps:$4 sm:$0xff]   ;;  %v21103_v18 = vld [vmem:[%s23123_s14 + $0xf14] ss:$52 sps:$4 sm:$0xff]  }
 0xa17   : > { %16341 = vmatprep.subr.bf16.mxu0 %v21021_v19  ;;  %16505 = vmatprep.subr.bf16.mxu1 %v21024_v26  ;;  %v21098_v19 = vld [vmem:[%s23123_s14 + $0xf08] ss:$52 sps:$4 sm:$0xff]   ;;  %v21101_v26 = vld [vmem:[%s23123_s14 + $0xf10] ss:$52 sps:$4 sm:$0xff]  }
 0xa1a   : > { %16342 = vmatpush1.bf16.msra.mxu0 %v21019_v38  ;;  %16506 = vmatpush1.bf16.msra.mxu1 %v21022_v23  ;;  %v21106_v38 = vld [vmem:[%s23123_s14 + $0xf74] ss:$52 sps:$4 sm:$0xff]   ;;  %v21109_v23 = vld [vmem:[%s23123_s14 + $0xf7c] ss:$52 sps:$4 sm:$0xff]  }
 0xa1b   : > { %16343 = vmatprep.subr.bf16.mxu0 %v21027_v24  ;;  %16507 = vmatprep.subr.bf16.mxu1 %v21030_v25  ;;  %v21104_v24 = vld [vmem:[%s23123_s14 + $0xf70] ss:$52 sps:$4 sm:$0xff]   ;;  %v21107_v25 = vld [vmem:[%s23123_s14 + $0xf78] ss:$52 sps:$4 sm:$0xff]  }
 0xa1e   : > { %16344 = vmatpush1.bf16.msra.mxu0 %v21025_v36  ;;  %16508 = vmatpush1.bf16.msra.mxu1 %v21028_v60  ;;  %v21112_v36 = vld [vmem:[%s23123_s14 + $0xfdc] ss:$52 sps:$4 sm:$0xff]   ;;  %v21115_v60 = vld [vmem:[%s23123_s14 + $0xfe4] ss:$52 sps:$4 sm:$0xff]  }
 0xa1f   : > { %16345 = vmatprep.subr.bf16.mxu0 %v21033_v48  ;;  %16509 = vmatprep.subr.bf16.mxu1 %v21036_v33  ;;  %v21110_v48 = vld [vmem:[%s23123_s14 + $0xfd8] ss:$52 sps:$4 sm:$0xff]   ;;  %v21113_v33 = vld [vmem:[%s23123_s14 + $0xfe0] ss:$52 sps:$4 sm:$0xff]  }
 0xa22   : > { %16346 = vmatpush1.bf16.msra.mxu0 %v21031_v61  ;;  %16510 = vmatpush1.bf16.msra.mxu1 %v21034_v41  ;;  %v21118_v61 = vld [vmem:[%s23123_s14 + $0x1044] ss:$52 sps:$4 sm:$0xff]   ;;  %v21121_v41 = vld [vmem:[%s23123_s14 + $0x104c] ss:$52 sps:$4 sm:$0xff]  }
 0xa23   : > { %16347 = vmatprep.subr.bf16.mxu0 %v21039_v54  ;;  %16511 = vmatprep.subr.bf16.mxu1 %v21042_v20  ;;  %v21116_v54 = vld [vmem:[%s23123_s14 + $0x1040] ss:$52 sps:$4 sm:$0xff]   ;;  %v21119_v20 = vld [vmem:[%s23123_s14 + $0x1048] ss:$52 sps:$4 sm:$0xff]  }
 0xa26   : > { %16348 = vmatpush1.bf16.msra.mxu0 %v21037_v37  ;;  %16512 = vmatpush1.bf16.msra.mxu1 %v21040_v50  ;;  %v21124_v37 = vld [vmem:[%s23123_s14 + $0x10ac] ss:$52 sps:$4 sm:$0xff]   ;;  %v21127_v50 = vld [vmem:[%s23123_s14 + $0x10b4] ss:$52 sps:$4 sm:$0xff]  }
 0xa27   : > { %16349 = vmatprep.subr.bf16.mxu0 %v21045_v39  ;;  %16513 = vmatprep.subr.bf16.mxu1 %v21048_v40  ;;  %v21122_v39 = vld [vmem:[%s23123_s14 + $0x10a8] ss:$52 sps:$4 sm:$0xff]   ;;  %v21125_v40 = vld [vmem:[%s23123_s14 + $0x10b0] ss:$52 sps:$4 sm:$0xff]  }
 0xa2a   : > { %16350 = vmatpush1.bf16.msra.mxu0 %v21043_v42  ;;  %16514 = vmatpush1.bf16.msra.mxu1 %v21046_v43  ;;  %v21130_v42 = vld [vmem:[%s23123_s14 + $0x1114] ss:$52 sps:$4 sm:$0xff]   ;;  %v21133_v43 = vld [vmem:[%s23123_s14 + $0x111c] ss:$52 sps:$4 sm:$0xff]  }
 0xa2b   : > { %16351 = vmatprep.subr.bf16.mxu0 %v21051_v44  ;;  %16515 = vmatprep.subr.bf16.mxu1 %v21054_v28  ;;  %v21128_v44 = vld [vmem:[%s23123_s14 + $0x1110] ss:$52 sps:$4 sm:$0xff]   ;;  %v21131_v28 = vld [vmem:[%s23123_s14 + $0x1118] ss:$52 sps:$4 sm:$0xff]  }
 0xa2e   : > { %16352 = vmatpush1.bf16.msra.mxu0 %v21049_v34  ;;  %16516 = vmatpush1.bf16.msra.mxu1 %v21052_v49  ;;  %v21136_v34 = vld [vmem:[%s23123_s14 + $0x117c] ss:$52 sps:$4 sm:$0xff]   ;;  %v21139_v49 = vld [vmem:[%s23123_s14 + $0x1184] ss:$52 sps:$4 sm:$0xff]  }
 0xa2f   : > { %16353 = vmatprep.subr.bf16.mxu0 %v21057_v63  ;;  %16517 = vmatprep.subr.bf16.mxu1 %v21060_v47  ;;  %v21134_v63 = vld [vmem:[%s23123_s14 + $0x1178] ss:$52 sps:$4 sm:$0xff]   ;;  %v21137_v47 = vld [vmem:[%s23123_s14 + $0x1180] ss:$52 sps:$4 sm:$0xff]  }
 0xa32   : > { %16354 = vmatpush1.bf16.msra.mxu0 %v21055_v13  ;;  %16518 = vmatpush1.bf16.msra.mxu1 %v21058_v7  ;;  %v21142_v13 = vld [vmem:[%s23123_s14 + $0x11e4] ss:$52 sps:$4 sm:$0xff]   ;;  %v21145_v7 = vld [vmem:[%s23123_s14 + $0x11ec] ss:$52 sps:$4 sm:$0xff]  }
 0xa33   : > { %16355 = vmatprep.subr.bf16.mxu0 %v21063_v51  ;;  %16519 = vmatprep.subr.bf16.mxu1 %v21066_v62  ;;  %v21140_v51 = vld [vmem:[%s23123_s14 + $0x11e0] ss:$52 sps:$4 sm:$0xff]   ;;  %v21143_v62 = vld [vmem:[%s23123_s14 + $0x11e8] ss:$52 sps:$4 sm:$0xff]  }
 0xa36   : > { %16356 = vmatpush1.bf16.msra.mxu0 %v21061_v22  ;;  %16520 = vmatpush1.bf16.msra.mxu1 %v21064_v55  ;;  %v21148_v22 = vld [vmem:[%s23123_s14 + $0x124c] ss:$52 sps:$4 sm:$0xff]   ;;  %v21151_v55 = vld [vmem:[%s23123_s14 + $0x1254] ss:$52 sps:$4 sm:$0xff]  }
 0xa37   : > { %16366 = vmatprep.subr.bf16.mxu0 %v21070_v6  ;;  %16530 = vmatprep.subr.bf16.mxu1 %v21073_v57  ;;  %v21146_v6 = vld [vmem:[%s23123_s14 + $0x1248] ss:$52 sps:$4 sm:$0xff]   ;;  %v21149_v57 = vld [vmem:[%s23123_s14 + $0x1250] ss:$52 sps:$4 sm:$0xff]  }
 0xa39   : > { %16358 = vmatmul.mubr.bf16.vlgmr.msra.gmra.mrb[0].mxu0 %v24395_v59  ;;  %16522 = vmatmul.mubr.bf16.vlgmr.msra.gmra.mrb[0].mxu1 %v24395_v59 }
 0xa3a   : > { %16367 = vmatpush1.bf16.msra.mxu0 %v21068_v58  ;;  %16531 = vmatpush1.bf16.msra.mxu1 %v21071_v1  ;;  %v21154_v58 = vld [vmem:[%s23123_s14 + $0x12b4] ss:$52 sps:$4 sm:$0xff]   ;;  %v21157_v1 = vld [vmem:[%s23123_s14 + $0x12bc] ss:$52 sps:$4 sm:$0xff]  }
 0xa3b   : > { %16368 = vmatprep.subr.bf16.mxu0 %v21076_v3  ;;  %16532 = vmatprep.subr.bf16.mxu1 %v21079_v32  ;;  %v11062_v3 = vcombine.high %v24398_v31, %v24398_v31  ;;  %v21152_v32 = vld [vmem:[%s23123_s14 + $0x12b0] ss:$52 sps:$4 sm:$0xff]   ;;  %v21158_v31 = vld [vmem:[%s23123_s14 + $0x1318] ss:$52 sps:$4 sm:$0xff]  }
 0xa3c   : > { %16398 = vmatprep.mubr.bf16.mxu0 %v24414_v46  ;;  %16562 = vmatprep.mubr.bf16.mxu1 %v24414_v46 }
 0xa3e   : > { %16369 = vmatpush1.bf16.msra.mxu0 %v21074_v5  ;;  %16533 = vmatpush1.bf16.msra.mxu1 %v21077_v0  ;;  %v21160_v5 = vld [vmem:[%s23123_s14 + $0x131c] ss:$52 sps:$4 sm:$0xff]   ;;  %v21163_v0 = vld [vmem:[%s23123_s14 + $0x1324] ss:$52 sps:$4 sm:$0xff]  }
 0xa3f   : > { %16370 = vmatprep.subr.bf16.mxu0 %v21082_v27  ;;  %16534 = vmatprep.subr.bf16.mxu1 %v21085_v2  ;;  %v24473_v27 = vrot.slane %v11062_v3, %v24286_v21  ;;  %v21161_v2 = vld [vmem:[%s23123_s14 + $0x1320] ss:$52 sps:$4 sm:$0xff]   ;;  %v21230_v3 = vld [vmem:[%s23123_s14 + $0x17f8] ss:$52 sps:$4 sm:$0xff]  }
 0xa42   : > { %16371 = vmatpush1.bf16.msra.mxu0 %v21080_v52  ;;  %16535 = vmatpush1.bf16.msra.mxu1 %v21083_v14  ;;  %v21166_v52 = vld [vmem:[%s23123_s14 + $0x1384] ss:$52 sps:$4 sm:$0xff]   ;;  %v21169_v14 = vld [vmem:[%s23123_s14 + $0x138c] ss:$52 sps:$4 sm:$0xff]  }
 0xa43   : > { %16372 = vmatprep.subr.bf16.mxu0 %v21088_v29  ;;  %16536 = vmatprep.subr.bf16.mxu1 %v21091_v10  ;;  %v11078_v29 = vcombine.high %v24473_v27, %v24473_v27  ;;  %v24483_v10 = vpack.c.bf16 %v24404_v4, %v24404_v4  ;;  %v21170_v4 = vld [vmem:[%s23123_s14 + $0x13e8] ss:$52 sps:$4 sm:$0xff]  }
 0xa46   : > { %16373 = vmatpush1.bf16.msra.mxu0 %v21086_v30  ;;  %16537 = vmatpush1.bf16.msra.mxu1 %v21089_v11  ;;  %v21164_v30 = vld [vmem:[%s23123_s14 + $0x1380] ss:$52 sps:$4 sm:$0xff]   ;;  %v21167_v11 = vld [vmem:[%s23123_s14 + $0x1388] ss:$52 sps:$4 sm:$0xff]  }
 0xa47   : > { %16374 = vmatprep.subr.bf16.mxu0 %v21094_v12  ;;  %16538 = vmatprep.subr.bf16.mxu1 %v21097_v8  ;;  %v21172_v12 = vld [vmem:[%s23123_s14 + $0x13ec] ss:$52 sps:$4 sm:$0xff]   ;;  %v21175_v8 = vld [vmem:[%s23123_s14 + $0x13f4] ss:$52 sps:$4 sm:$0xff]  }
 0xa4a   : > { %16375 = vmatpush1.bf16.msra.mxu0 %v21092_v15  ;;  %16539 = vmatpush1.bf16.msra.mxu1 %v21095_v16  ;;  %v24489_v15 = vpack.c.bf16 %v11078_v29, %v11078_v29  ;;  %v21173_v16 = vld [vmem:[%s23123_s14 + $0x13f0] ss:$52 sps:$4 sm:$0xff]  }
 0xa4b   : > { %16376 = vmatprep.subr.bf16.mxu0 %v21100_v17  ;;  %16540 = vmatprep.subr.bf16.mxu1 %v21103_v18  ;;  %v21178_v17 = vld [vmem:[%s23123_s14 + $0x1454] ss:$52 sps:$4 sm:$0xff]   ;;  %v21181_v18 = vld [vmem:[%s23123_s14 + $0x145c] ss:$52 sps:$4 sm:$0xff]  }
 0xa4c   : > { %v21245_v29 = vld [vmem:[%s23123_s14 + $0x18d0] ss:$52 sps:$4 sm:$0xff]  }
 0xa4e   : > { %16377 = vmatpush1.bf16.msra.mxu0 %v21098_v19  ;;  %16541 = vmatpush1.bf16.msra.mxu1 %v21101_v26  ;;  %v21176_v19 = vld [vmem:[%s23123_s14 + $0x1450] ss:$52 sps:$4 sm:$0xff]   ;;  %v21179_v26 = vld [vmem:[%s23123_s14 + $0x1458] ss:$52 sps:$4 sm:$0xff]  }
 0xa4f   : > { %16378 = vmatprep.subr.bf16.mxu0 %v21106_v38  ;;  %16542 = vmatprep.subr.bf16.mxu1 %v21109_v23  ;;  %v21184_v38 = vld [vmem:[%s23123_s14 + $0x14bc] ss:$52 sps:$4 sm:$0xff]   ;;  %v21187_v23 = vld [vmem:[%s23123_s14 + $0x14c4] ss:$52 sps:$4 sm:$0xff]  }
 0xa52   : > { %16379 = vmatpush1.bf16.msra.mxu0 %v21104_v24  ;;  %16543 = vmatpush1.bf16.msra.mxu1 %v21107_v25  ;;  %v21182_v24 = vld [vmem:[%s23123_s14 + $0x14b8] ss:$52 sps:$4 sm:$0xff]   ;;  %v21185_v25 = vld [vmem:[%s23123_s14 + $0x14c0] ss:$52 sps:$4 sm:$0xff]  }
 0xa53   : > { %16380 = vmatprep.subr.bf16.mxu0 %v21112_v36  ;;  %16544 = vmatprep.subr.bf16.mxu1 %v21115_v60  ;;  %v21190_v36 = vld [vmem:[%s23123_s14 + $0x1524] ss:$52 sps:$4 sm:$0xff]   ;;  %v21193_v60 = vld [vmem:[%s23123_s14 + $0x152c] ss:$52 sps:$4 sm:$0xff]  }
 0xa56   : > { %16381 = vmatpush1.bf16.msra.mxu0 %v21110_v48  ;;  %16545 = vmatpush1.bf16.msra.mxu1 %v21113_v33  ;;  %v21188_v48 = vld [vmem:[%s23123_s14 + $0x1520] ss:$52 sps:$4 sm:$0xff]   ;;  %v21191_v33 = vld [vmem:[%s23123_s14 + $0x1528] ss:$52 sps:$4 sm:$0xff]  }
 0xa57   : > { %16382 = vmatprep.subr.bf16.mxu0 %v21118_v61  ;;  %16546 = vmatprep.subr.bf16.mxu1 %v21121_v41  ;;  %v21196_v61 = vld [vmem:[%s23123_s14 + $0x158c] ss:$52 sps:$4 sm:$0xff]   ;;  %v21199_v41 = vld [vmem:[%s23123_s14 + $0x1594] ss:$52 sps:$4 sm:$0xff]  }
 0xa5a   : > { %16383 = vmatpush1.bf16.msra.mxu0 %v21116_v54  ;;  %16547 = vmatpush1.bf16.msra.mxu1 %v21119_v20  ;;  %v21194_v54 = vld [vmem:[%s23123_s14 + $0x1588] ss:$52 sps:$4 sm:$0xff]   ;;  %v21197_v20 = vld [vmem:[%s23123_s14 + $0x1590] ss:$52 sps:$4 sm:$0xff]  }
 0xa5b   : > { %16384 = vmatprep.subr.bf16.mxu0 %v21124_v37  ;;  %16548 = vmatprep.subr.bf16.mxu1 %v21127_v50  ;;  %v21202_v37 = vld [vmem:[%s23123_s14 + $0x15f4] ss:$52 sps:$4 sm:$0xff]   ;;  %v21205_v50 = vld [vmem:[%s23123_s14 + $0x15fc] ss:$52 sps:$4 sm:$0xff]  }
 0xa5e   : > { %16385 = vmatpush1.bf16.msra.mxu0 %v21122_v39  ;;  %16549 = vmatpush1.bf16.msra.mxu1 %v21125_v40  ;;  %v21200_v39 = vld [vmem:[%s23123_s14 + $0x15f0] ss:$52 sps:$4 sm:$0xff]   ;;  %v21203_v40 = vld [vmem:[%s23123_s14 + $0x15f8] ss:$52 sps:$4 sm:$0xff]  }
 0xa5f   : > { %16386 = vmatprep.subr.bf16.mxu0 %v21130_v42  ;;  %16550 = vmatprep.subr.bf16.mxu1 %v21133_v43  ;;  %v21208_v42 = vld [vmem:[%s23123_s14 + $0x165c] ss:$52 sps:$4 sm:$0xff]   ;;  %v21211_v43 = vld [vmem:[%s23123_s14 + $0x1664] ss:$52 sps:$4 sm:$0xff]  }
 0xa62   : > { %16387 = vmatpush1.bf16.msra.mxu0 %v21128_v44  ;;  %16551 = vmatpush1.bf16.msra.mxu1 %v21131_v28  ;;  %v21206_v44 = vld [vmem:[%s23123_s14 + $0x1658] ss:$52 sps:$4 sm:$0xff]   ;;  %v21209_v28 = vld [vmem:[%s23123_s14 + $0x1660] ss:$52 sps:$4 sm:$0xff]  }
 0xa63   : > { %16388 = vmatprep.subr.bf16.mxu0 %v21136_v34  ;;  %16552 = vmatprep.subr.bf16.mxu1 %v21139_v49  ;;  %v21214_v34 = vld [vmem:[%s23123_s14 + $0x16c4] ss:$52 sps:$4 sm:$0xff]   ;;  %v21217_v49 = vld [vmem:[%s23123_s14 + $0x16cc] ss:$52 sps:$4 sm:$0xff]  }
 0xa66   : > { %16389 = vmatpush1.bf16.msra.mxu0 %v21134_v63  ;;  %16553 = vmatpush1.bf16.msra.mxu1 %v21137_v47  ;;  %v21212_v63 = vld [vmem:[%s23123_s14 + $0x16c0] ss:$52 sps:$4 sm:$0xff]   ;;  %v21215_v47 = vld [vmem:[%s23123_s14 + $0x16c8] ss:$52 sps:$4 sm:$0xff]  }
 0xa67   : > { %16390 = vmatprep.subr.bf16.mxu0 %v21142_v13  ;;  %16554 = vmatprep.subr.bf16.mxu1 %v21145_v7  ;;  %v21220_v13 = vld [vmem:[%s23123_s14 + $0x172c] ss:$52 sps:$4 sm:$0xff]   ;;  %v21223_v7 = vld [vmem:[%s23123_s14 + $0x1734] ss:$52 sps:$4 sm:$0xff]  }
 0xa6a   : > { %16391 = vmatpush1.bf16.msra.mxu0 %v21140_v51  ;;  %16555 = vmatpush1.bf16.msra.mxu1 %v21143_v62  ;;  %v21218_v51 = vld [vmem:[%s23123_s14 + $0x1728] ss:$52 sps:$4 sm:$0xff]   ;;  %v21221_v62 = vld [vmem:[%s23123_s14 + $0x1730] ss:$52 sps:$4 sm:$0xff]  }
 0xa6b   : > { %16392 = vmatprep.subr.bf16.mxu0 %v21148_v22  ;;  %16556 = vmatprep.subr.bf16.mxu1 %v21151_v55  ;;  %v21226_v22 = vld [vmem:[%s23123_s14 + $0x1794] ss:$52 sps:$4 sm:$0xff]   ;;  %v21229_v55 = vld [vmem:[%s23123_s14 + $0x179c] ss:$52 sps:$4 sm:$0xff]  }
 0xa6e   : > { %16393 = vmatpush1.bf16.msra.mxu0 %v21146_v6  ;;  %16557 = vmatpush1.bf16.msra.mxu1 %v21149_v57  ;;  %v21224_v6 = vld [vmem:[%s23123_s14 + $0x1790] ss:$52 sps:$4 sm:$0xff]   ;;  %v21227_v57 = vld [vmem:[%s23123_s14 + $0x1798] ss:$52 sps:$4 sm:$0xff]  }
 0xa6f   : > { %16394 = vmatprep.subr.bf16.mxu0 %v21154_v58  ;;  %16558 = vmatprep.subr.bf16.mxu1 %v21157_v1  ;;  %v21232_v58 = vld [vmem:[%s23123_s14 + $0x17fc] ss:$52 sps:$4 sm:$0xff]   ;;  %v21235_v1 = vld [vmem:[%s23123_s14 + $0x1804] ss:$52 sps:$4 sm:$0xff]  }
 0xa72   : > { %16395 = vmatpush1.bf16.msra.mxu0 %v21152_v32  ;;  %16559 = vmatpush1.bf16.msra.mxu1 %v21155_v45  ;;  %v21233_v32 = vld [vmem:[%s23123_s14 + $0x1800] ss:$52 sps:$4 sm:$0xff]   ;;  %v21238_v45 = vld [vmem:[%s23123_s14 + $0x1864] ss:$52 sps:$4 sm:$0xff]  }
 0xa73   : > { %16396 = vmatprep.subr.bf16.mxu0 %v21160_v5  ;;  %16560 = vmatprep.subr.bf16.mxu1 %v21163_v0  ;;  %v21241_v5 = vld [vmem:[%s23123_s14 + $0x186c] ss:$52 sps:$4 sm:$0xff]  }
 0xa74   : > { %v21236_v0 = vld [vmem:[%s23123_s14 + $0x1860] ss:$52 sps:$4 sm:$0xff]  }
 0xa76   : > { %16397 = vmatpush1.bf16.msra.mxu0 %v21158_v31  ;;  %16561 = vmatpush1.bf16.msra.mxu1 %v21161_v2  ;;  %v21239_v31 = vld [vmem:[%s23123_s14 + $0x1868] ss:$52 sps:$4 sm:$0xff]   ;;  %v21244_v2 = vld [vmem:[%s23123_s14 + $0x18cc] ss:$52 sps:$4 sm:$0xff]  }
 0xa77   : > { %16407 = vmatprep.subr.bf16.mxu0 %v21166_v52  ;;  %16571 = vmatprep.subr.bf16.mxu1 %v21169_v14  ;;  %v21247_v52 = vld [vmem:[%s23123_s14 + $0x18d4] ss:$52 sps:$4 sm:$0xff]  }
 0xa78   : > { %v21242_v14 = vld [vmem:[%s23123_s14 + $0x18c8] ss:$52 sps:$4 sm:$0xff]  }
 0xa79   : > { %16399 = vmatmul.mubr.bf16.vlgmr.msra.gmra.mrb[0].mxu0 %v24483_v10  ;;  %16563 = vmatmul.mubr.bf16.vlgmr.msra.gmra.mrb[0].mxu1 %v24483_v10 }
 0xa7a   : > { %16408 = vmatpush1.bf16.msra.mxu0 %v21164_v30  ;;  %16572 = vmatpush1.bf16.msra.mxu1 %v21167_v11  ;;  %v21250_v30 = vld [vmem:[%s23123_s14 + $0x1934] ss:$52 sps:$4 sm:$0xff]   ;;  %v21253_v11 = vld [vmem:[%s23123_s14 + $0x193c] ss:$52 sps:$4 sm:$0xff]  }
 0xa7b   : > { %16409 = vmatprep.subr.bf16.mxu0 %v21172_v12  ;;  %16573 = vmatprep.subr.bf16.mxu1 %v21175_v8  ;;  %v21248_v12 = vld [vmem:[%s23123_s14 + $0x1930] ss:$52 sps:$4 sm:$0xff]   ;;  %v21251_v8 = vld [vmem:[%s23123_s14 + $0x1938] ss:$52 sps:$4 sm:$0xff]  }
 0xa7c   : > { %16439 = vmatprep.mubr.bf16.mxu0 %v24489_v15  ;;  %16603 = vmatprep.mubr.bf16.mxu1 %v24489_v15 }
 0xa7e   : > { %16410 = vmatpush1.bf16.msra.mxu0 %v21170_v4  ;;  %16574 = vmatpush1.bf16.msra.mxu1 %v21173_v16  ;;  %v21256_v4 = vld [vmem:[%s23123_s14 + $0x199c] ss:$52 sps:$4 sm:$0xff]   ;;  %v21259_v16 = vld [vmem:[%s23123_s14 + $0x19a4] ss:$52 sps:$4 sm:$0xff]  }
 0xa7f   : > { %16411 = vmatprep.subr.bf16.mxu0 %v21178_v17  ;;  %16575 = vmatprep.subr.bf16.mxu1 %v21181_v18  ;;  %v21254_v17 = vld [vmem:[%s23123_s14 + $0x1998] ss:$52 sps:$4 sm:$0xff]   ;;  %v21257_v18 = vld [vmem:[%s23123_s14 + $0x19a0] ss:$52 sps:$4 sm:$0xff]  }
 0xa82   : > { %16412 = vmatpush1.bf16.msra.mxu0 %v21176_v19  ;;  %16576 = vmatpush1.bf16.msra.mxu1 %v21179_v26  ;;  %v21263_v19 = vld [vmem:[%s23123_s14 + $0x14] ss:$52 sps:$4 sm:$0xff]   ;;  %v21266_v26 = vld [vmem:[%s23123_s14 + $0x1c] ss:$52 sps:$4 sm:$0xff]  }
 0xa83   : > { %16413 = vmatprep.subr.bf16.mxu0 %v21184_v38  ;;  %16577 = vmatprep.subr.bf16.mxu1 %v21187_v23  ;;  %v24557_v38 = vpack.c.bf16 %v24473_v27, %v24473_v27  ;;  %v21261_v23 = vld [vmem:[%s23123_s14 + $0x10] ss:$52 sps:$4 sm:$0xff]   ;;  %v21267_v27 = vld [vmem:[%s23123_s14 + $0x78] ss:$52 sps:$4 sm:$0xff]  }
 0xa86   : > { %16414 = vmatpush1.bf16.msra.mxu0 %v21182_v24  ;;  %16578 = vmatpush1.bf16.msra.mxu1 %v21185_v25  ;;  %v21264_v24 = vld [vmem:[%s23123_s14 + $0x18] ss:$52 sps:$4 sm:$0xff]   ;;  %v21269_v25 = vld [vmem:[%s23123_s14 + $0x7c] ss:$52 sps:$4 sm:$0xff]  }
 0xa87   : > { %16415 = vmatprep.subr.bf16.mxu0 %v21190_v36  ;;  %16579 = vmatprep.subr.bf16.mxu1 %v21193_v60  ;;  %v21272_v36 = vld [vmem:[%s23123_s14 + $0x84] ss:$52 sps:$4 sm:$0xff]   ;;  %v21270_v60 = vld [vmem:[%s23123_s14 + $0x80] ss:$52 sps:$4 sm:$0xff]  }
 0xa8a   : > { %16416 = vmatpush1.bf16.msra.mxu0 %v21188_v48  ;;  %16580 = vmatpush1.bf16.msra.mxu1 %v21191_v33  ;;  %v21275_v48 = vld [vmem:[%s23123_s14 + $0xe4] ss:$52 sps:$4 sm:$0xff]   ;;  %v21278_v33 = vld [vmem:[%s23123_s14 + $0xec] ss:$52 sps:$4 sm:$0xff]  }
 0xa8b   : > { %16417 = vmatprep.subr.bf16.mxu0 %v21196_v61  ;;  %16581 = vmatprep.subr.bf16.mxu1 %v21199_v41  ;;  %v21273_v61 = vld [vmem:[%s23123_s14 + $0xe0] ss:$52 sps:$4 sm:$0xff]   ;;  %v21276_v41 = vld [vmem:[%s23123_s14 + $0xe8] ss:$52 sps:$4 sm:$0xff]  }
 0xa8e   : > { %16418 = vmatpush1.bf16.msra.mxu0 %v21194_v54  ;;  %16582 = vmatpush1.bf16.msra.mxu1 %v21197_v20  ;;  %v21281_v54 = vld [vmem:[%s23123_s14 + $0x14c] ss:$52 sps:$4 sm:$0xff]   ;;  %v21284_v20 = vld [vmem:[%s23123_s14 + $0x154] ss:$52 sps:$4 sm:$0xff]  }
 0xa8f   : > { %16419 = vmatprep.subr.bf16.mxu0 %v21202_v37  ;;  %16583 = vmatprep.subr.bf16.mxu1 %v21205_v50  ;;  %v21279_v37 = vld [vmem:[%s23123_s14 + $0x148] ss:$52 sps:$4 sm:$0xff]   ;;  %v21282_v50 = vld [vmem:[%s23123_s14 + $0x150] ss:$52 sps:$4 sm:$0xff]  }
 0xa92   : > { %16420 = vmatpush1.bf16.msra.mxu0 %v21200_v39  ;;  %16584 = vmatpush1.bf16.msra.mxu1 %v21203_v40  ;;  %v21287_v39 = vld [vmem:[%s23123_s14 + $0x1b4] ss:$52 sps:$4 sm:$0xff]   ;;  %v21290_v40 = vld [vmem:[%s23123_s14 + $0x1bc] ss:$52 sps:$4 sm:$0xff]  }
 0xa93   : > { %16421 = vmatprep.subr.bf16.mxu0 %v21208_v42  ;;  %16585 = vmatprep.subr.bf16.mxu1 %v21211_v43  ;;  %v21285_v42 = vld [vmem:[%s23123_s14 + $0x1b0] ss:$52 sps:$4 sm:$0xff]   ;;  %v21288_v43 = vld [vmem:[%s23123_s14 + $0x1b8] ss:$52 sps:$4 sm:$0xff]  }
 0xa96   : > { %16422 = vmatpush1.bf16.msra.mxu0 %v21206_v44  ;;  %16586 = vmatpush1.bf16.msra.mxu1 %v21209_v28  ;;  %v21293_v44 = vld [vmem:[%s23123_s14 + $0x21c] ss:$52 sps:$4 sm:$0xff]   ;;  %v21296_v28 = vld [vmem:[%s23123_s14 + $0x224] ss:$52 sps:$4 sm:$0xff]  }
 0xa97   : > { %16423 = vmatprep.subr.bf16.mxu0 %v21214_v34  ;;  %16587 = vmatprep.subr.bf16.mxu1 %v21217_v49  ;;  %v21291_v34 = vld [vmem:[%s23123_s14 + $0x218] ss:$52 sps:$4 sm:$0xff]   ;;  %v21294_v49 = vld [vmem:[%s23123_s14 + $0x220] ss:$52 sps:$4 sm:$0xff]  }
 0xa9a   : > { %16424 = vmatpush1.bf16.msra.mxu0 %v21212_v63  ;;  %16588 = vmatpush1.bf16.msra.mxu1 %v21215_v47  ;;  %v21299_v63 = vld [vmem:[%s23123_s14 + $0x284] ss:$52 sps:$4 sm:$0xff]   ;;  %v21302_v47 = vld [vmem:[%s23123_s14 + $0x28c] ss:$52 sps:$4 sm:$0xff]  }
 0xa9b   : > { %16425 = vmatprep.subr.bf16.mxu0 %v21220_v13  ;;  %16589 = vmatprep.subr.bf16.mxu1 %v21223_v7  ;;  %v21297_v13 = vld [vmem:[%s23123_s14 + $0x280] ss:$52 sps:$4 sm:$0xff]   ;;  %v21300_v7 = vld [vmem:[%s23123_s14 + $0x288] ss:$52 sps:$4 sm:$0xff]  }
 0xa9e   : > { %16426 = vmatpush1.bf16.msra.mxu0 %v21218_v51  ;;  %16590 = vmatpush1.bf16.msra.mxu1 %v21221_v62  ;;  %v21305_v51 = vld [vmem:[%s23123_s14 + $0x2ec] ss:$52 sps:$4 sm:$0xff]   ;;  %v21308_v62 = vld [vmem:[%s23123_s14 + $0x2f4] ss:$52 sps:$4 sm:$0xff]  }
 0xa9f   : > { %16427 = vmatprep.subr.bf16.mxu0 %v21226_v22  ;;  %16591 = vmatprep.subr.bf16.mxu1 %v21229_v55  ;;  %v21303_v22 = vld [vmem:[%s23123_s14 + $0x2e8] ss:$52 sps:$4 sm:$0xff]   ;;  %v21306_v55 = vld [vmem:[%s23123_s14 + $0x2f0] ss:$52 sps:$4 sm:$0xff]  }
 0xaa2   : > { %16428 = vmatpush1.bf16.msra.mxu0 %v21224_v6  ;;  %16592 = vmatpush1.bf16.msra.mxu1 %v21227_v57  ;;  %v21311_v6 = vld [vmem:[%s23123_s14 + $0x354] ss:$52 sps:$4 sm:$0xff]   ;;  %v21314_v57 = vld [vmem:[%s23123_s14 + $0x35c] ss:$52 sps:$4 sm:$0xff]  }
 0xaa3   : > { %16429 = vmatprep.subr.bf16.mxu0 %v21232_v58  ;;  %16593 = vmatprep.subr.bf16.mxu1 %v21235_v1  ;;  %v21309_v58 = vld [vmem:[%s23123_s14 + $0x350] ss:$52 sps:$4 sm:$0xff]   ;;  %v21312_v1 = vld [vmem:[%s23123_s14 + $0x358] ss:$52 sps:$4 sm:$0xff]  }
 0xaa6   : > { %16430 = vmatpush1.bf16.msra.mxu0 %v21230_v3  ;;  %16594 = vmatpush1.bf16.msra.mxu1 %v21233_v32  ;;  %v21317_v3 = vld [vmem:[%s23123_s14 + $0x3bc] ss:$52 sps:$4 sm:$0xff]   ;;  %v21320_v32 = vld [vmem:[%s23123_s14 + $0x3c4] ss:$52 sps:$4 sm:$0xff]  }
 0xaa7   : > { %16431 = vmatprep.subr.bf16.mxu0 %v21238_v45  ;;  %16595 = vmatprep.subr.bf16.mxu1 %v21241_v5  ;;  %v21315_v45 = vld [vmem:[%s23123_s14 + $0x3b8] ss:$52 sps:$4 sm:$0xff]   ;;  %v21318_v5 = vld [vmem:[%s23123_s14 + $0x3c0] ss:$52 sps:$4 sm:$0xff]  }
 0xaaa   : > { %16432 = vmatpush1.bf16.msra.mxu0 %v21236_v0  ;;  %16596 = vmatpush1.bf16.msra.mxu1 %v21239_v31  ;;  %v21323_v0 = vld [vmem:[%s23123_s14 + $0x424] ss:$52 sps:$4 sm:$0xff]   ;;  %v21326_v31 = vld [vmem:[%s23123_s14 + $0x42c] ss:$52 sps:$4 sm:$0xff]  }
 0xaab   : > { %16433 = vmatprep.subr.bf16.mxu0 %v21244_v2  ;;  %16597 = vmatprep.subr.bf16.mxu1 %v21247_v52  ;;  %v21321_v2 = vld [vmem:[%s23123_s14 + $0x420] ss:$52 sps:$4 sm:$0xff]   ;;  %v21324_v52 = vld [vmem:[%s23123_s14 + $0x428] ss:$52 sps:$4 sm:$0xff]  }
 0xaae   : > { %16434 = vmatpush1.bf16.msra.mxu0 %v21242_v14  ;;  %16598 = vmatpush1.bf16.msra.mxu1 %v21245_v29  ;;  %v21329_v14 = vld [vmem:[%s23123_s14 + $0x48c] ss:$52 sps:$4 sm:$0xff]   ;;  %v21332_v29 = vld [vmem:[%s23123_s14 + $0x494] ss:$52 sps:$4 sm:$0xff]  }
 0xaaf   : > { %16435 = vmatprep.subr.bf16.mxu0 %v21250_v30  ;;  %16599 = vmatprep.subr.bf16.mxu1 %v21253_v11  ;;  %v21327_v30 = vld [vmem:[%s23123_s14 + $0x488] ss:$52 sps:$4 sm:$0xff]   ;;  %v21330_v11 = vld [vmem:[%s23123_s14 + $0x490] ss:$52 sps:$4 sm:$0xff]  }
 0xab2   : > { %16436 = vmatpush1.bf16.msra.mxu0 %v21248_v12  ;;  %16600 = vmatpush1.bf16.msra.mxu1 %v21251_v8  ;;  %v21335_v12 = vld [vmem:[%s23123_s14 + $0x4f4] ss:$52 sps:$4 sm:$0xff]   ;;  %v21338_v8 = vld [vmem:[%s23123_s14 + $0x4fc] ss:$52 sps:$4 sm:$0xff]  }
 0xab3   : > { %16437 = vmatprep.subr.bf16.mxu0 %v21256_v4  ;;  %16601 = vmatprep.subr.bf16.mxu1 %v21259_v16  ;;  %v21333_v4 = vld [vmem:[%s23123_s14 + $0x4f0] ss:$52 sps:$4 sm:$0xff]   ;;  %v21336_v16 = vld [vmem:[%s23123_s14 + $0x4f8] ss:$52 sps:$4 sm:$0xff]  }
 0xab6   : > { %16438 = vmatpush1.bf16.msra.mxu0 %v21254_v17  ;;  %16602 = vmatpush1.bf16.msra.mxu1 %v21257_v18  ;;  %v21341_v17 = vld [vmem:[%s23123_s14 + $0x55c] ss:$52 sps:$4 sm:$0xff]   ;;  %v21344_v18 = vld [vmem:[%s23123_s14 + $0x564] ss:$52 sps:$4 sm:$0xff]  }
 0xab7   : > { %16612 = vmatprep.subr.bf16.mxu0 %v21263_v19  ;;  %16776 = vmatprep.subr.bf16.mxu1 %v21266_v26  ;;  %v21339_v19 = vld [vmem:[%s23123_s14 + $0x558] ss:$52 sps:$4 sm:$0xff]   ;;  %v21342_v26 = vld [vmem:[%s23123_s14 + $0x560] ss:$52 sps:$4 sm:$0xff]  }
 0xab9   : > { %16440 = vmatmul.mubr.bf16.vlgmr.msra.gmra.mrb[0].mxu0 %v24557_v38  ;;  %16604 = vmatmul.mubr.bf16.vlgmr.msra.gmra.mrb[0].mxu1 %v24557_v38 }
 0xaba   : > { %16613 = vmatpush1.bf16.msra.mxu0 %v21261_v23  ;;  %16777 = vmatpush1.bf16.msra.mxu1 %v21264_v24  ;;  %v21347_v23 = vld [vmem:[%s23123_s14 + $0x5c4] ss:$52 sps:$4 sm:$0xff]   ;;  %v21350_v24 = vld [vmem:[%s23123_s14 + $0x5cc] ss:$52 sps:$4 sm:$0xff]  }
 0xabb   : > { %16614 = vmatprep.subr.bf16.mxu0 %v21269_v25  ;;  %16778 = vmatprep.subr.bf16.mxu1 %v21272_v36  ;;  %v21345_v25 = vld [vmem:[%s23123_s14 + $0x5c0] ss:$52 sps:$4 sm:$0xff]   ;;  %v21348_v36 = vld [vmem:[%s23123_s14 + $0x5c8] ss:$52 sps:$4 sm:$0xff]  }
 0xabc   : > { %16644 = vmatprep.mubr.bf16.mxu0 %v24296_v35  ;;  %16808 = vmatprep.mubr.bf16.mxu1 %v24296_v35 }
 0xabe   : > { %16615 = vmatpush1.bf16.msra.mxu0 %v21267_v27  ;;  %16779 = vmatpush1.bf16.msra.mxu1 %v21270_v60  ;;  %v21353_v27 = vld [vmem:[%s23123_s14 + $0x62c] ss:$52 sps:$4 sm:$0xff]   ;;  %v21356_v60 = vld [vmem:[%s23123_s14 + $0x634] ss:$52 sps:$4 sm:$0xff]  }
 0xabf   : > { %16616 = vmatprep.subr.bf16.mxu0 %v21275_v48  ;;  %16780 = vmatprep.subr.bf16.mxu1 %v21278_v33  ;;  %v21351_v48 = vld [vmem:[%s23123_s14 + $0x628] ss:$52 sps:$4 sm:$0xff]   ;;  %v21354_v33 = vld [vmem:[%s23123_s14 + $0x630] ss:$52 sps:$4 sm:$0xff]  }
 0xac2   : > { %16617 = vmatpush1.bf16.msra.mxu0 %v21273_v61  ;;  %16781 = vmatpush1.bf16.msra.mxu1 %v21276_v41  ;;  %v21359_v61 = vld [vmem:[%s23123_s14 + $0x694] ss:$52 sps:$4 sm:$0xff]   ;;  %v21362_v41 = vld [vmem:[%s23123_s14 + $0x69c] ss:$52 sps:$4 sm:$0xff]  }
 0xac3   : > { %16618 = vmatprep.subr.bf16.mxu0 %v21281_v54  ;;  %16782 = vmatprep.subr.bf16.mxu1 %v21284_v20  ;;  %v21357_v54 = vld [vmem:[%s23123_s14 + $0x690] ss:$52 sps:$4 sm:$0xff]   ;;  %v21360_v20 = vld [vmem:[%s23123_s14 + $0x698] ss:$52 sps:$4 sm:$0xff]  }
 0xac6   : > { %16619 = vmatpush1.bf16.msra.mxu0 %v21279_v37  ;;  %16783 = vmatpush1.bf16.msra.mxu1 %v21282_v50  ;;  %v21365_v37 = vld [vmem:[%s23123_s14 + $0x6fc] ss:$52 sps:$4 sm:$0xff]   ;;  %v21368_v50 = vld [vmem:[%s23123_s14 + $0x704] ss:$52 sps:$4 sm:$0xff]  }
 0xac7   : > { %16620 = vmatprep.subr.bf16.mxu0 %v21287_v39  ;;  %16784 = vmatprep.subr.bf16.mxu1 %v21290_v40  ;;  %v21363_v39 = vld [vmem:[%s23123_s14 + $0x6f8] ss:$52 sps:$4 sm:$0xff]   ;;  %v21366_v40 = vld [vmem:[%s23123_s14 + $0x700] ss:$52 sps:$4 sm:$0xff]  }
 0xaca   : > { %16621 = vmatpush1.bf16.msra.mxu0 %v21285_v42  ;;  %16785 = vmatpush1.bf16.msra.mxu1 %v21288_v43  ;;  %v21371_v42 = vld [vmem:[%s23123_s14 + $0x764] ss:$52 sps:$4 sm:$0xff]   ;;  %v21374_v43 = vld [vmem:[%s23123_s14 + $0x76c] ss:$52 sps:$4 sm:$0xff]  }
 0xacb   : > { %16622 = vmatprep.subr.bf16.mxu0 %v21293_v44  ;;  %16786 = vmatprep.subr.bf16.mxu1 %v21296_v28  ;;  %v21369_v44 = vld [vmem:[%s23123_s14 + $0x760] ss:$52 sps:$4 sm:$0xff]   ;;  %v21372_v28 = vld [vmem:[%s23123_s14 + $0x768] ss:$52 sps:$4 sm:$0xff]  }
 0xace   : > { %16623 = vmatpush1.bf16.msra.mxu0 %v21291_v34  ;;  %16787 = vmatpush1.bf16.msra.mxu1 %v21294_v49  ;;  %v21377_v34 = vld [vmem:[%s23123_s14 + $0x7cc] ss:$52 sps:$4 sm:$0xff]   ;;  %v21380_v49 = vld [vmem:[%s23123_s14 + $0x7d4] ss:$52 sps:$4 sm:$0xff]  }
 0xacf   : > { %16624 = vmatprep.subr.bf16.mxu0 %v21299_v63  ;;  %16788 = vmatprep.subr.bf16.mxu1 %v21302_v47  ;;  %v21375_v63 = vld [vmem:[%s23123_s14 + $0x7c8] ss:$52 sps:$4 sm:$0xff]   ;;  %v21378_v47 = vld [vmem:[%s23123_s14 + $0x7d0] ss:$52 sps:$4 sm:$0xff]  }
 0xad2   : > { %16625 = vmatpush1.bf16.msra.mxu0 %v21297_v13  ;;  %16789 = vmatpush1.bf16.msra.mxu1 %v21300_v7  ;;  %v21383_v13 = vld [vmem:[%s23123_s14 + $0x834] ss:$52 sps:$4 sm:$0xff]   ;;  %v21386_v7 = vld [vmem:[%s23123_s14 + $0x83c] ss:$52 sps:$4 sm:$0xff]  }
 0xad3   : > { %16626 = vmatprep.subr.bf16.mxu0 %v21305_v51  ;;  %16790 = vmatprep.subr.bf16.mxu1 %v21308_v62  ;;  %v21381_v51 = vld [vmem:[%s23123_s14 + $0x830] ss:$52 sps:$4 sm:$0xff]   ;;  %v21384_v62 = vld [vmem:[%s23123_s14 + $0x838] ss:$52 sps:$4 sm:$0xff]  }
 0xad6   : > { %16627 = vmatpush1.bf16.msra.mxu0 %v21303_v22  ;;  %16791 = vmatpush1.bf16.msra.mxu1 %v21306_v55  ;;  %v21389_v22 = vld [vmem:[%s23123_s14 + $0x89c] ss:$52 sps:$4 sm:$0xff]   ;;  %v21392_v55 = vld [vmem:[%s23123_s14 + $0x8a4] ss:$52 sps:$4 sm:$0xff]  }
 0xad7   : > { %16628 = vmatprep.subr.bf16.mxu0 %v21311_v6  ;;  %16792 = vmatprep.subr.bf16.mxu1 %v21314_v57  ;;  %v21387_v6 = vld [vmem:[%s23123_s14 + $0x898] ss:$52 sps:$4 sm:$0xff]   ;;  %v21390_v57 = vld [vmem:[%s23123_s14 + $0x8a0] ss:$52 sps:$4 sm:$0xff]  }
 0xada   : > { %16629 = vmatpush1.bf16.msra.mxu0 %v21309_v58  ;;  %16793 = vmatpush1.bf16.msra.mxu1 %v21312_v1  ;;  %v21395_v58 = vld [vmem:[%s23123_s14 + $0x904] ss:$52 sps:$4 sm:$0xff]   ;;  %v21398_v1 = vld [vmem:[%s23123_s14 + $0x90c] ss:$52 sps:$4 sm:$0xff]  }
 0xadb   : > { %16630 = vmatprep.subr.bf16.mxu0 %v21317_v3  ;;  %16794 = vmatprep.subr.bf16.mxu1 %v21320_v32  ;;  %v21393_v3 = vld [vmem:[%s23123_s14 + $0x900] ss:$52 sps:$4 sm:$0xff]   ;;  %v21396_v32 = vld [vmem:[%s23123_s14 + $0x908] ss:$52 sps:$4 sm:$0xff]  }
 0xade   : > { %16631 = vmatpush1.bf16.msra.mxu0 %v21315_v45  ;;  %16795 = vmatpush1.bf16.msra.mxu1 %v21318_v5  ;;  %v21401_v45 = vld [vmem:[%s23123_s14 + $0x96c] ss:$52 sps:$4 sm:$0xff]   ;;  %v21404_v5 = vld [vmem:[%s23123_s14 + $0x974] ss:$52 sps:$4 sm:$0xff]  }
 0xadf   : > { %16632 = vmatprep.subr.bf16.mxu0 %v21323_v0  ;;  %16796 = vmatprep.subr.bf16.mxu1 %v21326_v31  ;;  %v21399_v0 = vld [vmem:[%s23123_s14 + $0x968] ss:$52 sps:$4 sm:$0xff]   ;;  %v21402_v31 = vld [vmem:[%s23123_s14 + $0x970] ss:$52 sps:$4 sm:$0xff]  }
 0xae2   : > { %16633 = vmatpush1.bf16.msra.mxu0 %v21321_v2  ;;  %16797 = vmatpush1.bf16.msra.mxu1 %v21324_v52  ;;  %v21407_v2 = vld [vmem:[%s23123_s14 + $0x9d4] ss:$52 sps:$4 sm:$0xff]   ;;  %v21410_v52 = vld [vmem:[%s23123_s14 + $0x9dc] ss:$52 sps:$4 sm:$0xff]  }
 0xae3   : > { %16634 = vmatprep.subr.bf16.mxu0 %v21329_v14  ;;  %16798 = vmatprep.subr.bf16.mxu1 %v21332_v29  ;;  %v21405_v14 = vld [vmem:[%s23123_s14 + $0x9d0] ss:$52 sps:$4 sm:$0xff]   ;;  %v21408_v29 = vld [vmem:[%s23123_s14 + $0x9d8] ss:$52 sps:$4 sm:$0xff]  }
 0xae6   : > { %16635 = vmatpush1.bf16.msra.mxu0 %v21327_v30  ;;  %16799 = vmatpush1.bf16.msra.mxu1 %v21330_v11  ;;  %v21413_v30 = vld [vmem:[%s23123_s14 + $0xa3c] ss:$52 sps:$4 sm:$0xff]   ;;  %v21416_v11 = vld [vmem:[%s23123_s14 + $0xa44] ss:$52 sps:$4 sm:$0xff]  }
 0xae7   : > { %16636 = vmatprep.subr.bf16.mxu0 %v21335_v12  ;;  %16800 = vmatprep.subr.bf16.mxu1 %v21338_v8  ;;  %v21411_v12 = vld [vmem:[%s23123_s14 + $0xa38] ss:$52 sps:$4 sm:$0xff]   ;;  %v21414_v8 = vld [vmem:[%s23123_s14 + $0xa40] ss:$52 sps:$4 sm:$0xff]  }
 0xaea   : > { %16637 = vmatpush1.bf16.msra.mxu0 %v21333_v4  ;;  %16801 = vmatpush1.bf16.msra.mxu1 %v21336_v16  ;;  %v21419_v4 = vld [vmem:[%s23123_s14 + $0xaa4] ss:$52 sps:$4 sm:$0xff]   ;;  %v21422_v16 = vld [vmem:[%s23123_s14 + $0xaac] ss:$52 sps:$4 sm:$0xff]  }
 0xaeb   : > { %16638 = vmatprep.subr.bf16.mxu0 %v21341_v17  ;;  %16802 = vmatprep.subr.bf16.mxu1 %v21344_v18  ;;  %v21417_v17 = vld [vmem:[%s23123_s14 + $0xaa0] ss:$52 sps:$4 sm:$0xff]   ;;  %v21420_v18 = vld [vmem:[%s23123_s14 + $0xaa8] ss:$52 sps:$4 sm:$0xff]  }
 0xaee   : > { %16639 = vmatpush1.bf16.msra.mxu0 %v21339_v19  ;;  %16803 = vmatpush1.bf16.msra.mxu1 %v21342_v26  ;;  %v21425_v19 = vld [vmem:[%s23123_s14 + $0xb0c] ss:$52 sps:$4 sm:$0xff]   ;;  %v21428_v26 = vld [vmem:[%s23123_s14 + $0xb14] ss:$52 sps:$4 sm:$0xff]  }
 0xaef   : > { %16640 = vmatprep.subr.bf16.mxu0 %v21347_v23  ;;  %16804 = vmatprep.subr.bf16.mxu1 %v21350_v24  ;;  %v21423_v23 = vld [vmem:[%s23123_s14 + $0xb08] ss:$52 sps:$4 sm:$0xff]   ;;  %v21426_v24 = vld [vmem:[%s23123_s14 + $0xb10] ss:$52 sps:$4 sm:$0xff]  }
 0xaf2   : > { %16641 = vmatpush1.bf16.msra.mxu0 %v21345_v25  ;;  %16805 = vmatpush1.bf16.msra.mxu1 %v21348_v36  ;;  %v21431_v25 = vld [vmem:[%s23123_s14 + $0xb74] ss:$52 sps:$4 sm:$0xff]   ;;  %v21434_v36 = vld [vmem:[%s23123_s14 + $0xb7c] ss:$52 sps:$4 sm:$0xff]  }
 0xaf3   : > { %16642 = vmatprep.subr.bf16.mxu0 %v21353_v27  ;;  %16806 = vmatprep.subr.bf16.mxu1 %v21356_v60  ;;  %v21429_v27 = vld [vmem:[%s23123_s14 + $0xb70] ss:$52 sps:$4 sm:$0xff]   ;;  %v21432_v60 = vld [vmem:[%s23123_s14 + $0xb78] ss:$52 sps:$4 sm:$0xff]  }
 0xaf6   : > { %16643 = vmatpush1.bf16.msra.mxu0 %v21351_v48  ;;  %16807 = vmatpush1.bf16.msra.mxu1 %v21354_v33  ;;  %v21437_v48 = vld [vmem:[%s23123_s14 + $0xbdc] ss:$52 sps:$4 sm:$0xff]   ;;  %v21440_v33 = vld [vmem:[%s23123_s14 + $0xbe4] ss:$52 sps:$4 sm:$0xff]  }
 0xaf7   : > { %16653 = vmatprep.subr.bf16.mxu0 %v21359_v61  ;;  %16817 = vmatprep.subr.bf16.mxu1 %v21362_v41  ;;  %v21435_v61 = vld [vmem:[%s23123_s14 + $0xbd8] ss:$52 sps:$4 sm:$0xff]   ;;  %v21438_v41 = vld [vmem:[%s23123_s14 + $0xbe0] ss:$52 sps:$4 sm:$0xff]  }
 0xaf9   : > { %16645 = vmatmul.mubr.bf16.vlgmr.msra.gmra.mrb[4].mxu0 %v24321_v53  ;;  %16809 = vmatmul.mubr.bf16.vlgmr.msra.gmra.mrb[4].mxu1 %v24321_v53 }
 0xafa   : > { %16654 = vmatpush1.bf16.msra.mxu0 %v21357_v54  ;;  %16818 = vmatpush1.bf16.msra.mxu1 %v21360_v20  ;;  %v21443_v54 = vld [vmem:[%s23123_s14 + $0xc44] ss:$52 sps:$4 sm:$0xff]   ;;  %v21446_v20 = vld [vmem:[%s23123_s14 + $0xc4c] ss:$52 sps:$4 sm:$0xff]  }
 0xafb   : > { %16655 = vmatprep.subr.bf16.mxu0 %v21365_v37  ;;  %16819 = vmatprep.subr.bf16.mxu1 %v21368_v50  ;;  %v21441_v37 = vld [vmem:[%s23123_s14 + $0xc40] ss:$52 sps:$4 sm:$0xff]   ;;  %v21444_v50 = vld [vmem:[%s23123_s14 + $0xc48] ss:$52 sps:$4 sm:$0xff]  }
 0xafc   : > { %16685 = vmatprep.mubr.bf16.mxu0 %v24326_v9  ;;  %16849 = vmatprep.mubr.bf16.mxu1 %v24326_v9 }
 0xafe   : > { %16656 = vmatpush1.bf16.msra.mxu0 %v21363_v39  ;;  %16820 = vmatpush1.bf16.msra.mxu1 %v21366_v40  ;;  %v21449_v39 = vld [vmem:[%s23123_s14 + $0xcac] ss:$52 sps:$4 sm:$0xff]   ;;  %v21452_v40 = vld [vmem:[%s23123_s14 + $0xcb4] ss:$52 sps:$4 sm:$0xff]  }
 0xaff   : > { %16657 = vmatprep.subr.bf16.mxu0 %v21371_v42  ;;  %16821 = vmatprep.subr.bf16.mxu1 %v21374_v43  ;;  %v21447_v42 = vld [vmem:[%s23123_s14 + $0xca8] ss:$52 sps:$4 sm:$0xff]   ;;  %v21450_v43 = vld [vmem:[%s23123_s14 + $0xcb0] ss:$52 sps:$4 sm:$0xff]  }
 0xb02   : > { %16658 = vmatpush1.bf16.msra.mxu0 %v21369_v44  ;;  %16822 = vmatpush1.bf16.msra.mxu1 %v21372_v28  ;;  %v21455_v44 = vld [vmem:[%s23123_s14 + $0xd14] ss:$52 sps:$4 sm:$0xff]   ;;  %v21458_v28 = vld [vmem:[%s23123_s14 + $0xd1c] ss:$52 sps:$4 sm:$0xff]  }
 0xb03   : > { %16659 = vmatprep.subr.bf16.mxu0 %v21377_v34  ;;  %16823 = vmatprep.subr.bf16.mxu1 %v21380_v49  ;;  %v21453_v34 = vld [vmem:[%s23123_s14 + $0xd10] ss:$52 sps:$4 sm:$0xff]   ;;  %v21456_v49 = vld [vmem:[%s23123_s14 + $0xd18] ss:$52 sps:$4 sm:$0xff]  }
 0xb06   : > { %16660 = vmatpush1.bf16.msra.mxu0 %v21375_v63  ;;  %16824 = vmatpush1.bf16.msra.mxu1 %v21378_v47  ;;  %v21461_v63 = vld [vmem:[%s23123_s14 + $0xd7c] ss:$52 sps:$4 sm:$0xff]   ;;  %v21464_v47 = vld [vmem:[%s23123_s14 + $0xd84] ss:$52 sps:$4 sm:$0xff]  }
 0xb07   : > { %16661 = vmatprep.subr.bf16.mxu0 %v21383_v13  ;;  %16825 = vmatprep.subr.bf16.mxu1 %v21386_v7  ;;  %v21459_v13 = vld [vmem:[%s23123_s14 + $0xd78] ss:$52 sps:$4 sm:$0xff]   ;;  %v21462_v7 = vld [vmem:[%s23123_s14 + $0xd80] ss:$52 sps:$4 sm:$0xff]  }
 0xb0a   : > { %16662 = vmatpush1.bf16.msra.mxu0 %v21381_v51  ;;  %16826 = vmatpush1.bf16.msra.mxu1 %v21384_v62  ;;  %v21467_v51 = vld [vmem:[%s23123_s14 + $0xde4] ss:$52 sps:$4 sm:$0xff]   ;;  %v21470_v62 = vld [vmem:[%s23123_s14 + $0xdec] ss:$52 sps:$4 sm:$0xff]  }
 0xb0b   : > { %16663 = vmatprep.subr.bf16.mxu0 %v21389_v22  ;;  %16827 = vmatprep.subr.bf16.mxu1 %v21392_v55  ;;  %v21465_v22 = vld [vmem:[%s23123_s14 + $0xde0] ss:$52 sps:$4 sm:$0xff]   ;;  %v21468_v55 = vld [vmem:[%s23123_s14 + $0xde8] ss:$52 sps:$4 sm:$0xff]  }
 0xb0e   : > { %16664 = vmatpush1.bf16.msra.mxu0 %v21387_v6  ;;  %16828 = vmatpush1.bf16.msra.mxu1 %v21390_v57  ;;  %v21473_v6 = vld [vmem:[%s23123_s14 + $0xe4c] ss:$52 sps:$4 sm:$0xff]   ;;  %v21476_v57 = vld [vmem:[%s23123_s14 + $0xe54] ss:$52 sps:$4 sm:$0xff]  }
 0xb0f   : > { %16665 = vmatprep.subr.bf16.mxu0 %v21395_v58  ;;  %16829 = vmatprep.subr.bf16.mxu1 %v21398_v1  ;;  %v21471_v58 = vld [vmem:[%s23123_s14 + $0xe48] ss:$52 sps:$4 sm:$0xff]   ;;  %v21474_v1 = vld [vmem:[%s23123_s14 + $0xe50] ss:$52 sps:$4 sm:$0xff]  }
 0xb12   : > { %16666 = vmatpush1.bf16.msra.mxu0 %v21393_v3  ;;  %16830 = vmatpush1.bf16.msra.mxu1 %v21396_v32  ;;  %v21479_v3 = vld [vmem:[%s23123_s14 + $0xeb4] ss:$52 sps:$4 sm:$0xff]   ;;  %v21482_v32 = vld [vmem:[%s23123_s14 + $0xebc] ss:$52 sps:$4 sm:$0xff]  }
 0xb13   : > { %16667 = vmatprep.subr.bf16.mxu0 %v21401_v45  ;;  %16831 = vmatprep.subr.bf16.mxu1 %v21404_v5  ;;  %v21477_v45 = vld [vmem:[%s23123_s14 + $0xeb0] ss:$52 sps:$4 sm:$0xff]   ;;  %v21480_v5 = vld [vmem:[%s23123_s14 + $0xeb8] ss:$52 sps:$4 sm:$0xff]  }
 0xb16   : > { %16668 = vmatpush1.bf16.msra.mxu0 %v21399_v0  ;;  %16832 = vmatpush1.bf16.msra.mxu1 %v21402_v31  ;;  %v21485_v0 = vld [vmem:[%s23123_s14 + $0xf1c] ss:$52 sps:$4 sm:$0xff]   ;;  %v21488_v31 = vld [vmem:[%s23123_s14 + $0xf24] ss:$52 sps:$4 sm:$0xff]  }
 0xb17   : > { %16669 = vmatprep.subr.bf16.mxu0 %v21407_v2  ;;  %16833 = vmatprep.subr.bf16.mxu1 %v21410_v52  ;;  %v21483_v2 = vld [vmem:[%s23123_s14 + $0xf18] ss:$52 sps:$4 sm:$0xff]   ;;  %v21486_v52 = vld [vmem:[%s23123_s14 + $0xf20] ss:$52 sps:$4 sm:$0xff]  }
 0xb1a   : > { %16670 = vmatpush1.bf16.msra.mxu0 %v21405_v14  ;;  %16834 = vmatpush1.bf16.msra.mxu1 %v21408_v29  ;;  %v21491_v14 = vld [vmem:[%s23123_s14 + $0xf84] ss:$52 sps:$4 sm:$0xff]   ;;  %v21494_v29 = vld [vmem:[%s23123_s14 + $0xf8c] ss:$52 sps:$4 sm:$0xff]  }
 0xb1b   : > { %16671 = vmatprep.subr.bf16.mxu0 %v21413_v30  ;;  %16835 = vmatprep.subr.bf16.mxu1 %v21416_v11  ;;  %v21489_v30 = vld [vmem:[%s23123_s14 + $0xf80] ss:$52 sps:$4 sm:$0xff]   ;;  %v21492_v11 = vld [vmem:[%s23123_s14 + $0xf88] ss:$52 sps:$4 sm:$0xff]  }
 0xb1e   : > { %16672 = vmatpush1.bf16.msra.mxu0 %v21411_v12  ;;  %16836 = vmatpush1.bf16.msra.mxu1 %v21414_v8  ;;  %v21497_v12 = vld [vmem:[%s23123_s14 + $0xfec] ss:$52 sps:$4 sm:$0xff]   ;;  %v21500_v8 = vld [vmem:[%s23123_s14 + $0xff4] ss:$52 sps:$4 sm:$0xff]  }
 0xb1f   : > { %16673 = vmatprep.subr.bf16.mxu0 %v21419_v4  ;;  %16837 = vmatprep.subr.bf16.mxu1 %v21422_v16  ;;  %v21495_v4 = vld [vmem:[%s23123_s14 + $0xfe8] ss:$52 sps:$4 sm:$0xff]   ;;  %v21498_v16 = vld [vmem:[%s23123_s14 + $0xff0] ss:$52 sps:$4 sm:$0xff]  }
 0xb22   : > { %16674 = vmatpush1.bf16.msra.mxu0 %v21417_v17  ;;  %16838 = vmatpush1.bf16.msra.mxu1 %v21420_v18  ;;  %v21503_v17 = vld [vmem:[%s23123_s14 + $0x1054] ss:$52 sps:$4 sm:$0xff]   ;;  %v21506_v18 = vld [vmem:[%s23123_s14 + $0x105c] ss:$52 sps:$4 sm:$0xff]  }
 0xb23   : > { %16675 = vmatprep.subr.bf16.mxu0 %v21425_v19  ;;  %16839 = vmatprep.subr.bf16.mxu1 %v21428_v26  ;;  %v21501_v19 = vld [vmem:[%s23123_s14 + $0x1050] ss:$52 sps:$4 sm:$0xff]   ;;  %v21504_v26 = vld [vmem:[%s23123_s14 + $0x1058] ss:$52 sps:$4 sm:$0xff]  }
 0xb26   : > { %16676 = vmatpush1.bf16.msra.mxu0 %v21423_v23  ;;  %16840 = vmatpush1.bf16.msra.mxu1 %v21426_v24  ;;  %v21509_v23 = vld [vmem:[%s23123_s14 + $0x10bc] ss:$52 sps:$4 sm:$0xff]   ;;  %v21512_v24 = vld [vmem:[%s23123_s14 + $0x10c4] ss:$52 sps:$4 sm:$0xff]  }
 0xb27   : > { %16677 = vmatprep.subr.bf16.mxu0 %v21431_v25  ;;  %16841 = vmatprep.subr.bf16.mxu1 %v21434_v36  ;;  %v21507_v25 = vld [vmem:[%s23123_s14 + $0x10b8] ss:$52 sps:$4 sm:$0xff]   ;;  %v21510_v36 = vld [vmem:[%s23123_s14 + $0x10c0] ss:$52 sps:$4 sm:$0xff]  }
 0xb2a   : > { %16678 = vmatpush1.bf16.msra.mxu0 %v21429_v27  ;;  %16842 = vmatpush1.bf16.msra.mxu1 %v21432_v60  ;;  %v21515_v27 = vld [vmem:[%s23123_s14 + $0x1124] ss:$52 sps:$4 sm:$0xff]   ;;  %v21518_v60 = vld [vmem:[%s23123_s14 + $0x112c] ss:$52 sps:$4 sm:$0xff]  }
 0xb2b   : > { %16679 = vmatprep.subr.bf16.mxu0 %v21437_v48  ;;  %16843 = vmatprep.subr.bf16.mxu1 %v21440_v33  ;;  %v21513_v48 = vld [vmem:[%s23123_s14 + $0x1120] ss:$52 sps:$4 sm:$0xff]   ;;  %v21516_v33 = vld [vmem:[%s23123_s14 + $0x1128] ss:$52 sps:$4 sm:$0xff]  }
 0xb2e   : > { %16680 = vmatpush1.bf16.msra.mxu0 %v21435_v61  ;;  %16844 = vmatpush1.bf16.msra.mxu1 %v21438_v41  ;;  %v21521_v61 = vld [vmem:[%s23123_s14 + $0x118c] ss:$52 sps:$4 sm:$0xff]   ;;  %v21524_v41 = vld [vmem:[%s23123_s14 + $0x1194] ss:$52 sps:$4 sm:$0xff]  }
 0xb2f   : > { %16681 = vmatprep.subr.bf16.mxu0 %v21443_v54  ;;  %16845 = vmatprep.subr.bf16.mxu1 %v21446_v20  ;;  %v21519_v54 = vld [vmem:[%s23123_s14 + $0x1188] ss:$52 sps:$4 sm:$0xff]   ;;  %v21522_v20 = vld [vmem:[%s23123_s14 + $0x1190] ss:$52 sps:$4 sm:$0xff]  }
 0xb32   : > { %16682 = vmatpush1.bf16.msra.mxu0 %v21441_v37  ;;  %16846 = vmatpush1.bf16.msra.mxu1 %v21444_v50  ;;  %v21527_v37 = vld [vmem:[%s23123_s14 + $0x11f4] ss:$52 sps:$4 sm:$0xff]   ;;  %v21530_v50 = vld [vmem:[%s23123_s14 + $0x11fc] ss:$52 sps:$4 sm:$0xff]  }
 0xb33   : > { %16683 = vmatprep.subr.bf16.mxu0 %v21449_v39  ;;  %16847 = vmatprep.subr.bf16.mxu1 %v21452_v40  ;;  %v21525_v39 = vld [vmem:[%s23123_s14 + $0x11f0] ss:$52 sps:$4 sm:$0xff]   ;;  %v21528_v40 = vld [vmem:[%s23123_s14 + $0x11f8] ss:$52 sps:$4 sm:$0xff]  }
 0xb36   : > { %16684 = vmatpush1.bf16.msra.mxu0 %v21447_v42  ;;  %16848 = vmatpush1.bf16.msra.mxu1 %v21450_v43  ;;  %v21533_v42 = vld [vmem:[%s23123_s14 + $0x125c] ss:$52 sps:$4 sm:$0xff]   ;;  %v21536_v43 = vld [vmem:[%s23123_s14 + $0x1264] ss:$52 sps:$4 sm:$0xff]  }
 0xb37   : > { %16694 = vmatprep.subr.bf16.mxu0 %v21455_v44  ;;  %16858 = vmatprep.subr.bf16.mxu1 %v21458_v28  ;;  %v21531_v44 = vld [vmem:[%s23123_s14 + $0x1258] ss:$52 sps:$4 sm:$0xff]   ;;  %v21534_v28 = vld [vmem:[%s23123_s14 + $0x1260] ss:$52 sps:$4 sm:$0xff]  }
 0xb39   : > { %16686 = vmatmul.mubr.bf16.vlgmr.msra.gmra.mrb[4].mxu0 %v24395_v59  ;;  %16850 = vmatmul.mubr.bf16.vlgmr.msra.gmra.mrb[4].mxu1 %v24395_v59 }
 0xb3a   : > { %16695 = vmatpush1.bf16.msra.mxu0 %v21453_v34  ;;  %16859 = vmatpush1.bf16.msra.mxu1 %v21456_v49  ;;  %v21539_v34 = vld [vmem:[%s23123_s14 + $0x12c4] ss:$52 sps:$4 sm:$0xff]   ;;  %v21542_v49 = vld [vmem:[%s23123_s14 + $0x12cc] ss:$52 sps:$4 sm:$0xff]  }
 0xb3b   : > { %16696 = vmatprep.subr.bf16.mxu0 %v21461_v63  ;;  %16860 = vmatprep.subr.bf16.mxu1 %v21464_v47  ;;  %v21537_v63 = vld [vmem:[%s23123_s14 + $0x12c0] ss:$52 sps:$4 sm:$0xff]   ;;  %v21540_v47 = vld [vmem:[%s23123_s14 + $0x12c8] ss:$52 sps:$4 sm:$0xff]  }
 0xb3c   : > { %16726 = vmatprep.mubr.bf16.mxu0 %v24414_v46  ;;  %16890 = vmatprep.mubr.bf16.mxu1 %v24414_v46 }
 0xb3e   : > { %16697 = vmatpush1.bf16.msra.mxu0 %v21459_v13  ;;  %16861 = vmatpush1.bf16.msra.mxu1 %v21462_v7  ;;  %v21545_v13 = vld [vmem:[%s23123_s14 + $0x132c] ss:$52 sps:$4 sm:$0xff]   ;;  %v21548_v7 = vld [vmem:[%s23123_s14 + $0x1334] ss:$52 sps:$4 sm:$0xff]  }
 0xb3f   : > { %16698 = vmatprep.subr.bf16.mxu0 %v21467_v51  ;;  %16862 = vmatprep.subr.bf16.mxu1 %v21470_v62  ;;  %v21543_v51 = vld [vmem:[%s23123_s14 + $0x1328] ss:$52 sps:$4 sm:$0xff]   ;;  %v21546_v62 = vld [vmem:[%s23123_s14 + $0x1330] ss:$52 sps:$4 sm:$0xff]  }
 0xb42   : > { %16699 = vmatpush1.bf16.msra.mxu0 %v21465_v22  ;;  %16863 = vmatpush1.bf16.msra.mxu1 %v21468_v55  ;;  %v21551_v22 = vld [vmem:[%s23123_s14 + $0x1394] ss:$52 sps:$4 sm:$0xff]   ;;  %v21554_v55 = vld [vmem:[%s23123_s14 + $0x139c] ss:$52 sps:$4 sm:$0xff]  }
 0xb43   : > { %16700 = vmatprep.subr.bf16.mxu0 %v21473_v6  ;;  %16864 = vmatprep.subr.bf16.mxu1 %v21476_v57  ;;  %v21549_v6 = vld [vmem:[%s23123_s14 + $0x1390] ss:$52 sps:$4 sm:$0xff]   ;;  %v21552_v57 = vld [vmem:[%s23123_s14 + $0x1398] ss:$52 sps:$4 sm:$0xff]  }
 0xb46   : > { %16701 = vmatpush1.bf16.msra.mxu0 %v21471_v58  ;;  %16865 = vmatpush1.bf16.msra.mxu1 %v21474_v1  ;;  %v21557_v58 = vld [vmem:[%s23123_s14 + $0x13fc] ss:$52 sps:$4 sm:$0xff]   ;;  %v21560_v1 = vld [vmem:[%s23123_s14 + $0x1404] ss:$52 sps:$4 sm:$0xff]  }
 0xb47   : > { %16702 = vmatprep.subr.bf16.mxu0 %v21479_v3  ;;  %16866 = vmatprep.subr.bf16.mxu1 %v21482_v32  ;;  %v21555_v3 = vld [vmem:[%s23123_s14 + $0x13f8] ss:$52 sps:$4 sm:$0xff]   ;;  %v21558_v32 = vld [vmem:[%s23123_s14 + $0x1400] ss:$52 sps:$4 sm:$0xff]  }
 0xb4a   : > { %16703 = vmatpush1.bf16.msra.mxu0 %v21477_v45  ;;  %16867 = vmatpush1.bf16.msra.mxu1 %v21480_v5  ;;  %v21563_v45 = vld [vmem:[%s23123_s14 + $0x1464] ss:$52 sps:$4 sm:$0xff]   ;;  %v21566_v5 = vld [vmem:[%s23123_s14 + $0x146c] ss:$52 sps:$4 sm:$0xff]  }
 0xb4b   : > { %16704 = vmatprep.subr.bf16.mxu0 %v21485_v0  ;;  %16868 = vmatprep.subr.bf16.mxu1 %v21488_v31  ;;  %v21561_v0 = vld [vmem:[%s23123_s14 + $0x1460] ss:$52 sps:$4 sm:$0xff]   ;;  %v21564_v31 = vld [vmem:[%s23123_s14 + $0x1468] ss:$52 sps:$4 sm:$0xff]  }
 0xb4e   : > { %16705 = vmatpush1.bf16.msra.mxu0 %v21483_v2  ;;  %16869 = vmatpush1.bf16.msra.mxu1 %v21486_v52  ;;  %v21569_v2 = vld [vmem:[%s23123_s14 + $0x14cc] ss:$52 sps:$4 sm:$0xff]   ;;  %v21572_v52 = vld [vmem:[%s23123_s14 + $0x14d4] ss:$52 sps:$4 sm:$0xff]  }
 0xb4f   : > { %16706 = vmatprep.subr.bf16.mxu0 %v21491_v14  ;;  %16870 = vmatprep.subr.bf16.mxu1 %v21494_v29  ;;  %v21567_v14 = vld [vmem:[%s23123_s14 + $0x14c8] ss:$52 sps:$4 sm:$0xff]   ;;  %v21570_v29 = vld [vmem:[%s23123_s14 + $0x14d0] ss:$52 sps:$4 sm:$0xff]  }
 0xb52   : > { %16707 = vmatpush1.bf16.msra.mxu0 %v21489_v30  ;;  %16871 = vmatpush1.bf16.msra.mxu1 %v21492_v11  ;;  %v21575_v30 = vld [vmem:[%s23123_s14 + $0x1534] ss:$52 sps:$4 sm:$0xff]   ;;  %v21578_v11 = vld [vmem:[%s23123_s14 + $0x153c] ss:$52 sps:$4 sm:$0xff]  }
 0xb53   : > { %16708 = vmatprep.subr.bf16.mxu0 %v21497_v12  ;;  %16872 = vmatprep.subr.bf16.mxu1 %v21500_v8  ;;  %v11997_v12 = vsub.s32 0, %v24278_v56  ;;  %v12005_v8 = vsub.s32 2, %v24278_v56 }
 0xb56   : > { %16709 = vmatpush1.bf16.msra.mxu0 %v21495_v4  ;;  %16873 = vmatpush1.bf16.msra.mxu1 %v21498_v16  ;;  %v21573_v4 = vld [vmem:[%s23123_s14 + $0x1530] ss:$52 sps:$4 sm:$0xff]   ;;  %v21576_v16 = vld [vmem:[%s23123_s14 + $0x1538] ss:$52 sps:$4 sm:$0xff]  }
 0xb57   : > { %16710 = vmatprep.subr.bf16.mxu0 %v21503_v17  ;;  %16874 = vmatprep.subr.bf16.mxu1 %v21506_v18  ;;  %v11991_v17 = vld [vmem:[%s23130_s16] sm:$0xff]  ;;  %v12001_v18 = vsub.s32 1, %v24278_v56 }
 0xb5a   : > { %16711 = vmatpush1.bf16.msra.mxu0 %v21501_v19  ;;  %16875 = vmatpush1.bf16.msra.mxu1 %v21504_v26  ;;  %v12009_v19 = vsub.s32 3, %v24278_v56  ;;  %v21581_v26 = vld [vmem:[%s23123_s14 + $0x159c] ss:$52 sps:$4 sm:$0xff]  }
 0xb5b   : > { %16712 = vmatprep.subr.bf16.mxu0 %v21509_v23  ;;  %16876 = vmatprep.subr.bf16.mxu1 %v21512_v24  ;;  %v21584_v23 = vld [vmem:[%s23123_s14 + $0x15a4] ss:$52 sps:$4 sm:$0xff]   ;;  %v11998_v24 = vrot.slane %v11991_v17, %v11997_v12 }
 0xb5e   : > { %16713 = vmatpush1.bf16.msra.mxu0 %v21507_v25  ;;  %16877 = vmatpush1.bf16.msra.mxu1 %v21510_v36  ;;  %v12006_v25 = vrot.slane %v11991_v17, %v12005_v8  ;;  %v12002_v36 = vrot.slane %v11991_v17, %v12001_v18 }
 0xb5f   : > { %16714 = vmatprep.subr.bf16.mxu0 %v21515_v27  ;;  %16878 = vmatprep.subr.bf16.mxu1 %v21518_v60  ;;  %v12010_v27 = vrot.slane %v11991_v17, %v12009_v19  ;;  %v21579_v60 = vld [vmem:[%s23123_s14 + $0x1598] ss:$52 sps:$4 sm:$0xff]   ;;  %v21615_v17 = vld [vmem:[%s23123_s14 + $0x1808] ss:$52 sps:$4 sm:$0xff]  }
 0xb62   : > { %16715 = vmatpush1.bf16.msra.mxu0 %v21513_v48  ;;  %16879 = vmatpush1.bf16.msra.mxu1 %v21516_v33  ;;  %v21582_v48 = vld [vmem:[%s23123_s14 + $0x15a0] ss:$52 sps:$4 sm:$0xff]   ;;  %v21587_v33 = vld [vmem:[%s23123_s14 + $0x1604] ss:$52 sps:$4 sm:$0xff]  }
 0xb63   : > { %16716 = vmatprep.subr.bf16.mxu0 %v21521_v61  ;;  %16880 = vmatprep.subr.bf16.mxu1 %v21524_v41  ;;  %v21590_v61 = vld [vmem:[%s23123_s14 + $0x160c] ss:$52 sps:$4 sm:$0xff]  }
 0xb66   : > { %16717 = vmatpush1.bf16.msra.mxu0 %v21519_v54  ;;  %16881 = vmatpush1.bf16.msra.mxu1 %v21522_v20 }
 0xb67   : > { %16718 = vmatprep.subr.bf16.mxu0 %v21527_v37  ;;  %16882 = vmatprep.subr.bf16.mxu1 %v21530_v50 }
 0xb6a   : > { %16719 = vmatpush1.bf16.msra.mxu0 %v21525_v39  ;;  %16883 = vmatpush1.bf16.msra.mxu1 %v21528_v40 }
 0xb6b   : > { %16720 = vmatprep.subr.bf16.mxu0 %v21533_v42  ;;  %16884 = vmatprep.subr.bf16.mxu1 %v21536_v43 }
 0xb6e   : > { %16721 = vmatpush1.bf16.msra.mxu0 %v21531_v44  ;;  %16885 = vmatpush1.bf16.msra.mxu1 %v21534_v28  ;;  %v21585_v28 = vld [vmem:[%s23123_s14 + $0x1600] ss:$52 sps:$4 sm:$0xff]  }
 0xb6f   : > { %16722 = vmatprep.subr.bf16.mxu0 %v21539_v34  ;;  %16886 = vmatprep.subr.bf16.mxu1 %v21542_v49  ;;  %v21588_v34 = vld [vmem:[%s23123_s14 + $0x1608] ss:$52 sps:$4 sm:$0xff]  }
 0xb72   : > { %16723 = vmatpush1.bf16.msra.mxu0 %v21537_v63  ;;  %16887 = vmatpush1.bf16.msra.mxu1 %v21540_v47  ;;  %v21593_v47 = vld [vmem:[%s23123_s14 + $0x166c] ss:$52 sps:$4 sm:$0xff]  }
 0xb73   : > { %16724 = vmatprep.subr.bf16.mxu0 %v21545_v13  ;;  %16888 = vmatprep.subr.bf16.mxu1 %v21548_v7  ;;  %v21596_v13 = vld [vmem:[%s23123_s14 + $0x1674] ss:$52 sps:$4 sm:$0xff]  }
 0xb76   : > { %16725 = vmatpush1.bf16.msra.mxu0 %v21543_v51  ;;  %16889 = vmatpush1.bf16.msra.mxu1 %v21546_v62  ;;  %v17428_v62 = vld [vmem:[%s23090_s30] sm:$0xff] }
 0xb77   : > { %16735 = vmatprep.subr.bf16.mxu0 %v21551_v22  ;;  %16899 = vmatprep.subr.bf16.mxu1 %v21554_v55 }
 0xb79   : > { %16727 = vmatmul.mubr.bf16.vlgmr.msra.gmra.mrb[4].mxu0 %v24483_v10  ;;  %16891 = vmatmul.mubr.bf16.vlgmr.msra.gmra.mrb[4].mxu1 %v24483_v10 }
 0xb7a   : > { %16736 = vmatpush1.bf16.msra.mxu0 %v21549_v6  ;;  %16900 = vmatpush1.bf16.msra.mxu1 %v21552_v57  ;;  %v21591_v6 = vld [vmem:[%s23123_s14 + $0x1668] ss:$52 sps:$4 sm:$0xff]   ;;  %v21594_v57 = vld [vmem:[%s23123_s14 + $0x1670] ss:$52 sps:$4 sm:$0xff]  }
 0xb7b   : > { %16737 = vmatprep.subr.bf16.mxu0 %v21557_v58  ;;  %16901 = vmatprep.subr.bf16.mxu1 %v21560_v1  ;;  %v21599_v58 = vld [vmem:[%s23123_s14 + $0x16d4] ss:$52 sps:$4 sm:$0xff]   ;;  %v21602_v1 = vld [vmem:[%s23123_s14 + $0x16dc] ss:$52 sps:$4 sm:$0xff]  }
 0xb7c   : > { %16767 = vmatprep.mubr.bf16.mxu0 %v24489_v15  ;;  %16931 = vmatprep.mubr.bf16.mxu1 %v24489_v15 }
 0xb7e   : > { %16738 = vmatpush1.bf16.msra.mxu0 %v21555_v3  ;;  %16902 = vmatpush1.bf16.msra.mxu1 %v21558_v32 }
 0xb7f   : > { %16739 = vmatprep.subr.bf16.mxu0 %v21563_v45  ;;  %16903 = vmatprep.subr.bf16.mxu1 %v21566_v5  ;;  %v21597_v45 = vld [vmem:[%s23123_s14 + $0x16d0] ss:$52 sps:$4 sm:$0xff]   ;;  %v21600_v5 = vld [vmem:[%s23123_s14 + $0x16d8] ss:$52 sps:$4 sm:$0xff]  }
 0xb82   : > { %16740 = vmatpush1.bf16.msra.mxu0 %v21561_v0  ;;  %16904 = vmatpush1.bf16.msra.mxu1 %v21564_v31  ;;  %v21605_v0 = vld [vmem:[%s23123_s14 + $0x173c] ss:$52 sps:$4 sm:$0xff]   ;;  %v21608_v31 = vld [vmem:[%s23123_s14 + $0x1744] ss:$52 sps:$4 sm:$0xff]  }
 0xb83   : > { %16741 = vmatprep.subr.bf16.mxu0 %v21569_v2  ;;  %16905 = vmatprep.subr.bf16.mxu1 %v21572_v52  ;;  %v21603_v2 = vld [vmem:[%s23123_s14 + $0x1738] ss:$52 sps:$4 sm:$0xff]   ;;  %v21606_v52 = vld [vmem:[%s23123_s14 + $0x1740] ss:$52 sps:$4 sm:$0xff]  }
 0xb86   : > { %16742 = vmatpush1.bf16.msra.mxu0 %v21567_v14  ;;  %16906 = vmatpush1.bf16.msra.mxu1 %v21570_v29  ;;  %v21611_v14 = vld [vmem:[%s23123_s14 + $0x17a4] ss:$52 sps:$4 sm:$0xff]   ;;  %v21614_v29 = vld [vmem:[%s23123_s14 + $0x17ac] ss:$52 sps:$4 sm:$0xff]  }
 0xb87   : > { %16743 = vmatprep.subr.bf16.mxu0 %v21575_v30  ;;  %16907 = vmatprep.subr.bf16.mxu1 %v21578_v11  ;;  %v21609_v30 = vld [vmem:[%s23123_s14 + $0x17a0] ss:$52 sps:$4 sm:$0xff]   ;;  %v21612_v11 = vld [vmem:[%s23123_s14 + $0x17a8] ss:$52 sps:$4 sm:$0xff]  }
 0xb8a   : > { %16744 = vmatpush1.bf16.msra.mxu0 %v21573_v4  ;;  %16908 = vmatpush1.bf16.msra.mxu1 %v21576_v16  ;;  %v21617_v4 = vld [vmem:[%s23123_s14 + $0x180c] ss:$52 sps:$4 sm:$0xff]   ;;  %v21620_v16 = vld [vmem:[%s23123_s14 + $0x1814] ss:$52 sps:$4 sm:$0xff]  }
 0xb8b   : > { %16745 = vmatprep.subr.bf16.mxu0 %v21581_v26  ;;  %16909 = vmatprep.subr.bf16.mxu1 %v21584_v23  ;;  %v21618_v26 = vld [vmem:[%s23123_s14 + $0x1810] ss:$52 sps:$4 sm:$0xff]   ;;  %v21623_v23 = vld [vmem:[%s23123_s14 + $0x1874] ss:$52 sps:$4 sm:$0xff]  }
 0xb8c   : > { %v16441_v41 = vpop.f32.mrb[0].mxu0  ;;  %v16605_v54 = vpop.f32.mrb[0].mxu1 }
 0xb8d   : > { %v20188_v20 = vadd.f32 %v16441_v41, %v11998_v24  ;;  %v20190_v37 = vadd.f32 %v16605_v54, %v12006_v25  ;;  %v16443_v50 = vpop.f32.mrb[1].mxu0  ;;  %v16607_v39 = vpop.f32.mrb[1].mxu1  ;;  %v21626_v24 = vld [vmem:[%s23123_s14 + $0x187c] ss:$52 sps:$4 sm:$0xff]   ;;  %v21638_v41 = vld [vmem:[%s23123_s14 + $0x194c] ss:$52 sps:$4 sm:$0xff]  }
 0xb8e   : > { %v20189_v40 = vadd.f32 %v16443_v50, %v12002_v36  ;;  %v20191_v42 = vadd.f32 %v16607_v39, %v12010_v27  ;;  %v16445_v43 = vpop.f32.mrb[2].mxu0  ;;  %v16609_v44 = vpop.f32.mrb[2].mxu1  ;;  %16746 = vmatpush1.bf16.msra.mxu0 %v21579_v60  ;;  %16910 = vmatpush1.bf16.msra.mxu1 %v21582_v48  ;;  %v21621_v25 = vld [vmem:[%s23123_s14 + $0x1870] ss:$52 sps:$4 sm:$0xff]   ;;  %v21624_v36 = vld [vmem:[%s23123_s14 + $0x1878] ss:$52 sps:$4 sm:$0xff]  }
 0xb8f   : > { %v16446_v49 = vpop.f32.mrb[3].mxu0  ;;  %v16610_v63 = vpop.f32.mrb[3].mxu1  ;;  %16747 = vmatprep.subr.bf16.mxu0 %v21587_v33  ;;  %16911 = vmatprep.subr.bf16.mxu1 %v21590_v61  ;;  %v21629_v27 = vld [vmem:[%s23123_s14 + $0x18dc] ss:$52 sps:$4 sm:$0xff]   ;;  %v21632_v60 = vld [vmem:[%s23123_s14 + $0x18e4] ss:$52 sps:$4 sm:$0xff]  }
 0xb90   : > { %v17445_v7 = vcombine.low %v20188_v20, %v20189_v40  ;;  %v17446_v51 = vcombine.low %v20190_v37, %v20191_v42  ;;  %v21627_v48 = vld [vmem:[%s23123_s14 + $0x18d8] ss:$52 sps:$4 sm:$0xff]   ;;  %v21630_v33 = vld [vmem:[%s23123_s14 + $0x18e0] ss:$52 sps:$4 sm:$0xff]   ;;  %v21636_v20 = vld [vmem:[%s23123_s14 + $0x1948] ss:$52 sps:$4 sm:$0xff]  }
 0xb91   : > { %v21635_v61 = vld [vmem:[%s23123_s14 + $0x1944] ss:$52 sps:$4 sm:$0xff]   ;;  %v21633_v54 = vld [vmem:[%s23123_s14 + $0x1940] ss:$52 sps:$4 sm:$0xff]   ;;  %v21639_v39 = vld [vmem:[%s23123_s14 + $0x19a8] ss:$52 sps:$4 sm:$0xff]  }
 0xb92   : > { %v17453_v22 = vrot.slane %v17445_v7, %v24286_v21  ;;  %v17460_v55 = vrot.slane %v17446_v51, %v24286_v21  ;;  %16748 = vmatpush1.bf16.msra.mxu0 %v21585_v28  ;;  %16912 = vmatpush1.bf16.msra.mxu1 %v21588_v34  ;;  %v21641_v37 = vld [vmem:[%s23123_s14 + $0x19ac] ss:$52 sps:$4 sm:$0xff]   ;;  %v21644_v50 = vld [vmem:[%s23123_s14 + $0x19b4] ss:$52 sps:$4 sm:$0xff]   ;;  %v21642_v40 = vld [vmem:[%s23123_s14 + $0x19b0] ss:$52 sps:$4 sm:$0xff]  }
 0xb93   : > { %16749 = vmatprep.subr.bf16.mxu0 %v21593_v47  ;;  %16913 = vmatprep.subr.bf16.mxu1 %v21596_v13  ;;  %v21647_v42 = vld [vmem:[%s23123_s14 + $0x24] ss:$52 sps:$4 sm:$0xff]   ;;  %v21650_v43 = vld [vmem:[%s23123_s14 + $0x2c] ss:$52 sps:$4 sm:$0xff]   ;;  %v21648_v28 = vld [vmem:[%s23123_s14 + $0x28] ss:$52 sps:$4 sm:$0xff]  }
 0xb94   : > { %v17461_v3 = vcombine.low %v17453_v22, %v17460_v55  ;;  %v21645_v44 = vld [vmem:[%s23123_s14 + $0x20] ss:$52 sps:$4 sm:$0xff]   ;;  %v21651_v63 = vld [vmem:[%s23123_s14 + $0x88] ss:$52 sps:$4 sm:$0xff]   ;;  %v21654_v47 = vld [vmem:[%s23123_s14 + $0x90] ss:$52 sps:$4 sm:$0xff]  }
 0xb95   : > { %v21653_v34 = vld [vmem:[%s23123_s14 + $0x8c] ss:$52 sps:$4 sm:$0xff]   ;;  %v21656_v49 = vld [vmem:[%s23123_s14 + $0x94] ss:$52 sps:$4 sm:$0xff]   ;;  %v21662_v7 = vld [vmem:[%s23123_s14 + $0xfc] ss:$52 sps:$4 sm:$0xff]  }
 0xb96   : > { %v17507_v32 = vsub.f32 %v17428_v62, %v17461_v3  ;;  %16750 = vmatpush1.bf16.msra.mxu0 %v21591_v6  ;;  %16914 = vmatpush1.bf16.msra.mxu1 %v21594_v57  ;;  %v21659_v13 = vld [vmem:[%s23123_s14 + $0xf4] ss:$52 sps:$4 sm:$0xff]   ;;  %v21657_v51 = vld [vmem:[%s23123_s14 + $0xf0] ss:$52 sps:$4 sm:$0xff]   ;;  %v21660_v62 = vld [vmem:[%s23123_s14 + $0xf8] ss:$52 sps:$4 sm:$0xff]  }
 0xb97   : > { %16751 = vmatprep.subr.bf16.mxu0 %v21599_v58  ;;  %16915 = vmatprep.subr.bf16.mxu1 %v21602_v1  ;;  %v21665_v22 = vld [vmem:[%s23123_s14 + $0x15c] ss:$52 sps:$4 sm:$0xff]   ;;  %v21668_v55 = vld [vmem:[%s23123_s14 + $0x164] ss:$52 sps:$4 sm:$0xff]   ;;  %v21666_v57 = vld [vmem:[%s23123_s14 + $0x160] ss:$52 sps:$4 sm:$0xff]  }
 0xb98   : > { %17511 = vst [vmem:[%s23137_s23] sm:$0xff] %v17507_v32  ;;  %v21663_v6 = vld [vmem:[%s23123_s14 + $0x158] ss:$52 sps:$4 sm:$0xff]   ;;  %v21669_v3 = vld [vmem:[%s23123_s14 + $0x1c0] ss:$52 sps:$4 sm:$0xff]   ;;  %v21672_v32 = vld [vmem:[%s23123_s14 + $0x1c8] ss:$52 sps:$4 sm:$0xff]  }
 0xb99   : > { %v21671_v58 = vld [vmem:[%s23123_s14 + $0x1c4] ss:$52 sps:$4 sm:$0xff]   ;;  %v21674_v1 = vld [vmem:[%s23123_s14 + $0x1cc] ss:$52 sps:$4 sm:$0xff]  }
 0xb9a   : > { %16752 = vmatpush1.bf16.msra.mxu0 %v21597_v45  ;;  %16916 = vmatpush1.bf16.msra.mxu1 %v21600_v5  ;;  %v21677_v45 = vld [vmem:[%s23123_s14 + $0x22c] ss:$52 sps:$4 sm:$0xff]   ;;  %v21680_v5 = vld [vmem:[%s23123_s14 + $0x234] ss:$52 sps:$4 sm:$0xff]  }
 0xb9b   : > { %16753 = vmatprep.subr.bf16.mxu0 %v21605_v0  ;;  %16917 = vmatprep.subr.bf16.mxu1 %v21608_v31  ;;  %v21675_v0 = vld [vmem:[%s23123_s14 + $0x228] ss:$52 sps:$4 sm:$0xff]   ;;  %v21678_v31 = vld [vmem:[%s23123_s14 + $0x230] ss:$52 sps:$4 sm:$0xff]  }
 0xb9e   : > { %16754 = vmatpush1.bf16.msra.mxu0 %v21603_v2  ;;  %16918 = vmatpush1.bf16.msra.mxu1 %v21606_v52  ;;  %v21683_v2 = vld [vmem:[%s23123_s14 + $0x294] ss:$52 sps:$4 sm:$0xff]   ;;  %v21686_v52 = vld [vmem:[%s23123_s14 + $0x29c] ss:$52 sps:$4 sm:$0xff]  }
 0xb9f   : > { %16755 = vmatprep.subr.bf16.mxu0 %v21611_v14  ;;  %16919 = vmatprep.subr.bf16.mxu1 %v21614_v29  ;;  %v21681_v14 = vld [vmem:[%s23123_s14 + $0x290] ss:$52 sps:$4 sm:$0xff]   ;;  %v21684_v29 = vld [vmem:[%s23123_s14 + $0x298] ss:$52 sps:$4 sm:$0xff]  }
 0xba2   : > { %16756 = vmatpush1.bf16.msra.mxu0 %v21609_v30  ;;  %16920 = vmatpush1.bf16.msra.mxu1 %v21612_v11  ;;  %v21689_v30 = vld [vmem:[%s23123_s14 + $0x2fc] ss:$52 sps:$4 sm:$0xff]   ;;  %v21692_v11 = vld [vmem:[%s23123_s14 + $0x304] ss:$52 sps:$4 sm:$0xff]  }
 0xba3   : > { %16757 = vmatprep.subr.bf16.mxu0 %v21617_v4  ;;  %16921 = vmatprep.subr.bf16.mxu1 %v21620_v16  ;;  %v21687_v4 = vld [vmem:[%s23123_s14 + $0x2f8] ss:$52 sps:$4 sm:$0xff]   ;;  %v21690_v16 = vld [vmem:[%s23123_s14 + $0x300] ss:$52 sps:$4 sm:$0xff]  }
 0xba6   : > { %16758 = vmatpush1.bf16.msra.mxu0 %v21615_v17  ;;  %16922 = vmatpush1.bf16.msra.mxu1 %v21618_v26  ;;  %v21695_v17 = vld [vmem:[%s23123_s14 + $0x364] ss:$52 sps:$4 sm:$0xff]   ;;  %v21698_v26 = vld [vmem:[%s23123_s14 + $0x36c] ss:$52 sps:$4 sm:$0xff]  }
 0xba7   : > { %16759 = vmatprep.subr.bf16.mxu0 %v21623_v23  ;;  %16923 = vmatprep.subr.bf16.mxu1 %v21626_v24  ;;  %v21693_v23 = vld [vmem:[%s23123_s14 + $0x360] ss:$52 sps:$4 sm:$0xff]   ;;  %v21696_v24 = vld [vmem:[%s23123_s14 + $0x368] ss:$52 sps:$4 sm:$0xff]  }
 0xbaa   : > { %16760 = vmatpush1.bf16.msra.mxu0 %v21621_v25  ;;  %16924 = vmatpush1.bf16.msra.mxu1 %v21624_v36  ;;  %v21701_v25 = vld [vmem:[%s23123_s14 + $0x3cc] ss:$52 sps:$4 sm:$0xff]   ;;  %v21704_v36 = vld [vmem:[%s23123_s14 + $0x3d4] ss:$52 sps:$4 sm:$0xff]  }
 0xbab   : > { %16761 = vmatprep.subr.bf16.mxu0 %v21629_v27  ;;  %16925 = vmatprep.subr.bf16.mxu1 %v21632_v60  ;;  %v21699_v27 = vld [vmem:[%s23123_s14 + $0x3c8] ss:$52 sps:$4 sm:$0xff]   ;;  %v21702_v60 = vld [vmem:[%s23123_s14 + $0x3d0] ss:$52 sps:$4 sm:$0xff]  }
 0xbae   : > { %16762 = vmatpush1.bf16.msra.mxu0 %v21627_v48  ;;  %16926 = vmatpush1.bf16.msra.mxu1 %v21630_v33  ;;  %v21707_v48 = vld [vmem:[%s23123_s14 + $0x434] ss:$52 sps:$4 sm:$0xff]   ;;  %v21710_v33 = vld [vmem:[%s23123_s14 + $0x43c] ss:$52 sps:$4 sm:$0xff]  }
 0xbaf   : > { %16763 = vmatprep.subr.bf16.mxu0 %v21635_v61  ;;  %16927 = vmatprep.subr.bf16.mxu1 %v21638_v41  ;;  %v21705_v61 = vld [vmem:[%s23123_s14 + $0x430] ss:$52 sps:$4 sm:$0xff]   ;;  %v21708_v41 = vld [vmem:[%s23123_s14 + $0x438] ss:$52 sps:$4 sm:$0xff]  }
 0xbb2   : > { %16764 = vmatpush1.bf16.msra.mxu0 %v21633_v54  ;;  %16928 = vmatpush1.bf16.msra.mxu1 %v21636_v20  ;;  %v21713_v54 = vld [vmem:[%s23123_s14 + $0x49c] ss:$52 sps:$4 sm:$0xff]   ;;  %v21716_v20 = vld [vmem:[%s23123_s14 + $0x4a4] ss:$52 sps:$4 sm:$0xff]  }
 0xbb3   : > { %16765 = vmatprep.subr.bf16.mxu0 %v21641_v37  ;;  %16929 = vmatprep.subr.bf16.mxu1 %v21644_v50  ;;  %v21711_v37 = vld [vmem:[%s23123_s14 + $0x498] ss:$52 sps:$4 sm:$0xff]   ;;  %v21714_v50 = vld [vmem:[%s23123_s14 + $0x4a0] ss:$52 sps:$4 sm:$0xff]  }
 0xbb6   : > { %16766 = vmatpush1.bf16.msra.mxu0 %v21639_v39  ;;  %16930 = vmatpush1.bf16.msra.mxu1 %v21642_v40  ;;  %v21719_v39 = vld [vmem:[%s23123_s14 + $0x504] ss:$52 sps:$4 sm:$0xff]   ;;  %v21722_v40 = vld [vmem:[%s23123_s14 + $0x50c] ss:$52 sps:$4 sm:$0xff]  }
 0xbb7   : > { %16940 = vmatprep.subr.bf16.mxu0 %v21647_v42  ;;  %17104 = vmatprep.subr.bf16.mxu1 %v21650_v43  ;;  %v21717_v42 = vld [vmem:[%s23123_s14 + $0x500] ss:$52 sps:$4 sm:$0xff]   ;;  %v21720_v43 = vld [vmem:[%s23123_s14 + $0x508] ss:$52 sps:$4 sm:$0xff]  }
 0xbb9   : > { %16768 = vmatmul.mubr.bf16.vlgmr.msra.gmra.mrb[4].mxu0 %v24557_v38  ;;  %16932 = vmatmul.mubr.bf16.vlgmr.msra.gmra.mrb[4].mxu1 %v24557_v38 }
 0xbba   : > { %16941 = vmatpush1.bf16.msra.mxu0 %v21645_v44  ;;  %17105 = vmatpush1.bf16.msra.mxu1 %v21648_v28  ;;  %v21725_v44 = vld [vmem:[%s23123_s14 + $0x56c] ss:$52 sps:$4 sm:$0xff]   ;;  %v21728_v28 = vld [vmem:[%s23123_s14 + $0x574] ss:$52 sps:$4 sm:$0xff]  }
 0xbbb   : > { %16942 = vmatprep.subr.bf16.mxu0 %v21653_v34  ;;  %17106 = vmatprep.subr.bf16.mxu1 %v21656_v49  ;;  %v21723_v34 = vld [vmem:[%s23123_s14 + $0x568] ss:$52 sps:$4 sm:$0xff]   ;;  %v21726_v49 = vld [vmem:[%s23123_s14 + $0x570] ss:$52 sps:$4 sm:$0xff]  }
 0xbbc   : > { %16972 = vmatprep.mubr.bf16.mxu0 %v24296_v35  ;;  %17136 = vmatprep.mubr.bf16.mxu1 %v24296_v35 }
 0xbbe   : > { %16943 = vmatpush1.bf16.msra.mxu0 %v21651_v63  ;;  %17107 = vmatpush1.bf16.msra.mxu1 %v21654_v47  ;;  %v21731_v63 = vld [vmem:[%s23123_s14 + $0x5d4] ss:$52 sps:$4 sm:$0xff]   ;;  %v21734_v47 = vld [vmem:[%s23123_s14 + $0x5dc] ss:$52 sps:$4 sm:$0xff]  }
 0xbbf   : > { %16944 = vmatprep.subr.bf16.mxu0 %v21659_v13  ;;  %17108 = vmatprep.subr.bf16.mxu1 %v21662_v7  ;;  %v21729_v13 = vld [vmem:[%s23123_s14 + $0x5d0] ss:$52 sps:$4 sm:$0xff]   ;;  %v21732_v7 = vld [vmem:[%s23123_s14 + $0x5d8] ss:$52 sps:$4 sm:$0xff]  }
 0xbc2   : > { %16945 = vmatpush1.bf16.msra.mxu0 %v21657_v51  ;;  %17109 = vmatpush1.bf16.msra.mxu1 %v21660_v62  ;;  %v21737_v51 = vld [vmem:[%s23123_s14 + $0x63c] ss:$52 sps:$4 sm:$0xff]   ;;  %v21740_v62 = vld [vmem:[%s23123_s14 + $0x644] ss:$52 sps:$4 sm:$0xff]  }
 0xbc3   : > { %16946 = vmatprep.subr.bf16.mxu0 %v21665_v22  ;;  %17110 = vmatprep.subr.bf16.mxu1 %v21668_v55  ;;  %v21735_v22 = vld [vmem:[%s23123_s14 + $0x638] ss:$52 sps:$4 sm:$0xff]   ;;  %v21738_v55 = vld [vmem:[%s23123_s14 + $0x640] ss:$52 sps:$4 sm:$0xff]  }
 0xbc6   : > { %16947 = vmatpush1.bf16.msra.mxu0 %v21663_v6  ;;  %17111 = vmatpush1.bf16.msra.mxu1 %v21666_v57  ;;  %v21743_v6 = vld [vmem:[%s23123_s14 + $0x6a4] ss:$52 sps:$4 sm:$0xff]   ;;  %v21746_v57 = vld [vmem:[%s23123_s14 + $0x6ac] ss:$52 sps:$4 sm:$0xff]  }
 0xbc7   : > { %16948 = vmatprep.subr.bf16.mxu0 %v21671_v58  ;;  %17112 = vmatprep.subr.bf16.mxu1 %v21674_v1  ;;  %v21741_v58 = vld [vmem:[%s23123_s14 + $0x6a0] ss:$52 sps:$4 sm:$0xff]   ;;  %v21744_v1 = vld [vmem:[%s23123_s14 + $0x6a8] ss:$52 sps:$4 sm:$0xff]  }
 0xbca   : > { %16949 = vmatpush1.bf16.msra.mxu0 %v21669_v3  ;;  %17113 = vmatpush1.bf16.msra.mxu1 %v21672_v32  ;;  %v21749_v3 = vld [vmem:[%s23123_s14 + $0x70c] ss:$52 sps:$4 sm:$0xff]   ;;  %v21752_v32 = vld [vmem:[%s23123_s14 + $0x714] ss:$52 sps:$4 sm:$0xff]  }
 0xbcb   : > { %16950 = vmatprep.subr.bf16.mxu0 %v21677_v45  ;;  %17114 = vmatprep.subr.bf16.mxu1 %v21680_v5  ;;  %v21747_v45 = vld [vmem:[%s23123_s14 + $0x708] ss:$52 sps:$4 sm:$0xff]   ;;  %v21750_v5 = vld [vmem:[%s23123_s14 + $0x710] ss:$52 sps:$4 sm:$0xff]  }
 0xbce   : > { %16951 = vmatpush1.bf16.msra.mxu0 %v21675_v0  ;;  %17115 = vmatpush1.bf16.msra.mxu1 %v21678_v31  ;;  %v21755_v0 = vld [vmem:[%s23123_s14 + $0x774] ss:$52 sps:$4 sm:$0xff]   ;;  %v21758_v31 = vld [vmem:[%s23123_s14 + $0x77c] ss:$52 sps:$4 sm:$0xff]  }
 0xbcf   : > { %16952 = vmatprep.subr.bf16.mxu0 %v21683_v2  ;;  %17116 = vmatprep.subr.bf16.mxu1 %v21686_v52  ;;  %v21753_v2 = vld [vmem:[%s23123_s14 + $0x770] ss:$52 sps:$4 sm:$0xff]   ;;  %v21756_v52 = vld [vmem:[%s23123_s14 + $0x778] ss:$52 sps:$4 sm:$0xff]  }
 0xbd2   : > { %16953 = vmatpush1.bf16.msra.mxu0 %v21681_v14  ;;  %17117 = vmatpush1.bf16.msra.mxu1 %v21684_v29  ;;  %v21761_v14 = vld [vmem:[%s23123_s14 + $0x7dc] ss:$52 sps:$4 sm:$0xff]   ;;  %v21764_v29 = vld [vmem:[%s23123_s14 + $0x7e4] ss:$52 sps:$4 sm:$0xff]  }
 0xbd3   : > { %16954 = vmatprep.subr.bf16.mxu0 %v21689_v30  ;;  %17118 = vmatprep.subr.bf16.mxu1 %v21692_v11  ;;  %v21759_v30 = vld [vmem:[%s23123_s14 + $0x7d8] ss:$52 sps:$4 sm:$0xff]   ;;  %v21762_v11 = vld [vmem:[%s23123_s14 + $0x7e0] ss:$52 sps:$4 sm:$0xff]  }
 0xbd6   : > { %16955 = vmatpush1.bf16.msra.mxu0 %v21687_v4  ;;  %17119 = vmatpush1.bf16.msra.mxu1 %v21690_v16  ;;  %v21767_v4 = vld [vmem:[%s23123_s14 + $0x844] ss:$52 sps:$4 sm:$0xff]   ;;  %v21770_v16 = vld [vmem:[%s23123_s14 + $0x84c] ss:$52 sps:$4 sm:$0xff]  }
 0xbd7   : > { %16956 = vmatprep.subr.bf16.mxu0 %v21695_v17  ;;  %17120 = vmatprep.subr.bf16.mxu1 %v21698_v26  ;;  %v21765_v17 = vld [vmem:[%s23123_s14 + $0x840] ss:$52 sps:$4 sm:$0xff]   ;;  %v21768_v26 = vld [vmem:[%s23123_s14 + $0x848] ss:$52 sps:$4 sm:$0xff]  }
 0xbda   : > { %16957 = vmatpush1.bf16.msra.mxu0 %v21693_v23  ;;  %17121 = vmatpush1.bf16.msra.mxu1 %v21696_v24  ;;  %v21773_v23 = vld [vmem:[%s23123_s14 + $0x8ac] ss:$52 sps:$4 sm:$0xff]   ;;  %v21776_v24 = vld [vmem:[%s23123_s14 + $0x8b4] ss:$52 sps:$4 sm:$0xff]  }
 0xbdb   : > { %16958 = vmatprep.subr.bf16.mxu0 %v21701_v25  ;;  %17122 = vmatprep.subr.bf16.mxu1 %v21704_v36  ;;  %v21771_v25 = vld [vmem:[%s23123_s14 + $0x8a8] ss:$52 sps:$4 sm:$0xff]   ;;  %v21774_v36 = vld [vmem:[%s23123_s14 + $0x8b0] ss:$52 sps:$4 sm:$0xff]  }
 0xbde   : > { %16959 = vmatpush1.bf16.msra.mxu0 %v21699_v27  ;;  %17123 = vmatpush1.bf16.msra.mxu1 %v21702_v60  ;;  %v21779_v27 = vld [vmem:[%s23123_s14 + $0x914] ss:$52 sps:$4 sm:$0xff]   ;;  %v21782_v60 = vld [vmem:[%s23123_s14 + $0x91c] ss:$52 sps:$4 sm:$0xff]  }
 0xbdf   : > { %16960 = vmatprep.subr.bf16.mxu0 %v21707_v48  ;;  %17124 = vmatprep.subr.bf16.mxu1 %v21710_v33  ;;  %v21777_v48 = vld [vmem:[%s23123_s14 + $0x910] ss:$52 sps:$4 sm:$0xff]   ;;  %v21780_v33 = vld [vmem:[%s23123_s14 + $0x918] ss:$52 sps:$4 sm:$0xff]  }
 0xbe2   : > { %16961 = vmatpush1.bf16.msra.mxu0 %v21705_v61  ;;  %17125 = vmatpush1.bf16.msra.mxu1 %v21708_v41  ;;  %v21785_v61 = vld [vmem:[%s23123_s14 + $0x97c] ss:$52 sps:$4 sm:$0xff]   ;;  %v21788_v41 = vld [vmem:[%s23123_s14 + $0x984] ss:$52 sps:$4 sm:$0xff]  }
 0xbe3   : > { %16962 = vmatprep.subr.bf16.mxu0 %v21713_v54  ;;  %17126 = vmatprep.subr.bf16.mxu1 %v21716_v20  ;;  %v21783_v54 = vld [vmem:[%s23123_s14 + $0x978] ss:$52 sps:$4 sm:$0xff]   ;;  %v21786_v20 = vld [vmem:[%s23123_s14 + $0x980] ss:$52 sps:$4 sm:$0xff]  }
 0xbe6   : > { %16963 = vmatpush1.bf16.msra.mxu0 %v21711_v37  ;;  %17127 = vmatpush1.bf16.msra.mxu1 %v21714_v50  ;;  %v21791_v37 = vld [vmem:[%s23123_s14 + $0x9e4] ss:$52 sps:$4 sm:$0xff]   ;;  %v21794_v50 = vld [vmem:[%s23123_s14 + $0x9ec] ss:$52 sps:$4 sm:$0xff]  }
 0xbe7   : > { %16964 = vmatprep.subr.bf16.mxu0 %v21719_v39  ;;  %17128 = vmatprep.subr.bf16.mxu1 %v21722_v40  ;;  %v21789_v39 = vld [vmem:[%s23123_s14 + $0x9e0] ss:$52 sps:$4 sm:$0xff]   ;;  %v21792_v40 = vld [vmem:[%s23123_s14 + $0x9e8] ss:$52 sps:$4 sm:$0xff]  }
 0xbea   : > { %16965 = vmatpush1.bf16.msra.mxu0 %v21717_v42  ;;  %17129 = vmatpush1.bf16.msra.mxu1 %v21720_v43  ;;  %v21797_v42 = vld [vmem:[%s23123_s14 + $0xa4c] ss:$52 sps:$4 sm:$0xff]   ;;  %v21800_v43 = vld [vmem:[%s23123_s14 + $0xa54] ss:$52 sps:$4 sm:$0xff]  }
 0xbeb   : > { %16966 = vmatprep.subr.bf16.mxu0 %v21725_v44  ;;  %17130 = vmatprep.subr.bf16.mxu1 %v21728_v28  ;;  %v21795_v44 = vld [vmem:[%s23123_s14 + $0xa48] ss:$52 sps:$4 sm:$0xff]   ;;  %v21798_v28 = vld [vmem:[%s23123_s14 + $0xa50] ss:$52 sps:$4 sm:$0xff]  }
 0xbee   : > { %16967 = vmatpush1.bf16.msra.mxu0 %v21723_v34  ;;  %17131 = vmatpush1.bf16.msra.mxu1 %v21726_v49  ;;  %v21803_v34 = vld [vmem:[%s23123_s14 + $0xab4] ss:$52 sps:$4 sm:$0xff]   ;;  %v21806_v49 = vld [vmem:[%s23123_s14 + $0xabc] ss:$52 sps:$4 sm:$0xff]  }
 0xbef   : > { %16968 = vmatprep.subr.bf16.mxu0 %v21731_v63  ;;  %17132 = vmatprep.subr.bf16.mxu1 %v21734_v47  ;;  %v21801_v63 = vld [vmem:[%s23123_s14 + $0xab0] ss:$52 sps:$4 sm:$0xff]   ;;  %v21804_v47 = vld [vmem:[%s23123_s14 + $0xab8] ss:$52 sps:$4 sm:$0xff]  }
 0xbf2   : > { %16969 = vmatpush1.bf16.msra.mxu0 %v21729_v13  ;;  %17133 = vmatpush1.bf16.msra.mxu1 %v21732_v7  ;;  %v21809_v13 = vld [vmem:[%s23123_s14 + $0xb1c] ss:$52 sps:$4 sm:$0xff]   ;;  %v21812_v7 = vld [vmem:[%s23123_s14 + $0xb24] ss:$52 sps:$4 sm:$0xff]  }
 0xbf3   : > { %16970 = vmatprep.subr.bf16.mxu0 %v21737_v51  ;;  %17134 = vmatprep.subr.bf16.mxu1 %v21740_v62  ;;  %v21807_v51 = vld [vmem:[%s23123_s14 + $0xb18] ss:$52 sps:$4 sm:$0xff]   ;;  %v21810_v62 = vld [vmem:[%s23123_s14 + $0xb20] ss:$52 sps:$4 sm:$0xff]  }
 0xbf6   : > { %16971 = vmatpush1.bf16.msra.mxu0 %v21735_v22  ;;  %17135 = vmatpush1.bf16.msra.mxu1 %v21738_v55  ;;  %v21815_v22 = vld [vmem:[%s23123_s14 + $0xb84] ss:$52 sps:$4 sm:$0xff]   ;;  %v21818_v55 = vld [vmem:[%s23123_s14 + $0xb8c] ss:$52 sps:$4 sm:$0xff]  }
 0xbf7   : > { %16981 = vmatprep.subr.bf16.mxu0 %v21743_v6  ;;  %17145 = vmatprep.subr.bf16.mxu1 %v21746_v57  ;;  %v21813_v6 = vld [vmem:[%s23123_s14 + $0xb80] ss:$52 sps:$4 sm:$0xff]   ;;  %v21816_v57 = vld [vmem:[%s23123_s14 + $0xb88] ss:$52 sps:$4 sm:$0xff]  }
 0xbf9   : > { %16973 = vmatmul.mubr.bf16.vlgmr.msra.gmra.mrb[8].mxu0 %v24321_v53  ;;  %17137 = vmatmul.mubr.bf16.vlgmr.msra.gmra.mrb[8].mxu1 %v24321_v53 }
 0xbfa   : > { %16982 = vmatpush1.bf16.msra.mxu0 %v21741_v58  ;;  %17146 = vmatpush1.bf16.msra.mxu1 %v21744_v1  ;;  %v21821_v58 = vld [vmem:[%s23123_s14 + $0xbec] ss:$52 sps:$4 sm:$0xff]   ;;  %v21824_v1 = vld [vmem:[%s23123_s14 + $0xbf4] ss:$52 sps:$4 sm:$0xff]  }
 0xbfb   : > { %16983 = vmatprep.subr.bf16.mxu0 %v21749_v3  ;;  %17147 = vmatprep.subr.bf16.mxu1 %v21752_v32  ;;  %v21819_v3 = vld [vmem:[%s23123_s14 + $0xbe8] ss:$52 sps:$4 sm:$0xff]   ;;  %v21822_v32 = vld [vmem:[%s23123_s14 + $0xbf0] ss:$52 sps:$4 sm:$0xff]  }
 0xbfc   : > { %17013 = vmatprep.mubr.bf16.mxu0 %v24326_v9  ;;  %17177 = vmatprep.mubr.bf16.mxu1 %v24326_v9 }
 0xbfe   : > { %16984 = vmatpush1.bf16.msra.mxu0 %v21747_v45  ;;  %17148 = vmatpush1.bf16.msra.mxu1 %v21750_v5  ;;  %v21827_v45 = vld [vmem:[%s23123_s14 + $0xc54] ss:$52 sps:$4 sm:$0xff]   ;;  %v21830_v5 = vld [vmem:[%s23123_s14 + $0xc5c] ss:$52 sps:$4 sm:$0xff]  }
 0xbff   : > { %16985 = vmatprep.subr.bf16.mxu0 %v21755_v0  ;;  %17149 = vmatprep.subr.bf16.mxu1 %v21758_v31  ;;  %v21825_v0 = vld [vmem:[%s23123_s14 + $0xc50] ss:$52 sps:$4 sm:$0xff]   ;;  %v21828_v31 = vld [vmem:[%s23123_s14 + $0xc58] ss:$52 sps:$4 sm:$0xff]  }
 0xc02   : > { %16986 = vmatpush1.bf16.msra.mxu0 %v21753_v2  ;;  %17150 = vmatpush1.bf16.msra.mxu1 %v21756_v52  ;;  %v21833_v2 = vld [vmem:[%s23123_s14 + $0xcbc] ss:$52 sps:$4 sm:$0xff]   ;;  %v21836_v52 = vld [vmem:[%s23123_s14 + $0xcc4] ss:$52 sps:$4 sm:$0xff]  }
 0xc03   : > { %16987 = vmatprep.subr.bf16.mxu0 %v21761_v14  ;;  %17151 = vmatprep.subr.bf16.mxu1 %v21764_v29  ;;  %v21831_v14 = vld [vmem:[%s23123_s14 + $0xcb8] ss:$52 sps:$4 sm:$0xff]   ;;  %v21834_v29 = vld [vmem:[%s23123_s14 + $0xcc0] ss:$52 sps:$4 sm:$0xff]  }
 0xc06   : > { %16988 = vmatpush1.bf16.msra.mxu0 %v21759_v30  ;;  %17152 = vmatpush1.bf16.msra.mxu1 %v21762_v11  ;;  %v21839_v30 = vld [vmem:[%s23123_s14 + $0xd24] ss:$52 sps:$4 sm:$0xff]   ;;  %v21842_v11 = vld [vmem:[%s23123_s14 + $0xd2c] ss:$52 sps:$4 sm:$0xff]  }
 0xc07   : > { %16989 = vmatprep.subr.bf16.mxu0 %v21767_v4  ;;  %17153 = vmatprep.subr.bf16.mxu1 %v21770_v16  ;;  %v21837_v4 = vld [vmem:[%s23123_s14 + $0xd20] ss:$52 sps:$4 sm:$0xff]   ;;  %v21840_v16 = vld [vmem:[%s23123_s14 + $0xd28] ss:$52 sps:$4 sm:$0xff]  }
 0xc0a   : > { %16990 = vmatpush1.bf16.msra.mxu0 %v21765_v17  ;;  %17154 = vmatpush1.bf16.msra.mxu1 %v21768_v26  ;;  %v21845_v17 = vld [vmem:[%s23123_s14 + $0xd8c] ss:$52 sps:$4 sm:$0xff]   ;;  %v21848_v26 = vld [vmem:[%s23123_s14 + $0xd94] ss:$52 sps:$4 sm:$0xff]  }
 0xc0b   : > { %16991 = vmatprep.subr.bf16.mxu0 %v21773_v23  ;;  %17155 = vmatprep.subr.bf16.mxu1 %v21776_v24  ;;  %v21843_v23 = vld [vmem:[%s23123_s14 + $0xd88] ss:$52 sps:$4 sm:$0xff]   ;;  %v21846_v24 = vld [vmem:[%s23123_s14 + $0xd90] ss:$52 sps:$4 sm:$0xff]  }
 0xc0e   : > { %16992 = vmatpush1.bf16.msra.mxu0 %v21771_v25  ;;  %17156 = vmatpush1.bf16.msra.mxu1 %v21774_v36  ;;  %v21851_v25 = vld [vmem:[%s23123_s14 + $0xdf4] ss:$52 sps:$4 sm:$0xff]   ;;  %v21854_v36 = vld [vmem:[%s23123_s14 + $0xdfc] ss:$52 sps:$4 sm:$0xff]  }
 0xc0f   : > { %16993 = vmatprep.subr.bf16.mxu0 %v21779_v27  ;;  %17157 = vmatprep.subr.bf16.mxu1 %v21782_v60  ;;  %v21849_v27 = vld [vmem:[%s23123_s14 + $0xdf0] ss:$52 sps:$4 sm:$0xff]   ;;  %v21852_v60 = vld [vmem:[%s23123_s14 + $0xdf8] ss:$52 sps:$4 sm:$0xff]  }
 0xc12   : > { %16994 = vmatpush1.bf16.msra.mxu0 %v21777_v48  ;;  %17158 = vmatpush1.bf16.msra.mxu1 %v21780_v33  ;;  %v21857_v48 = vld [vmem:[%s23123_s14 + $0xe5c] ss:$52 sps:$4 sm:$0xff]   ;;  %v21860_v33 = vld [vmem:[%s23123_s14 + $0xe64] ss:$52 sps:$4 sm:$0xff]  }
 0xc13   : > { %16995 = vmatprep.subr.bf16.mxu0 %v21785_v61  ;;  %17159 = vmatprep.subr.bf16.mxu1 %v21788_v41  ;;  %v21855_v61 = vld [vmem:[%s23123_s14 + $0xe58] ss:$52 sps:$4 sm:$0xff]   ;;  %v21858_v41 = vld [vmem:[%s23123_s14 + $0xe60] ss:$52 sps:$4 sm:$0xff]  }
 0xc16   : > { %16996 = vmatpush1.bf16.msra.mxu0 %v21783_v54  ;;  %17160 = vmatpush1.bf16.msra.mxu1 %v21786_v20  ;;  %v21863_v54 = vld [vmem:[%s23123_s14 + $0xec4] ss:$52 sps:$4 sm:$0xff]   ;;  %v21866_v20 = vld [vmem:[%s23123_s14 + $0xecc] ss:$52 sps:$4 sm:$0xff]  }
 0xc17   : > { %16997 = vmatprep.subr.bf16.mxu0 %v21791_v37  ;;  %17161 = vmatprep.subr.bf16.mxu1 %v21794_v50  ;;  %v21861_v37 = vld [vmem:[%s23123_s14 + $0xec0] ss:$52 sps:$4 sm:$0xff]   ;;  %v21864_v50 = vld [vmem:[%s23123_s14 + $0xec8] ss:$52 sps:$4 sm:$0xff]  }
 0xc1a   : > { %16998 = vmatpush1.bf16.msra.mxu0 %v21789_v39  ;;  %17162 = vmatpush1.bf16.msra.mxu1 %v21792_v40  ;;  %v21869_v39 = vld [vmem:[%s23123_s14 + $0xf2c] ss:$52 sps:$4 sm:$0xff]   ;;  %v21872_v40 = vld [vmem:[%s23123_s14 + $0xf34] ss:$52 sps:$4 sm:$0xff]  }
 0xc1b   : > { %16999 = vmatprep.subr.bf16.mxu0 %v21797_v42  ;;  %17163 = vmatprep.subr.bf16.mxu1 %v21800_v43  ;;  %v21867_v42 = vld [vmem:[%s23123_s14 + $0xf28] ss:$52 sps:$4 sm:$0xff]   ;;  %v21870_v43 = vld [vmem:[%s23123_s14 + $0xf30] ss:$52 sps:$4 sm:$0xff]  }
 0xc1e   : > { %17000 = vmatpush1.bf16.msra.mxu0 %v21795_v44  ;;  %17164 = vmatpush1.bf16.msra.mxu1 %v21798_v28  ;;  %v21875_v44 = vld [vmem:[%s23123_s14 + $0xf94] ss:$52 sps:$4 sm:$0xff]   ;;  %v21878_v28 = vld [vmem:[%s23123_s14 + $0xf9c] ss:$52 sps:$4 sm:$0xff]  }
 0xc1f   : > { %17001 = vmatprep.subr.bf16.mxu0 %v21803_v34  ;;  %17165 = vmatprep.subr.bf16.mxu1 %v21806_v49  ;;  %v21873_v34 = vld [vmem:[%s23123_s14 + $0xf90] ss:$52 sps:$4 sm:$0xff]   ;;  %v21876_v49 = vld [vmem:[%s23123_s14 + $0xf98] ss:$52 sps:$4 sm:$0xff]  }
 0xc22   : > { %17002 = vmatpush1.bf16.msra.mxu0 %v21801_v63  ;;  %17166 = vmatpush1.bf16.msra.mxu1 %v21804_v47  ;;  %v21881_v63 = vld [vmem:[%s23123_s14 + $0xffc] ss:$52 sps:$4 sm:$0xff]   ;;  %v21884_v47 = vld [vmem:[%s23123_s14 + $0x1004] ss:$52 sps:$4 sm:$0xff]  }
 0xc23   : > { %17003 = vmatprep.subr.bf16.mxu0 %v21809_v13  ;;  %17167 = vmatprep.subr.bf16.mxu1 %v21812_v7  ;;  %v21879_v13 = vld [vmem:[%s23123_s14 + $0xff8] ss:$52 sps:$4 sm:$0xff]   ;;  %v21882_v7 = vld [vmem:[%s23123_s14 + $0x1000] ss:$52 sps:$4 sm:$0xff]  }
 0xc26   : > { %17004 = vmatpush1.bf16.msra.mxu0 %v21807_v51  ;;  %17168 = vmatpush1.bf16.msra.mxu1 %v21810_v62  ;;  %v21887_v51 = vld [vmem:[%s23123_s14 + $0x1064] ss:$52 sps:$4 sm:$0xff]   ;;  %v21890_v62 = vld [vmem:[%s23123_s14 + $0x106c] ss:$52 sps:$4 sm:$0xff]  }
 0xc27   : > { %17005 = vmatprep.subr.bf16.mxu0 %v21815_v22  ;;  %17169 = vmatprep.subr.bf16.mxu1 %v21818_v55  ;;  %v21885_v22 = vld [vmem:[%s23123_s14 + $0x1060] ss:$52 sps:$4 sm:$0xff]   ;;  %v21888_v55 = vld [vmem:[%s23123_s14 + $0x1068] ss:$52 sps:$4 sm:$0xff]  }
 0xc2a   : > { %17006 = vmatpush1.bf16.msra.mxu0 %v21813_v6  ;;  %17170 = vmatpush1.bf16.msra.mxu1 %v21816_v57  ;;  %v21893_v6 = vld [vmem:[%s23123_s14 + $0x10cc] ss:$52 sps:$4 sm:$0xff]   ;;  %v21896_v57 = vld [vmem:[%s23123_s14 + $0x10d4] ss:$52 sps:$4 sm:$0xff]  }
 0xc2b   : > { %17007 = vmatprep.subr.bf16.mxu0 %v21821_v58  ;;  %17171 = vmatprep.subr.bf16.mxu1 %v21824_v1  ;;  %v21891_v58 = vld [vmem:[%s23123_s14 + $0x10c8] ss:$52 sps:$4 sm:$0xff]   ;;  %v21894_v1 = vld [vmem:[%s23123_s14 + $0x10d0] ss:$52 sps:$4 sm:$0xff]  }
 0xc2e   : > { %17008 = vmatpush1.bf16.msra.mxu0 %v21819_v3  ;;  %17172 = vmatpush1.bf16.msra.mxu1 %v21822_v32  ;;  %v21899_v3 = vld [vmem:[%s23123_s14 + $0x1134] ss:$52 sps:$4 sm:$0xff]   ;;  %v21902_v32 = vld [vmem:[%s23123_s14 + $0x113c] ss:$52 sps:$4 sm:$0xff]  }
 0xc2f   : > { %17009 = vmatprep.subr.bf16.mxu0 %v21827_v45  ;;  %17173 = vmatprep.subr.bf16.mxu1 %v21830_v5  ;;  %v21897_v45 = vld [vmem:[%s23123_s14 + $0x1130] ss:$52 sps:$4 sm:$0xff]   ;;  %v21900_v5 = vld [vmem:[%s23123_s14 + $0x1138] ss:$52 sps:$4 sm:$0xff]  }
 0xc32   : > { %17010 = vmatpush1.bf16.msra.mxu0 %v21825_v0  ;;  %17174 = vmatpush1.bf16.msra.mxu1 %v21828_v31  ;;  %v21905_v0 = vld [vmem:[%s23123_s14 + $0x119c] ss:$52 sps:$4 sm:$0xff]   ;;  %v21908_v31 = vld [vmem:[%s23123_s14 + $0x11a4] ss:$52 sps:$4 sm:$0xff]  }
 0xc33   : > { %17011 = vmatprep.subr.bf16.mxu0 %v21833_v2  ;;  %17175 = vmatprep.subr.bf16.mxu1 %v21836_v52  ;;  %v21903_v2 = vld [vmem:[%s23123_s14 + $0x1198] ss:$52 sps:$4 sm:$0xff]   ;;  %v21906_v52 = vld [vmem:[%s23123_s14 + $0x11a0] ss:$52 sps:$4 sm:$0xff]  }
 0xc36   : > { %17012 = vmatpush1.bf16.msra.mxu0 %v21831_v14  ;;  %17176 = vmatpush1.bf16.msra.mxu1 %v21834_v29  ;;  %v21911_v14 = vld [vmem:[%s23123_s14 + $0x1204] ss:$52 sps:$4 sm:$0xff]   ;;  %v21914_v29 = vld [vmem:[%s23123_s14 + $0x120c] ss:$52 sps:$4 sm:$0xff]  }
 0xc37   : > { %17022 = vmatprep.subr.bf16.mxu0 %v21839_v30  ;;  %17186 = vmatprep.subr.bf16.mxu1 %v21842_v11  ;;  %v21909_v30 = vld [vmem:[%s23123_s14 + $0x1200] ss:$52 sps:$4 sm:$0xff]   ;;  %v21912_v11 = vld [vmem:[%s23123_s14 + $0x1208] ss:$52 sps:$4 sm:$0xff]  }
 0xc39   : > { %17014 = vmatmul.mubr.bf16.vlgmr.msra.gmra.mrb[8].mxu0 %v24395_v59  ;;  %17178 = vmatmul.mubr.bf16.vlgmr.msra.gmra.mrb[8].mxu1 %v24395_v59 }
 0xc3a   : > { %17023 = vmatpush1.bf16.msra.mxu0 %v21837_v4  ;;  %17187 = vmatpush1.bf16.msra.mxu1 %v21840_v16  ;;  %v21917_v4 = vld [vmem:[%s23123_s14 + $0x126c] ss:$52 sps:$4 sm:$0xff]   ;;  %v21920_v16 = vld [vmem:[%s23123_s14 + $0x1274] ss:$52 sps:$4 sm:$0xff]  }
 0xc3b   : > { %17024 = vmatprep.subr.bf16.mxu0 %v21845_v17  ;;  %17188 = vmatprep.subr.bf16.mxu1 %v21848_v26  ;;  %v21915_v17 = vld [vmem:[%s23123_s14 + $0x1268] ss:$52 sps:$4 sm:$0xff]   ;;  %v21918_v26 = vld [vmem:[%s23123_s14 + $0x1270] ss:$52 sps:$4 sm:$0xff]  }
 0xc3c   : > { %17054 = vmatprep.mubr.bf16.mxu0 %v24414_v46  ;;  %17218 = vmatprep.mubr.bf16.mxu1 %v24414_v46 }
 0xc3e   : > { %17025 = vmatpush1.bf16.msra.mxu0 %v21843_v23  ;;  %17189 = vmatpush1.bf16.msra.mxu1 %v21846_v24  ;;  %v21923_v23 = vld [vmem:[%s23123_s14 + $0x12d4] ss:$52 sps:$4 sm:$0xff]   ;;  %v21926_v24 = vld [vmem:[%s23123_s14 + $0x12dc] ss:$52 sps:$4 sm:$0xff]  }
 0xc3f   : > { %17026 = vmatprep.subr.bf16.mxu0 %v21851_v25  ;;  %17190 = vmatprep.subr.bf16.mxu1 %v21854_v36  ;;  %v21921_v25 = vld [vmem:[%s23123_s14 + $0x12d0] ss:$52 sps:$4 sm:$0xff]   ;;  %v21924_v36 = vld [vmem:[%s23123_s14 + $0x12d8] ss:$52 sps:$4 sm:$0xff]  }
 0xc42   : > { %17027 = vmatpush1.bf16.msra.mxu0 %v21849_v27  ;;  %17191 = vmatpush1.bf16.msra.mxu1 %v21852_v60  ;;  %v21929_v27 = vld [vmem:[%s23123_s14 + $0x133c] ss:$52 sps:$4 sm:$0xff]   ;;  %v21932_v60 = vld [vmem:[%s23123_s14 + $0x1344] ss:$52 sps:$4 sm:$0xff]  }
 0xc43   : > { %17028 = vmatprep.subr.bf16.mxu0 %v21857_v48  ;;  %17192 = vmatprep.subr.bf16.mxu1 %v21860_v33  ;;  %v21927_v48 = vld [vmem:[%s23123_s14 + $0x1338] ss:$52 sps:$4 sm:$0xff]   ;;  %v21930_v33 = vld [vmem:[%s23123_s14 + $0x1340] ss:$52 sps:$4 sm:$0xff]  }
 0xc46   : > { %17029 = vmatpush1.bf16.msra.mxu0 %v21855_v61  ;;  %17193 = vmatpush1.bf16.msra.mxu1 %v21858_v41  ;;  %v21935_v61 = vld [vmem:[%s23123_s14 + $0x13a4] ss:$52 sps:$4 sm:$0xff]   ;;  %v21938_v41 = vld [vmem:[%s23123_s14 + $0x13ac] ss:$52 sps:$4 sm:$0xff]  }
 0xc47   : > { %17030 = vmatprep.subr.bf16.mxu0 %v21863_v54  ;;  %17194 = vmatprep.subr.bf16.mxu1 %v21866_v20  ;;  %v21933_v54 = vld [vmem:[%s23123_s14 + $0x13a0] ss:$52 sps:$4 sm:$0xff]   ;;  %v21936_v20 = vld [vmem:[%s23123_s14 + $0x13a8] ss:$52 sps:$4 sm:$0xff]  }
 0xc4a   : > { %17031 = vmatpush1.bf16.msra.mxu0 %v21861_v37  ;;  %17195 = vmatpush1.bf16.msra.mxu1 %v21864_v50  ;;  %v21941_v37 = vld [vmem:[%s23123_s14 + $0x140c] ss:$52 sps:$4 sm:$0xff]   ;;  %v21944_v50 = vld [vmem:[%s23123_s14 + $0x1414] ss:$52 sps:$4 sm:$0xff]  }
 0xc4b   : > { %17032 = vmatprep.subr.bf16.mxu0 %v21869_v39  ;;  %17196 = vmatprep.subr.bf16.mxu1 %v21872_v40  ;;  %v21939_v39 = vld [vmem:[%s23123_s14 + $0x1408] ss:$52 sps:$4 sm:$0xff]   ;;  %v21942_v40 = vld [vmem:[%s23123_s14 + $0x1410] ss:$52 sps:$4 sm:$0xff]  }
 0xc4e   : > { %17033 = vmatpush1.bf16.msra.mxu0 %v21867_v42  ;;  %17197 = vmatpush1.bf16.msra.mxu1 %v21870_v43  ;;  %v21947_v42 = vld [vmem:[%s23123_s14 + $0x1474] ss:$52 sps:$4 sm:$0xff]   ;;  %v21950_v43 = vld [vmem:[%s23123_s14 + $0x147c] ss:$52 sps:$4 sm:$0xff]  }
 0xc4f   : > { %17034 = vmatprep.subr.bf16.mxu0 %v21875_v44  ;;  %17198 = vmatprep.subr.bf16.mxu1 %v21878_v28  ;;  %v21945_v44 = vld [vmem:[%s23123_s14 + $0x1470] ss:$52 sps:$4 sm:$0xff]   ;;  %v21948_v28 = vld [vmem:[%s23123_s14 + $0x1478] ss:$52 sps:$4 sm:$0xff]  }
 0xc52   : > { %17035 = vmatpush1.bf16.msra.mxu0 %v21873_v34  ;;  %17199 = vmatpush1.bf16.msra.mxu1 %v21876_v49  ;;  %v21953_v34 = vld [vmem:[%s23123_s14 + $0x14dc] ss:$52 sps:$4 sm:$0xff]   ;;  %v21956_v49 = vld [vmem:[%s23123_s14 + $0x14e4] ss:$52 sps:$4 sm:$0xff]  }
 0xc53   : > { %17036 = vmatprep.subr.bf16.mxu0 %v21881_v63  ;;  %17200 = vmatprep.subr.bf16.mxu1 %v21884_v47  ;;  %v21951_v63 = vld [vmem:[%s23123_s14 + $0x14d8] ss:$52 sps:$4 sm:$0xff]   ;;  %v21954_v47 = vld [vmem:[%s23123_s14 + $0x14e0] ss:$52 sps:$4 sm:$0xff]  }
 0xc56   : > { %17037 = vmatpush1.bf16.msra.mxu0 %v21879_v13  ;;  %17201 = vmatpush1.bf16.msra.mxu1 %v21882_v7  ;;  %v21959_v13 = vld [vmem:[%s23123_s14 + $0x1544] ss:$52 sps:$4 sm:$0xff]   ;;  %v21962_v7 = vld [vmem:[%s23123_s14 + $0x154c] ss:$52 sps:$4 sm:$0xff]  }
 0xc57   : > { %17038 = vmatprep.subr.bf16.mxu0 %v21887_v51  ;;  %17202 = vmatprep.subr.bf16.mxu1 %v21890_v62  ;;  %v12013_v51 = vsub.s32 4, %v24278_v56  ;;  %v12021_v62 = vsub.s32 6, %v24278_v56 }
 0xc5a   : > { %17039 = vmatpush1.bf16.msra.mxu0 %v21885_v22  ;;  %17203 = vmatpush1.bf16.msra.mxu1 %v21888_v55  ;;  %v21957_v22 = vld [vmem:[%s23123_s14 + $0x1540] ss:$52 sps:$4 sm:$0xff]   ;;  %v21960_v55 = vld [vmem:[%s23123_s14 + $0x1548] ss:$52 sps:$4 sm:$0xff]  }
 0xc5b   : > { %17040 = vmatprep.subr.bf16.mxu0 %v21893_v6  ;;  %17204 = vmatprep.subr.bf16.mxu1 %v21896_v57  ;;  %v12017_v6 = vsub.s32 5, %v24278_v56  ;;  %v12025_v57 = vsub.s32 7, %v24278_v56 }
 0xc5e   : > { %17041 = vmatpush1.bf16.msra.mxu0 %v21891_v58  ;;  %17205 = vmatpush1.bf16.msra.mxu1 %v21894_v1  ;;  %v21965_v58 = vld [vmem:[%s23123_s14 + $0x15ac] ss:$52 sps:$4 sm:$0xff]   ;;  %v21968_v1 = vld [vmem:[%s23123_s14 + $0x15b4] ss:$52 sps:$4 sm:$0xff]  }
 0xc5f   : > { %17042 = vmatprep.subr.bf16.mxu0 %v21899_v3  ;;  %17206 = vmatprep.subr.bf16.mxu1 %v21902_v32  ;;  %v22093_v3 = vld [vmem:[%s23130_s16] sm:$0xff] }
 0xc60   : > { %v12014_v32 = vrot.slane %v22093_v3, %v12013_v51 }
 0xc62   : > { %17043 = vmatpush1.bf16.msra.mxu0 %v21897_v45  ;;  %17207 = vmatpush1.bf16.msra.mxu1 %v21900_v5  ;;  %v12022_v45 = vrot.slane %v22093_v3, %v12021_v62  ;;  %v12018_v5 = vrot.slane %v22093_v3, %v12017_v6  ;;  %v21995_v62 = vld [vmem:[%s23123_s14 + $0x17b4] ss:$52 sps:$4 sm:$0xff]   ;;  %v21996_v6 = vld [vmem:[%s23123_s14 + $0x17b8] ss:$52 sps:$4 sm:$0xff]  }
 0xc63   : > { %17044 = vmatprep.subr.bf16.mxu0 %v21905_v0  ;;  %17208 = vmatprep.subr.bf16.mxu1 %v21908_v31  ;;  %v12026_v0 = vrot.slane %v22093_v3, %v12025_v57  ;;  %v21963_v31 = vld [vmem:[%s23123_s14 + $0x15a8] ss:$52 sps:$4 sm:$0xff]   ;;  %v22002_v3 = vld [vmem:[%s23123_s14 + $0x1820] ss:$52 sps:$4 sm:$0xff]  }
 0xc64   : > { %v22001_v57 = vld [vmem:[%s23123_s14 + $0x181c] ss:$52 sps:$4 sm:$0xff]  }
 0xc66   : > { %17045 = vmatpush1.bf16.msra.mxu0 %v21903_v2  ;;  %17209 = vmatpush1.bf16.msra.mxu1 %v21906_v52  ;;  %v21966_v2 = vld [vmem:[%s23123_s14 + $0x15b0] ss:$52 sps:$4 sm:$0xff]   ;;  %v21971_v52 = vld [vmem:[%s23123_s14 + $0x1614] ss:$52 sps:$4 sm:$0xff]  }
 0xc67   : > { %17046 = vmatprep.subr.bf16.mxu0 %v21911_v14  ;;  %17210 = vmatprep.subr.bf16.mxu1 %v21914_v29  ;;  %v21974_v14 = vld [vmem:[%s23123_s14 + $0x161c] ss:$52 sps:$4 sm:$0xff]  }
 0xc6a   : > { %17047 = vmatpush1.bf16.msra.mxu0 %v21909_v30  ;;  %17211 = vmatpush1.bf16.msra.mxu1 %v21912_v11 }
 0xc6b   : > { %17048 = vmatprep.subr.bf16.mxu0 %v21917_v4  ;;  %17212 = vmatprep.subr.bf16.mxu1 %v21920_v16 }
 0xc6e   : > { %17049 = vmatpush1.bf16.msra.mxu0 %v21915_v17  ;;  %17213 = vmatpush1.bf16.msra.mxu1 %v21918_v26 }
 0xc6f   : > { %17050 = vmatprep.subr.bf16.mxu0 %v21923_v23  ;;  %17214 = vmatprep.subr.bf16.mxu1 %v21926_v24 }
 0xc72   : > { %17051 = vmatpush1.bf16.msra.mxu0 %v21921_v25  ;;  %17215 = vmatpush1.bf16.msra.mxu1 %v21924_v36  ;;  %v21969_v36 = vld [vmem:[%s23123_s14 + $0x1610] ss:$52 sps:$4 sm:$0xff]  }
 0xc73   : > { %17052 = vmatprep.subr.bf16.mxu0 %v21929_v27  ;;  %17216 = vmatprep.subr.bf16.mxu1 %v21932_v60  ;;  %v21972_v27 = vld [vmem:[%s23123_s14 + $0x1618] ss:$52 sps:$4 sm:$0xff]  }
 0xc76   : > { %17053 = vmatpush1.bf16.msra.mxu0 %v21927_v48  ;;  %17217 = vmatpush1.bf16.msra.mxu1 %v21930_v33  ;;  %v21977_v33 = vld [vmem:[%s23123_s14 + $0x167c] ss:$52 sps:$4 sm:$0xff]  }
 0xc77   : > { %17063 = vmatprep.subr.bf16.mxu0 %v21935_v61  ;;  %17227 = vmatprep.subr.bf16.mxu1 %v21938_v41  ;;  %v21980_v61 = vld [vmem:[%s23123_s14 + $0x1684] ss:$52 sps:$4 sm:$0xff]  }
 0xc79   : > { %17055 = vmatmul.mubr.bf16.vlgmr.msra.gmra.mrb[8].mxu0 %v24483_v10  ;;  %17219 = vmatmul.mubr.bf16.vlgmr.msra.gmra.mrb[8].mxu1 %v24483_v10 }
 0xc7a   : > { %17064 = vmatpush1.bf16.msra.mxu0 %v21933_v54  ;;  %17228 = vmatpush1.bf16.msra.mxu1 %v21936_v20 }
 0xc7b   : > { %17065 = vmatprep.subr.bf16.mxu0 %v21941_v37  ;;  %17229 = vmatprep.subr.bf16.mxu1 %v21944_v50  ;;  %v21975_v50 = vld [vmem:[%s23123_s14 + $0x1678] ss:$52 sps:$4 sm:$0xff]  }
 0xc7c   : > { %17095 = vmatprep.mubr.bf16.mxu0 %v24489_v15  ;;  %17259 = vmatprep.mubr.bf16.mxu1 %v24489_v15 }
 0xc7e   : > { %17066 = vmatpush1.bf16.msra.mxu0 %v21939_v39  ;;  %17230 = vmatpush1.bf16.msra.mxu1 %v21942_v40  ;;  %v21978_v39 = vld [vmem:[%s23123_s14 + $0x1680] ss:$52 sps:$4 sm:$0xff]  }
 0xc7f   : > { %17067 = vmatprep.subr.bf16.mxu0 %v21947_v42  ;;  %17231 = vmatprep.subr.bf16.mxu1 %v21950_v43  ;;  %v17429_v40 = vld [vmem:[%s23090_s30 + $0x8] sm:$0xff]  ;;  %v21986_v43 = vld [vmem:[%s23123_s14 + $0x16ec] ss:$52 sps:$4 sm:$0xff]  }
 0xc80   : > { %v21983_v42 = vld [vmem:[%s23123_s14 + $0x16e4] ss:$52 sps:$4 sm:$0xff]  }
 0xc82   : > { %17068 = vmatpush1.bf16.msra.mxu0 %v21945_v44  ;;  %17232 = vmatpush1.bf16.msra.mxu1 %v21948_v28 }
 0xc83   : > { %17069 = vmatprep.subr.bf16.mxu0 %v21953_v34  ;;  %17233 = vmatprep.subr.bf16.mxu1 %v21956_v49  ;;  %v21981_v34 = vld [vmem:[%s23123_s14 + $0x16e0] ss:$52 sps:$4 sm:$0xff]   ;;  %v21984_v49 = vld [vmem:[%s23123_s14 + $0x16e8] ss:$52 sps:$4 sm:$0xff]  }
 0xc86   : > { %17070 = vmatpush1.bf16.msra.mxu0 %v21951_v63  ;;  %17234 = vmatpush1.bf16.msra.mxu1 %v21954_v47  ;;  %v21989_v63 = vld [vmem:[%s23123_s14 + $0x174c] ss:$52 sps:$4 sm:$0xff]   ;;  %v21992_v47 = vld [vmem:[%s23123_s14 + $0x1754] ss:$52 sps:$4 sm:$0xff]  }
 0xc87   : > { %17071 = vmatprep.subr.bf16.mxu0 %v21959_v13  ;;  %17235 = vmatprep.subr.bf16.mxu1 %v21962_v7  ;;  %v21987_v13 = vld [vmem:[%s23123_s14 + $0x1748] ss:$52 sps:$4 sm:$0xff]   ;;  %v21990_v7 = vld [vmem:[%s23123_s14 + $0x1750] ss:$52 sps:$4 sm:$0xff]  }
 0xc8a   : > { %17072 = vmatpush1.bf16.msra.mxu0 %v21957_v22  ;;  %17236 = vmatpush1.bf16.msra.mxu1 %v21960_v55  ;;  %v21998_v22 = vld [vmem:[%s23123_s14 + $0x17bc] ss:$52 sps:$4 sm:$0xff]  }
 0xc8b   : > { %17073 = vmatprep.subr.bf16.mxu0 %v21965_v58  ;;  %17237 = vmatprep.subr.bf16.mxu1 %v21968_v1  ;;  %v21993_v55 = vld [vmem:[%s23123_s14 + $0x17b0] ss:$52 sps:$4 sm:$0xff]   ;;  %v21999_v1 = vld [vmem:[%s23123_s14 + $0x1818] ss:$52 sps:$4 sm:$0xff]  }
 0xc8c   : > { %v16769_v29 = vpop.f32.mrb[4].mxu0  ;;  %v16933_v30 = vpop.f32.mrb[4].mxu1  ;;  %v22004_v58 = vld [vmem:[%s23123_s14 + $0x1824] ss:$52 sps:$4 sm:$0xff]  }
 0xc8d   : > { %v20192_v11 = vadd.f32 %v16769_v29, %v12014_v32  ;;  %v20194_v4 = vadd.f32 %v16933_v30, %v12022_v45  ;;  %v16771_v16 = vpop.f32.mrb[5].mxu0  ;;  %v16935_v17 = vpop.f32.mrb[5].mxu1  ;;  %v22007_v32 = vld [vmem:[%s23123_s14 + $0x1884] ss:$52 sps:$4 sm:$0xff]   ;;  %v22010_v45 = vld [vmem:[%s23123_s14 + $0x188c] ss:$52 sps:$4 sm:$0xff]  }
 0xc8e   : > { %v20193_v26 = vadd.f32 %v16771_v16, %v12018_v5  ;;  %v20195_v23 = vadd.f32 %v16935_v17, %v12026_v0  ;;  %v16773_v24 = vpop.f32.mrb[6].mxu0  ;;  %v16937_v25 = vpop.f32.mrb[6].mxu1  ;;  %17074 = vmatpush1.bf16.msra.mxu0 %v21963_v31  ;;  %17238 = vmatpush1.bf16.msra.mxu1 %v21966_v2  ;;  %v22005_v5 = vld [vmem:[%s23123_s14 + $0x1880] ss:$52 sps:$4 sm:$0xff]   ;;  %v22008_v0 = vld [vmem:[%s23123_s14 + $0x1888] ss:$52 sps:$4 sm:$0xff]  }
 0xc8f   : > { %v16774_v60 = vpop.f32.mrb[7].mxu0  ;;  %v16938_v48 = vpop.f32.mrb[7].mxu1  ;;  %17075 = vmatprep.subr.bf16.mxu0 %v21971_v52  ;;  %17239 = vmatprep.subr.bf16.mxu1 %v21974_v14  ;;  %v22013_v31 = vld [vmem:[%s23123_s14 + $0x18ec] ss:$52 sps:$4 sm:$0xff]   ;;  %v22016_v2 = vld [vmem:[%s23123_s14 + $0x18f4] ss:$52 sps:$4 sm:$0xff]  }
 0xc90   : > { %v17462_v41 = vcombine.low %v20192_v11, %v20193_v26  ;;  %v17463_v54 = vcombine.low %v20194_v4, %v20195_v23  ;;  %v22011_v52 = vld [vmem:[%s23123_s14 + $0x18e8] ss:$52 sps:$4 sm:$0xff]   ;;  %v22014_v14 = vld [vmem:[%s23123_s14 + $0x18f0] ss:$52 sps:$4 sm:$0xff]   ;;  %v22020_v4 = vld [vmem:[%s23123_s14 + $0x1958] ss:$52 sps:$4 sm:$0xff]  }
 0xc91   : > { %v22019_v29 = vld [vmem:[%s23123_s14 + $0x1954] ss:$52 sps:$4 sm:$0xff]   ;;  %v22022_v30 = vld [vmem:[%s23123_s14 + $0x195c] ss:$52 sps:$4 sm:$0xff]   ;;  %v22028_v17 = vld [vmem:[%s23123_s14 + $0x19c4] ss:$52 sps:$4 sm:$0xff]  }
 0xc92   : > { %v17470_v20 = vrot.slane %v17462_v41, %v24286_v21  ;;  %v17477_v37 = vrot.slane %v17463_v54, %v24286_v21  ;;  %17076 = vmatpush1.bf16.msra.mxu0 %v21969_v36  ;;  %17240 = vmatpush1.bf16.msra.mxu1 %v21972_v27  ;;  %v22017_v11 = vld [vmem:[%s23123_s14 + $0x1950] ss:$52 sps:$4 sm:$0xff]   ;;  %v22023_v26 = vld [vmem:[%s23123_s14 + $0x19b8] ss:$52 sps:$4 sm:$0xff]   ;;  %v22026_v23 = vld [vmem:[%s23123_s14 + $0x19c0] ss:$52 sps:$4 sm:$0xff]  }
 0xc93   : > { %17077 = vmatprep.subr.bf16.mxu0 %v21977_v33  ;;  %17241 = vmatprep.subr.bf16.mxu1 %v21980_v61  ;;  %v22025_v16 = vld [vmem:[%s23123_s14 + $0x19bc] ss:$52 sps:$4 sm:$0xff]   ;;  %v22033_v60 = vld [vmem:[%s23123_s14 + $0x3d8] ss:$52 sps:$4 sm:$0xff]   ;;  %v22037_v41 = vld [vmem:[%s23123_s14 + $0x440] ss:$52 sps:$4 sm:$0xff]  }
 0xc94   : > { %v17478_v44 = vcombine.low %v17470_v20, %v17477_v37  ;;  %v22029_v24 = vld [vmem:[%s23123_s14 + $0x370] ss:$52 sps:$4 sm:$0xff]   ;;  %v22034_v48 = vld [vmem:[%s23123_s14 + $0xa58] ss:$52 sps:$4 sm:$0xff]   ;;  %v22038_v54 = vld [vmem:[%s23123_s14 + $0xac0] ss:$52 sps:$4 sm:$0xff]  }
 0xc95   : > { %v22030_v25 = vld [vmem:[%s23123_s14 + $0x9f0] ss:$52 sps:$4 sm:$0xff]   ;;  %v22035_v33 = vld [vmem:[%s23123_s14 + $0x98] ss:$52 sps:$4 sm:$0xff]   ;;  %v22039_v20 = vld [vmem:[%s23123_s14 + $0x100] ss:$52 sps:$4 sm:$0xff]  }
 0xc96   : > { %v17508_v28 = vsub.f32 %v17429_v40, %v17478_v44  ;;  %17078 = vmatpush1.bf16.msra.mxu0 %v21975_v50  ;;  %17242 = vmatpush1.bf16.msra.mxu1 %v21978_v39  ;;  %v22031_v36 = vld [vmem:[%s23123_s14 + $0x30] ss:$52 sps:$4 sm:$0xff]   ;;  %v22036_v61 = vld [vmem:[%s23123_s14 + $0x718] ss:$52 sps:$4 sm:$0xff]   ;;  %v22040_v37 = vld [vmem:[%s23123_s14 + $0x780] ss:$52 sps:$4 sm:$0xff]  }
 0xc97   : > { %17079 = vmatprep.subr.bf16.mxu0 %v21983_v42  ;;  %17243 = vmatprep.subr.bf16.mxu1 %v21986_v43  ;;  %v22032_v27 = vld [vmem:[%s23123_s14 + $0x6b0] ss:$52 sps:$4 sm:$0xff]   ;;  %v22041_v50 = vld [vmem:[%s23123_s14 + $0x4a8] ss:$52 sps:$4 sm:$0xff]  }
 0xc98   : > { %17512 = vst [vmem:[%s23137_s23 + $0x8] sm:$0xff] %v17508_v28  ;;  %v22042_v39 = vld [vmem:[%s23123_s14 + $0xb28] ss:$52 sps:$4 sm:$0xff]   ;;  %v22046_v42 = vld [vmem:[%s23123_s14 + $0xb90] ss:$52 sps:$4 sm:$0xff]  }
 0xc99   : > { %v22043_v40 = vld [vmem:[%s23123_s14 + $0x168] ss:$52 sps:$4 sm:$0xff]   ;;  %v22047_v43 = vld [vmem:[%s23123_s14 + $0x1d0] ss:$52 sps:$4 sm:$0xff]   ;;  %v22049_v28 = vld [vmem:[%s23123_s14 + $0x578] ss:$52 sps:$4 sm:$0xff]  }
 0xc9a   : > { %17080 = vmatpush1.bf16.msra.mxu0 %v21981_v34  ;;  %17244 = vmatpush1.bf16.msra.mxu1 %v21984_v49  ;;  %v22048_v44 = vld [vmem:[%s23123_s14 + $0x850] ss:$52 sps:$4 sm:$0xff]   ;;  %v22050_v34 = vld [vmem:[%s23123_s14 + $0xbf8] ss:$52 sps:$4 sm:$0xff]  }
 0xc9b   : > { %17081 = vmatprep.subr.bf16.mxu0 %v21989_v63  ;;  %17245 = vmatprep.subr.bf16.mxu1 %v21992_v47  ;;  %v22051_v49 = vld [vmem:[%s23123_s14 + $0x238] ss:$52 sps:$4 sm:$0xff]   ;;  %v22053_v47 = vld [vmem:[%s23123_s14 + $0x5e0] ss:$52 sps:$4 sm:$0xff]  }
 0xc9c   : > { %v22052_v63 = vld [vmem:[%s23123_s14 + $0x8b8] ss:$52 sps:$4 sm:$0xff]  }
 0xc9e   : > { %17082 = vmatpush1.bf16.msra.mxu0 %v21987_v13  ;;  %17246 = vmatpush1.bf16.msra.mxu1 %v21990_v7  ;;  %v22054_v13 = vld [vmem:[%s23123_s14 + $0xc60] ss:$52 sps:$4 sm:$0xff]  }
 0xc9f   : > { %17083 = vmatprep.subr.bf16.mxu0 %v21995_v62  ;;  %17247 = vmatprep.subr.bf16.mxu1 %v21998_v22  ;;  %v22055_v7 = vld [vmem:[%s23123_s14 + $0x2a0] ss:$52 sps:$4 sm:$0xff]   ;;  %v22057_v22 = vld [vmem:[%s23123_s14 + $0x648] ss:$52 sps:$4 sm:$0xff]  }
 0xca0   : > { %v22056_v62 = vld [vmem:[%s23123_s14 + $0x920] ss:$52 sps:$4 sm:$0xff]  }
 0xca2   : > { %17084 = vmatpush1.bf16.msra.mxu0 %v21993_v55  ;;  %17248 = vmatpush1.bf16.msra.mxu1 %v21996_v6  ;;  %v22058_v55 = vld [vmem:[%s23123_s14 + $0xcc8] ss:$52 sps:$4 sm:$0xff]  }
 0xca3   : > { %17085 = vmatprep.subr.bf16.mxu0 %v22001_v57  ;;  %17249 = vmatprep.subr.bf16.mxu1 %v22004_v58  ;;  %v22059_v6 = vld [vmem:[%s23123_s14 + $0x308] ss:$52 sps:$4 sm:$0xff]   ;;  %v22061_v58 = vld [vmem:[%s23123_s14 + $0x1070] ss:$52 sps:$4 sm:$0xff]  }
 0xca4   : > { %v22060_v57 = vld [vmem:[%s23123_s14 + $0x988] ss:$52 sps:$4 sm:$0xff]  }
 0xca6   : > { %17086 = vmatpush1.bf16.msra.mxu0 %v21999_v1  ;;  %17250 = vmatpush1.bf16.msra.mxu1 %v22002_v3  ;;  %v22062_v1 = vld [vmem:[%s23123_s14 + $0x16f0] ss:$52 sps:$4 sm:$0xff]  }
 0xca7   : > { %17087 = vmatprep.subr.bf16.mxu0 %v22007_v32  ;;  %17251 = vmatprep.subr.bf16.mxu1 %v22010_v45  ;;  %v22063_v3 = vld [vmem:[%s23123_s14 + $0xd30] ss:$52 sps:$4 sm:$0xff]   ;;  %v22065_v45 = vld [vmem:[%s23123_s14 + $0x10d8] ss:$52 sps:$4 sm:$0xff]  }
 0xca8   : > { %v22064_v32 = vld [vmem:[%s23123_s14 + $0x13b0] ss:$52 sps:$4 sm:$0xff]  }
 0xcaa   : > { %17088 = vmatpush1.bf16.msra.mxu0 %v22005_v5  ;;  %17252 = vmatpush1.bf16.msra.mxu1 %v22008_v0  ;;  %v22066_v5 = vld [vmem:[%s23123_s14 + $0x1758] ss:$52 sps:$4 sm:$0xff]  }
 0xcab   : > { %17089 = vmatprep.subr.bf16.mxu0 %v22013_v31  ;;  %17253 = vmatprep.subr.bf16.mxu1 %v22016_v2  ;;  %v22067_v0 = vld [vmem:[%s23123_s14 + $0xd98] ss:$52 sps:$4 sm:$0xff]   ;;  %v22069_v2 = vld [vmem:[%s23123_s14 + $0x1140] ss:$52 sps:$4 sm:$0xff]  }
 0xcac   : > { %v22068_v31 = vld [vmem:[%s23123_s14 + $0x1418] ss:$52 sps:$4 sm:$0xff]  }
 0xcae   : > { %17090 = vmatpush1.bf16.msra.mxu0 %v22011_v52  ;;  %17254 = vmatpush1.bf16.msra.mxu1 %v22014_v14  ;;  %v22070_v52 = vld [vmem:[%s23123_s14 + $0x17c0] ss:$52 sps:$4 sm:$0xff]   ;;  %v22073_v14 = vld [vmem:[%s23123_s14 + $0x11a8] ss:$52 sps:$4 sm:$0xff]  }
 0xcaf   : > { %17091 = vmatprep.subr.bf16.mxu0 %v22019_v29  ;;  %17255 = vmatprep.subr.bf16.mxu1 %v22022_v30  ;;  %v22074_v29 = vld [vmem:[%s23123_s14 + $0x1828] ss:$52 sps:$4 sm:$0xff]  }
 0xcb0   : > { %v22075_v30 = vld [vmem:[%s23123_s14 + $0xe68] ss:$52 sps:$4 sm:$0xff]  }
 0xcb2   : > { %17092 = vmatpush1.bf16.msra.mxu0 %v22017_v11  ;;  %17256 = vmatpush1.bf16.msra.mxu1 %v22020_v4  ;;  %v22078_v11 = vld [vmem:[%s23123_s14 + $0x1890] ss:$52 sps:$4 sm:$0xff]  }
 0xcb3   : > { %17093 = vmatprep.subr.bf16.mxu0 %v22025_v16  ;;  %17257 = vmatprep.subr.bf16.mxu1 %v22028_v17  ;;  %v22079_v4 = vld [vmem:[%s23123_s14 + $0xed0] ss:$52 sps:$4 sm:$0xff]   ;;  %v22081_v17 = vld [vmem:[%s23123_s14 + $0x1278] ss:$52 sps:$4 sm:$0xff]  }
 0xcb4   : > { %v22080_v16 = vld [vmem:[%s23123_s14 + $0x1550] ss:$52 sps:$4 sm:$0xff]  }
 0xcb6   : > { %17094 = vmatpush1.bf16.msra.mxu0 %v22023_v26  ;;  %17258 = vmatpush1.bf16.msra.mxu1 %v22026_v23  ;;  %v22082_v26 = vld [vmem:[%s23123_s14 + $0x18f8] ss:$52 sps:$4 sm:$0xff]  }
 0xcb7   : > { %19952 = vmatprep.subr.bf16.mxu0 %v22029_v24  ;;  %19974 = vmatprep.subr.bf16.mxu1 %v22030_v25  ;;  %v22083_v23 = vld [vmem:[%s23123_s14 + $0xf38] ss:$52 sps:$4 sm:$0xff]   ;;  %v22085_v25 = vld [vmem:[%s23123_s14 + $0x12e0] ss:$52 sps:$4 sm:$0xff]  }
 0xcb8   : > { %v22084_v24 = vld [vmem:[%s23123_s14 + $0x15b8] ss:$52 sps:$4 sm:$0xff]  }
 0xcb9   : > { %17096 = vmatmul.mubr.bf16.vlgmr.msra.gmra.mrb[8].mxu0 %v24557_v38  ;;  %17260 = vmatmul.mubr.bf16.vlgmr.msra.gmra.mrb[8].mxu1 %v24557_v38 }
 0xcba   : > { %19953 = vmatpush3.bf16.msra.mxu0 %v22031_v36  ;;  %19975 = vmatpush3.bf16.msra.mxu1 %v22032_v27  ;;  %v22086_v36 = vld [vmem:[%s23123_s14 + $0x1960] ss:$52 sps:$4 sm:$0xff]  }
 0xcbb   : > { %19954 = vmatprep.subr.bf16.mxu0 %v22033_v60  ;;  %19976 = vmatprep.subr.bf16.mxu1 %v22034_v48  ;;  %v22087_v27 = vld [vmem:[%s23123_s14 + $0xfa0] ss:$52 sps:$4 sm:$0xff]   ;;  %v22089_v48 = vld [vmem:[%s23123_s14 + $0x1348] ss:$52 sps:$4 sm:$0xff]  }
 0xcbc   : > { %17300 = vmatprep.mubr.bf16.mxu0 %v24296_v35  ;;  %17340 = vmatprep.mubr.bf16.mxu1 %v24326_v9  ;;  %v22044_v35 = vld [vmem:[%s23123_s14 + $0x7e8] ss:$52 sps:$4 sm:$0xff]   ;;  %v22045_v9 = vld [vmem:[%s23123_s14 + $0x510] ss:$52 sps:$4 sm:$0xff]   ;;  %v22088_v60 = vld [vmem:[%s23123_s14 + $0x1620] ss:$52 sps:$4 sm:$0xff]  }
 0xcbe   : > { %19955 = vmatpush3.bf16.msra.mxu0 %v22035_v33  ;;  %19977 = vmatpush3.bf16.msra.mxu1 %v22036_v61  ;;  %v22090_v33 = vld [vmem:[%s23123_s14 + $0x19c8] ss:$52 sps:$4 sm:$0xff]  }
 0xcbf   : > { %19956 = vmatprep.subr.bf16.mxu0 %v22037_v41  ;;  %19978 = vmatprep.subr.bf16.mxu1 %v22038_v54  ;;  %v22091_v61 = vld [vmem:[%s23123_s14 + $0x1008] ss:$52 sps:$4 sm:$0xff]  }
 0xcc0   : > { %v22092_v41 = vld [vmem:[%s23123_s14 + $0x1688] ss:$52 sps:$4 sm:$0xff]  }
 0xcc1   : > { %v11992_v54 = vld [vmem:[%s23130_s16 + $0x8] sm:$0x1f] }
 0xcc2   : > { %19957 = vmatpush3.bf16.msra.mxu0 %v22039_v20  ;;  %19979 = vmatpush3.bf16.msra.mxu1 %v22040_v37  ;;  %v12030_v20 = vrot.slane %v11992_v54, %v11997_v12  ;;  %v12038_v37 = vrot.slane %v11992_v54, %v12005_v8 }
 0xcc3   : > { %19958 = vmatprep.subr.bf16.mxu0 %v22041_v50  ;;  %19980 = vmatprep.subr.bf16.mxu1 %v22042_v39  ;;  %v12034_v50 = vrot.slane %v11992_v54, %v12001_v18  ;;  %v12042_v39 = vrot.slane %v11992_v54, %v12009_v19 }
 0xcc6   : > { %19959 = vmatpush3.bf16.msra.mxu0 %v22043_v40  ;;  %19981 = vmatpush3.bf16.msra.mxu1 %v22044_v35 }
 0xcc7   : > { %19960 = vmatprep.subr.bf16.mxu0 %v22045_v9  ;;  %19982 = vmatprep.subr.bf16.mxu1 %v22046_v42 }
 0xcca   : > { %19961 = vmatpush3.bf16.msra.mxu0 %v22047_v43  ;;  %19983 = vmatpush3.bf16.msra.mxu1 %v22048_v44 }
 0xccb   : > { %19962 = vmatprep.subr.bf16.mxu0 %v22049_v28  ;;  %19984 = vmatprep.subr.bf16.mxu1 %v22050_v34 }
 0xcce   : > { %19963 = vmatpush3.bf16.msra.mxu0 %v22051_v49  ;;  %19985 = vmatpush3.bf16.msra.mxu1 %v22052_v63 }
 0xccf   : > { %19964 = vmatprep.subr.bf16.mxu0 %v22053_v47  ;;  %19986 = vmatprep.subr.bf16.mxu1 %v22054_v13  ;;  %v17430_v47 = vld [vmem:[%s23090_s30 + $0x10] sm:$0xff] }
 0xcd2   : > { %19965 = vmatpush3.bf16.msra.mxu0 %v22055_v7  ;;  %19987 = vmatpush3.bf16.msra.mxu1 %v22056_v62 }
 0xcd3   : > { %19966 = vmatprep.subr.bf16.mxu0 %v22057_v22  ;;  %19988 = vmatprep.subr.bf16.mxu1 %v22058_v55  ;;  %v12046_v55 = vrot.slane %v11992_v54, %v12013_v51 }
 0xcd6   : > { %19967 = vmatpush3.bf16.msra.mxu0 %v22059_v6  ;;  %19989 = vmatpush3.bf16.msra.mxu1 %v22060_v57 }
 0xcd7   : > { %19996 = vmatprep.subr.bf16.mxu0 %v22061_v58  ;;  %20018 = vmatprep.subr.bf16.mxu1 %v22062_v1 }
 0xcd9   : > { %17301 = vmatmul.mubr.bf16.vlgmr.msra.gmra.mrb[12].mxu0 %v24321_v53  ;;  %17341 = vmatmul.mubr.bf16.vlgmr.msra.gmra.mrb[12].mxu1 %v24395_v59  ;;  %v22071_v53 = vld [vmem:[%s23123_s14 + $0xe00] ss:$52 sps:$4 sm:$0xff]  }
 0xcda   : > { %19997 = vmatpush3.bf16.msra.mxu0 %v22063_v3  ;;  %20019 = vmatpush3.bf16.msra.mxu1 %v22064_v32  ;;  %v22072_v59 = vld [vmem:[%s23123_s14 + $0x1480] ss:$52 sps:$4 sm:$0xff]  }
 0xcdb   : > { %19998 = vmatprep.subr.bf16.mxu0 %v22065_v45  ;;  %20020 = vmatprep.subr.bf16.mxu1 %v22066_v5 }
 0xcdc   : > { %17380 = vmatprep.mubr.bf16.mxu0 %v24414_v46  ;;  %17420 = vmatprep.mubr.bf16.mxu1 %v24489_v15  ;;  %v22076_v46 = vld [vmem:[%s23123_s14 + $0x14e8] ss:$52 sps:$4 sm:$0xff]   ;;  %v22077_v15 = vld [vmem:[%s23123_s14 + $0x1210] ss:$52 sps:$4 sm:$0xff]  }
 0xcde   : > { %19999 = vmatpush3.bf16.msra.mxu0 %v22067_v0  ;;  %20021 = vmatpush3.bf16.msra.mxu1 %v22068_v31 }
 0xcdf   : > { %20000 = vmatprep.subr.bf16.mxu0 %v22069_v2  ;;  %20022 = vmatprep.subr.bf16.mxu1 %v22070_v52 }
 0xce2   : > { %20001 = vmatpush3.bf16.msra.mxu0 %v22071_v53  ;;  %20023 = vmatpush3.bf16.msra.mxu1 %v22072_v59 }
 0xce3   : > { %20002 = vmatprep.subr.bf16.mxu0 %v22073_v14  ;;  %20024 = vmatprep.subr.bf16.mxu1 %v22074_v29 }
 0xce6   : > { %20003 = vmatpush3.bf16.msra.mxu0 %v22075_v30  ;;  %20025 = vmatpush3.bf16.msra.mxu1 %v22076_v46 }
 0xce7   : > { %20004 = vmatprep.subr.bf16.mxu0 %v22077_v15  ;;  %20026 = vmatprep.subr.bf16.mxu1 %v22078_v11 }
 0xcea   : > { %20005 = vmatpush3.bf16.msra.mxu0 %v22079_v4  ;;  %20027 = vmatpush3.bf16.msra.mxu1 %v22080_v16  ;;  %v17431_v4 = vld [vmem:[%s23090_s30 + $0x18] sm:$0x3] }
 0xceb   : > { %20006 = vmatprep.subr.bf16.mxu0 %v22081_v17  ;;  %20028 = vmatprep.subr.bf16.mxu1 %v22082_v26 }
 0xcee   : > { %20007 = vmatpush3.bf16.msra.mxu0 %v22083_v23  ;;  %20029 = vmatpush3.bf16.msra.mxu1 %v22084_v24 }
 0xcef   : > { %20008 = vmatprep.subr.bf16.mxu0 %v22085_v25  ;;  %20030 = vmatprep.subr.bf16.mxu1 %v22086_v36 }
 0xcf2   : > { %20009 = vmatpush3.bf16.msra.mxu0 %v22087_v27  ;;  %20031 = vmatpush3.bf16.msra.mxu1 %v22088_v60 }
 0xcf3   : > { %20010 = vmatprep.subr.bf16.mxu0 %v22089_v48  ;;  %20032 = vmatprep.subr.bf16.mxu1 %v22090_v33 }
 0xcf6   : > { %20011 = vmatpush3.bf16.msra.mxu0 %v22091_v61  ;;  %20033 = vmatpush3.bf16.msra.mxu1 %v22092_v41 }
 0xcf9   : > { %17381 = vmatmul.mubr.bf16.vlgmr.msra.gmra.mrb[16].mxu0 %v24483_v10  ;;  %17421 = vmatmul.mubr.bf16.vlgmr.msra.gmra.mrb[16].mxu1 %v24557_v38 }
 0xd8c   : > { %v17097_v40 = vpop.f32.mrb[8].mxu0  ;;  %v17261_v35 = vpop.f32.mrb[8].mxu1 }
 0xd8d   : > { %v20196_v9 = vadd.f32 %v17097_v40, %v12030_v20  ;;  %v20198_v10 = vadd.f32 %v17261_v35, %v12038_v37  ;;  %v17099_v38 = vpop.f32.mrb[9].mxu0  ;;  %v17263_v42 = vpop.f32.mrb[9].mxu1 }
 0xd8e   : > { %v20197_v43 = vadd.f32 %v17099_v38, %v12034_v50  ;;  %v20199_v44 = vadd.f32 %v17263_v42, %v12042_v39  ;;  %v17101_v12 = vpop.f32.mrb[10].mxu0  ;;  %v17265_v28 = vpop.f32.mrb[10].mxu1 }
 0xd8f   : > { %v17102_v34 = vpop.f32.mrb[11].mxu0  ;;  %v17266_v8 = vpop.f32.mrb[11].mxu1 }
 0xd90   : > { %v17479_v49 = vcombine.low %v20196_v9, %v20197_v43  ;;  %v17480_v63 = vcombine.low %v20198_v10, %v20199_v44 }
 0xd92   : > { %v17487_v18 = vrot.slane %v17479_v49, %v24286_v21  ;;  %v17494_v19 = vrot.slane %v17480_v63, %v24286_v21 }
 0xd94   : > { %v17495_v13 = vcombine.low %v17487_v18, %v17494_v19 }
 0xd96   : > { %v17509_v7 = vsub.f32 %v17430_v47, %v17495_v13 }
 0xd98   : > { %17513 = vst [vmem:[%s23137_s23 + $0x10] sm:$0xff] %v17509_v7 }
 0xdac   : > { %v19968_v62 = vpop.f32.mrb[12].mxu0  ;;  %v19990_v22 = vpop.f32.mrb[12].mxu1 }
 0xdad   : > { %v19969_v6 = vpop.f32.mrb[13].mxu0  ;;  %v19991_v57 = vpop.f32.mrb[13].mxu1 }
 0xdae   : > { %v19970_v58 = vadd.f32 %v19969_v6, %v19968_v62  ;;  %v19992_v1 = vadd.f32 %v19991_v57, %v19990_v22  ;;  %v19971_v3 = vpop.f32.mrb[14].mxu0  ;;  %v19993_v32 = vpop.f32.mrb[14].mxu1 }
 0xdaf   : > { %v19972_v45 = vpop.f32.mrb[15].mxu0  ;;  %v19994_v5 = vpop.f32.mrb[15].mxu1 }
 0xdb0   : > { %v17303_v0 = vadd.f32 %v19970_v58, %v12046_v55 }
 0xdb2   : > { %v17343_v31 = vadd.f32 %v19992_v1, %v17303_v0 }
 0xdcc   : > { %v20012_v2 = vpop.f32.mrb[16].mxu0  ;;  %v20034_v52 = vpop.f32.mrb[16].mxu1 }
 0xdcd   : > { %v20013_v53 = vpop.f32.mrb[17].mxu0  ;;  %v20035_v59 = vpop.f32.mrb[17].mxu1 }
 0xdce   : > { %v20014_v14 = vadd.f32 %v20013_v53, %v20012_v2  ;;  %v20036_v29 = vadd.f32 %v20035_v59, %v20034_v52  ;;  %v20015_v56 = vpop.f32.mrb[18].mxu0  ;;  %v20037_v51 = vpop.f32.mrb[18].mxu1 }
 0xdcf   : > { %v20016_v30 = vpop.f32.mrb[19].mxu0  ;;  %v20038_v46 = vpop.f32.mrb[19].mxu1 }
 0xdd0   : > { %v17383_v15 = vadd.f32 %v20014_v14, %v17343_v31 }
 0xdd2   : > { %v17423_v11 = vadd.f32 %v20036_v29, %v17383_v15 }
 0xdd4   : > { %v17502_v16 = vrot.slane %v17423_v11, %v24286_v21 }
 0xdd6   : > { %v17510_v17 = vsub.f32 %v17431_v4, %v17502_v16 }
 0xdd8   : > { %17514 = vst [vmem:[%s23137_s23 + $0x18] sm:$0x3] %v17510_v17 }
 0xdd9 PF: > { %s25397_s28 = sld [smem:[#allocation35_spill]]  ;;  %s19942_s27 = sadd.s32 4294967291, %s22659_s29 }
 0xdda   : > { %p17524_p10 = scmp.gt.s32.totalorder %s19942_s27, 0  ;;  %s17533_s25 = sshll.u32 %s23137_s23, 4  ;;  %s25223_s25 = int_to_ptr.vmem [resolvable:$true] %s17533_s25 }
 0xddb   : > { %s25398_s15 = sld [smem:[#allocation49_spill]]  ;;  %s17516_s13 = scalar_lea.sflag [#allocation5], %s23120_s7 }
 0xddc   : > { %s25422_s27 = smov (!%p17524_p10, %s19942_s27), 0  ;;  %s22382_s0 = scalar_lea.vmem %s25223_s25, 416 }
 0xddd   : > { %s19950_s8 = smul.u32 416, %s25422_s27  ;;  %p22383_p12 = scmp.ne.s32.totalorder %s25223_s25, %s22382_s0 }
 0xdde   : > { %s22547_s29 = smov [#allocation19]  }
 0xddf   : > { %p25399_p2 = scmp.ne.s32.totalorder %s25397_s28, 0  ;;  %s22386_s14 = sshll.u32 %s22547_s29, 4  ;;  %s22387_s14 = int_to_ptr.vmem [resolvable:$false] %s22386_s14 }
 0xde0   : > { %s22388_s10 = scalar_lea.vmem %s22387_s14, 832  ;;  %p22389_p9 = scmp.lt.s32.totalorder %s25223_s25, %s22387_s14 }
 0xde1   : > { %s17531_s30 = scalar_lea.hbm %s25398_s15, %s19950_s8  ;;  %p22384_p3 = pnand %p22383_p12, %p25399_p2 }
 0xde2   : > { %p22390_p8 = scmp.lt.s32.totalorder %s22388_s10, %s22382_s0 }
 0xde3   : > { %p22385_p11 = pneg %p22384_p3 }
 0xde4   : > { %p22391_p13 = por %p22390_p8, %p22389_p9 }
 0xde6   : > { %p22392_p7 = pnand %p22391_p13, %p22385_p11 }
 0xde8   : > { %22395 = shalt.err (!%p22392_p7)
}
 0xde9   : > { %s22396_s16 = scalar_lea.hbm %s17531_s30, 416  ;;  %s22400_s23 = scalar_lea.hbm %s25398_s15, 2080 }
 0xdea   : > { %p22397_p5 = scmp.ne.s32.totalorder %s17531_s30, %s22396_s16  ;;  %p22401_p1 = scmp.lt.u32.totalorder %s17531_s30, %s25398_s15 }
 0xdeb   : > { %p22402_p4 = scmp.lt.u32.totalorder %s22400_s23, %s22396_s16  ;;  %p22404_p12 = scmp.lt.u32.totalorder %s22396_s16, %s17531_s30 }
 0xdec   : > { %p22398_p0 = pnand %p22397_p5, %p25399_p2 }
 0xded   : > { %p22403_p10 = por %p22402_p4, %p22401_p1 }
 0xdee   : > { %p22399_p6 = pneg %p22398_p0 }
 0xdef   : > { %p22405_p3 = por %p22404_p12, %p22403_p10 }
 0xdf1   : > { %p22406_p11 = pnand %p22405_p3, %p22399_p6 }
 0xdf3   : > { %22409 = shalt.err (!%p22406_p11)
}
 0xdf4   : > { %20314 = dma.vmem_to_hbm [thread:$0]  (%p25399_p2), %s25223_s25, 416, %s17531_s30, %s17516_s13  }
 0xdf5 PF: > { %s25400_s20 = sld [smem:[#allocation29_spill]]  ;;  %s25401_s27 = sld [smem:[#allocation37_spill]] }
 0xdf6   : > { %p20365_p9 = scmp.ge.s32.totalorder %s22524_s26, 2 }
 0xdfb   : > { %s17545_s8 = sand.u32 1, %s25400_s20   ;;  %p25402_p8 = scmp.ne.s32.totalorder %s25401_s27, 0 }
 0xdfc   : > { %s17546_s17 = scalar_lea.sflag [#allocation5], %s17545_s8 }
 0xdfd   : > { %p20349_p13 = pnand %p20365_p9, %p25402_p8 }
 0xdff   : > { %22483 = dma.done.wait (!%p20349_p13), %s17546_s17, 416  }
 0xe00   : > { %22485 = vsyncadd (!%p20349_p13), %s17546_s17, 4294966880  ;;  %s25403_s26 = sld [smem:[#allocation32_spill]]  ;;  %s25404_s12 = sld [smem:[#allocation36_spill]] }
 0xe01   : > { %s25405_s28 = sld [smem:[#allocation38_spill]]  ;;  %s25406_s25 = sld [smem:[#allocation30_spill]] }
 0xe02   : > { %s25407_s30 = sld [smem:[#allocation33_spill]]  ;;  %s25408_s17 = smov %s22492_s18 }
 0xe03   : > { %s25409_s18 = smov %s22496_s19  ;;  %s25411_s20 = smov %s22504_s21 }
 0xe04   : > { %s25412_s21 = smov %s22508_s22  ;;  %s25414_s23 = smov %s22516_s24 }
 0xe06   : > { %p30_p2 = scmp.ge.s32.totalorder %s25403_s26, 12   ;;  %s25410_s19 = smov %s25404_s12 }
 0xe07   : > { %s25413_s22 = smov %s25405_s28  ;;  %s25415_s24 = smov %s25406_s25 }
 0xe08   : > { %s25416_s25 = smov %s25407_s30  ;;  %32 = sbr.rel (!%p30_p2) target bundleno = 25 (0x19), region = 184 }
 0xe0f   :  { %17551 = vsyncpa [#allocation4], 1 }
 0xe10   :  { %17553 = vsyncpa [#allocation4 + $0x1], 1 }
 0xe11   :  { %17554 = vsyncpa [#allocation7], 1 }
 0xe12   :  { %17556 = vsyncpa [#allocation7 + $0x1], 1 }
 0xe13   :  { %17557 = vsyncpa [#allocation10], 1 }
 0xe14   :  { %17558 = vsyncpa [#allocation13], 1 }
 0xe15   :  { %17559 = vsyncpa [#allocation16], 1 }
 0xe16   :  { %17560 = vsyncpa [#allocation5], 1 }
 0xe17   :  { %17562 = vsyncpa [#allocation5 + $0x1], 1 }

</bundles_post_ra>
